<compile_context>
chip_gen: v7x
topology: tpu7x:2x2x1
jax: 0.10.0
libtpu: 0.0.40
codegen_flags: <defaults>
</compile_context>

<pallas_src>
import functools
import math

import jax
import jax.numpy as jnp
from jax.experimental import pallas as pl
from jax.experimental.pallas import tpu as pltpu


_SLAB_LANES = 256      # widest packed entry: the fused (64, 192) QKV weight of f_enc1
_W_ROW_ALIGN = 16      # bf16 sublane tile
_B_ROW_ALIGN = 8       # f32 sublane tile


# ----------------------------------------------------------------------------
# host-side parameter packing (fold / fuse weights, build 2 slabs + index maps)
# ----------------------------------------------------------------------------
def _pack_slab(entries, dtype, lanes, row_align):
    """Pack a list of (name, 2-D array) into one (rows, lanes) slab + index map."""
    blocks, index, off = [], {}, 0
    for name, arr in entries:
        r, c = arr.shape
        pr = ((r + row_align - 1) // row_align) * row_align
        blocks.append(jnp.pad(arr.astype(dtype), ((0, pr - r), (0, lanes - c))))
        index[name] = (off, r, c)
        off += pr
    return jnp.concatenate(blocks, axis=0), index


def _build_slabs(params):
    enc = params["enc"]
    # seq-len-1 self-attention degenerates to out_proj(v_proj(x)):
    #   x @ (Wv @ Wo) + (bv @ Wo + bo)
    w_att = jnp.dot(enc["wv"], enc["wo"])
    b_att = jnp.dot(enc["bv"], enc["wo"]) + enc["bo"]

    def fuse_qkv(p):
        return (jnp.concatenate([p["wq"], p["wk"], p["wv"]], axis=1),
                jnp.concatenate([p["bq"], p["bk"], p["bv"]], axis=1))

    f1, f2 = params["f_enc1"], params["f_enc2"]
    f1_wqkv, f1_bqkv = fuse_qkv(f1)
    f2_wqkv, f2_bqkv = fuse_qkv(f2)

    w_entries = [
        ("enc_watt", w_att), ("enc_w1", enc["w1"]), ("enc_w2", enc["w2"]),
        ("f1_wqkv", f1_wqkv), ("f1_wo", f1["wo"]),
        ("f1_w1", f1["w1"]), ("f1_w2", f1["w2"]),
        ("lin1_w", params["f_lin1_w"]),
        ("f2_wqkv", f2_wqkv), ("f2_wo", f2["wo"]),
        ("f2_w1", f2["w1"]), ("f2_w2", f2["w2"]),
        ("lin2_w", params["f_lin2_w"]),
    ]
    b_entries = [
        ("enc_batt", b_att),
        ("enc_ln1_g", enc["ln1_g"]), ("enc_ln1_b", enc["ln1_b"]),
        ("enc_b1", enc["b1"]), ("enc_b2", enc["b2"]),
        ("enc_ln2_g", enc["ln2_g"]), ("enc_ln2_b", enc["ln2_b"]),
        ("f1_bqkv", f1_bqkv), ("f1_bo", f1["bo"]),
        ("f1_ln1_g", f1["ln1_g"]), ("f1_ln1_b", f1["ln1_b"]),
        ("f1_b1", f1["b1"]), ("f1_b2", f1["b2"]),
        ("f1_ln2_g", f1["ln2_g"]), ("f1_ln2_b", f1["ln2_b"]),
        ("lin1_b", params["f_lin1_b"]),
        ("f2_bqkv", f2_bqkv), ("f2_bo", f2["bo"]),
        ("f2_ln1_g", f2["ln1_g"]), ("f2_ln1_b", f2["ln1_b"]),
        ("f2_b1", f2["b1"]), ("f2_b2", f2["b2"]),
        ("f2_ln2_g", f2["ln2_g"]), ("f2_ln2_b", f2["ln2_b"]),
        ("lin2_b", params["f_lin2_b"]),
    ]
    w_slab, w_idx = _pack_slab(w_entries, jnp.bfloat16, _SLAB_LANES, _W_ROW_ALIGN)
    b_slab, b_idx = _pack_slab(b_entries, jnp.float32, _SLAB_LANES, _B_ROW_ALIGN)
    return w_slab, w_idx, b_slab, b_idx


# ----------------------------------------------------------------------------
# in-kernel building blocks
# ----------------------------------------------------------------------------
def _layer_norm(x, g, b, eps=1e-5):
    mu = jnp.mean(x, axis=-1, keepdims=True)
    xc = x - mu
    var = jnp.mean(xc * xc, axis=-1, keepdims=True)
    return xc * jax.lax.rsqrt(var + eps) * g + b


def _mm(x, w_bf16):
    """bf16 MXU matmul with f32 accumulation (weight already stored as bf16)."""
    return jnp.dot(x.astype(jnp.bfloat16), w_bf16,
                   preferred_element_type=jnp.float32)


def _encoder_layer_deg(x, W, B):
    """Post-norm TransformerEncoderLayer, sequence length 1 (attention folded)."""
    attn = _mm(x, W("enc_watt")) + B("enc_batt")
    h1 = _layer_norm(x + attn, B("enc_ln1_g"), B("enc_ln1_b"))
    f = jnp.maximum(_mm(h1, W("enc_w1")) + B("enc_b1"), 0.0)   # ReLU FFN
    f = _mm(f, W("enc_w2")) + B("enc_b2")
    return _layer_norm(h1 + f, B("enc_ln2_g"), B("enc_ln2_b"))


def _encoder_layer_full(x, W, B, pre, num_heads):
    """Post-norm TransformerEncoderLayer on an unbatched (S, E) sequence."""
    S, E = x.shape
    dh = E // num_heads
    scale = 1.0 / math.sqrt(dh)
    bf16 = jnp.bfloat16

    # fused QKV projection: one matmul instead of three
    qkv = _mm(x, W(pre + "wqkv")) + B(pre + "bqkv")            # (S, 3E) f32
    q = qkv[:, 0:E]
    k = qkv[:, E:2 * E]
    v = qkv[:, 2 * E:3 * E]
    kb = k.astype(bf16)

    lane = jax.lax.broadcasted_iota(jnp.int32, (1, E), 1)      # hoisted out of head loop
    attn = None
    for h in range(num_heads):
        # lane mask instead of lane slicing: masked lanes contribute exact zeros,
        # so full-width MXU matmuls reproduce per-head attention with no slices.
        mh = ((lane >= h * dh) & (lane < (h + 1) * dh)).astype(jnp.float32)
        qh = (q * (mh * scale)).astype(bf16)
        s = jax.lax.dot_general(qh, kb, (((1,), (1,)), ((), ())),
                                preferred_element_type=jnp.float32)
        s = s - jnp.max(s, axis=-1, keepdims=True)
        p = jnp.exp(s)
        p = p / jnp.sum(p, axis=-1, keepdims=True)             # exact division
        o = jnp.dot(p.astype(bf16), (v * mh).astype(bf16),
                    preferred_element_type=jnp.float32)
        attn = o if attn is None else attn + o

    attn = _mm(attn, W(pre + "wo")) + B(pre + "bo")
    h1 = _layer_norm(x + attn, B(pre + "ln1_g"), B(pre + "ln1_b"))
    f = jnp.maximum(_mm(h1, W(pre + "w1")) + B(pre + "b1"), 0.0)
    f = _mm(f, W(pre + "w2")) + B(pre + "b2")
    return _layer_norm(h1 + f, B(pre + "ln2_g"), B(pre + "ln2_b"))


# ----------------------------------------------------------------------------
# fused kernel
# ----------------------------------------------------------------------------
def _tgt_fused_kernel(*refs, w_idx, b_idx, heads_f, eps, has_custom_mask):
    if has_custom_mask:
        x_ref, w_ref, b_ref, mask_ref, values_ref, loss_ref = refs
    else:
        x_ref, w_ref, b_ref, values_ref, loss_ref = refs
        mask_ref = None

    f32, bf16 = jnp.float32, jnp.bfloat16

    def W(name):                      # static slice out of the packed bf16 weight slab
        off, r, c = w_idx[name]
        return w_ref[off:off + r, 0:c]

    def B(name):                      # static slice out of the packed f32 bias/LN slab
        off, r, c = b_idx[name]
        return b_ref[off:off + 1, 0:c]

    x = x_ref[...]                                             # (L, d) f32
    L, d = x.shape
    S = L * L
    L_f = f32(L)

    # ---- self.transformer : length-1 sequence -> degenerate self-attention ----
    vecs = _encoder_layer_deg(x, W, B)                         # (L, d)

    # ---- rel[i*L+j] = [vecs[i] | vecs[j]]  (iota index math + 0/1 selector matmuls) ----
    pair = jax.lax.broadcasted_iota(jnp.int32, (S, L), 0).astype(f32)   # flat index s
    node = jax.lax.broadcasted_iota(jnp.int32, (S, L), 1).astype(f32)   # node index
    i_f = jnp.floor(pair / L_f)                                # s // L  (exact for small ints)
    j_f = pair - i_f * L_f                                     # s %  L
    sel_i = (i_f == node)                                      # (S, L)
    sel_j = (j_f == node)                                      # (S, L)
    vecs_bf = vecs.astype(bf16)
    rel = jnp.concatenate(
        [jnp.dot(sel_i.astype(bf16), vecs_bf, preferred_element_type=f32),
         jnp.dot(sel_j.astype(bf16), vecs_bf, preferred_element_type=f32)],
        axis=-1)                                               # (S, 2d)

    # ---- self.f : enc(2d) -> Linear(2d,16) -> enc(16) -> Linear(16,1) ----
    h = _encoder_layer_full(rel, W, B, "f1_", heads_f)
    h = _mm(h, W("lin1_w")) + B("lin1_b")
    h = _encoder_layer_full(h, W, B, "f2_", heads_f)
    z = jnp.dot(h.astype(bf16), W("lin2_w"),
                preferred_element_type=f32) + B("lin2_b")      # (S, 1)

    # ---- values[i, j] = z[i*L + j] via a 0/1 gather matmul (no (S,1)->(L,L) reshape)
    row = jax.lax.broadcasted_iota(jnp.int32, (L, S), 0).astype(f32)
    col = jax.lax.broadcasted_iota(jnp.int32, (L, S), 1).astype(f32)
    gather = (row == jnp.floor(col / L_f)).astype(bf16)        # (L, S): row i picks s//L == i
    z_cols = jnp.where(sel_j, z, 0.0).astype(bf16)             # (S, L): z[s] sits in col s%L
    values = jnp.dot(gather, z_cols, preferred_element_type=f32)   # (L, L)

    # ---- masked softmax over dim=1, static action mask baked from iota ----
    ri = jax.lax.broadcasted_iota(jnp.int32, (L, L), 0)
    ci = jax.lax.broadcasted_iota(jnp.int32, (L, L), 1)
    allowed = (((ri >= 2) & (ri <= L - 2) & (ci <= L - 3))
               | ((ri == 1) & (ci == 0))
               | ((ri == L - 1) & (ci == L - 2)))
    allowed = allowed & (ri != ci)
    if has_custom_mask:
        allowed = allowed & (mask_ref[...] > 0.5)
    masked = jnp.where(allowed, values, f32(-1e10))            # matches torch's -1e10
    m = jnp.max(masked, axis=1, keepdims=True)
    e = jnp.exp(masked - m)
    probs = e / jnp.sum(e, axis=1, keepdims=True)
    values_ref[...] = probs + f32(eps)

    # ---- contrastive loss: sum_i CE(exp(0.9) * normalize(vecs) @ normalize(vecs).T, i)
    nrm = jnp.sqrt(jnp.sum(vecs * vecs, axis=-1, keepdims=True))
    vn = vecs / jnp.maximum(nrm, f32(1e-12))                   # F.normalize(p=2, eps=1e-12)
    g = jax.lax.dot_general(vn, vn, (((1,), (1,)), ((), ())),
                            preferred_element_type=f32) * f32(math.exp(0.9))
    gm = jnp.max(g, axis=-1, keepdims=True)
    lse = jnp.log(jnp.sum(jnp.exp(g - gm), axis=-1, keepdims=True)) + gm
    diag = jnp.sum(jnp.where(ri == ci, g, 0.0), axis=-1, keepdims=True)
    loss_ref[...] = jnp.sum(lse - diag, keepdims=True)         # mean CE * L == sum of CE


# ----------------------------------------------------------------------------
# TGT forward
# ----------------------------------------------------------------------------
def tgt_forward(params, vectors_in, eps=1e-6, beta=1.0, custom_mask=None):
    del beta  # only used by the undefined task_graph_maximum_likelihood_loss
    x = jnp.concatenate(
        [params["emb_start"], vectors_in, params["emb_end"]], axis=0
    ).astype(jnp.float32)                                      # (L, d)
    L = x.shape[0]

    w_slab, w_idx, b_slab, b_idx = _build_slabs(params)

    args = [x, w_slab, b_slab]
    has_custom = custom_mask is not None
    if has_custom:
        args.append(jnp.asarray(custom_mask, jnp.float32))

    kern = functools.partial(_tgt_fused_kernel, w_idx=w_idx, b_idx=b_idx,
                             heads_f=2, eps=float(eps), has_custom_mask=has_custom)
    values, loss = pl.pallas_call(
        kern,
        out_shape=(jax.ShapeDtypeStruct((L, L), jnp.float32),
                   jax.ShapeDtypeStruct((1, 1), jnp.float32)),
        compiler_params=pltpu.CompilerParams(vmem_limit_bytes=32 * 1024 * 1024),
    )(*args)

    # TODO(synk): task_graph_maximum_likelihood_loss is not defined in the provided
    # source; the adjacency (softmax(values) + eps) is returned in its place.
    return values, loss[0, 0]


# ----------------------------------------------------------------------------
# deterministic synthetic parameter init
# ----------------------------------------------------------------------------
def init_encoder_layer_params(key, E, ff, scale=0.05):
    ks = jax.random.split(key, 6)
    z = lambda s: jnp.zeros(s, jnp.float32)
    return dict(
        wq=scale * jax.random.normal(ks[0], (E, E), jnp.float32),
        wk=scale * jax.random.normal(ks[1], (E, E), jnp.float32),
        wv=scale * jax.random.normal(ks[2], (E, E), jnp.float32),
        bq=z((1, E)), bk=z((1, E)), bv=z((1, E)),
        wo=scale * jax.random.normal(ks[3], (E, E), jnp.float32),
        bo=z((1, E)),
        ln1_g=jnp.ones((1, E), jnp.float32), ln1_b=z((1, E)),
        w1=scale * jax.random.normal(ks[4], (E, ff), jnp.float32), b1=z((1, ff)),
        w2=scale * jax.random.normal(ks[5], (ff, E), jnp.float32), b2=z((1, E)),
        ln2_g=jnp.ones((1, E), jnp.float32), ln2_b=z((1, E)),
    )


def init_tgt_params(key, d_model, d_ff, f_ff, f_hidden=16, scale=0.05):
    ks = jax.random.split(key, 8)
    z = lambda s: jnp.zeros(s, jnp.float32)
    return dict(
        emb_start=scale * jax.random.normal(ks[0], (2, d_model), jnp.float32),
        emb_end=scale * jax.random.normal(ks[1], (2, d_model), jnp.float32),
        enc=init_encoder_layer_params(ks[2], d_model, d_ff, scale),
        f_enc1=init_encoder_layer_params(ks[3], 2 * d_model, f_ff, scale),
        f_lin1_w=scale * jax.random.normal(ks[4], (2 * d_model, f_hidden), jnp.float32),
        f_lin1_b=z((1, f_hidden)),
        f_enc2=init_encoder_layer_params(ks[5], f_hidden, f_ff, scale),
        f_lin2_w=scale * jax.random.normal(ks[6], (f_hidden, 1), jnp.float32),
        f_lin2_b=z((1, 1)),
    )


# ----------------------------------------------------------------------------
# main
# ----------------------------------------------------------------------------
if __name__ == "__main__":
    # small shapes consistent with the module: d_model=32, d_ff=32, f-ff=128
    d_model, d_ff, f_ff = 32, 32, 128
    N = 8                                   # number of input task vectors -> L = N + 4

    key = jax.random.PRNGKey(0)
    kp, kx = jax.random.split(key)
    params = init_tgt_params(kp, d_model, d_ff, f_ff)
    vectors = jax.random.normal(kx, (N, d_model), jnp.float32)

    fwd = jax.jit(tgt_forward)
    adjacency, loss = fwd(params, vectors)
    jax.block_until_ready((adjacency, loss))

    assert adjacency.shape == (N + 4, N + 4)
    assert loss.shape == ()
    assert bool(jnp.all(jnp.isfinite(adjacency))) and bool(jnp.isfinite(loss))
    print("KERNEL_OK")
</pallas_src>

<mosaic_0001>
module attributes {stable_mosaic.version = 11 : i64} {
  func.func @_tgt_fused_kernel(%arg0: memref<12x32xf32, #tpu.memory_space<vmem>>, %arg1: memref<672x256xbf16, #tpu.memory_space<vmem>>, %arg2: memref<200x256xf32, #tpu.memory_space<vmem>>, %arg3: memref<12x12xf32, #tpu.memory_space<vmem>>, %arg4: memref<1x1xf32, #tpu.memory_space<vmem>>) attributes {dimension_semantics = [], scalar_prefetch = 0 : i64, scratch_operands = 0 : i64, tpu.core_type = #tpu.core_type<tc>} {
    %c0 = arith.constant 0 : index
    %c0_0 = arith.constant 0 : index
    %0 = vector.load %arg0[%c0, %c0_0] : memref<12x32xf32, #tpu.memory_space<vmem>>, vector<12x32xf32>
    %c0_1 = arith.constant 0 : index
    %c0_2 = arith.constant 0 : index
    %1 = vector.load %arg1[%c0_1, %c0_2] : memref<672x256xbf16, #tpu.memory_space<vmem>>, vector<32x32xbf16>
    %2 = arith.truncf %0 : vector<12x32xf32> to vector<12x32xbf16>
    %cst = arith.constant dense<0.000000e+00> : vector<12x32xf32>
    %3 = tpu.matmul %2, %1, %cst {dimension_numbers = #tpu.dot_dimension_numbers<[1], [0], [0], [1], [0, 0, 1, 1], [], []>} : vector<12x32xbf16>, vector<32x32xbf16>, vector<12x32xf32> -> vector<12x32xf32>
    %c0_3 = arith.constant 0 : index
    %c0_4 = arith.constant 0 : index
    %4 = vector.load %arg2[%c0_3, %c0_4] : memref<200x256xf32, #tpu.memory_space<vmem>>, vector<1x32xf32>
    %5 = vector.broadcast %4 : vector<1x32xf32> to vector<12x32xf32>
    %6 = arith.addf %3, %5 : vector<12x32xf32>
    %7 = arith.addf %0, %6 : vector<12x32xf32>
    %c8 = arith.constant 8 : index
    %c0_5 = arith.constant 0 : index
    %8 = vector.load %arg2[%c8, %c0_5] : memref<200x256xf32, #tpu.memory_space<vmem>>, vector<1x32xf32>
    %c16 = arith.constant 16 : index
    %c0_6 = arith.constant 0 : index
    %9 = vector.load %arg2[%c16, %c0_6] : memref<200x256xf32, #tpu.memory_space<vmem>>, vector<1x32xf32>
    %cst_7 = arith.constant dense<0.000000e+00> : vector<12xf32>
    %10 = vector.multi_reduction <add>, %7, %cst_7 [1] : vector<12x32xf32> to vector<12xf32>
    %11 = vector.shape_cast %10 : vector<12xf32> to vector<12x1xf32>
    %cst_8 = arith.constant 3.200000e+01 : f32
    %12 = vector.broadcast %cst_8 : f32 to vector<12x1xf32>
    %13 = arith.divf %11, %12 : vector<12x1xf32>
    %14 = vector.broadcast %13 : vector<12x1xf32> to vector<12x32xf32>
    %15 = arith.subf %7, %14 : vector<12x32xf32>
    %16 = arith.mulf %15, %15 : vector<12x32xf32>
    %cst_9 = arith.constant dense<0.000000e+00> : vector<12xf32>
    %17 = vector.multi_reduction <add>, %16, %cst_9 [1] : vector<12x32xf32> to vector<12xf32>
    %18 = vector.shape_cast %17 : vector<12xf32> to vector<12x1xf32>
    %cst_10 = arith.constant 3.200000e+01 : f32
    %19 = vector.broadcast %cst_10 : f32 to vector<12x1xf32>
    %20 = arith.divf %18, %19 : vector<12x1xf32>
    %cst_11 = arith.constant 9.99999974E-6 : f32
    %21 = vector.broadcast %cst_11 : f32 to vector<12x1xf32>
    %22 = arith.addf %20, %21 : vector<12x1xf32>
    %23 = math.rsqrt %22 : vector<12x1xf32>
    %24 = vector.broadcast %23 : vector<12x1xf32> to vector<12x32xf32>
    %25 = arith.mulf %15, %24 : vector<12x32xf32>
    %26 = vector.broadcast %8 : vector<1x32xf32> to vector<12x32xf32>
    %27 = arith.mulf %25, %26 : vector<12x32xf32>
    %28 = vector.broadcast %9 : vector<1x32xf32> to vector<12x32xf32>
    %29 = arith.addf %27, %28 : vector<12x32xf32>
    %c32 = arith.constant 32 : index
    %c0_12 = arith.constant 0 : index
    %30 = vector.load %arg1[%c32, %c0_12] : memref<672x256xbf16, #tpu.memory_space<vmem>>, vector<32x32xbf16>
    %31 = arith.truncf %29 : vector<12x32xf32> to vector<12x32xbf16>
    %cst_13 = arith.constant dense<0.000000e+00> : vector<12x32xf32>
    %32 = tpu.matmul %31, %30, %cst_13 {dimension_numbers = #tpu.dot_dimension_numbers<[1], [0], [0], [1], [0, 0, 1, 1], [], []>} : vector<12x32xbf16>, vector<32x32xbf16>, vector<12x32xf32> -> vector<12x32xf32>
    %c24 = arith.constant 24 : index
    %c0_14 = arith.constant 0 : index
    %33 = vector.load %arg2[%c24, %c0_14] : memref<200x256xf32, #tpu.memory_space<vmem>>, vector<1x32xf32>
    %34 = vector.broadcast %33 : vector<1x32xf32> to vector<12x32xf32>
    %35 = arith.addf %32, %34 : vector<12x32xf32>
    %cst_15 = arith.constant 0.000000e+00 : f32
    %36 = vector.broadcast %cst_15 : f32 to vector<12x32xf32>
    %37 = arith.maximumf %35, %36 : vector<12x32xf32>
    %c64 = arith.constant 64 : index
    %c0_16 = arith.constant 0 : index
    %38 = vector.load %arg1[%c64, %c0_16] : memref<672x256xbf16, #tpu.memory_space<vmem>>, vector<32x32xbf16>
    %39 = arith.truncf %37 : vector<12x32xf32> to vector<12x32xbf16>
    %cst_17 = arith.constant dense<0.000000e+00> : vector<12x32xf32>
    %40 = tpu.matmul %39, %38, %cst_17 {dimension_numbers = #tpu.dot_dimension_numbers<[1], [0], [0], [1], [0, 0, 1, 1], [], []>} : vector<12x32xbf16>, vector<32x32xbf16>, vector<12x32xf32> -> vector<12x32xf32>
    %c32_18 = arith.constant 32 : index
    %c0_19 = arith.constant 0 : index
    %41 = vector.load %arg2[%c32_18, %c0_19] : memref<200x256xf32, #tpu.memory_space<vmem>>, vector<1x32xf32>
    %42 = vector.broadcast %41 : vector<1x32xf32> to vector<12x32xf32>
    %43 = arith.addf %40, %42 : vector<12x32xf32>
    %44 = arith.addf %29, %43 : vector<12x32xf32>
    %c40 = arith.constant 40 : index
    %c0_20 = arith.constant 0 : index
    %45 = vector.load %arg2[%c40, %c0_20] : memref<200x256xf32, #tpu.memory_space<vmem>>, vector<1x32xf32>
    %c48 = arith.constant 48 : index
    %c0_21 = arith.constant 0 : index
    %46 = vector.load %arg2[%c48, %c0_21] : memref<200x256xf32, #tpu.memory_space<vmem>>, vector<1x32xf32>
    %cst_22 = arith.constant dense<0.000000e+00> : vector<12xf32>
    %47 = vector.multi_reduction <add>, %44, %cst_22 [1] : vector<12x32xf32> to vector<12xf32>
    %48 = vector.shape_cast %47 : vector<12xf32> to vector<12x1xf32>
    %cst_23 = arith.constant 3.200000e+01 : f32
    %49 = vector.broadcast %cst_23 : f32 to vector<12x1xf32>
    %50 = arith.divf %48, %49 : vector<12x1xf32>
    %51 = vector.broadcast %50 : vector<12x1xf32> to vector<12x32xf32>
    %52 = arith.subf %44, %51 : vector<12x32xf32>
    %53 = arith.mulf %52, %52 : vector<12x32xf32>
    %cst_24 = arith.constant dense<0.000000e+00> : vector<12xf32>
    %54 = vector.multi_reduction <add>, %53, %cst_24 [1] : vector<12x32xf32> to vector<12xf32>
    %55 = vector.shape_cast %54 : vector<12xf32> to vector<12x1xf32>
    %cst_25 = arith.constant 3.200000e+01 : f32
    %56 = vector.broadcast %cst_25 : f32 to vector<12x1xf32>
    %57 = arith.divf %55, %56 : vector<12x1xf32>
    %cst_26 = arith.constant 9.99999974E-6 : f32
    %58 = vector.broadcast %cst_26 : f32 to vector<12x1xf32>
    %59 = arith.addf %57, %58 : vector<12x1xf32>
    %60 = math.rsqrt %59 : vector<12x1xf32>
    %61 = vector.broadcast %60 : vector<12x1xf32> to vector<12x32xf32>
    %62 = arith.mulf %52, %61 : vector<12x32xf32>
    %63 = vector.broadcast %45 : vector<1x32xf32> to vector<12x32xf32>
    %64 = arith.mulf %62, %63 : vector<12x32xf32>
    %65 = vector.broadcast %46 : vector<1x32xf32> to vector<12x32xf32>
    %66 = arith.addf %64, %65 : vector<12x32xf32>
    %67 = tpu.iota {dimensions = array<i32: 0>} : vector<144x12xi32>
    %68 = arith.sitofp %67 : vector<144x12xi32> to vector<144x12xf32>
    %69 = tpu.iota {dimensions = array<i32: 1>} : vector<144x12xi32>
    %70 = arith.sitofp %69 : vector<144x12xi32> to vector<144x12xf32>
    %cst_27 = arith.constant 1.200000e+01 : f32
    %71 = vector.broadcast %cst_27 : f32 to vector<144x12xf32>
    %72 = arith.divf %68, %71 : vector<144x12xf32>
    %73 = math.floor %72 : vector<144x12xf32>
    %cst_28 = arith.constant 1.200000e+01 : f32
    %74 = vector.broadcast %cst_28 : f32 to vector<144x12xf32>
    %75 = arith.mulf %73, %74 : vector<144x12xf32>
    %76 = arith.subf %68, %75 : vector<144x12xf32>
    %77 = arith.cmpf oeq, %73, %70 : vector<144x12xf32>
    %78 = arith.cmpf oeq, %76, %70 : vector<144x12xf32>
    %79 = arith.truncf %66 : vector<12x32xf32> to vector<12x32xbf16>
    %80 = arith.extui %77 : vector<144x12xi1> to vector<144x12xi32>
    %81 = arith.sitofp %80 : vector<144x12xi32> to vector<144x12xf32>
    %82 = arith.truncf %81 : vector<144x12xf32> to vector<144x12xbf16>
    %cst_29 = arith.constant dense<0.000000e+00> : vector<144x32xf32>
    %83 = tpu.matmul %82, %79, %cst_29 {dimension_numbers = #tpu.dot_dimension_numbers<[1], [0], [0], [1], [0, 0, 1, 1], [], []>} : vector<144x12xbf16>, vector<12x32xbf16>, vector<144x32xf32> -> vector<144x32xf32>
    %84 = arith.extui %78 : vector<144x12xi1> to vector<144x12xi32>
    %85 = arith.sitofp %84 : vector<144x12xi32> to vector<144x12xf32>
    %86 = arith.truncf %85 : vector<144x12xf32> to vector<144x12xbf16>
    %cst_30 = arith.constant dense<0.000000e+00> : vector<144x32xf32>
    %87 = tpu.matmul %86, %79, %cst_30 {dimension_numbers = #tpu.dot_dimension_numbers<[1], [0], [0], [1], [0, 0, 1, 1], [], []>} : vector<144x12xbf16>, vector<12x32xbf16>, vector<144x32xf32> -> vector<144x32xf32>
    %88 = tpu.concatenate %83, %87 in 1 : vector<144x32xf32>, vector<144x32xf32> -> vector<144x64xf32>
    %c96 = arith.constant 96 : index
    %c0_31 = arith.constant 0 : index
    %89 = vector.load %arg1[%c96, %c0_31] : memref<672x256xbf16, #tpu.memory_space<vmem>>, vector<64x192xbf16>
    %90 = arith.truncf %88 : vector<144x64xf32> to vector<144x64xbf16>
    %cst_32 = arith.constant dense<0.000000e+00> : vector<144x192xf32>
    %91 = tpu.matmul %90, %89, %cst_32 {dimension_numbers = #tpu.dot_dimension_numbers<[1], [0], [0], [1], [0, 0, 1, 1], [], []>} : vector<144x64xbf16>, vector<64x192xbf16>, vector<144x192xf32> -> vector<144x192xf32>
    %c56 = arith.constant 56 : index
    %c0_33 = arith.constant 0 : index
    %92 = vector.load %arg2[%c56, %c0_33] : memref<200x256xf32, #tpu.memory_space<vmem>>, vector<1x192xf32>
    %93 = vector.broadcast %92 : vector<1x192xf32> to vector<144x192xf32>
    %94 = arith.addf %91, %93 : vector<144x192xf32>
    %95 = vector.extract_strided_slice %94 {offsets = [0, 0], sizes = [144, 64], strides = [1, 1]} : vector<144x192xf32> to vector<144x64xf32>
    %96 = vector.extract_strided_slice %94 {offsets = [0, 64], sizes = [144, 64], strides = [1, 1]} : vector<144x192xf32> to vector<144x64xf32>
    %97 = vector.extract_strided_slice %94 {offsets = [0, 128], sizes = [144, 64], strides = [1, 1]} : vector<144x192xf32> to vector<144x64xf32>
    %98 = arith.truncf %96 : vector<144x64xf32> to vector<144x64xbf16>
    %99 = tpu.iota {dimensions = array<i32: 1>} : vector<1x64xi32>
    %c0_i32 = arith.constant 0 : i32
    %100 = vector.broadcast %c0_i32 : i32 to vector<1x64xi32>
    %101 = arith.cmpi sge, %99, %100 : vector<1x64xi32>
    %c32_i32 = arith.constant 32 : i32
    %102 = vector.broadcast %c32_i32 : i32 to vector<1x64xi32>
    %103 = arith.cmpi slt, %99, %102 : vector<1x64xi32>
    %104 = arith.andi %101, %103 : vector<1x64xi1>
    %105 = arith.extui %104 : vector<1x64xi1> to vector<1x64xi32>
    %106 = arith.sitofp %105 : vector<1x64xi32> to vector<1x64xf32>
    %cst_34 = arith.constant 0.176776692 : f32
    %107 = vector.broadcast %cst_34 : f32 to vector<1x64xf32>
    %108 = arith.mulf %106, %107 : vector<1x64xf32>
    %109 = vector.broadcast %108 : vector<1x64xf32> to vector<144x64xf32>
    %110 = arith.mulf %95, %109 : vector<144x64xf32>
    %111 = arith.truncf %110 : vector<144x64xf32> to vector<144x64xbf16>
    %cst_35 = arith.constant dense<0.000000e+00> : vector<144x144xf32>
    %112 = tpu.matmul %111, %98, %cst_35 {dimension_numbers = #tpu.dot_dimension_numbers<[1], [1], [0], [0], [0, 0, 1, 0], [], []>} : vector<144x64xbf16>, vector<144x64xbf16>, vector<144x144xf32> -> vector<144x144xf32>
    %cst_36 = arith.constant dense<0xFF800000> : vector<144xf32>
    %113 = vector.multi_reduction <maximumf>, %112, %cst_36 [1] : vector<144x144xf32> to vector<144xf32>
    %114 = vector.shape_cast %113 : vector<144xf32> to vector<144x1xf32>
    %115 = vector.broadcast %114 : vector<144x1xf32> to vector<144x144xf32>
    %116 = arith.subf %112, %115 : vector<144x144xf32>
    %117 = math.exp %116 : vector<144x144xf32>
    %cst_37 = arith.constant dense<0.000000e+00> : vector<144xf32>
    %118 = vector.multi_reduction <add>, %117, %cst_37 [1] : vector<144x144xf32> to vector<144xf32>
    %119 = vector.shape_cast %118 : vector<144xf32> to vector<144x1xf32>
    %120 = vector.broadcast %119 : vector<144x1xf32> to vector<144x144xf32>
    %121 = arith.divf %117, %120 : vector<144x144xf32>
    %122 = arith.truncf %121 : vector<144x144xf32> to vector<144x144xbf16>
    %123 = vector.broadcast %106 : vector<1x64xf32> to vector<144x64xf32>
    %124 = arith.mulf %97, %123 : vector<144x64xf32>
    %125 = arith.truncf %124 : vector<144x64xf32> to vector<144x64xbf16>
    %cst_38 = arith.constant dense<0.000000e+00> : vector<144x64xf32>
    %126 = tpu.matmul %122, %125, %cst_38 {dimension_numbers = #tpu.dot_dimension_numbers<[1], [0], [0], [1], [0, 0, 1, 1], [], []>} : vector<144x144xbf16>, vector<144x64xbf16>, vector<144x64xf32> -> vector<144x64xf32>
    %c32_i32_39 = arith.constant 32 : i32
    %127 = vector.broadcast %c32_i32_39 : i32 to vector<1x64xi32>
    %128 = arith.cmpi sge, %99, %127 : vector<1x64xi32>
    %c64_i32 = arith.constant 64 : i32
    %129 = vector.broadcast %c64_i32 : i32 to vector<1x64xi32>
    %130 = arith.cmpi slt, %99, %129 : vector<1x64xi32>
    %131 = arith.andi %128, %130 : vector<1x64xi1>
    %132 = arith.extui %131 : vector<1x64xi1> to vector<1x64xi32>
    %133 = arith.sitofp %132 : vector<1x64xi32> to vector<1x64xf32>
    %cst_40 = arith.constant 0.176776692 : f32
    %134 = vector.broadcast %cst_40 : f32 to vector<1x64xf32>
    %135 = arith.mulf %133, %134 : vector<1x64xf32>
    %136 = vector.broadcast %135 : vector<1x64xf32> to vector<144x64xf32>
    %137 = arith.mulf %95, %136 : vector<144x64xf32>
    %138 = arith.truncf %137 : vector<144x64xf32> to vector<144x64xbf16>
    %cst_41 = arith.constant dense<0.000000e+00> : vector<144x144xf32>
    %139 = tpu.matmul %138, %98, %cst_41 {dimension_numbers = #tpu.dot_dimension_numbers<[1], [1], [0], [0], [0, 0, 1, 0], [], []>} : vector<144x64xbf16>, vector<144x64xbf16>, vector<144x144xf32> -> vector<144x144xf32>
    %cst_42 = arith.constant dense<0xFF800000> : vector<144xf32>
    %140 = vector.multi_reduction <maximumf>, %139, %cst_42 [1] : vector<144x144xf32> to vector<144xf32>
    %141 = vector.shape_cast %140 : vector<144xf32> to vector<144x1xf32>
    %142 = vector.broadcast %141 : vector<144x1xf32> to vector<144x144xf32>
    %143 = arith.subf %139, %142 : vector<144x144xf32>
    %144 = math.exp %143 : vector<144x144xf32>
    %cst_43 = arith.constant dense<0.000000e+00> : vector<144xf32>
    %145 = vector.multi_reduction <add>, %144, %cst_43 [1] : vector<144x144xf32> to vector<144xf32>
    %146 = vector.shape_cast %145 : vector<144xf32> to vector<144x1xf32>
    %147 = vector.broadcast %146 : vector<144x1xf32> to vector<144x144xf32>
    %148 = arith.divf %144, %147 : vector<144x144xf32>
    %149 = arith.truncf %148 : vector<144x144xf32> to vector<144x144xbf16>
    %150 = vector.broadcast %133 : vector<1x64xf32> to vector<144x64xf32>
    %151 = arith.mulf %97, %150 : vector<144x64xf32>
    %152 = arith.truncf %151 : vector<144x64xf32> to vector<144x64xbf16>
    %cst_44 = arith.constant dense<0.000000e+00> : vector<144x64xf32>
    %153 = tpu.matmul %149, %152, %cst_44 {dimension_numbers = #tpu.dot_dimension_numbers<[1], [0], [0], [1], [0, 0, 1, 1], [], []>} : vector<144x144xbf16>, vector<144x64xbf16>, vector<144x64xf32> -> vector<144x64xf32>
    %154 = arith.addf %126, %153 : vector<144x64xf32>
    %c160 = arith.constant 160 : index
    %c0_45 = arith.constant 0 : index
    %155 = vector.load %arg1[%c160, %c0_45] : memref<672x256xbf16, #tpu.memory_space<vmem>>, vector<64x64xbf16>
    %156 = arith.truncf %154 : vector<144x64xf32> to vector<144x64xbf16>
    %cst_46 = arith.constant dense<0.000000e+00> : vector<144x64xf32>
    %157 = tpu.matmul %156, %155, %cst_46 {dimension_numbers = #tpu.dot_dimension_numbers<[1], [0], [0], [1], [0, 0, 1, 1], [], []>} : vector<144x64xbf16>, vector<64x64xbf16>, vector<144x64xf32> -> vector<144x64xf32>
    %c64_47 = arith.constant 64 : index
    %c0_48 = arith.constant 0 : index
    %158 = vector.load %arg2[%c64_47, %c0_48] : memref<200x256xf32, #tpu.memory_space<vmem>>, vector<1x64xf32>
    %159 = vector.broadcast %158 : vector<1x64xf32> to vector<144x64xf32>
    %160 = arith.addf %157, %159 : vector<144x64xf32>
    %161 = arith.addf %88, %160 : vector<144x64xf32>
    %c72 = arith.constant 72 : index
    %c0_49 = arith.constant 0 : index
    %162 = vector.load %arg2[%c72, %c0_49] : memref<200x256xf32, #tpu.memory_space<vmem>>, vector<1x64xf32>
    %c80 = arith.constant 80 : index
    %c0_50 = arith.constant 0 : index
    %163 = vector.load %arg2[%c80, %c0_50] : memref<200x256xf32, #tpu.memory_space<vmem>>, vector<1x64xf32>
    %cst_51 = arith.constant dense<0.000000e+00> : vector<144xf32>
    %164 = vector.multi_reduction <add>, %161, %cst_51 [1] : vector<144x64xf32> to vector<144xf32>
    %165 = vector.shape_cast %164 : vector<144xf32> to vector<144x1xf32>
    %cst_52 = arith.constant 6.400000e+01 : f32
    %166 = vector.broadcast %cst_52 : f32 to vector<144x1xf32>
    %167 = arith.divf %165, %166 : vector<144x1xf32>
    %168 = vector.broadcast %167 : vector<144x1xf32> to vector<144x64xf32>
    %169 = arith.subf %161, %168 : vector<144x64xf32>
    %170 = arith.mulf %169, %169 : vector<144x64xf32>
    %cst_53 = arith.constant dense<0.000000e+00> : vector<144xf32>
    %171 = vector.multi_reduction <add>, %170, %cst_53 [1] : vector<144x64xf32> to vector<144xf32>
    %172 = vector.shape_cast %171 : vector<144xf32> to vector<144x1xf32>
    %cst_54 = arith.constant 6.400000e+01 : f32
    %173 = vector.broadcast %cst_54 : f32 to vector<144x1xf32>
    %174 = arith.divf %172, %173 : vector<144x1xf32>
    %cst_55 = arith.constant 9.99999974E-6 : f32
    %175 = vector.broadcast %cst_55 : f32 to vector<144x1xf32>
    %176 = arith.addf %174, %175 : vector<144x1xf32>
    %177 = math.rsqrt %176 : vector<144x1xf32>
    %178 = vector.broadcast %177 : vector<144x1xf32> to vector<144x64xf32>
    %179 = arith.mulf %169, %178 : vector<144x64xf32>
    %180 = vector.broadcast %162 : vector<1x64xf32> to vector<144x64xf32>
    %181 = arith.mulf %179, %180 : vector<144x64xf32>
    %182 = vector.broadcast %163 : vector<1x64xf32> to vector<144x64xf32>
    %183 = arith.addf %181, %182 : vector<144x64xf32>
    %c224 = arith.constant 224 : index
    %c0_56 = arith.constant 0 : index
    %184 = vector.load %arg1[%c224, %c0_56] : memref<672x256xbf16, #tpu.memory_space<vmem>>, vector<64x128xbf16>
    %185 = arith.truncf %183 : vector<144x64xf32> to vector<144x64xbf16>
    %cst_57 = arith.constant dense<0.000000e+00> : vector<144x128xf32>
    %186 = tpu.matmul %185, %184, %cst_57 {dimension_numbers = #tpu.dot_dimension_numbers<[1], [0], [0], [1], [0, 0, 1, 1], [], []>} : vector<144x64xbf16>, vector<64x128xbf16>, vector<144x128xf32> -> vector<144x128xf32>
    %c88 = arith.constant 88 : index
    %c0_58 = arith.constant 0 : index
    %187 = vector.load %arg2[%c88, %c0_58] : memref<200x256xf32, #tpu.memory_space<vmem>>, vector<1x128xf32>
    %188 = vector.broadcast %187 : vector<1x128xf32> to vector<144x128xf32>
    %189 = arith.addf %186, %188 : vector<144x128xf32>
    %cst_59 = arith.constant 0.000000e+00 : f32
    %190 = vector.broadcast %cst_59 : f32 to vector<144x128xf32>
    %191 = arith.maximumf %189, %190 : vector<144x128xf32>
    %c288 = arith.constant 288 : index
    %c0_60 = arith.constant 0 : index
    %192 = vector.load %arg1[%c288, %c0_60] : memref<672x256xbf16, #tpu.memory_space<vmem>>, vector<128x64xbf16>
    %193 = arith.truncf %191 : vector<144x128xf32> to vector<144x128xbf16>
    %cst_61 = arith.constant dense<0.000000e+00> : vector<144x64xf32>
    %194 = tpu.matmul %193, %192, %cst_61 {dimension_numbers = #tpu.dot_dimension_numbers<[1], [0], [0], [1], [0, 0, 1, 1], [], []>} : vector<144x128xbf16>, vector<128x64xbf16>, vector<144x64xf32> -> vector<144x64xf32>
    %c96_62 = arith.constant 96 : index
    %c0_63 = arith.constant 0 : index
    %195 = vector.load %arg2[%c96_62, %c0_63] : memref<200x256xf32, #tpu.memory_space<vmem>>, vector<1x64xf32>
    %196 = vector.broadcast %195 : vector<1x64xf32> to vector<144x64xf32>
    %197 = arith.addf %194, %196 : vector<144x64xf32>
    %198 = arith.addf %183, %197 : vector<144x64xf32>
    %c104 = arith.constant 104 : index
    %c0_64 = arith.constant 0 : index
    %199 = vector.load %arg2[%c104, %c0_64] : memref<200x256xf32, #tpu.memory_space<vmem>>, vector<1x64xf32>
    %c112 = arith.constant 112 : index
    %c0_65 = arith.constant 0 : index
    %200 = vector.load %arg2[%c112, %c0_65] : memref<200x256xf32, #tpu.memory_space<vmem>>, vector<1x64xf32>
    %cst_66 = arith.constant dense<0.000000e+00> : vector<144xf32>
    %201 = vector.multi_reduction <add>, %198, %cst_66 [1] : vector<144x64xf32> to vector<144xf32>
    %202 = vector.shape_cast %201 : vector<144xf32> to vector<144x1xf32>
    %cst_67 = arith.constant 6.400000e+01 : f32
    %203 = vector.broadcast %cst_67 : f32 to vector<144x1xf32>
    %204 = arith.divf %202, %203 : vector<144x1xf32>
    %205 = vector.broadcast %204 : vector<144x1xf32> to vector<144x64xf32>
    %206 = arith.subf %198, %205 : vector<144x64xf32>
    %207 = arith.mulf %206, %206 : vector<144x64xf32>
    %cst_68 = arith.constant dense<0.000000e+00> : vector<144xf32>
    %208 = vector.multi_reduction <add>, %207, %cst_68 [1] : vector<144x64xf32> to vector<144xf32>
    %209 = vector.shape_cast %208 : vector<144xf32> to vector<144x1xf32>
    %cst_69 = arith.constant 6.400000e+01 : f32
    %210 = vector.broadcast %cst_69 : f32 to vector<144x1xf32>
    %211 = arith.divf %209, %210 : vector<144x1xf32>
    %cst_70 = arith.constant 9.99999974E-6 : f32
    %212 = vector.broadcast %cst_70 : f32 to vector<144x1xf32>
    %213 = arith.addf %211, %212 : vector<144x1xf32>
    %214 = math.rsqrt %213 : vector<144x1xf32>
    %215 = vector.broadcast %214 : vector<144x1xf32> to vector<144x64xf32>
    %216 = arith.mulf %206, %215 : vector<144x64xf32>
    %217 = vector.broadcast %199 : vector<1x64xf32> to vector<144x64xf32>
    %218 = arith.mulf %216, %217 : vector<144x64xf32>
    %219 = vector.broadcast %200 : vector<1x64xf32> to vector<144x64xf32>
    %220 = arith.addf %218, %219 : vector<144x64xf32>
    %c416 = arith.constant 416 : index
    %c0_71 = arith.constant 0 : index
    %221 = vector.load %arg1[%c416, %c0_71] : memref<672x256xbf16, #tpu.memory_space<vmem>>, vector<64x16xbf16>
    %222 = arith.truncf %220 : vector<144x64xf32> to vector<144x64xbf16>
    %cst_72 = arith.constant dense<0.000000e+00> : vector<144x16xf32>
    %223 = tpu.matmul %222, %221, %cst_72 {dimension_numbers = #tpu.dot_dimension_numbers<[1], [0], [0], [1], [0, 0, 1, 1], [], []>} : vector<144x64xbf16>, vector<64x16xbf16>, vector<144x16xf32> -> vector<144x16xf32>
    %c120 = arith.constant 120 : index
    %c0_73 = arith.constant 0 : index
    %224 = vector.load %arg2[%c120, %c0_73] : memref<200x256xf32, #tpu.memory_space<vmem>>, vector<1x16xf32>
    %225 = vector.broadcast %224 : vector<1x16xf32> to vector<144x16xf32>
    %226 = arith.addf %223, %225 : vector<144x16xf32>
    %c480 = arith.constant 480 : index
    %c0_74 = arith.constant 0 : index
    %227 = vector.load %arg1[%c480, %c0_74] : memref<672x256xbf16, #tpu.memory_space<vmem>>, vector<16x48xbf16>
    %228 = arith.truncf %226 : vector<144x16xf32> to vector<144x16xbf16>
    %cst_75 = arith.constant dense<0.000000e+00> : vector<144x48xf32>
    %229 = tpu.matmul %228, %227, %cst_75 {dimension_numbers = #tpu.dot_dimension_numbers<[1], [0], [0], [1], [0, 0, 1, 1], [], []>} : vector<144x16xbf16>, vector<16x48xbf16>, vector<144x48xf32> -> vector<144x48xf32>
    %c128 = arith.constant 128 : index
    %c0_76 = arith.constant 0 : index
    %230 = vector.load %arg2[%c128, %c0_76] : memref<200x256xf32, #tpu.memory_space<vmem>>, vector<1x48xf32>
    %231 = vector.broadcast %230 : vector<1x48xf32> to vector<144x48xf32>
    %232 = arith.addf %229, %231 : vector<144x48xf32>
    %233 = vector.extract_strided_slice %232 {offsets = [0, 0], sizes = [144, 16], strides = [1, 1]} : vector<144x48xf32> to vector<144x16xf32>
    %234 = vector.extract_strided_slice %232 {offsets = [0, 16], sizes = [144, 16], strides = [1, 1]} : vector<144x48xf32> to vector<144x16xf32>
    %235 = vector.extract_strided_slice %232 {offsets = [0, 32], sizes = [144, 16], strides = [1, 1]} : vector<144x48xf32> to vector<144x16xf32>
    %236 = arith.truncf %234 : vector<144x16xf32> to vector<144x16xbf16>
    %237 = tpu.iota {dimensions = array<i32: 1>} : vector<1x16xi32>
    %c0_i32_77 = arith.constant 0 : i32
    %238 = vector.broadcast %c0_i32_77 : i32 to vector<1x16xi32>
    %239 = arith.cmpi sge, %237, %238 : vector<1x16xi32>
    %c8_i32 = arith.constant 8 : i32
    %240 = vector.broadcast %c8_i32 : i32 to vector<1x16xi32>
    %241 = arith.cmpi slt, %237, %240 : vector<1x16xi32>
    %242 = arith.andi %239, %241 : vector<1x16xi1>
    %243 = arith.extui %242 : vector<1x16xi1> to vector<1x16xi32>
    %244 = arith.sitofp %243 : vector<1x16xi32> to vector<1x16xf32>
    %cst_78 = arith.constant 0.353553385 : f32
    %245 = vector.broadcast %cst_78 : f32 to vector<1x16xf32>
    %246 = arith.mulf %244, %245 : vector<1x16xf32>
    %247 = vector.broadcast %246 : vector<1x16xf32> to vector<144x16xf32>
    %248 = arith.mulf %233, %247 : vector<144x16xf32>
    %249 = arith.truncf %248 : vector<144x16xf32> to vector<144x16xbf16>
    %cst_79 = arith.constant dense<0.000000e+00> : vector<144x144xf32>
    %250 = tpu.matmul %249, %236, %cst_79 {dimension_numbers = #tpu.dot_dimension_numbers<[1], [1], [0], [0], [0, 0, 1, 0], [], []>} : vector<144x16xbf16>, vector<144x16xbf16>, vector<144x144xf32> -> vector<144x144xf32>
    %cst_80 = arith.constant dense<0xFF800000> : vector<144xf32>
    %251 = vector.multi_reduction <maximumf>, %250, %cst_80 [1] : vector<144x144xf32> to vector<144xf32>
    %252 = vector.shape_cast %251 : vector<144xf32> to vector<144x1xf32>
    %253 = vector.broadcast %252 : vector<144x1xf32> to vector<144x144xf32>
    %254 = arith.subf %250, %253 : vector<144x144xf32>
    %255 = math.exp %254 : vector<144x144xf32>
    %cst_81 = arith.constant dense<0.000000e+00> : vector<144xf32>
    %256 = vector.multi_reduction <add>, %255, %cst_81 [1] : vector<144x144xf32> to vector<144xf32>
    %257 = vector.shape_cast %256 : vector<144xf32> to vector<144x1xf32>
    %258 = vector.broadcast %257 : vector<144x1xf32> to vector<144x144xf32>
    %259 = arith.divf %255, %258 : vector<144x144xf32>
    %260 = arith.truncf %259 : vector<144x144xf32> to vector<144x144xbf16>
    %261 = vector.broadcast %244 : vector<1x16xf32> to vector<144x16xf32>
    %262 = arith.mulf %235, %261 : vector<144x16xf32>
    %263 = arith.truncf %262 : vector<144x16xf32> to vector<144x16xbf16>
    %cst_82 = arith.constant dense<0.000000e+00> : vector<144x16xf32>
    %264 = tpu.matmul %260, %263, %cst_82 {dimension_numbers = #tpu.dot_dimension_numbers<[1], [0], [0], [1], [0, 0, 1, 1], [], []>} : vector<144x144xbf16>, vector<144x16xbf16>, vector<144x16xf32> -> vector<144x16xf32>
    %c8_i32_83 = arith.constant 8 : i32
    %265 = vector.broadcast %c8_i32_83 : i32 to vector<1x16xi32>
    %266 = arith.cmpi sge, %237, %265 : vector<1x16xi32>
    %c16_i32 = arith.constant 16 : i32
    %267 = vector.broadcast %c16_i32 : i32 to vector<1x16xi32>
    %268 = arith.cmpi slt, %237, %267 : vector<1x16xi32>
    %269 = arith.andi %266, %268 : vector<1x16xi1>
    %270 = arith.extui %269 : vector<1x16xi1> to vector<1x16xi32>
    %271 = arith.sitofp %270 : vector<1x16xi32> to vector<1x16xf32>
    %cst_84 = arith.constant 0.353553385 : f32
    %272 = vector.broadcast %cst_84 : f32 to vector<1x16xf32>
    %273 = arith.mulf %271, %272 : vector<1x16xf32>
    %274 = vector.broadcast %273 : vector<1x16xf32> to vector<144x16xf32>
    %275 = arith.mulf %233, %274 : vector<144x16xf32>
    %276 = arith.truncf %275 : vector<144x16xf32> to vector<144x16xbf16>
    %cst_85 = arith.constant dense<0.000000e+00> : vector<144x144xf32>
    %277 = tpu.matmul %276, %236, %cst_85 {dimension_numbers = #tpu.dot_dimension_numbers<[1], [1], [0], [0], [0, 0, 1, 0], [], []>} : vector<144x16xbf16>, vector<144x16xbf16>, vector<144x144xf32> -> vector<144x144xf32>
    %cst_86 = arith.constant dense<0xFF800000> : vector<144xf32>
    %278 = vector.multi_reduction <maximumf>, %277, %cst_86 [1] : vector<144x144xf32> to vector<144xf32>
    %279 = vector.shape_cast %278 : vector<144xf32> to vector<144x1xf32>
    %280 = vector.broadcast %279 : vector<144x1xf32> to vector<144x144xf32>
    %281 = arith.subf %277, %280 : vector<144x144xf32>
    %282 = math.exp %281 : vector<144x144xf32>
    %cst_87 = arith.constant dense<0.000000e+00> : vector<144xf32>
    %283 = vector.multi_reduction <add>, %282, %cst_87 [1] : vector<144x144xf32> to vector<144xf32>
    %284 = vector.shape_cast %283 : vector<144xf32> to vector<144x1xf32>
    %285 = vector.broadcast %284 : vector<144x1xf32> to vector<144x144xf32>
    %286 = arith.divf %282, %285 : vector<144x144xf32>
    %287 = arith.truncf %286 : vector<144x144xf32> to vector<144x144xbf16>
    %288 = vector.broadcast %271 : vector<1x16xf32> to vector<144x16xf32>
    %289 = arith.mulf %235, %288 : vector<144x16xf32>
    %290 = arith.truncf %289 : vector<144x16xf32> to vector<144x16xbf16>
    %cst_88 = arith.constant dense<0.000000e+00> : vector<144x16xf32>
    %291 = tpu.matmul %287, %290, %cst_88 {dimension_numbers = #tpu.dot_dimension_numbers<[1], [0], [0], [1], [0, 0, 1, 1], [], []>} : vector<144x144xbf16>, vector<144x16xbf16>, vector<144x16xf32> -> vector<144x16xf32>
    %292 = arith.addf %264, %291 : vector<144x16xf32>
    %c496 = arith.constant 496 : index
    %c0_89 = arith.constant 0 : index
    %293 = vector.load %arg1[%c496, %c0_89] : memref<672x256xbf16, #tpu.memory_space<vmem>>, vector<16x16xbf16>
    %294 = arith.truncf %292 : vector<144x16xf32> to vector<144x16xbf16>
    %cst_90 = arith.constant dense<0.000000e+00> : vector<144x16xf32>
    %295 = tpu.matmul %294, %293, %cst_90 {dimension_numbers = #tpu.dot_dimension_numbers<[1], [0], [0], [1], [0, 0, 1, 1], [], []>} : vector<144x16xbf16>, vector<16x16xbf16>, vector<144x16xf32> -> vector<144x16xf32>
    %c136 = arith.constant 136 : index
    %c0_91 = arith.constant 0 : index
    %296 = vector.load %arg2[%c136, %c0_91] : memref<200x256xf32, #tpu.memory_space<vmem>>, vector<1x16xf32>
    %297 = vector.broadcast %296 : vector<1x16xf32> to vector<144x16xf32>
    %298 = arith.addf %295, %297 : vector<144x16xf32>
    %299 = arith.addf %226, %298 : vector<144x16xf32>
    %c144 = arith.constant 144 : index
    %c0_92 = arith.constant 0 : index
    %300 = vector.load %arg2[%c144, %c0_92] : memref<200x256xf32, #tpu.memory_space<vmem>>, vector<1x16xf32>
    %c152 = arith.constant 152 : index
    %c0_93 = arith.constant 0 : index
    %301 = vector.load %arg2[%c152, %c0_93] : memref<200x256xf32, #tpu.memory_space<vmem>>, vector<1x16xf32>
    %cst_94 = arith.constant dense<0.000000e+00> : vector<144xf32>
    %302 = vector.multi_reduction <add>, %299, %cst_94 [1] : vector<144x16xf32> to vector<144xf32>
    %303 = vector.shape_cast %302 : vector<144xf32> to vector<144x1xf32>
    %cst_95 = arith.constant 1.600000e+01 : f32
    %304 = vector.broadcast %cst_95 : f32 to vector<144x1xf32>
    %305 = arith.divf %303, %304 : vector<144x1xf32>
    %306 = vector.broadcast %305 : vector<144x1xf32> to vector<144x16xf32>
    %307 = arith.subf %299, %306 : vector<144x16xf32>
    %308 = arith.mulf %307, %307 : vector<144x16xf32>
    %cst_96 = arith.constant dense<0.000000e+00> : vector<144xf32>
    %309 = vector.multi_reduction <add>, %308, %cst_96 [1] : vector<144x16xf32> to vector<144xf32>
    %310 = vector.shape_cast %309 : vector<144xf32> to vector<144x1xf32>
    %cst_97 = arith.constant 1.600000e+01 : f32
    %311 = vector.broadcast %cst_97 : f32 to vector<144x1xf32>
    %312 = arith.divf %310, %311 : vector<144x1xf32>
    %cst_98 = arith.constant 9.99999974E-6 : f32
    %313 = vector.broadcast %cst_98 : f32 to vector<144x1xf32>
    %314 = arith.addf %312, %313 : vector<144x1xf32>
    %315 = math.rsqrt %314 : vector<144x1xf32>
    %316 = vector.broadcast %315 : vector<144x1xf32> to vector<144x16xf32>
    %317 = arith.mulf %307, %316 : vector<144x16xf32>
    %318 = vector.broadcast %300 : vector<1x16xf32> to vector<144x16xf32>
    %319 = arith.mulf %317, %318 : vector<144x16xf32>
    %320 = vector.broadcast %301 : vector<1x16xf32> to vector<144x16xf32>
    %321 = arith.addf %319, %320 : vector<144x16xf32>
    %c512 = arith.constant 512 : index
    %c0_99 = arith.constant 0 : index
    %322 = vector.load %arg1[%c512, %c0_99] : memref<672x256xbf16, #tpu.memory_space<vmem>>, vector<16x128xbf16>
    %323 = arith.truncf %321 : vector<144x16xf32> to vector<144x16xbf16>
    %cst_100 = arith.constant dense<0.000000e+00> : vector<144x128xf32>
    %324 = tpu.matmul %323, %322, %cst_100 {dimension_numbers = #tpu.dot_dimension_numbers<[1], [0], [0], [1], [0, 0, 1, 1], [], []>} : vector<144x16xbf16>, vector<16x128xbf16>, vector<144x128xf32> -> vector<144x128xf32>
    %c160_101 = arith.constant 160 : index
    %c0_102 = arith.constant 0 : index
    %325 = vector.load %arg2[%c160_101, %c0_102] : memref<200x256xf32, #tpu.memory_space<vmem>>, vector<1x128xf32>
    %326 = vector.broadcast %325 : vector<1x128xf32> to vector<144x128xf32>
    %327 = arith.addf %324, %326 : vector<144x128xf32>
    %cst_103 = arith.constant 0.000000e+00 : f32
    %328 = vector.broadcast %cst_103 : f32 to vector<144x128xf32>
    %329 = arith.maximumf %327, %328 : vector<144x128xf32>
    %c528 = arith.constant 528 : index
    %c0_104 = arith.constant 0 : index
    %330 = vector.load %arg1[%c528, %c0_104] : memref<672x256xbf16, #tpu.memory_space<vmem>>, vector<128x16xbf16>
    %331 = arith.truncf %329 : vector<144x128xf32> to vector<144x128xbf16>
    %cst_105 = arith.constant dense<0.000000e+00> : vector<144x16xf32>
    %332 = tpu.matmul %331, %330, %cst_105 {dimension_numbers = #tpu.dot_dimension_numbers<[1], [0], [0], [1], [0, 0, 1, 1], [], []>} : vector<144x128xbf16>, vector<128x16xbf16>, vector<144x16xf32> -> vector<144x16xf32>
    %c168 = arith.constant 168 : index
    %c0_106 = arith.constant 0 : index
    %333 = vector.load %arg2[%c168, %c0_106] : memref<200x256xf32, #tpu.memory_space<vmem>>, vector<1x16xf32>
    %334 = vector.broadcast %333 : vector<1x16xf32> to vector<144x16xf32>
    %335 = arith.addf %332, %334 : vector<144x16xf32>
    %336 = arith.addf %321, %335 : vector<144x16xf32>
    %c176 = arith.constant 176 : index
    %c0_107 = arith.constant 0 : index
    %337 = vector.load %arg2[%c176, %c0_107] : memref<200x256xf32, #tpu.memory_space<vmem>>, vector<1x16xf32>
    %c184 = arith.constant 184 : index
    %c0_108 = arith.constant 0 : index
    %338 = vector.load %arg2[%c184, %c0_108] : memref<200x256xf32, #tpu.memory_space<vmem>>, vector<1x16xf32>
    %cst_109 = arith.constant dense<0.000000e+00> : vector<144xf32>
    %339 = vector.multi_reduction <add>, %336, %cst_109 [1] : vector<144x16xf32> to vector<144xf32>
    %340 = vector.shape_cast %339 : vector<144xf32> to vector<144x1xf32>
    %cst_110 = arith.constant 1.600000e+01 : f32
    %341 = vector.broadcast %cst_110 : f32 to vector<144x1xf32>
    %342 = arith.divf %340, %341 : vector<144x1xf32>
    %343 = vector.broadcast %342 : vector<144x1xf32> to vector<144x16xf32>
    %344 = arith.subf %336, %343 : vector<144x16xf32>
    %345 = arith.mulf %344, %344 : vector<144x16xf32>
    %cst_111 = arith.constant dense<0.000000e+00> : vector<144xf32>
    %346 = vector.multi_reduction <add>, %345, %cst_111 [1] : vector<144x16xf32> to vector<144xf32>
    %347 = vector.shape_cast %346 : vector<144xf32> to vector<144x1xf32>
    %cst_112 = arith.constant 1.600000e+01 : f32
    %348 = vector.broadcast %cst_112 : f32 to vector<144x1xf32>
    %349 = arith.divf %347, %348 : vector<144x1xf32>
    %cst_113 = arith.constant 9.99999974E-6 : f32
    %350 = vector.broadcast %cst_113 : f32 to vector<144x1xf32>
    %351 = arith.addf %349, %350 : vector<144x1xf32>
    %352 = math.rsqrt %351 : vector<144x1xf32>
    %353 = vector.broadcast %352 : vector<144x1xf32> to vector<144x16xf32>
    %354 = arith.mulf %344, %353 : vector<144x16xf32>
    %355 = vector.broadcast %337 : vector<1x16xf32> to vector<144x16xf32>
    %356 = arith.mulf %354, %355 : vector<144x16xf32>
    %357 = vector.broadcast %338 : vector<1x16xf32> to vector<144x16xf32>
    %358 = arith.addf %356, %357 : vector<144x16xf32>
    %359 = arith.truncf %358 : vector<144x16xf32> to vector<144x16xbf16>
    %c656 = arith.constant 656 : index
    %c0_114 = arith.constant 0 : index
    %360 = vector.load %arg1[%c656, %c0_114] : memref<672x256xbf16, #tpu.memory_space<vmem>>, vector<16x1xbf16>
    %cst_115 = arith.constant dense<0.000000e+00> : vector<144x1xf32>
    %361 = tpu.matmul %359, %360, %cst_115 {dimension_numbers = #tpu.dot_dimension_numbers<[1], [0], [0], [1], [0, 0, 1, 1], [], []>} : vector<144x16xbf16>, vector<16x1xbf16>, vector<144x1xf32> -> vector<144x1xf32>
    %c192 = arith.constant 192 : index
    %c0_116 = arith.constant 0 : index
    %362 = vector.load %arg2[%c192, %c0_116] : memref<200x256xf32, #tpu.memory_space<vmem>>, vector<1x1xf32>
    %363 = vector.broadcast %362 : vector<1x1xf32> to vector<144x1xf32>
    %364 = arith.addf %361, %363 : vector<144x1xf32>
    %365 = tpu.iota {dimensions = array<i32: 0>} : vector<12x144xi32>
    %366 = arith.sitofp %365 : vector<12x144xi32> to vector<12x144xf32>
    %367 = tpu.iota {dimensions = array<i32: 1>} : vector<12x144xi32>
    %368 = arith.sitofp %367 : vector<12x144xi32> to vector<12x144xf32>
    %cst_117 = arith.constant 1.200000e+01 : f32
    %369 = vector.broadcast %cst_117 : f32 to vector<12x144xf32>
    %370 = arith.divf %368, %369 : vector<12x144xf32>
    %371 = math.floor %370 : vector<12x144xf32>
    %372 = arith.cmpf oeq, %366, %371 : vector<12x144xf32>
    %373 = arith.extui %372 : vector<12x144xi1> to vector<12x144xi32>
    %374 = arith.sitofp %373 : vector<12x144xi32> to vector<12x144xf32>
    %375 = arith.truncf %374 : vector<12x144xf32> to vector<12x144xbf16>
    %cst_118 = arith.constant 0.000000e+00 : f32
    %376 = vector.shape_cast %364 : vector<144x1xf32> to vector<144x1xf32>
    %377 = vector.broadcast %376 : vector<144x1xf32> to vector<144x12xf32>
    %378 = vector.broadcast %cst_118 : f32 to vector<144x12xf32>
    %379 = arith.select %78, %377, %378 : vector<144x12xi1>, vector<144x12xf32>
    %380 = arith.truncf %379 : vector<144x12xf32> to vector<144x12xbf16>
    %cst_119 = arith.constant dense<0.000000e+00> : vector<12x12xf32>
    %381 = tpu.matmul %375, %380, %cst_119 {dimension_numbers = #tpu.dot_dimension_numbers<[1], [0], [0], [1], [0, 0, 1, 1], [], []>} : vector<12x144xbf16>, vector<144x12xbf16>, vector<12x12xf32> -> vector<12x12xf32>
    %382 = tpu.iota {dimensions = array<i32: 0>} : vector<12x12xi32>
    %383 = tpu.iota {dimensions = array<i32: 1>} : vector<12x12xi32>
    %c2_i32 = arith.constant 2 : i32
    %384 = vector.broadcast %c2_i32 : i32 to vector<12x12xi32>
    %385 = arith.cmpi sge, %382, %384 : vector<12x12xi32>
    %c10_i32 = arith.constant 10 : i32
    %386 = vector.broadcast %c10_i32 : i32 to vector<12x12xi32>
    %387 = arith.cmpi sle, %382, %386 : vector<12x12xi32>
    %388 = arith.andi %385, %387 : vector<12x12xi1>
    %c9_i32 = arith.constant 9 : i32
    %389 = vector.broadcast %c9_i32 : i32 to vector<12x12xi32>
    %390 = arith.cmpi sle, %383, %389 : vector<12x12xi32>
    %391 = arith.andi %388, %390 : vector<12x12xi1>
    %c1_i32 = arith.constant 1 : i32
    %392 = vector.broadcast %c1_i32 : i32 to vector<12x12xi32>
    %393 = arith.cmpi eq, %382, %392 : vector<12x12xi32>
    %c0_i32_120 = arith.constant 0 : i32
    %394 = vector.broadcast %c0_i32_120 : i32 to vector<12x12xi32>
    %395 = arith.cmpi eq, %383, %394 : vector<12x12xi32>
    %396 = arith.andi %393, %395 : vector<12x12xi1>
    %397 = arith.ori %391, %396 : vector<12x12xi1>
    %c11_i32 = arith.constant 11 : i32
    %398 = vector.broadcast %c11_i32 : i32 to vector<12x12xi32>
    %399 = arith.cmpi eq, %382, %398 : vector<12x12xi32>
    %c10_i32_121 = arith.constant 10 : i32
    %400 = vector.broadcast %c10_i32_121 : i32 to vector<12x12xi32>
    %401 = arith.cmpi eq, %383, %400 : vector<12x12xi32>
    %402 = arith.andi %399, %401 : vector<12x12xi1>
    %403 = arith.ori %397, %402 : vector<12x12xi1>
    %404 = arith.cmpi ne, %382, %383 : vector<12x12xi32>
    %405 = arith.andi %403, %404 : vector<12x12xi1>
    %cst_122 = arith.constant -1.000000e+10 : f32
    %406 = vector.broadcast %cst_122 : f32 to vector<12x12xf32>
    %407 = arith.select %405, %381, %406 : vector<12x12xi1>, vector<12x12xf32>
    %cst_123 = arith.constant dense<0xFF800000> : vector<12xf32>
    %408 = vector.multi_reduction <maximumf>, %407, %cst_123 [1] : vector<12x12xf32> to vector<12xf32>
    %409 = vector.shape_cast %408 : vector<12xf32> to vector<12x1xf32>
    %410 = vector.broadcast %409 : vector<12x1xf32> to vector<12x12xf32>
    %411 = arith.subf %407, %410 : vector<12x12xf32>
    %412 = math.exp %411 : vector<12x12xf32>
    %cst_124 = arith.constant dense<0.000000e+00> : vector<12xf32>
    %413 = vector.multi_reduction <add>, %412, %cst_124 [1] : vector<12x12xf32> to vector<12xf32>
    %414 = vector.shape_cast %413 : vector<12xf32> to vector<12x1xf32>
    %415 = vector.broadcast %414 : vector<12x1xf32> to vector<12x12xf32>
    %416 = arith.divf %412, %415 : vector<12x12xf32>
    %cst_125 = arith.constant 9.99999997E-7 : f32
    %417 = vector.broadcast %cst_125 : f32 to vector<12x12xf32>
    %418 = arith.addf %416, %417 : vector<12x12xf32>
    %c0_126 = arith.constant 0 : index
    %c0_127 = arith.constant 0 : index
    %419 = vector.load %arg3[%c0_126, %c0_127] : memref<12x12xf32, #tpu.memory_space<vmem>>, vector<12x12xf32>
    tpu.vector_store %arg3[%c0_126, %c0_127], %418 {strides = array<i32>} : memref<12x12xf32, #tpu.memory_space<vmem>>, vector<12x12xf32>,
    %420 = arith.mulf %66, %66 : vector<12x32xf32>
    %cst_128 = arith.constant dense<0.000000e+00> : vector<12xf32>
    %421 = vector.multi_reduction <add>, %420, %cst_128 [1] : vector<12x32xf32> to vector<12xf32>
    %422 = vector.shape_cast %421 : vector<12xf32> to vector<12x1xf32>
    %423 = math.sqrt %422 : vector<12x1xf32>
    %cst_129 = arith.constant 9.99999996E-13 : f32
    %424 = vector.broadcast %cst_129 : f32 to vector<12x1xf32>
    %425 = arith.maximumf %423, %424 : vector<12x1xf32>
    %426 = vector.broadcast %425 : vector<12x1xf32> to vector<12x32xf32>
    %427 = arith.divf %66, %426 : vector<12x32xf32>
    %cst_130 = arith.constant dense<0.000000e+00> : vector<12x12xf32>
    %428 = tpu.matmul %427, %427, %cst_130 {dimension_numbers = #tpu.dot_dimension_numbers<[1], [1], [0], [0], [0, 0, 1, 0], [], []>} : vector<12x32xf32>, vector<12x32xf32>, vector<12x12xf32> -> vector<12x12xf32>
    %cst_131 = arith.constant 2.45960307 : f32
    %429 = vector.broadcast %cst_131 : f32 to vector<12x12xf32>
    %430 = arith.mulf %428, %429 : vector<12x12xf32>
    %cst_132 = arith.constant dense<0xFF800000> : vector<12xf32>
    %431 = vector.multi_reduction <maximumf>, %430, %cst_132 [1] : vector<12x12xf32> to vector<12xf32>
    %432 = vector.shape_cast %431 : vector<12xf32> to vector<12x1xf32>
    %433 = vector.broadcast %432 : vector<12x1xf32> to vector<12x12xf32>
    %434 = arith.subf %430, %433 : vector<12x12xf32>
    %435 = math.exp %434 : vector<12x12xf32>
    %cst_133 = arith.constant dense<0.000000e+00> : vector<12xf32>
    %436 = vector.multi_reduction <add>, %435, %cst_133 [1] : vector<12x12xf32> to vector<12xf32>
    %437 = vector.shape_cast %436 : vector<12xf32> to vector<12x1xf32>
    %438 = math.log %437 : vector<12x1xf32>
    %439 = arith.addf %438, %432 : vector<12x1xf32>
    %440 = arith.cmpi eq, %382, %383 : vector<12x12xi32>
    %cst_134 = arith.constant 0.000000e+00 : f32
    %441 = vector.broadcast %cst_134 : f32 to vector<12x12xf32>
    %442 = arith.select %440, %430, %441 : vector<12x12xi1>, vector<12x12xf32>
    %cst_135 = arith.constant dense<0.000000e+00> : vector<12xf32>
    %443 = vector.multi_reduction <add>, %442, %cst_135 [1] : vector<12x12xf32> to vector<12xf32>
    %444 = vector.shape_cast %443 : vector<12xf32> to vector<12x1xf32>
    %445 = arith.subf %439, %444 : vector<12x1xf32>
    %446 = vector.shape_cast %445 : vector<12x1xf32> to vector<1x12x1xf32>
    %cst_136 = arith.constant dense<0.000000e+00> : vector<1xf32>
    %447 = vector.multi_reduction <add>, %446, %cst_136 [1, 2] : vector<1x12x1xf32> to vector<1xf32>
    %448 = vector.shape_cast %447 : vector<1xf32> to vector<1x1x1xf32>
    %449 = vector.extract %448[0, 0, 0] : f32 from vector<1x1x1xf32>
    %450 = vector.broadcast %449 : f32 to vector<1x1xf32>
    %c0_137 = arith.constant 0 : index
    %c0_138 = arith.constant 0 : index
    %451 = vector.load %arg4[%c0_137, %c0_138] : memref<1x1xf32, #tpu.memory_space<vmem>>, vector<1x1xf32>
    tpu.vector_store %arg4[%c0_137, %c0_138], %450 {strides = array<i32>} : memref<1x1xf32, #tpu.memory_space<vmem>>, vector<1x1xf32>,
    return
  }
}

</mosaic_0001>

<bundles_post_ra>
// kernel: tgt_forward.1
= control target key start
LH: loop header
LB: loop body
LE: loop exit
PB: predicated region body
PF: predicated region fallthrough
CT: control target
= control target key end

     0   :  { %10 = vsyncpa [#allocation3], 0  ;;  %v13769_v0 = vmov 0.0   ;;  %vm8861_vm0 = vmmov 0   ;;  %vm39_vm1 = vcmask 261120   ;;  %s13753_s0 = inlined_call_operand.vmem [shape: f32[12,32], index: 0, kind: input, shape index: {}]   ;;  %s13754_s1 = inlined_call_operand.vmem [shape: bf16[672,256], index: 1, kind: input, shape index: {}]   ;;  %s13755_s2 = inlined_call_operand.vmem [shape: f32[200,256], index: 2, kind: input, shape index: {}]   ;;  %s13756_s3 = inlined_call_operand.hbm [shape: f32[12,12], index: 3, kind: output, shape index: {0}]   ;;  %s13757_s4 = inlined_call_operand.hbm [shape: f32[1,1], index: 4, kind: output, shape index: {1}]  }
   0x1   :  { %7515 = vmatprep.subr.bf16.mxu0 %v13769_v0  ;;  %v8154_v1 = vld [vmem:[%s13754_s1] ss:$8 sps:$4 sm:$0xff]   ;;  %7519 = vmatprep.mubr.msk.bf16.mxu0 %vm8861_vm0, %v13769_v0  ;;  %v8155_v2 = vld [vmem:[%s13754_s1 + $0x10] ss:$8 sps:$4 sm:$0xff]  }
   0x2   :  { %v19_v3 = vld [vmem:[%s13753_s0] sm:$0xff]  ;;  %7523 = vmatprep.subr.bf16.mxu1 %v13769_v0  ;;  %7527 = vmatprep.mubr.msk.bf16.mxu1 %vm8861_vm0, %v13769_v0  ;;  %v20_v4 = vld [vmem:[%s13753_s0 + $0x8] sm:$0xf] }
   0x3   :  { %7516 = vmatpush3.bf16.msra.mxu0 %v8154_v1  ;;  %v25_v5 = vpack.c.bf16 %v20_v4, %v19_v3 }
   0x4   :  { %7517 = vmatprep.subr.bf16.mxu0 %v13769_v0 }
   0x7   :  { %7518 = vmatpush3.bf16.msra.mxu0 %v8155_v2 }
   0x8   :  { %7531 = vmatprep.subr.bf16.mxu0 %v13769_v0 }
   0xa   :  { %7520 = vmatmul.mubr.msk.bf16.vlgmr.msra.gmra.mrb[0].mxu0 %vm39_vm1, %v25_v5 }
   0xb   :  { %7535 = vmatprep.mubr.msk.bf16.mxu0 %vm8861_vm0, %v13769_v0 }
   0xc   :  { %11 = vsyncpa [#allocation5], 0  ;;  %v26_v6 = vld [vmem:[%s13755_s2] ss:$0 sm:$0xff]  ;;  %vm91_vm2 = vcmask 257024   ;;  %vm503_vm7 = vcmask 1045504  }
   0xd   :  { %v8156_v27 = vld [vmem:[%s13754_s1 + $0x20] ss:$8 sps:$4 sm:$0xff]   ;;  %v8157_v28 = vld [vmem:[%s13754_s1 + $0x30] ss:$8 sps:$4 sm:$0xff]   ;;  %vm13969_vm8 = vcmask 97280   ;;  %s8863_s7 = smov 32  }
   0xe   :  { %7524 = vmatpush3.bf16.msra.mxu1 %v8156_v27  ;;  %v86_v37 = vld [vmem:[%s13755_s2 + $0x10] ss:$0 sm:$0xff]  ;;  %v87_v41 = vld [vmem:[%s13755_s2 + $0x20] ss:$0 sm:$0xff]  ;;  %s8864_s10 = smov 64   ;;  %s8865_s19 = smov 112  }
   0xf   :  { %7525 = vmatprep.subr.bf16.mxu1 %v13769_v0  ;;  %v8158_v46 = vld [vmem:[%s13754_s1 + $0x40] ss:$8 sps:$4 sm:$0xff]   ;;  %v8159_v47 = vld [vmem:[%s13754_s1 + $0x50] ss:$8 sps:$4 sm:$0xff]  }
  0x10   :  { %7532 = vmatpush3.bf16.msra.mxu0 %v8158_v46  ;;  %v125_v48 = vld [vmem:[%s13755_s2 + $0x30] ss:$0 sm:$0xff]  ;;  %v189_v58 = vld [vmem:[%s13755_s2 + $0x40] ss:$0 sm:$0xff] }
  0x11   :  { %7533 = vmatprep.subr.bf16.mxu0 %v13769_v0 }
  0x12   :  { %7526 = vmatpush3.bf16.msra.mxu1 %v8157_v28 }
  0x13   :  { %7539 = vmatprep.subr.bf16.mxu1 %v13769_v0 }
  0x14   :  { %7534 = vmatpush3.bf16.msra.mxu0 %v8159_v47 }
  0x15   :  { %7577 = vmatprep.subr.bf16.mxu0 %v13769_v0 }
  0xdd   :  { %v77_v7 = vpop.f32.mrb[0].mxu0 }
  0xde   :  { %v78_v8 = vadd.f32 %v77_v7, %v26_v6  ;;  %v7521_v9 = vpop.f32.mrb[1].mxu0 }
  0xdf   :  { %v80_v10 = vpop.f32.mrb[2].mxu0 }
  0xe0   :  { %v81_v11 = vadd.f32 %v80_v10, %v26_v6  ;;  %v7522_v12 = vpop.f32.mrb[3].mxu0  ;;  %v84_v13 = vadd.f32 %v78_v8, %v19_v3 }
  0xe2   :  { %v88_v14 = vsel %vm39_vm1, %v84_v13, 0.0  ;;  %v85_v15 = vadd.f32 %v81_v11, %v20_v4 }
  0xe3   :  { %89 = vadd.xlane.f32.xlu0 %v88_v14 }
  0xe4   :  { %v92_v16 = vsel %vm91_vm2, %v85_v15, 0.0 }
  0xe7   :  { %93 = vadd.xlane.f32.xlu0 %v92_v16  ;;  %v280_v16 = vlaneseq }
 0x170   :  { %v90_v17 = vpop.xlane.xlu0 %89 }
 0x171   :  { %v96_v18 = vmul.f32 0.03125, %v90_v17  ;;  %v8965_v17 = vshrl.u32 %v280_v16, 7 }
 0x173   :  { %v98_v19 = vsub.f32 %v84_v13, %v96_v18  ;;  %13970 = vst [vmem:[#allocation8_spill] sm:$0xff] %v8965_v17  ;;  %v8968_v18 = vadd.s32 8, %v8965_v17 }
 0x174   :  { %v94_v20 = vpop.xlane.xlu0 %93 }
 0x175   :  { %v97_v21 = vmul.f32 0.03125, %v94_v20  ;;  %v100_v22 = vmul.f32 %v98_v19, %v98_v19  ;;  %13971 = vst [vmem:[#allocation9_spill] sm:$0xff] %v8968_v18  ;;  %v8974_v20 = vcvt.s32.f32 %v8968_v18 }
 0x177   :  { %v99_v23 = vsub.f32 %v85_v15, %v97_v21  ;;  %v102_v24 = vsel %vm39_vm1, %v100_v22, 0.0  ;;  %13973 = vst [vmem:[#allocation11_spill] sm:$0xff] %v8974_v20  ;;  %v322_v28 = vmul.f32 0.083333336, %v8974_v20 }
 0x178   :  { %103 = vadd.xlane.f32.xlu1 %v102_v24 }
 0x179   :  { %v101_v25 = vmul.f32 %v99_v23, %v99_v23 }
 0x17b   :  { %v105_v26 = vsel %vm91_vm2, %v101_v25, 0.0  ;;  %v283_v25 = vadd.s32 16, %v8965_v17 }
 0x17c   :  { %106 = vadd.xlane.f32.xlu1 %v105_v26 }
 0x205   :  { %v104_v29 = vpop.xlane.xlu1 %103 }
 0x206   :  { %v108_v30 = vmul.f32 0.03125, %v104_v29  ;;  %v284_v29 = vadd.s32 24, %v8965_v17 }
 0x208   :  { %v110_v31 = vadd.f32 1e-05, %v108_v30 }
 0x209   :  { %v107_v32 = vpop.xlane.xlu1 %106 }
 0x20a   :  { %8204 = vrsqrt.f32 %v110_v31  ;;  %v109_v33 = vmul.f32 0.03125, %v107_v32  ;;  %v301_v32 = vcvt.s32.f32 %v283_v25 }
 0x20c   :  { %v111_v34 = vadd.f32 1e-05, %v109_v33  ;;  %v340_v33 = vfloor.f32 %v322_v28 }
 0x20e   :  { %8206 = vrsqrt.f32 %v111_v34  ;;  %v302_v34 = vcvt.s32.f32 %v284_v29 }
 0x214   :  { %v8205_v35 = vpop.eup %8204 }
 0x215   :  { %v114_v36 = vmul.f32 %v8205_v35, %v98_v19  ;;  %v8971_v19 = vcvt.s32.f32 %v8965_v17  ;;  %v285_v35 = vadd.s32 32, %v8965_v17 }
 0x217   :  { %v116_v40 = vmul.f32 %v114_v36, %v86_v37  ;;  %13972 = vst [vmem:[#allocation10_spill] sm:$0xff] %v8971_v19  ;;  %v321_v24 = vmul.f32 0.083333336, %v8971_v19  ;;  %v286_v36 = vadd.s32 40, %v8965_v17 }
 0x218   :  { %v8207_v38 = vpop.eup %8206 }
 0x219   :  { %v115_v39 = vmul.f32 %v8207_v38, %v99_v23  ;;  %v118_v43 = vadd.f32 %v116_v40, %v87_v41  ;;  %v339_v31 = vfloor.f32 %v321_v24  ;;  %v358_v40 = vmul.f32 12.0, %v340_v33 }
 0x21b   :  { %v117_v42 = vmul.f32 %v115_v39, %v86_v37  ;;  %v8982_v37 = vand.u32 127, %v280_v16  ;;  %v357_v38 = vmul.f32 12.0, %v339_v31  ;;  %v323_v39 = vmul.f32 0.083333336, %v301_v32 }
 0x21d   :  { %v119_v44 = vadd.f32 %v117_v42, %v87_v41  ;;  %13974 = vst [vmem:[#allocation12_spill] sm:$0xff] %v8982_v37  ;;  %v324_v41 = vmul.f32 0.083333336, %v302_v34  ;;  %v303_v42 = vcvt.s32.f32 %v285_v35  ;;  %v341_v46 = vfloor.f32 %v323_v39 }
 0x21f   :  { %v124_v45 = vpack.c.bf16 %v119_v44, %v118_v43 }
 0x221   :  { %7528 = vmatmul.mubr.msk.bf16.vlgmr.msra.gmra.mrb[0].mxu1 %vm39_vm1, %v124_v45  ;;  %v375_v45 = vsub.f32 %v8971_v19, %v357_v38 }
 0x222   :  { %7541 = vmatprep.mubr.msk.bf16.mxu1 %vm8861_vm0, %v13769_v0 }
 0x2f4   :  { %v175_v49 = vpop.f32.mrb[0].mxu1 }
 0x2f5   :  { %v176_v50 = vadd.f32 %v175_v49, %v125_v48  ;;  %v7529_v51 = vpop.f32.mrb[1].mxu1  ;;  %v376_v49 = vsub.f32 %v8974_v20, %v358_v40 }
 0x2f6   :  { %v178_v52 = vpop.f32.mrb[2].mxu1  ;;  %v8992_v51 = vmul.f32 0.083333336, %v303_v42 }
 0x2f7   :  { %v179_v53 = vadd.f32 %v178_v52, %v125_v48  ;;  %v7530_v54 = vpop.f32.mrb[3].mxu1  ;;  %v182_v55 = vmax.f32 %v176_v50, 0.0  ;;  %v248_v48 = vld [vmem:[%s13755_s2 + $0x50] ss:$0 sm:$0xff]  ;;  %v342_v50 = vfloor.f32 %v324_v41 }
 0x2f9   :  { %v183_v56 = vmax.f32 %v179_v53, 0.0 }
 0x2fb   :  { %v188_v57 = vpack.c.bf16 %v183_v56, %v182_v55  ;;  %v8997_v55 = vadd.s32 48, %v8965_v17 }
 0x2fd   :  { %7536 = vmatmul.mubr.msk.bf16.vlgmr.msra.gmra.mrb[4].mxu0 %vm39_vm1, %v188_v57 }
 0x2fe   :  { %7579 = vmatprep.mubr.msk.bf16.mxu0 %vm8861_vm0, %v13769_v0 }
 0x3d0   :  { %v239_v59 = vpop.f32.mrb[4].mxu0 }
 0x3d1   :  { %v240_v60 = vadd.f32 %v239_v59, %v189_v58  ;;  %v7537_v61 = vpop.f32.mrb[5].mxu0  ;;  %v359_v59 = vmul.f32 12.0, %v341_v46 }
 0x3d2   :  { %v242_v62 = vpop.f32.mrb[6].mxu0  ;;  %v13979_v61 = vmov 0 }
 0x3d3   :  { %v243_v63 = vadd.f32 %v242_v62, %v189_v58  ;;  %v7538_v1 = vpop.f32.mrb[7].mxu0  ;;  %v246_v2 = vadd.f32 %v240_v60, %v118_v43  ;;  %v304_v43 = vcvt.s32.f32 %v286_v36  ;;  %v13976_v58 = vmov 0  ;;  %v249_v60 = vld [vmem:[%s13755_s2 + $0x60] ss:$0 sm:$0xff] }
 0x3d4   :  { %v360_v62 = vmul.f32 12.0, %v342_v50  ;;  %v9014_v1 = vadd.s32 56, %v8965_v17 }
 0x3d5   :  { %v250_v3 = vsel %vm39_vm1, %v246_v2, 0.0  ;;  %v247_v4 = vadd.f32 %v243_v63, %v119_v44  ;;  %v8985_v44 = vcvt.s32.f32 %v8982_v37  ;;  %v8994_v53 = vmul.f32 0.083333336, %v304_v43 }
 0x3d6   :  { %251 = vadd.xlane.f32.xlu0 %v250_v3  ;;  %v343_v63 = vfloor.f32 %v8992_v51 }
 0x3d7   :  { %v253_v5 = vsel %vm91_vm2, %v247_v4, 0.0  ;;  %13975 = vst [vmem:[#allocation13_spill] sm:$0xff] %v8985_v44  ;;  %vm9000_vm3 = vcmp.eq.f32.partialorder %v375_v45, %v8985_v44  ;;  %vm9008_vm4 = vcmp.eq.f32.partialorder %v376_v49, %v8985_v44  ;;  %v344_v3 = vfloor.f32 %v8994_v53 }
 0x3d8   :  { %254 = vadd.xlane.f32.xlu1 %v253_v5  ;;  %v13977_v58 = vsel %vm9000_vm3, 4294967295, %v13976_v58  ;;  %v13980_v61 = vsel %vm9008_vm4, 4294967295, %v13979_v61  ;;  %vm393_vm5 = vcmp.eq.f32.partialorder %v339_v31, %v8985_v44  ;;  %vm394_vm6 = vcmp.eq.f32.partialorder %v340_v33, %v8985_v44 }
 0x3d9   :  { %13978 = vst [vmem:[#allocation14_spill] sm:$0xff] %v13977_v58  ;;  %13981 = vst [vmem:[#allocation15_spill] sm:$0xff] %v13980_v61  ;;  %v305_v5 = vcvt.s32.f32 %v8997_v55  ;;  %v362_v16 = vmul.f32 12.0, %v344_v3  ;;  %vm395_vm11 = vcmp.eq.f32.partialorder %v341_v46, %v8985_v44  ;;  %vm396_vm12 = vcmp.eq.f32.partialorder %v342_v50, %v8985_v44 }
 0x3da   :  { %v7090_v36 = vsel %vm395_vm11, 1.0, %v13769_v0  ;;  %v7091_v38 = vsel %vm396_vm12, 1.0, %v13769_v0  ;;  %v292_v45 = vadd.s32 88, %v8965_v17  ;;  %vm397_vm15 = vcmp.eq.f32.partialorder %v343_v63, %v8985_v44 }
 0x3db   :  { %v9054_v29 = vsub.f32 %v304_v43, %v362_v16  ;;  %v467_v46 = vpack.c.bf16 %v7091_v38, %v7090_v36 }
 0x3dd   :  { %13987 = vst [vmem:[#allocation21_spill] sm:$0xff] %v9054_v29  ;;  %vm416_vm14 = vcmp.eq.f32.partialorder %v9054_v29, %v8985_v44 }
 0x3de   :  { %v7120_v49 = vsel %vm416_vm14, 1.0, %v13769_v0 }
 0x463   :  { %v252_v6 = vpop.xlane.xlu0 %251 }
 0x464   :  { %v256_v7 = vmul.f32 0.03125, %v252_v6 }
 0x465   :  { %v255_v8 = vpop.xlane.xlu1 %254 }
 0x466   :  { %v258_v9 = vsub.f32 %v246_v2, %v256_v7  ;;  %v257_v10 = vmul.f32 0.03125, %v255_v8  ;;  %v7116_v8 = vsel %vm9008_vm4, 1.0, %v13769_v0 }
 0x468   :  { %v259_v11 = vsub.f32 %v247_v4, %v257_v10  ;;  %v260_v12 = vmul.f32 %v258_v9, %v258_v9  ;;  %v7115_v4 = vsel %vm9000_vm3, 1.0, %v13769_v0  ;;  %v9032_v10 = vsub.f32 %v302_v34, %v360_v62 }
 0x469   :  { %v648_v25 = vpack.c.bf16 %v7116_v8, %v7115_v4 }
 0x46a   :  { %v262_v13 = vsel %vm39_vm1, %v260_v12, 0.0  ;;  %v261_v14 = vmul.f32 %v259_v11, %v259_v11  ;;  %13985 = vst [vmem:[#allocation19_spill] sm:$0xff] %v9032_v10  ;;  %v7088_v12 = vsel %vm393_vm5, 1.0, %v13769_v0  ;;  %vm414_vm10 = vcmp.eq.f32.partialorder %v9032_v10, %v8985_v44 }
 0x46b   :  { %263 = vadd.xlane.f32.xlu0 %v262_v13  ;;  %v7089_v13 = vsel %vm394_vm6, 1.0, %v13769_v0  ;;  %v7118_v34 = vsel %vm414_vm10, 1.0, %v13769_v0  ;;  %vm398_vm5 = vcmp.eq.f32.partialorder %v344_v3, %v8985_v44  ;;  %v294_v3 = vadd.s32 104, %v8965_v17 }
 0x46c   :  { %v265_v15 = vsel %vm91_vm2, %v261_v14, 0.0 }
 0x46d   :  { %266 = vadd.xlane.f32.xlu1 %v265_v15  ;;  %v361_v15 = vmul.f32 12.0, %v343_v63  ;;  %v312_v16 = vcvt.s32.f32 %v294_v3 }
 0x46f   :  { %v9052_v28 = vsub.f32 %v303_v42, %v361_v15  ;;  %v9082_v42 = vadd.s32 80, %v8965_v17 }
 0x471   :  { %13986 = vst [vmem:[#allocation20_spill] sm:$0xff] %v9052_v28  ;;  %vm415_vm13 = vcmp.eq.f32.partialorder %v9052_v28, %v8985_v44  ;;  %v309_v53 = vcvt.s32.f32 %v9082_v42 }
 0x473   :  { %v331_v63 = vmul.f32 0.083333336, %v309_v53 }
 0x4f8   :  { %v264_v21 = vpop.xlane.xlu0 %263 }
 0x4f9   :  { %v268_v22 = vmul.f32 0.03125, %v264_v21  ;;  %v9039_v21 = vmul.f32 0.083333336, %v305_v5 }
 0x4fa   :  { %v267_v23 = vpop.xlane.xlu1 %266 }
 0x4fb   :  { %v270_v26 = vadd.f32 1e-05, %v268_v22  ;;  %v269_v27 = vmul.f32 0.03125, %v267_v23  ;;  %v9042_v22 = vadd.s32 64, %v8965_v17  ;;  %v9045_v23 = vadd.s32 72, %v8965_v17 }
 0x4fd   :  { %8208 = vrsqrt.f32 %v270_v26  ;;  %v271_v30 = vadd.f32 1e-05, %v269_v27  ;;  %v466_v26 = vpack.c.bf16 %v7089_v13, %v7088_v12  ;;  %v307_v31 = vcvt.s32.f32 %v9042_v22 }
 0x4fe   :  { %v349_v12 = vfloor.f32 %v331_v63 }
 0x4ff   :  { %8210 = vrsqrt.f32 %v271_v30  ;;  %v345_v30 = vfloor.f32 %v9039_v21  ;;  %v329_v40 = vmul.f32 0.083333336, %v307_v31 }
 0x501   :  { %v363_v39 = vmul.f32 12.0, %v345_v30  ;;  %v347_v51 = vfloor.f32 %v329_v40  ;;  %vm399_vm11 = vcmp.eq.f32.partialorder %v345_v30, %v8985_v44 }
 0x502   :  { %v7094_v21 = vsel %vm399_vm11, 1.0, %v13769_v0 }
 0x503   :  { %v9095_v50 = vsub.f32 %v305_v5, %v363_v39  ;;  %vm401_vm11 = vcmp.eq.f32.partialorder %v347_v51, %v8985_v44 }
 0x504   :  { %v7096_v42 = vsel %vm401_vm11, 1.0, %v13769_v0  ;;  %vm403_vm11 = vcmp.eq.f32.partialorder %v349_v12, %v8985_v44 }
 0x505   :  { %13988 = vst [vmem:[#allocation22_spill] sm:$0xff] %v9095_v50  ;;  %vm13765_vm6 = vcmp.eq.f32.partialorder %v9095_v50, %v8985_v44  ;;  %v7098_v63 = vsel %vm403_vm11, 1.0, %v13769_v0 }
 0x506   :  { %v7121_v5 = vsel %vm13765_vm6, 1.0, %v13769_v0 }
 0x507   :  { %v8209_v47 = vpop.eup %8208 }
 0x508   :  { %v274_v52 = vmul.f32 %v8209_v47, %v258_v9  ;;  %v9030_v9 = vsub.f32 %v301_v32, %v359_v59  ;;  %v308_v32 = vcvt.s32.f32 %v9045_v23 }
 0x509   :  { %v8211_v54 = vpop.eup %8210 }
 0x50a   :  { %v275_v56 = vmul.f32 %v8211_v54, %v259_v11  ;;  %v276_v57 = vmul.f32 %v274_v52, %v248_v48  ;;  %13984 = vst [vmem:[#allocation18_spill] sm:$0xff] %v9030_v9  ;;  %v306_v11 = vcvt.s32.f32 %v9014_v1  ;;  %vm413_vm9 = vcmp.eq.f32.partialorder %v9030_v9, %v8985_v44 }
 0x50b   :  { %v7117_v33 = vsel %vm413_vm9, 1.0, %v13769_v0  ;;  %v330_v41 = vmul.f32 0.083333336, %v308_v32  ;;  %v310_v54 = vcvt.s32.f32 %v292_v45 }
 0x50c   :  { %v277_v2 = vmul.f32 %v275_v56, %v248_v48  ;;  %v9023_v6 = vadd.f32 %v276_v57, %v249_v60  ;;  %v328_v27 = vmul.f32 0.083333336, %v306_v11  ;;  %v649_v43 = vpack.c.bf16 %v7118_v34, %v7117_v33 }
 0x50d   :  { %v7119_v48 = vsel %vm415_vm13, 1.0, %v13769_v0  ;;  %v348_v52 = vfloor.f32 %v330_v41  ;;  %v7092_v56 = vsel %vm397_vm15, 1.0, %v13769_v0  ;;  %v7093_v57 = vsel %vm398_vm5, 1.0, %v13769_v0 }
 0x50e   :  { %13982 = vst [vmem:[#allocation16_spill] sm:$0xff] %v9023_v6  ;;  %v9025_v7 = vadd.f32 %v277_v2, %v249_v60  ;;  %v346_v35 = vfloor.f32 %v328_v27  ;;  %v650_v59 = vpack.c.bf16 %v7120_v49, %v7119_v48  ;;  %v365_v60 = vmul.f32 12.0, %v347_v51 }
 0x50f   :  { %v366_v62 = vmul.f32 12.0, %v348_v52  ;;  %v332_v1 = vmul.f32 0.083333336, %v310_v54  ;;  %v293_v2 = vadd.s32 96, %v8965_v17  ;;  %v468_v4 = vpack.c.bf16 %v7093_v57, %v7092_v56 }
 0x510   :  { %13983 = vst [vmem:[#allocation17_spill] sm:$0xff] %v9025_v7  ;;  %v429_v14 = vpack.c.bf16 %v9025_v7, %v9023_v6  ;;  %v364_v47 = vmul.f32 12.0, %v346_v35  ;;  %vm400_vm12 = vcmp.eq.f32.partialorder %v346_v35, %v8985_v44  ;;  %v9120_v8 = vsub.f32 %v307_v31, %v365_v60 }
 0x511   :  { %v311_v15 = vcvt.s32.f32 %v293_v2  ;;  %v7095_v22 = vsel %vm400_vm12, 1.0, %v13769_v0  ;;  %v334_v27 = vmul.f32 0.083333336, %v312_v16  ;;  %v295_v31 = vadd.s32 112, %v8965_v17 }
 0x512   :  { %v505_v24 = vsel %vm503_vm7, %v429_v14, 0  ;;  %v9102_v55 = vsub.f32 %v306_v11, %v364_v47  ;;  %13990 = vst [vmem:[#allocation24_spill] sm:$0xff] %v9120_v8  ;;  %v9122_v11 = vsub.f32 %v308_v32, %v366_v62  ;;  %v350_v14 = vfloor.f32 %v332_v1 }
 0x513   :  { %7540 = vmatpush3.bf16.msra.mxu1 %v505_v24  ;;  %7578 = vmatpush3.bf16.msra.mxu0 %v505_v24  ;;  %vm13759_vm15 = vcmp.eq.f32.partialorder %v9120_v8, %v8985_v44  ;;  %v367_v24 = vmul.f32 12.0, %v349_v12  ;;  %v469_v30 = vpack.c.bf16 %v7095_v22, %v7094_v21  ;;  %v296_v32 = vadd.s32 120, %v8965_v17 }
 0x514   :  { %13989 = vst [vmem:[#allocation23_spill] sm:$0xff] %v9102_v55  ;;  %vm13762_vm7 = vcmp.eq.f32.partialorder %v9102_v55, %v8985_v44  ;;  %13991 = vst [vmem:[#allocation25_spill] sm:$0xff] %v9122_v11  ;;  %vm13758_vm5 = vcmp.eq.f32.partialorder %v9122_v11, %v8985_v44  ;;  %vm402_vm12 = vcmp.eq.f32.partialorder %v348_v52, %v8985_v44  ;;  %v7123_v33 = vsel %vm13759_vm15, 1.0, %v13769_v0 }
 0x515   :  { %v7122_v13 = vsel %vm13762_vm7, 1.0, %v13769_v0  ;;  %v7124_v34 = vsel %vm13758_vm5, 1.0, %v13769_v0  ;;  %v9153_v35 = vsub.f32 %v309_v53, %v367_v24  ;;  %v352_v39 = vfloor.f32 %v334_v27 }
 0x516   :  { %7580 = vmatmul.mubr.msk.bf16.vlgmr.msra.gmra.mrb[8].mxu0 %vm13969_vm8, %v648_v25  ;;  %7542 = vmatmul.mubr.msk.bf16.vlgmr.msra.gmra.mrb[4].mxu1 %vm13969_vm8, %v466_v26  ;;  %v651_v23 = vpack.c.bf16 %v7122_v13, %v7121_v5  ;;  %v368_v25 = vmul.f32 12.0, %v350_v14  ;;  %v333_v26 = vmul.f32 0.083333336, %v311_v15  ;;  %v313_v40 = vcvt.s32.f32 %v295_v31 }
 0x517   :  { %7583 = vmatprep.mubr.msk.bf16.mxu0 %vm8861_vm0, %v13769_v0  ;;  %7545 = vmatprep.mubr.msk.bf16.mxu1 %vm8861_vm0, %v13769_v0  ;;  %13992 = vst [vmem:[#allocation26_spill] sm:$0xff] %v9153_v35  ;;  %v314_v41 = vcvt.s32.f32 %v296_v32  ;;  %v652_v45 = vpack.c.bf16 %v7124_v34, %v7123_v33  ;;  %v370_v47 = vmul.f32 12.0, %v352_v39  ;;  %vm13761_vm5 = vcmp.eq.f32.partialorder %v9153_v35, %v8985_v44 }
 0x518   :  { %v9155_v36 = vsub.f32 %v310_v54, %v368_v25  ;;  %v351_v38 = vfloor.f32 %v333_v26  ;;  %v335_v49 = vmul.f32 0.083333336, %v313_v40  ;;  %v297_v52 = vadd.s32 128, %v8965_v17 }
 0x519   :  { %v336_v51 = vmul.f32 0.083333336, %v314_v41  ;;  %v298_v53 = vadd.s32 136, %v8965_v17  ;;  %v7125_v54 = vsel %vm13761_vm5, 1.0, %v13769_v0  ;;  %vm406_vm11 = vcmp.eq.f32.partialorder %v352_v39, %v8985_v44 }
 0x51a   :  { %13993 = vst [vmem:[#allocation27_spill] sm:$0xff] %v9155_v36  ;;  %vm13760_vm15 = vcmp.eq.f32.partialorder %v9155_v36, %v8985_v44  ;;  %v353_v60 = vfloor.f32 %v335_v49  ;;  %v315_v2 = vcvt.s32.f32 %v297_v52  ;;  %vm405_vm7 = vcmp.eq.f32.partialorder %v351_v38, %v8985_v44 }
 0x51b   :  { %v7126_v56 = vsel %vm13760_vm15, 1.0, %v13769_v0  ;;  %v354_v62 = vfloor.f32 %v336_v51  ;;  %v316_v3 = vcvt.s32.f32 %v298_v53  ;;  %v7100_v24 = vsel %vm405_vm7, 1.0, %v13769_v0  ;;  %v8160_v53 = vld [vmem:[%s13754_s1 + $0x60] ss:$8 sps:$4 sm:$0xff]  }
 0x51c   :  { %v371_v12 = vmul.f32 12.0, %v353_v60  ;;  %v7101_v25 = vsel %vm406_vm11, 1.0, %v13769_v0 }
 0x51d   :  { %v372_v13 = vmul.f32 12.0, %v354_v62  ;;  %v472_v31 = vpack.c.bf16 %v7101_v25, %v7100_v24  ;;  %vm408_vm6 = vcmp.eq.f32.partialorder %v354_v62, %v8985_v44  ;;  %v8168_v62 = vld [vmem:[%s13754_s1 + $0x84] ss:$8 sps:$4 sm:$0xff]  }
 0x51e   :  { %7584 = vmatmul.mubr.msk.bf16.gmra.mrb[12].mxu0 %vm13969_vm8, %v649_v43  ;;  %7546 = vmatmul.mubr.msk.bf16.gmra.mrb[8].mxu1 %vm13969_vm8, %v467_v46  ;;  %v7097_v43 = vsel %vm402_vm12, 1.0, %v13769_v0  ;;  %v369_v46 = vmul.f32 12.0, %v351_v38  ;;  %vm404_vm12 = vcmp.eq.f32.partialorder %v350_v14, %v8985_v44  ;;  %v337_v14 = vmul.f32 0.083333336, %v315_v2 }
 0x51f   :  { %7587 = vmatprep.mubr.msk.bf16.mxu0 %vm8861_vm0, %v13769_v0  ;;  %7549 = vmatprep.mubr.msk.bf16.mxu1 %vm8861_vm0, %v13769_v0  ;;  %v470_v48 = vpack.c.bf16 %v7097_v43, %v7096_v42  ;;  %v7099_v1 = vsel %vm404_vm12, 1.0, %v13769_v0  ;;  %v9210_v22 = vsub.f32 %v313_v40, %v371_v12  ;;  %v7103_v40 = vsel %vm408_vm6, 1.0, %v13769_v0 }
 0x520   :  { %v9181_v57 = vsub.f32 %v311_v15, %v369_v46  ;;  %v471_v5 = vpack.c.bf16 %v7099_v1, %v7098_v63  ;;  %v338_v15 = vmul.f32 0.083333336, %v316_v3  ;;  %v355_v26 = vfloor.f32 %v337_v14  ;;  %v8166_v63 = vld [vmem:[%s13754_s1 + $0x80] ss:$8 sps:$4 sm:$0xff]   ;;  %v8171_v1 = vld [vmem:[%s13754_s1 + $0x94] ss:$8 sps:$4 sm:$0xff]  }
 0x521   :  { %13996 = vst [vmem:[#allocation30_spill] sm:$0xff] %v9210_v22  ;;  %vm13767_vm12 = vcmp.eq.f32.partialorder %v9210_v22, %v8985_v44  ;;  %vm949_vm6 = vcmask 523264  }
 0x522   :  { %13994 = vst [vmem:[#allocation28_spill] sm:$0xff] %v9181_v57  ;;  %vm13764_vm15 = vcmp.eq.f32.partialorder %v9181_v57, %v8985_v44  ;;  %v356_v27 = vfloor.f32 %v338_v15  ;;  %v373_v32 = vmul.f32 12.0, %v355_v26  ;;  %v7129_v34 = vsel %vm13767_vm12, 1.0, %v13769_v0 }
 0x524   :  { %v374_v33 = vmul.f32 12.0, %v356_v27  ;;  %vm410_vm12 = vcmp.eq.f32.partialorder %v356_v27, %v8985_v44 }
 0x525   :  { %v7105_v49 = vsel %vm410_vm12, 1.0, %v13769_v0  ;;  %vm1110_vm12 = vcmp.lt.s32.totalorder %v8982_v37, 32 }
 0x526   :  { %7588 = vmatmul.mubr.msk.bf16.gmra.mrb[16].mxu0 %vm13969_vm8, %v650_v59  ;;  %7550 = vmatmul.mubr.msk.bf16.gmra.mrb[12].mxu1 %vm13969_vm8, %v468_v4  ;;  %v9183_v59 = vsub.f32 %v312_v16, %v370_v47  ;;  %v653_v4 = vpack.c.bf16 %v7126_v56, %v7125_v54  ;;  %v7127_v16 = vsel %vm13764_vm15, 1.0, %v13769_v0  ;;  %vm407_vm15 = vcmp.eq.f32.partialorder %v353_v60, %v8985_v44  ;;  %v8162_v54 = vld [vmem:[%s13754_s1 + $0x64] ss:$8 sps:$4 sm:$0xff]   ;;  %v8163_v56 = vld [vmem:[%s13754_s1 + $0x70] ss:$8 sps:$4 sm:$0xff]  }
 0x527   :  { %7591 = vmatprep.mubr.msk.bf16.mxu0 %vm8861_vm0, %v13769_v0  ;;  %7553 = vmatprep.mubr.msk.bf16.mxu1 %vm8861_vm0, %v13769_v0  ;;  %v7102_v39 = vsel %vm407_vm15, 1.0, %v13769_v0  ;;  %v9242_v42 = vsub.f32 %v316_v3, %v374_v33  ;;  %v8165_v60 = vld [vmem:[%s13754_s1 + $0x74] ss:$8 sps:$4 sm:$0xff]   ;;  %v13771_v3 = vmov 0   ;;  %vm1698_vm15 = vcmp.ge.s32.totalorder %v8982_v37, 32 }
 0x528   :  { %13995 = vst [vmem:[#allocation29_spill] sm:$0xff] %v9183_v59  ;;  %vm13763_vm5 = vcmp.eq.f32.partialorder %v9183_v59, %v8985_v44  ;;  %977 = vmatprep.subr.bf16.mxu1 %v8162_v54  ;;  %1223 = vmatprep.subr.bf16.mxu0 %v13771_v3 }
 0x529   :  { %v7128_v21 = vsel %vm13763_vm5, 1.0, %v13769_v0  ;;  %13999 = vst [vmem:[#allocation33_spill] sm:$0xff] %v9242_v42  ;;  %vm13768_vm11 = vcmp.eq.f32.partialorder %v9242_v42, %v8985_v44  ;;  %978 = vmatpush1.bf16.msra.mxu1 %v8160_v53  ;;  %8107 = vset.pattern.permute.xlu1 %v13771_v3 }
 0x52a   :  { %v7132_v47 = vsel %vm13768_vm11, 1.0, %v13769_v0  ;;  %979 = vmatprep.subr.bf16.mxu1 %v8165_v60  ;;  %8113 = vset.pattern.permute.xlu0 %v13771_v3 }
 0x52d   :  { %980 = vmatpush1.bf16.msra.mxu1 %v8163_v56 }
 0x52e   :  { %7592 = vmatmul.mubr.msk.bf16.gmra.mrb[20].mxu0 %vm13969_vm8, %v651_v23  ;;  %7554 = vmatmul.mubr.msk.bf16.gmra.mrb[16].mxu1 %vm13969_vm8, %v469_v30  ;;  %v9212_v23 = vsub.f32 %v314_v41, %v372_v13  ;;  %v654_v30 = vpack.c.bf16 %v7128_v21, %v7127_v16  ;;  %v9240_v41 = vsub.f32 %v315_v2, %v373_v32  ;;  %v8169_v2 = vld [vmem:[%s13754_s1 + $0x90] ss:$8 sps:$4 sm:$0xff]  }
 0x52f   :  { %7595 = vmatprep.mubr.msk.bf16.mxu0 %vm8861_vm0, %v13769_v0  ;;  %7557 = vmatprep.mubr.msk.bf16.mxu1 %vm8861_vm0, %v13769_v0 }
 0x530   :  { %13997 = vst [vmem:[#allocation31_spill] sm:$0xff] %v9212_v23  ;;  %vm13766_vm5 = vcmp.eq.f32.partialorder %v9212_v23, %v8985_v44  ;;  %13998 = vst [vmem:[#allocation32_spill] sm:$0xff] %v9240_v41  ;;  %vm427_vm7 = vcmp.eq.f32.partialorder %v9240_v41, %v8985_v44  ;;  %981 = vmatprep.subr.bf16.mxu1 %v8168_v62 }
 0x531   :  { %v7130_v38 = vsel %vm13766_vm5, 1.0, %v13769_v0  ;;  %vm409_vm5 = vcmp.eq.f32.partialorder %v355_v26, %v8985_v44  ;;  %v7131_v46 = vsel %vm427_vm7, 1.0, %v13769_v0  ;;  %982 = vmatpush1.bf16.msra.mxu1 %v8166_v63 }
 0x532   :  { %v655_v43 = vpack.c.bf16 %v7130_v38, %v7129_v34  ;;  %v656_v51 = vpack.c.bf16 %v7132_v47, %v7131_v46  ;;  %983 = vmatprep.subr.bf16.mxu1 %v8171_v1 }
 0x535   :  { %984 = vmatpush1.bf16.msra.mxu1 %v8169_v2 }
 0x536   :  { %7596 = vmatmul.mubr.msk.bf16.gmra.mrb[24].mxu0 %vm13969_vm8, %v652_v45  ;;  %7558 = vmatmul.mubr.msk.bf16.gmra.mrb[20].mxu1 %vm13969_vm8, %v470_v48  ;;  %v473_v45 = vpack.c.bf16 %v7103_v40, %v7102_v39  ;;  %v7104_v48 = vsel %vm409_vm5, 1.0, %v13769_v0  ;;  %vm1699_vm5 = vcmp.lt.s32.totalorder %v8982_v37, 64 }
 0x537   :  { %7599 = vmatprep.mubr.msk.bf16.mxu0 %vm8861_vm0, %v13769_v0  ;;  %7561 = vmatprep.mubr.msk.bf16.mxu1 %vm8861_vm0, %v13769_v0  ;;  %v474_v52 = vpack.c.bf16 %v7105_v49, %v7104_v48  ;;  %vm1700_vm11 = vmand %vm1698_vm15, %vm1699_vm5 }
 0x538   :  { %1758 = vmatprep.subr.bf16.mxu1 %v13771_v3 }
 0x53e   :  { %7600 = vmatmul.mubr.msk.bf16.gmra.mrb[28].mxu0 %vm13969_vm8, %v653_v4  ;;  %7562 = vmatmul.mubr.msk.bf16.gmra.mrb[24].mxu1 %vm13969_vm8, %v471_v5 }
 0x53f   :  { %7603 = vmatprep.mubr.msk.bf16.mxu0 %vm8861_vm0, %v13769_v0  ;;  %7565 = vmatprep.mubr.msk.bf16.mxu1 %vm8861_vm0, %v13769_v0 }
 0x546   :  { %7604 = vmatmul.mubr.msk.bf16.gmra.mrb[32].mxu0 %vm13969_vm8, %v654_v30  ;;  %7566 = vmatmul.mubr.msk.bf16.gmra.mrb[28].mxu1 %vm13969_vm8, %v472_v31 }
 0x547   :  { %7607 = vmatprep.mubr.msk.bf16.mxu0 %vm8861_vm0, %v13769_v0  ;;  %7569 = vmatprep.mubr.msk.bf16.mxu1 %vm8861_vm0, %v13769_v0 }
 0x54e   :  { %7608 = vmatmul.mubr.msk.bf16.gmra.mrb[36].mxu0 %vm13969_vm8, %v655_v43  ;;  %7570 = vmatmul.mubr.msk.bf16.gmra.mrb[32].mxu1 %vm13969_vm8, %v473_v45 }
 0x54f   :  { %7611 = vmatprep.mubr.msk.bf16.mxu0 %vm8861_vm0, %v13769_v0  ;;  %7573 = vmatprep.mubr.msk.bf16.mxu1 %vm8861_vm0, %v13769_v0 }
 0x556   :  { %7612 = vmatmul.mubr.msk.bf16.gmra.mrb[40].mxu0 %vm13969_vm8, %v656_v51  ;;  %7574 = vmatmul.mubr.msk.bf16.gmra.mrb[36].mxu1 %vm13969_vm8, %v474_v52 }
 0x557   :  { %1009 = vmatprep.mubr.bf16.mxu1 %v13771_v3  ;;  %1255 = vmatprep.mubr.bf16.mxu0 %v13771_v3 }
 0x5e9   :  { %v718_v4 = vpop.f32.mrb[8].mxu0  ;;  %v9298_v5 = vpop.f32.mrb[4].mxu1 }
 0x5ea   :  { %807 = vrot.lane.b32.xlu0 %v718_v4, %s8863_s7  ;;  %v7581_v12 = vpop.f32.mrb[9].mxu0  ;;  %v7543_v13 = vpop.f32.mrb[5].mxu1 }
 0x5eb   :  { %v721_v14 = vpop.f32.mrb[10].mxu0  ;;  %v9301_v15 = vpop.f32.mrb[6].mxu1 }
 0x5ec   :  { %809 = vrot.lane.b32.xlu1 %v721_v14, %s8863_s7  ;;  %v7582_v16 = vpop.f32.mrb[11].mxu0  ;;  %v7544_v21 = vpop.f32.mrb[7].mxu1 }
 0x5f1   :  { %v726_v24 = vpop.f32.mrb[12].mxu0  ;;  %v9304_v25 = vpop.f32.mrb[8].mxu1 }
 0x5f2   :  { %811 = vrot.lane.b32.xlu1 %v726_v24, %s8863_s7  ;;  %v7585_v26 = vpop.f32.mrb[13].mxu0  ;;  %v7547_v27 = vpop.f32.mrb[9].mxu1 }
 0x5f3   :  { %v729_v30 = vpop.f32.mrb[14].mxu0  ;;  %v9307_v31 = vpop.f32.mrb[10].mxu1 }
 0x5f4   :  { %v7586_v32 = vpop.f32.mrb[15].mxu0  ;;  %v7548_v33 = vpop.f32.mrb[11].mxu1 }
 0x5f6   :  { %813 = vrot.lane.b32.xlu1 %v729_v30, %s8863_s7 }
 0x5f9   :  { %v734_v34 = vpop.f32.mrb[16].mxu0  ;;  %v9310_v38 = vpop.f32.mrb[12].mxu1 }
 0x5fa   :  { %v7589_v39 = vpop.f32.mrb[17].mxu0  ;;  %815 = vrot.lane.b32.xlu0 %v734_v34, %s8863_s7  ;;  %v7551_v40 = vpop.f32.mrb[13].mxu1 }
 0x5fb   :  { %v737_v43 = vpop.f32.mrb[18].mxu0  ;;  %v9313_v45 = vpop.f32.mrb[14].mxu1 }
 0x5fc   :  { %817 = vrot.lane.b32.xlu1 %v737_v43, %s8863_s7  ;;  %v7590_v46 = vpop.f32.mrb[19].mxu0  ;;  %v7552_v47 = vpop.f32.mrb[15].mxu1 }
 0x601   :  { %v742_v48 = vpop.f32.mrb[20].mxu0  ;;  %v9316_v49 = vpop.f32.mrb[16].mxu1 }
 0x602   :  { %v7593_v51 = vpop.f32.mrb[21].mxu0  ;;  %819 = vrot.lane.b32.xlu0 %v742_v48, %s8863_s7  ;;  %v7555_v52 = vpop.f32.mrb[17].mxu1 }
 0x603   :  { %v745_v53 = vpop.f32.mrb[22].mxu0  ;;  %v9319_v54 = vpop.f32.mrb[18].mxu1 }
 0x604   :  { %821 = vrot.lane.b32.xlu1 %v745_v53, %s8863_s7  ;;  %v7594_v56 = vpop.f32.mrb[23].mxu0  ;;  %v7556_v60 = vpop.f32.mrb[19].mxu1 }
 0x609   :  { %v750_v62 = vpop.f32.mrb[24].mxu0  ;;  %v9322_v63 = vpop.f32.mrb[20].mxu1 }
 0x60a   :  { %v7597_v1 = vpop.f32.mrb[25].mxu0  ;;  %823 = vrot.lane.b32.xlu0 %v750_v62, %s8863_s7  ;;  %v7559_v2 = vpop.f32.mrb[21].mxu1 }
 0x60b   :  { %v753_v4 = vpop.f32.mrb[26].mxu0  ;;  %v9325_v12 = vpop.f32.mrb[22].mxu1 }
 0x60c   :  { %825 = vrot.lane.b32.xlu1 %v753_v4, %s8863_s7  ;;  %v7598_v13 = vpop.f32.mrb[27].mxu0  ;;  %v7560_v14 = vpop.f32.mrb[23].mxu1 }
 0x611   :  { %v758_v16 = vpop.f32.mrb[28].mxu0  ;;  %v9328_v21 = vpop.f32.mrb[24].mxu1 }
 0x612   :  { %v7601_v24 = vpop.f32.mrb[29].mxu0  ;;  %827 = vrot.lane.b32.xlu0 %v758_v16, %s8863_s7  ;;  %v7563_v26 = vpop.f32.mrb[25].mxu1 }
 0x613   :  { %v761_v27 = vpop.f32.mrb[30].mxu0  ;;  %v9331_v30 = vpop.f32.mrb[26].mxu1 }
 0x614   :  { %829 = vrot.lane.b32.xlu1 %v761_v27, %s8863_s7  ;;  %v7602_v32 = vpop.f32.mrb[31].mxu0  ;;  %v7564_v33 = vpop.f32.mrb[27].mxu1 }
 0x619   :  { %v766_v34 = vpop.f32.mrb[32].mxu0  ;;  %v9334_v39 = vpop.f32.mrb[28].mxu1 }
 0x61a   :  { %v7605_v40 = vpop.f32.mrb[33].mxu0  ;;  %831 = vrot.lane.b32.xlu0 %v766_v34, %s8863_s7  ;;  %v7567_v43 = vpop.f32.mrb[29].mxu1 }
 0x61b   :  { %v769_v46 = vpop.f32.mrb[34].mxu0  ;;  %v9337_v47 = vpop.f32.mrb[30].mxu1 }
 0x61c   :  { %833 = vrot.lane.b32.xlu1 %v769_v46, %s8863_s7  ;;  %v7606_v48 = vpop.f32.mrb[35].mxu0  ;;  %v7568_v51 = vpop.f32.mrb[31].mxu1 }
 0x621   :  { %v774_v52 = vpop.f32.mrb[36].mxu0  ;;  %v9340_v53 = vpop.f32.mrb[32].mxu1 }
 0x622   :  { %v7609_v56 = vpop.f32.mrb[37].mxu0  ;;  %835 = vrot.lane.b32.xlu0 %v774_v52, %s8863_s7  ;;  %v7571_v60 = vpop.f32.mrb[33].mxu1 }
 0x623   :  { %v777_v62 = vpop.f32.mrb[38].mxu0  ;;  %v9343_v1 = vpop.f32.mrb[34].mxu1 }
 0x624   :  { %837 = vrot.lane.b32.xlu1 %v777_v62, %s8863_s7  ;;  %v7610_v2 = vpop.f32.mrb[39].mxu0  ;;  %v7572_v4 = vpop.f32.mrb[35].mxu1 }
 0x629   :  { %v782_v13 = vpop.f32.mrb[40].mxu0  ;;  %v9346_v14 = vpop.f32.mrb[36].mxu1 }
 0x62a   :  { %v7613_v16 = vpop.f32.mrb[41].mxu0  ;;  %839 = vrot.lane.b32.xlu0 %v782_v13, %s8863_s7  ;;  %v7575_v24 = vpop.f32.mrb[37].mxu1 }
 0x62b   :  { %v785_v26 = vpop.f32.mrb[42].mxu0  ;;  %v9349_v27 = vpop.f32.mrb[38].mxu1 }
 0x62c   :  { %841 = vrot.lane.b32.xlu1 %v785_v26, %s8863_s7  ;;  %v7614_v32 = vpop.f32.mrb[43].mxu0  ;;  %v7576_v33 = vpop.f32.mrb[39].mxu1 }
 0x65c   :  { %v808_v34 = vpop.permute.xlu0 %807 }
 0x65d   :  { %v9354_v43 = vsel %vm39_vm1, %v9298_v5, %v808_v34 }
 0x65e   :  { %v810_v40 = vpop.permute.xlu1 %809  ;;  %14000 = vst [vmem:[#allocation34_spill] sm:$0xff] %v9354_v43 }
 0x65f   :  { %v9358_v46 = vsel %vm39_vm1, %v9301_v15, %v810_v40 }
 0x660   :  { %14001 = vst [vmem:[#allocation35_spill] sm:$0xff] %v9358_v46  ;;  %v887_v48 = vpack.c.bf16 %v9358_v46, %v9354_v43 }
 0x662   :  { %7151 = vmatmul.mubr.msk.bf16.vlgmr.msra.gmra.mrb[40].mxu1 %vm949_vm6, %v887_v48 }
 0x663   :  { %1019 = vmatprep.mubr.bf16.mxu1 %v13771_v3 }
 0x664   :  { %v812_v51 = vpop.permute.xlu1 %811 }
 0x665   :  { %v9366_v56 = vsel %vm39_vm1, %v9304_v25, %v812_v51 }
 0x666   :  { %14002 = vst [vmem:[#allocation36_spill] sm:$0xff] %v9366_v56 }
 0x668   :  { %v814_v52 = vpop.permute.xlu1 %813 }
 0x669   :  { %v9370_v5 = vsel %vm39_vm1, %v9307_v31, %v814_v52 }
 0x66a   :  { %14003 = vst [vmem:[#allocation37_spill] sm:$0xff] %v9370_v5  ;;  %v888_v15 = vpack.c.bf16 %v9370_v5, %v9366_v56 }
 0x66c   :  { %7152 = vmatmul.mubr.msk.bf16.gmra.mrb[44].mxu1 %vm949_vm6, %v888_v15  ;;  %v816_v60 = vpop.permute.xlu0 %815 }
 0x66d   :  { %1029 = vmatprep.mubr.bf16.mxu1 %v13771_v3  ;;  %v9378_v2 = vsel %vm39_vm1, %v9310_v38, %v816_v60 }
 0x66e   :  { %v818_v62 = vpop.permute.xlu1 %817  ;;  %14004 = vst [vmem:[#allocation38_spill] sm:$0xff] %v9378_v2 }
 0x66f   :  { %v9382_v25 = vsel %vm39_vm1, %v9313_v45, %v818_v62 }
 0x670   :  { %14005 = vst [vmem:[#allocation39_spill] sm:$0xff] %v9382_v25  ;;  %v889_v31 = vpack.c.bf16 %v9382_v25, %v9378_v2 }
 0x674   :  { %7153 = vmatmul.mubr.msk.bf16.gmra.mrb[48].mxu1 %vm949_vm6, %v889_v31  ;;  %v820_v4 = vpop.permute.xlu0 %819 }
 0x675   :  { %1039 = vmatprep.mubr.bf16.mxu1 %v13771_v3  ;;  %v9390_v16 = vsel %vm39_vm1, %v9316_v49, %v820_v4 }
 0x676   :  { %v822_v13 = vpop.permute.xlu1 %821  ;;  %14006 = vst [vmem:[#allocation40_spill] sm:$0xff] %v9390_v16 }
 0x677   :  { %v9394_v38 = vsel %vm39_vm1, %v9319_v54, %v822_v13 }
 0x678   :  { %14007 = vst [vmem:[#allocation41_spill] sm:$0xff] %v9394_v38  ;;  %v890_v45 = vpack.c.bf16 %v9394_v38, %v9390_v16 }
 0x67c   :  { %7154 = vmatmul.mubr.msk.bf16.gmra.mrb[52].mxu1 %vm949_vm6, %v890_v45  ;;  %v824_v24 = vpop.permute.xlu0 %823  ;;  %v901_v45 = vsub.s32 0, %v8965_v17 }
 0x67d   :  { %1049 = vmatprep.mubr.bf16.mxu1 %v13771_v3  ;;  %v9402_v32 = vsel %vm39_vm1, %v9322_v63, %v824_v24 }
 0x67e   :  { %v826_v26 = vpop.permute.xlu1 %825  ;;  %14008 = vst [vmem:[#allocation42_spill] sm:$0xff] %v9402_v32 }
 0x67f   :  { %v9406_v49 = vsel %vm39_vm1, %v9325_v12, %v826_v26  ;;  %v9471_v26 = vsel %vm1110_vm12, 1.0, %v13769_v0 }
 0x680   :  { %14009 = vst [vmem:[#allocation43_spill] sm:$0xff] %v9406_v49  ;;  %v891_v54 = vpack.c.bf16 %v9406_v49, %v9402_v32 }
 0x684   :  { %7155 = vmatmul.mubr.msk.bf16.gmra.mrb[56].mxu1 %vm949_vm6, %v891_v54  ;;  %v828_v33 = vpop.permute.xlu0 %827  ;;  %v9474_v54 = vsel %vm1700_vm11, 1.0, %v13769_v0  ;;  %vm1346_vm11 = vcmask 130048  }
 0x685   :  { %1059 = vmatprep.mubr.bf16.mxu1 %v13771_v3  ;;  %v9414_v40 = vsel %vm39_vm1, %v9328_v21, %v828_v33 }
 0x686   :  { %v830_v34 = vpop.permute.xlu1 %829  ;;  %14010 = vst [vmem:[#allocation44_spill] sm:$0xff] %v9414_v40 }
 0x687   :  { %v9418_v63 = vsel %vm39_vm1, %v9331_v30, %v830_v34 }
 0x688   :  { %14011 = vst [vmem:[#allocation45_spill] sm:$0xff] %v9418_v63  ;;  %v892_v12 = vpack.c.bf16 %v9418_v63, %v9414_v40 }
 0x68c   :  { %7156 = vmatmul.mubr.msk.bf16.gmra.mrb[60].mxu1 %vm949_vm6, %v892_v12  ;;  %v832_v48 = vpop.permute.xlu0 %831  ;;  %v9479_v12 = vmul.f32 0.17677669, %v9471_v26 }
 0x68d   :  { %1069 = vmatprep.mubr.bf16.mxu1 %v13771_v3  ;;  %v9426_v52 = vsel %vm39_vm1, %v9334_v39, %v832_v48 }
 0x68e   :  { %v834_v51 = vpop.permute.xlu1 %833  ;;  %14012 = vst [vmem:[#allocation46_spill] sm:$0xff] %v9426_v52 }
 0x68f   :  { %v9430_v21 = vsel %vm39_vm1, %v9337_v47, %v834_v51  ;;  %v9483_v51 = vmul.f32 0.17677669, %v9474_v54 }
 0x690   :  { %14013 = vst [vmem:[#allocation47_spill] sm:$0xff] %v9430_v21  ;;  %v893_v30 = vpack.c.bf16 %v9430_v21, %v9426_v52 }
 0x694   :  { %7157 = vmatmul.mubr.msk.bf16.gmra.mrb[64].mxu1 %vm949_vm6, %v893_v30  ;;  %v836_v15 = vpop.permute.xlu0 %835 }
 0x695   :  { %1079 = vmatprep.mubr.bf16.mxu1 %v13771_v3  ;;  %v9438_v62 = vsel %vm39_vm1, %v9340_v53, %v836_v15 }
 0x696   :  { %v838_v60 = vpop.permute.xlu1 %837  ;;  %14014 = vst [vmem:[#allocation48_spill] sm:$0xff] %v9438_v62 }
 0x697   :  { %v9442_v39 = vsel %vm39_vm1, %v9343_v1, %v838_v60 }
 0x698   :  { %14015 = vst [vmem:[#allocation49_spill] sm:$0xff] %v9442_v39  ;;  %v894_v47 = vpack.c.bf16 %v9442_v39, %v9438_v62 }
 0x69c   :  { %7158 = vmatmul.mubr.msk.bf16.gmra.mrb[68].mxu1 %vm949_vm6, %v894_v47  ;;  %v840_v31 = vpop.permute.xlu0 %839 }
 0x69d   :  { %1089 = vmatprep.mubr.bf16.mxu1 %v13771_v3  ;;  %v9450_v13 = vsel %vm39_vm1, %v9346_v14, %v840_v31  ;;  %v7142_v14 = vld [vmem:[%s13755_s2 + $0x70] ss:$8 sm:$0x3] }
 0x69e   :  { %v842_v4 = vpop.permute.xlu1 %841  ;;  %14016 = vst [vmem:[#allocation50_spill] sm:$0xff] %v9450_v13  ;;  %v9468_v24 = vrot.slane %v7142_v14, %v901_v45 }
 0x69f   :  { %v9454_v53 = vsel %vm39_vm1, %v9349_v27, %v842_v4  ;;  %v905_v27 = vsub.s32 1, %v8965_v17 }
 0x6a0   :  { %14017 = vst [vmem:[#allocation51_spill] sm:$0xff] %v9454_v53  ;;  %v895_v1 = vpack.c.bf16 %v9454_v53, %v9450_v13 }
 0x6a1   :  { %v9476_v33 = vrot.slane %v7142_v14, %v905_v27 }
 0x6a4   :  { %7159 = vmatmul.mubr.msk.bf16.gmra.mrb[72].mxu1 %vm949_vm6, %v895_v1 }
 0x6a5   :  { %1790 = vmatprep.mubr.bf16.mxu1 %v13771_v3 }
 0x735   :  { %v1011_v34 = vpop.f32.mrb[40].mxu1 }
 0x736   :  { %v1012_v48 = vadd.f32 %v1011_v34, %v9468_v24  ;;  %v1013_v30 = vpop.f32.mrb[41].mxu1 }
 0x737   :  { %v1014_v15 = vadd.f32 %v1013_v30, %v9476_v33  ;;  %v1015_v60 = vpop.f32.mrb[42].mxu1 }
 0x738   :  { %v1016_v47 = vadd.f32 %v1015_v60, %v9468_v24  ;;  %v1017_v31 = vpop.f32.mrb[43].mxu1  ;;  %v9488_v4 = vmul.f32 %v9479_v12, %v1012_v48  ;;  %v9492_v45 = vmul.f32 %v9483_v51, %v1012_v48 }
 0x739   :  { %v1018_v1 = vadd.f32 %v1017_v31, %v9476_v33  ;;  %v9501_v30 = vmul.f32 %v9471_v26, %v1014_v15  ;;  %v9504_v60 = vmul.f32 %v9474_v54, %v1014_v15 }
 0x73a   :  { %v9495_v14 = vmul.f32 %v9479_v12, %v1016_v47  ;;  %v9498_v27 = vmul.f32 %v9483_v51, %v1016_v47  ;;  %v1100_v34 = vpack.c.bf16 %v1016_v47, %v1012_v48 }
 0x73b   :  { %14018 = vst [vmem:[#allocation52_spill] sm:$0xff] %v9501_v30  ;;  %v9507_v0 = vmul.f32 %v9471_v26, %v1018_v1  ;;  %v9510_v31 = vmul.f32 %v9474_v54, %v1018_v1 }
 0x73c   :  { %1151 = vrot.lane.b32.xlu0 %v1100_v34, %s8864_s10 }
 0x73d   :  { %14019 = vst [vmem:[#allocation53_spill] sm:$0xff] %v9507_v0 }
 0x73f   :  { %v1021_v47 = vpop.f32.mrb[44].mxu1 }
 0x740   :  { %v1022_v42 = vadd.f32 %v1021_v47, %v9468_v24  ;;  %v1023_v1 = vpop.f32.mrb[45].mxu1 }
 0x741   :  { %v1024_v41 = vadd.f32 %v1023_v1, %v9476_v33  ;;  %v1025_v23 = vpop.f32.mrb[46].mxu1 }
 0x742   :  { %v1026_v3 = vadd.f32 %v1025_v23, %v9468_v24  ;;  %v1027_v22 = vpop.f32.mrb[47].mxu1  ;;  %v9525_v18 = vmul.f32 %v9479_v12, %v1022_v42  ;;  %v9529_v48 = vmul.f32 %v9483_v51, %v1022_v42 }
 0x743   :  { %v1028_v34 = vadd.f32 %v1027_v22, %v9476_v33  ;;  %v9538_v1 = vmul.f32 %v9471_v26, %v1024_v41  ;;  %v9541_v23 = vmul.f32 %v9474_v54, %v1024_v41 }
 0x744   :  { %v9532_v15 = vmul.f32 %v9479_v12, %v1026_v3  ;;  %v9535_v47 = vmul.f32 %v9483_v51, %v1026_v3  ;;  %v1101_v59 = vpack.c.bf16 %v1026_v3, %v1022_v42 }
 0x745   :  { %14020 = vst [vmem:[#allocation54_spill] sm:$0xff] %v9538_v1  ;;  %v9544_v57 = vmul.f32 %v9471_v26, %v1028_v34  ;;  %v9547_v22 = vmul.f32 %v9474_v54, %v1028_v34 }
 0x746   :  { %1153 = vrot.lane.b32.xlu1 %v1101_v59, %s8864_s10 }
 0x747   :  { %14021 = vst [vmem:[#allocation55_spill] sm:$0xff] %v9544_v57  ;;  %v1031_v3 = vpop.f32.mrb[48].mxu1 }
 0x748   :  { %v1032_v11 = vadd.f32 %v1031_v3, %v9468_v24  ;;  %v1033_v8 = vpop.f32.mrb[49].mxu1 }
 0x749   :  { %v1034_v34 = vadd.f32 %v1033_v8, %v9476_v33  ;;  %v1035_v55 = vpop.f32.mrb[50].mxu1 }
 0x74a   :  { %v1036_v59 = vadd.f32 %v1035_v55, %v9468_v24  ;;  %v1037_v50 = vpop.f32.mrb[51].mxu1  ;;  %v9562_v36 = vmul.f32 %v9479_v12, %v1032_v11  ;;  %v9566_v29 = vmul.f32 %v9483_v51, %v1032_v11 }
 0x74b   :  { %v1038_v42 = vadd.f32 %v1037_v50, %v9476_v33  ;;  %v9575_v8 = vmul.f32 %v9471_v26, %v1034_v34  ;;  %v9578_v55 = vmul.f32 %v9474_v54, %v1034_v34 }
 0x74c   :  { %v9569_v35 = vmul.f32 %v9479_v12, %v1036_v59  ;;  %v9572_v3 = vmul.f32 %v9483_v51, %v1036_v59  ;;  %v1102_v41 = vpack.c.bf16 %v1036_v59, %v1032_v11 }
 0x74d   :  { %14022 = vst [vmem:[#allocation56_spill] sm:$0xff] %v9575_v8  ;;  %v9581_v28 = vmul.f32 %v9471_v26, %v1038_v42  ;;  %v9584_v50 = vmul.f32 %v9474_v54, %v1038_v42 }
 0x74e   :  { %1155 = vrot.lane.b32.xlu0 %v1102_v41, %s8864_s10 }
 0x74f   :  { %14023 = vst [vmem:[#allocation57_spill] sm:$0xff] %v9581_v28  ;;  %v1041_v59 = vpop.f32.mrb[52].mxu1 }
 0x750   :  { %v1042_v9 = vadd.f32 %v1041_v59, %v9468_v24  ;;  %v1043_v61 = vpop.f32.mrb[53].mxu1 }
 0x751   :  { %v1044_v42 = vadd.f32 %v1043_v61, %v9476_v33  ;;  %v1045_v58 = vpop.f32.mrb[54].mxu1 }
 0x752   :  { %v1046_v41 = vadd.f32 %v1045_v58, %v9468_v24  ;;  %v1047_v17 = vpop.f32.mrb[55].mxu1  ;;  %v9599_v10 = vmul.f32 %v9479_v12, %v1042_v9  ;;  %v9603_v20 = vmul.f32 %v9483_v51, %v1042_v9 }
 0x753   :  { %v1048_v11 = vadd.f32 %v1047_v17, %v9476_v33  ;;  %v9612_v61 = vmul.f32 %v9471_v26, %v1044_v42  ;;  %v9615_v58 = vmul.f32 %v9474_v54, %v1044_v42 }
 0x754   :  { %v9606_v44 = vmul.f32 %v9479_v12, %v1046_v41  ;;  %v9609_v59 = vmul.f32 %v9483_v51, %v1046_v41  ;;  %v1103_v34 = vpack.c.bf16 %v1046_v41, %v1042_v9 }
 0x755   :  { %14024 = vst [vmem:[#allocation58_spill] sm:$0xff] %v9612_v61  ;;  %v9618_v19 = vmul.f32 %v9471_v26, %v1048_v11  ;;  %v9621_v17 = vmul.f32 %v9474_v54, %v1048_v11 }
 0x756   :  { %1157 = vrot.lane.b32.xlu1 %v1103_v34, %s8864_s10 }
 0x757   :  { %14025 = vst [vmem:[#allocation59_spill] sm:$0xff] %v9618_v19  ;;  %v1051_v41 = vpop.f32.mrb[56].mxu1 }
 0x758   :  { %v1052_v37 = vadd.f32 %v1051_v41, %v9468_v24  ;;  %v1053_v53 = vpop.f32.mrb[57].mxu1 }
 0x759   :  { %v1054_v11 = vadd.f32 %v1053_v53, %v9476_v33  ;;  %v1055_v13 = vpop.f32.mrb[58].mxu1 }
 0x75a   :  { %v1056_v34 = vadd.f32 %v1055_v13, %v9468_v24  ;;  %v1057_v39 = vpop.f32.mrb[59].mxu1  ;;  %v9636_v7 = vmul.f32 %v9479_v12, %v1052_v37  ;;  %v9640_v62 = vmul.f32 %v9483_v51, %v1052_v37 }
 0x75b   :  { %v1058_v9 = vadd.f32 %v1057_v39, %v9476_v33  ;;  %v9649_v53 = vmul.f32 %v9471_v26, %v1054_v11  ;;  %v9652_v13 = vmul.f32 %v9474_v54, %v1054_v11 }
 0x75c   :  { %v9643_v6 = vmul.f32 %v9479_v12, %v1056_v34  ;;  %v9646_v41 = vmul.f32 %v9483_v51, %v1056_v34  ;;  %v1104_v42 = vpack.c.bf16 %v1056_v34, %v1052_v37 }
 0x75d   :  { %14026 = vst [vmem:[#allocation60_spill] sm:$0xff] %v9649_v53  ;;  %v9655_v21 = vmul.f32 %v9471_v26, %v1058_v9  ;;  %v9658_v39 = vmul.f32 %v9474_v54, %v1058_v9 }
 0x75e   :  { %1159 = vrot.lane.b32.xlu0 %v1104_v42, %s8864_s10 }
 0x75f   :  { %14027 = vst [vmem:[#allocation61_spill] sm:$0xff] %v9655_v21  ;;  %v1061_v34 = vpop.f32.mrb[60].mxu1 }
 0x760   :  { %v1062_v40 = vadd.f32 %v1061_v34, %v9468_v24  ;;  %v1063_v49 = vpop.f32.mrb[61].mxu1 }
 0x761   :  { %v1064_v9 = vadd.f32 %v1063_v49, %v9476_v33  ;;  %v1065_v32 = vpop.f32.mrb[62].mxu1 }
 0x762   :  { %v1066_v42 = vadd.f32 %v1065_v32, %v9468_v24  ;;  %v1067_v38 = vpop.f32.mrb[63].mxu1  ;;  %v9673_v52 = vmul.f32 %v9479_v12, %v1062_v40  ;;  %v9677_v16 = vmul.f32 %v9483_v51, %v1062_v40 }
 0x763   :  { %v1068_v37 = vadd.f32 %v1067_v38, %v9476_v33  ;;  %v9686_v49 = vmul.f32 %v9471_v26, %v1064_v9  ;;  %v9689_v32 = vmul.f32 %v9474_v54, %v1064_v9 }
 0x764   :  { %v9680_v63 = vmul.f32 %v9479_v12, %v1066_v42  ;;  %v9683_v34 = vmul.f32 %v9483_v51, %v1066_v42  ;;  %v1105_v11 = vpack.c.bf16 %v1066_v42, %v1062_v40 }
 0x765   :  { %14028 = vst [vmem:[#allocation62_spill] sm:$0xff] %v9686_v49  ;;  %v9692_v25 = vmul.f32 %v9471_v26, %v1068_v37  ;;  %v9695_v38 = vmul.f32 %v9474_v54, %v1068_v37 }
 0x766   :  { %1161 = vrot.lane.b32.xlu1 %v1105_v11, %s8864_s10 }
 0x767   :  { %14029 = vst [vmem:[#allocation63_spill] sm:$0xff] %v9692_v25  ;;  %v1071_v42 = vpop.f32.mrb[64].mxu1 }
 0x768   :  { %v1072_v56 = vadd.f32 %v1071_v42, %v9468_v24  ;;  %v1073_v46 = vpop.f32.mrb[65].mxu1 }
 0x769   :  { %v1074_v37 = vadd.f32 %v1073_v46, %v9476_v33  ;;  %v1075_v43 = vpop.f32.mrb[66].mxu1 }
 0x76a   :  { %v1076_v11 = vadd.f32 %v1075_v43, %v9468_v24  ;;  %v1077_v53 = vpop.f32.mrb[67].mxu1  ;;  %v9710_v2 = vmul.f32 %v9479_v12, %v1072_v56  ;;  %v9714_v21 = vmul.f32 %v9483_v51, %v1072_v56 }
 0x76b   :  { %v1078_v40 = vadd.f32 %v1077_v53, %v9476_v33  ;;  %v9723_v46 = vmul.f32 %v9471_v26, %v1074_v37  ;;  %v9726_v43 = vmul.f32 %v9474_v54, %v1074_v37 }
 0x76c   :  { %14030 = vst [vmem:[#allocation64_spill] sm:$0xff] %v9714_v21  ;;  %v9717_v5 = vmul.f32 %v9479_v12, %v1076_v11  ;;  %v9720_v42 = vmul.f32 %v9483_v51, %v1076_v11  ;;  %v1106_v9 = vpack.c.bf16 %v1076_v11, %v1072_v56 }
 0x76d   :  { %14032 = vst [vmem:[#allocation66_spill] sm:$0xff] %v9723_v46  ;;  %v9729_v49 = vmul.f32 %v9471_v26, %v1078_v40  ;;  %v9732_v53 = vmul.f32 %v9474_v54, %v1078_v40 }
 0x76e   :  { %14031 = vst [vmem:[#allocation65_spill] sm:$0xff] %v9720_v42  ;;  %1163 = vrot.lane.b32.xlu0 %v1106_v9, %s8864_s10 }
 0x76f   :  { %14033 = vst [vmem:[#allocation67_spill] sm:$0xff] %v9729_v49  ;;  %v1081_v11 = vpop.f32.mrb[68].mxu1 }
 0x770   :  { %v1082_v19 = vadd.f32 %v1081_v11, %v9468_v24  ;;  %v1083_v8 = vpop.f32.mrb[69].mxu1 }
 0x771   :  { %v1084_v40 = vadd.f32 %v1083_v8, %v9476_v33  ;;  %v1085_v28 = vpop.f32.mrb[70].mxu1 }
 0x772   :  { %v1086_v9 = vadd.f32 %v1085_v28, %v9468_v24  ;;  %v1087_v1 = vpop.f32.mrb[71].mxu1  ;;  %v9747_v25 = vmul.f32 %v9479_v12, %v1082_v19  ;;  %v9751_v57 = vmul.f32 %v9483_v51, %v1082_v19 }
 0x773   :  { %v1088_v56 = vadd.f32 %v1087_v1, %v9476_v33  ;;  %v9760_v8 = vmul.f32 %v9471_v26, %v1084_v40  ;;  %v9763_v28 = vmul.f32 %v9474_v54, %v1084_v40 }
 0x774   :  { %14034 = vst [vmem:[#allocation68_spill] sm:$0xff] %v9751_v57  ;;  %v9754_v61 = vmul.f32 %v9479_v12, %v1086_v9  ;;  %v9757_v11 = vmul.f32 %v9483_v51, %v1086_v9  ;;  %v1107_v37 = vpack.c.bf16 %v1086_v9, %v1082_v19 }
 0x775   :  { %14036 = vst [vmem:[#allocation70_spill] sm:$0xff] %v9760_v8  ;;  %v9766_v46 = vmul.f32 %v9471_v26, %v1088_v56  ;;  %v9769_v1 = vmul.f32 %v9474_v54, %v1088_v56 }
 0x776   :  { %14035 = vst [vmem:[#allocation69_spill] sm:$0xff] %v9757_v11  ;;  %1165 = vrot.lane.b32.xlu1 %v1107_v37, %s8864_s10 }
 0x777   :  { %14037 = vst [vmem:[#allocation71_spill] sm:$0xff] %v9766_v46  ;;  %v1091_v9 = vpop.f32.mrb[72].mxu1 }
 0x778   :  { %v1092_v0 = vadd.f32 %v1091_v9, %v9468_v24  ;;  %v1093_v21 = vpop.f32.mrb[73].mxu1 }
 0x779   :  { %v1094_v56 = vadd.f32 %v1093_v21, %v9476_v33  ;;  %v1095_v42 = vpop.f32.mrb[74].mxu1 }
 0x77a   :  { %v9783_v37 = vmul.f32 %v9479_v12, %v1092_v0  ;;  %v9786_v49 = vmul.f32 %v9483_v51, %v1092_v0  ;;  %v1096_v19 = vadd.f32 %v1095_v42, %v9468_v24  ;;  %v1097_v57 = vpop.f32.mrb[75].mxu1 }
 0x77b   :  { %v1098_v30 = vadd.f32 %v1097_v57, %v9476_v33  ;;  %v9797_v21 = vmul.f32 %v9471_v26, %v1094_v56  ;;  %v9800_v8 = vmul.f32 %v9474_v54, %v1094_v56 }
 0x77c   :  { %v9791_v11 = vmul.f32 %v9479_v12, %v1096_v19  ;;  %v9794_v9 = vmul.f32 %v9483_v51, %v1096_v19  ;;  %v1108_v40 = vpack.c.bf16 %v1096_v19, %v1092_v0 }
 0x77d   :  { %14038 = vst [vmem:[#allocation72_spill] sm:$0xff] %v9797_v21  ;;  %v9803_v46 = vmul.f32 %v9471_v26, %v1098_v30  ;;  %v9806_v24 = vmul.f32 %v9474_v54, %v1098_v30  ;;  %v14040_v54 = vmov 0  }
 0x77e   :  { %1167 = vrot.lane.b32.xlu0 %v1108_v40, %s8864_s10  ;;  %v1141_v57 = vpack.c.bf16 %v9791_v11, %v9783_v37  ;;  %v1730_v0 = vpack.c.bf16 %v9794_v9, %v9786_v49 }
 0x77f   :  { %14039 = vst [vmem:[#allocation73_spill] sm:$0xff] %v9803_v46  ;;  %v2231_v33 = vpack.c.bf16 %v9806_v24, %v9800_v8 }
 0x7ae   :  { %v1152_v51 = vpop.permute.xlu0 %1151 }
 0x7af   :  { %v1197_v26 = vsel %vm949_vm6, %v1152_v51, 0 }
 0x7b0   :  { %1224 = vmatpush1.bf16.xpose.msra.mxu0 %v1197_v26  ;;  %1759 = vmatpush1.bf16.xpose.msra.mxu1 %v1197_v26 }
 0x7b1   :  { %1225 = vmatprep.subr.bf16.mxu0 %v14040_v54  ;;  %1760 = vmatprep.subr.bf16.mxu1 %v14040_v54 }
 0x7b8   :  { %v1154_v30 = vpop.permute.xlu1 %1153 }
 0x7b9   :  { %v1200_v42 = vsel %vm949_vm6, %v1154_v30, 0 }
 0x7ba   :  { %1226 = vmatpush1.bf16.xpose.msra.mxu0 %v1200_v42  ;;  %1761 = vmatpush1.bf16.xpose.msra.mxu1 %v1200_v42 }
 0x7bb   :  { %1227 = vmatprep.subr.bf16.mxu0 %v14040_v54  ;;  %1762 = vmatprep.subr.bf16.mxu1 %v14040_v54 }
 0x7c0   :  { %v1156_v19 = vpop.permute.xlu0 %1155 }
 0x7c1   :  { %v1203_v40 = vsel %vm949_vm6, %v1156_v19, 0 }
 0x7c2   :  { %1228 = vmatpush1.bf16.xpose.msra.mxu0 %v1203_v40  ;;  %1763 = vmatpush1.bf16.xpose.msra.mxu1 %v1203_v40 }
 0x7c3   :  { %1229 = vmatprep.subr.bf16.mxu0 %v14040_v54  ;;  %1764 = vmatprep.subr.bf16.mxu1 %v14040_v54 }
 0x7c8   :  { %v1158_v56 = vpop.permute.xlu1 %1157 }
 0x7c9   :  { %v1206_v51 = vsel %vm949_vm6, %v1158_v56, 0 }
 0x7ca   :  { %1230 = vmatpush1.bf16.xpose.msra.mxu0 %v1206_v51  ;;  %1765 = vmatpush1.bf16.xpose.msra.mxu1 %v1206_v51 }
 0x7cb   :  { %1231 = vmatprep.subr.bf16.mxu0 %v14040_v54  ;;  %1766 = vmatprep.subr.bf16.mxu1 %v14040_v54 }
 0x7d0   :  { %v1160_v26 = vpop.permute.xlu0 %1159 }
 0x7d1   :  { %v1209_v30 = vsel %vm949_vm6, %v1160_v26, 0 }
 0x7d2   :  { %1232 = vmatpush1.bf16.xpose.msra.mxu0 %v1209_v30  ;;  %1767 = vmatpush1.bf16.xpose.msra.mxu1 %v1209_v30 }
 0x7d3   :  { %1233 = vmatprep.subr.bf16.mxu0 %v14040_v54  ;;  %1768 = vmatprep.subr.bf16.mxu1 %v14040_v54 }
 0x7d8   :  { %v1162_v42 = vpop.permute.xlu1 %1161 }
 0x7d9   :  { %v1212_v19 = vsel %vm949_vm6, %v1162_v42, 0 }
 0x7da   :  { %1234 = vmatpush1.bf16.xpose.msra.mxu0 %v1212_v19  ;;  %1769 = vmatpush1.bf16.xpose.msra.mxu1 %v1212_v19  ;;  %v14041_v19 = vmov 0.0  }
 0x7db   :  { %1235 = vmatprep.subr.bf16.mxu0 %v14040_v54  ;;  %1770 = vmatprep.subr.bf16.mxu1 %v14040_v54 }
 0x7e0   :  { %v1164_v40 = vpop.permute.xlu0 %1163 }
 0x7e1   :  { %v1215_v56 = vsel %vm949_vm6, %v1164_v40, 0  ;;  %v14042_v40 = vpack.c.bf16 %v9495_v14, %v9488_v4  ;;  %v14045_v4 = vpack.c.bf16 %v9547_v22, %v9541_v23  ;;  %v14047_v14 = vpack.c.bf16 %v9535_v47, %v9529_v48  ;;  %v14063_v47 = vld [vmem:[#allocation65_spill] sm:$0xff]  ;;  %v14064_v23 = vld [vmem:[#allocation64_spill] sm:$0xff] }
 0x7e2   :  { %1236 = vmatpush1.bf16.xpose.msra.mxu0 %v1215_v56  ;;  %1771 = vmatpush1.bf16.xpose.msra.mxu1 %v1215_v56  ;;  %v14043_v56 = vpack.c.bf16 %v9498_v27, %v9492_v45  ;;  %v14046_v45 = vpack.c.bf16 %v9532_v15, %v9525_v18  ;;  %v14048_v27 = vpack.c.bf16 %v9584_v50, %v9578_v55 }
 0x7e3   :  { %1237 = vmatprep.subr.bf16.mxu0 %v14040_v54  ;;  %1772 = vmatprep.subr.bf16.mxu1 %v14040_v54  ;;  %v14049_v18 = vpack.c.bf16 %v9621_v17, %v9615_v58  ;;  %v14052_v48 = vpack.c.bf16 %v9658_v39, %v9652_v13  ;;  %v14056_v15 = vpack.c.bf16 %v9732_v53, %v9726_v43 }
 0x7e4   :  { %v14065_v22 = vpack.c.bf16 %v14063_v47, %v14064_v23 }
 0x7e8   :  { %v1166_v51 = vpop.permute.xlu1 %1165 }
 0x7e9   :  { %v1218_v26 = vsel %vm949_vm6, %v1166_v51, 0  ;;  %v14044_v51 = vpack.c.bf16 %v9510_v31, %v9504_v60  ;;  %v14050_v60 = vpack.c.bf16 %v9569_v35, %v9562_v36  ;;  %v14051_v31 = vpack.c.bf16 %v9572_v3, %v9566_v29 }
 0x7ea   :  { %1238 = vmatpush1.bf16.xpose.msra.mxu0 %v1218_v26  ;;  %1773 = vmatpush1.bf16.xpose.msra.mxu1 %v1218_v26  ;;  %v14053_v35 = vpack.c.bf16 %v9695_v38, %v9689_v32  ;;  %v14054_v29 = vpack.c.bf16 %v9606_v44, %v9599_v10  ;;  %v14055_v36 = vpack.c.bf16 %v9609_v59, %v9603_v20 }
 0x7eb   :  { %1239 = vmatprep.subr.bf16.mxu0 %v14040_v54  ;;  %1774 = vmatprep.subr.bf16.mxu1 %v14040_v54  ;;  %v14057_v44 = vpack.c.bf16 %v9769_v1, %v9763_v28  ;;  %v14058_v20 = vpack.c.bf16 %v9643_v6, %v9636_v7  ;;  %v14059_v10 = vpack.c.bf16 %v9646_v41, %v9640_v62 }
 0x7ec   :  { %v14060_v6 = vpack.c.bf16 %v9680_v63, %v9673_v52  ;;  %v14061_v7 = vpack.c.bf16 %v9683_v34, %v9677_v16  ;;  %v14062_v62 = vpack.c.bf16 %v9717_v5, %v9710_v2  ;;  %v14066_v16 = vpack.c.bf16 %v9754_v61, %v9747_v25  ;;  %v14067_v63 = vld [vmem:[#allocation69_spill] sm:$0xff]  ;;  %v14068_v52 = vld [vmem:[#allocation68_spill] sm:$0xff] }
 0x7ed   :  { %v14069_v3 = vpack.c.bf16 %v14067_v63, %v14068_v52 }
 0x7f0   :  { %v1168_v30 = vpop.permute.xlu0 %1167 }
 0x7f1   :  { %v1221_v42 = vsel %vm949_vm6, %v1168_v30, 0 }
 0x7f2   :  { %1240 = vmatpush1.bf16.xpose.msra.mxu0 %v1221_v42  ;;  %1775 = vmatpush1.bf16.xpose.msra.mxu1 %v1221_v42 }
 0x7f3   :  { %2259 = vmatprep.subr.bf16.mxu0 %v14040_v54  ;;  %7615 = vmatprep.subr.bf16.mxu1 %v14041_v19 }
 0x7f9   :  { %7161 = vmatmul.mubr.msk.bf16.vlgmr.msra.gmra.mrb[44].mxu0 %vm949_vm6, %v14042_v40  ;;  %7171 = vmatmul.mubr.msk.bf16.vlgmr.msra.gmra.mrb[76].mxu1 %vm949_vm6, %v14043_v56 }
 0x7fa   :  { %2260 = vmatpush1.bf16.msra.mxu0 %v14044_v51  ;;  %1265 = vmatprep.mubr.bf16.mxu0 %v14040_v54 }
 0x7fb   :  { %2261 = vmatprep.subr.bf16.mxu0 %v14040_v54  ;;  %1800 = vmatprep.mubr.bf16.mxu1 %v14040_v54 }
 0x7fe   :  { %2262 = vmatpush1.bf16.msra.mxu0 %v14045_v4 }
 0x7ff   :  { %2263 = vmatprep.subr.bf16.mxu0 %v14040_v54 }
 0x801   :  { %7162 = vmatmul.mubr.msk.bf16.gmra.mrb[48].mxu0 %vm949_vm6, %v14046_v45  ;;  %7172 = vmatmul.mubr.msk.bf16.gmra.mrb[80].mxu1 %vm949_vm6, %v14047_v14 }
 0x802   :  { %2264 = vmatpush1.bf16.msra.mxu0 %v14048_v27  ;;  %1275 = vmatprep.mubr.bf16.mxu0 %v14040_v54 }
 0x803   :  { %2265 = vmatprep.subr.bf16.mxu0 %v14040_v54  ;;  %1810 = vmatprep.mubr.bf16.mxu1 %v14040_v54 }
 0x806   :  { %2266 = vmatpush1.bf16.msra.mxu0 %v14049_v18 }
 0x807   :  { %2267 = vmatprep.subr.bf16.mxu0 %v14040_v54 }
 0x809   :  { %7163 = vmatmul.mubr.msk.bf16.gmra.mrb[52].mxu0 %vm949_vm6, %v14050_v60  ;;  %7173 = vmatmul.mubr.msk.bf16.gmra.mrb[84].mxu1 %vm949_vm6, %v14051_v31 }
 0x80a   :  { %2268 = vmatpush1.bf16.msra.mxu0 %v14052_v48  ;;  %1285 = vmatprep.mubr.bf16.mxu0 %v14040_v54 }
 0x80b   :  { %2269 = vmatprep.subr.bf16.mxu0 %v14040_v54  ;;  %1820 = vmatprep.mubr.bf16.mxu1 %v14040_v54 }
 0x80e   :  { %2270 = vmatpush1.bf16.msra.mxu0 %v14053_v35 }
 0x80f   :  { %2271 = vmatprep.subr.bf16.mxu0 %v14040_v54 }
 0x811   :  { %7164 = vmatmul.mubr.msk.bf16.gmra.mrb[56].mxu0 %vm949_vm6, %v14054_v29  ;;  %7174 = vmatmul.mubr.msk.bf16.gmra.mrb[88].mxu1 %vm949_vm6, %v14055_v36 }
 0x812   :  { %2272 = vmatpush1.bf16.msra.mxu0 %v14056_v15  ;;  %1295 = vmatprep.mubr.bf16.mxu0 %v14040_v54 }
 0x813   :  { %2273 = vmatprep.subr.bf16.mxu0 %v14040_v54  ;;  %1830 = vmatprep.mubr.bf16.mxu1 %v14040_v54 }
 0x816   :  { %2274 = vmatpush1.bf16.msra.mxu0 %v14057_v44 }
 0x817   :  { %2275 = vmatprep.subr.bf16.mxu0 %v14040_v54 }
 0x819   :  { %7165 = vmatmul.mubr.msk.bf16.gmra.mrb[60].mxu0 %vm949_vm6, %v14058_v20  ;;  %7175 = vmatmul.mubr.msk.bf16.gmra.mrb[92].mxu1 %vm949_vm6, %v14059_v10 }
 0x81a   :  { %2276 = vmatpush1.bf16.msra.mxu0 %v2231_v33  ;;  %1305 = vmatprep.mubr.bf16.mxu0 %v14040_v54 }
 0x81b   :  { %1840 = vmatprep.mubr.bf16.mxu1 %v14040_v54  ;;  %2391 = vmatprep.subr.bf16.mxu0 %v14040_v54 }
 0x821   :  { %7166 = vmatmul.mubr.msk.bf16.gmra.mrb[64].mxu0 %vm949_vm6, %v14060_v6  ;;  %7176 = vmatmul.mubr.msk.bf16.gmra.mrb[96].mxu1 %vm949_vm6, %v14061_v7 }
 0x822   :  { %1315 = vmatprep.mubr.bf16.mxu0 %v14040_v54  ;;  %1850 = vmatprep.mubr.bf16.mxu1 %v14040_v54 }
 0x829   :  { %7167 = vmatmul.mubr.msk.bf16.gmra.mrb[68].mxu0 %vm949_vm6, %v14062_v62  ;;  %7177 = vmatmul.mubr.msk.bf16.gmra.mrb[100].mxu1 %vm949_vm6, %v14065_v22 }
 0x82a   :  { %1325 = vmatprep.mubr.bf16.mxu0 %v14040_v54  ;;  %1860 = vmatprep.mubr.bf16.mxu1 %v14040_v54 }
 0x831   :  { %7168 = vmatmul.mubr.msk.bf16.gmra.mrb[72].mxu0 %vm949_vm6, %v14066_v16  ;;  %7178 = vmatmul.mubr.msk.bf16.gmra.mrb[104].mxu1 %vm949_vm6, %v14069_v3 }
 0x832   :  { %1335 = vmatprep.mubr.bf16.mxu0 %v14040_v54  ;;  %1870 = vmatprep.mubr.bf16.mxu1 %v14040_v54 }
 0x839   :  { %7169 = vmatmul.mubr.msk.bf16.gmra.mrb[76].mxu0 %vm949_vm6, %v1141_v57  ;;  %7179 = vmatmul.mubr.msk.bf16.gmra.mrb[108].mxu1 %vm949_vm6, %v1730_v0 }
 0x83a   :  { %7623 = vmatprep.mubr.msk.bf16.mxu1 %vm8861_vm0, %v14041_v19 }
 0x8cc   :  { %v9970_v5 = vpop.f32.mrb[44].mxu0  ;;  %v9972_v2 = vpop.f32.mrb[76].mxu1 }
 0x8cd   :  { %v9974_v25 = vpop.f32.mrb[45].mxu0  ;;  %v9976_v55 = vpop.f32.mrb[77].mxu1 }
 0x8ce   :  { %14070 = vst [vmem:[#allocation65_spill] sm:$0xff] %v9974_v25  ;;  %v1881_v50 = vsel %vm1346_vm11, %v9976_v55, -inf  ;;  %v9980_v59 = vpop.f32.mrb[46].mxu0  ;;  %v9982_v61 = vpop.f32.mrb[78].mxu1  ;;  %v9986_v58 = vsel %vm1346_vm11, %v9974_v25, -inf }
 0x8cf   :  { %v9988_v17 = vpop.f32.mrb[47].mxu0  ;;  %v9990_v41 = vpop.f32.mrb[79].mxu1  ;;  %v1882_v13 = vmax.f32 %v9972_v2, %v1881_v50 }
 0x8d0   :  { %14071 = vst [vmem:[#allocation64_spill] sm:$0xff] %v9988_v17  ;;  %v1885_v34 = vsel %vm1346_vm11, %v9990_v41, -inf  ;;  %v9999_v49 = vsel %vm1346_vm11, %v9988_v17, -inf }
 0x8d1   :  { %1883 = vmax.xlane.f32.xlu1 %v1882_v13  ;;  %v1886_v32 = vmax.f32 %v9982_v61, %v1885_v34 }
 0x8d3   :  { %1887 = vmax.xlane.f32.xlu0 %v1886_v32 }
 0x8d4   :  { %v10004_v43 = vpop.f32.mrb[48].mxu0  ;;  %v10006_v53 = vpop.f32.mrb[80].mxu1 }
 0x8d5   :  { %v10008_v11 = vpop.f32.mrb[49].mxu0  ;;  %v10010_v8 = vpop.f32.mrb[81].mxu1 }
 0x8d6   :  { %14072 = vst [vmem:[#allocation69_spill] sm:$0xff] %v10008_v11  ;;  %v1889_v28 = vsel %vm1346_vm11, %v10010_v8, -inf  ;;  %v10014_v1 = vpop.f32.mrb[50].mxu0  ;;  %v10016_v37 = vpop.f32.mrb[82].mxu1  ;;  %v10020_v9 = vsel %vm1346_vm11, %v10008_v11, -inf }
 0x8d7   :  { %v10022_v24 = vpop.f32.mrb[51].mxu0  ;;  %v10024_v57 = vpop.f32.mrb[83].mxu1  ;;  %v1890_v0 = vmax.f32 %v10006_v53, %v1889_v28 }
 0x8d8   :  { %14073 = vst [vmem:[#allocation68_spill] sm:$0xff] %v10022_v24  ;;  %v1893_v26 = vsel %vm1346_vm11, %v10024_v57, -inf  ;;  %v10033_v30 = vsel %vm1346_vm11, %v10022_v24, -inf }
 0x8d9   :  { %1891 = vmax.xlane.f32.xlu0 %v1890_v0  ;;  %v1894_v42 = vmax.f32 %v10016_v37, %v1893_v26 }
 0x8dc   :  { %v10038_v56 = vpop.f32.mrb[52].mxu0  ;;  %v10040_v51 = vpop.f32.mrb[84].mxu1 }
 0x8dd   :  { %1895 = vmax.xlane.f32.xlu0 %v1894_v42  ;;  %v10042_v4 = vpop.f32.mrb[53].mxu0  ;;  %v10044_v45 = vpop.f32.mrb[85].mxu1 }
 0x8de   :  { %14074 = vst [vmem:[#allocation74_spill] sm:$0xff] %v10042_v4  ;;  %v1897_v14 = vsel %vm1346_vm11, %v10044_v45, -inf  ;;  %v10048_v27 = vpop.f32.mrb[54].mxu0  ;;  %v10050_v18 = vpop.f32.mrb[86].mxu1  ;;  %v10054_v60 = vsel %vm1346_vm11, %v10042_v4, -inf }
 0x8df   :  { %v10056_v31 = vpop.f32.mrb[55].mxu0  ;;  %v10058_v48 = vpop.f32.mrb[87].mxu1  ;;  %v1898_v35 = vmax.f32 %v10040_v51, %v1897_v14 }
 0x8e0   :  { %14075 = vst [vmem:[#allocation75_spill] sm:$0xff] %v10056_v31  ;;  %v1901_v36 = vsel %vm1346_vm11, %v10058_v48, -inf  ;;  %v10067_v15 = vsel %vm1346_vm11, %v10056_v31, -inf }
 0x8e1   :  { %1899 = vmax.xlane.f32.xlu1 %v1898_v35  ;;  %v1902_v44 = vmax.f32 %v10050_v18, %v1901_v36 }
 0x8e3   :  { %1903 = vmax.xlane.f32.xlu0 %v1902_v44 }
 0x8e4   :  { %v10072_v10 = vpop.f32.mrb[56].mxu0  ;;  %v10074_v6 = vpop.f32.mrb[88].mxu1 }
 0x8e5   :  { %v10076_v7 = vpop.f32.mrb[57].mxu0  ;;  %v10078_v62 = vpop.f32.mrb[89].mxu1 }
 0x8e6   :  { %14076 = vst [vmem:[#allocation76_spill] sm:$0xff] %v10076_v7  ;;  %v1905_v47 = vsel %vm1346_vm11, %v10078_v62, -inf  ;;  %v10082_v23 = vpop.f32.mrb[58].mxu0  ;;  %v10084_v22 = vpop.f32.mrb[90].mxu1  ;;  %v10088_v16 = vsel %vm1346_vm11, %v10076_v7, -inf }
 0x8e7   :  { %v10090_v63 = vpop.f32.mrb[59].mxu0  ;;  %v10092_v52 = vpop.f32.mrb[91].mxu1  ;;  %v1906_v3 = vmax.f32 %v10074_v6, %v1905_v47 }
 0x8e8   :  { %14077 = vst [vmem:[#allocation77_spill] sm:$0xff] %v10090_v63  ;;  %v1909_v13 = vsel %vm1346_vm11, %v10092_v52, -inf  ;;  %v10101_v34 = vsel %vm1346_vm11, %v10090_v63, -inf }
 0x8e9   :  { %1907 = vmax.xlane.f32.xlu1 %v1906_v3  ;;  %v1910_v32 = vmax.f32 %v10084_v22, %v1909_v13 }
 0x8eb   :  { %1911 = vmax.xlane.f32.xlu0 %v1910_v32 }
 0x8ec   :  { %v10106_v0 = vpop.f32.mrb[60].mxu0  ;;  %v10108_v26 = vpop.f32.mrb[92].mxu1 }
 0x8ed   :  { %v10110_v42 = vpop.f32.mrb[61].mxu0  ;;  %v10112_v14 = vpop.f32.mrb[93].mxu1 }
 0x8ee   :  { %14078 = vst [vmem:[#allocation78_spill] sm:$0xff] %v10110_v42  ;;  %v1913_v35 = vsel %vm1346_vm11, %v10112_v14, -inf  ;;  %v10116_v36 = vpop.f32.mrb[62].mxu0  ;;  %v10118_v44 = vpop.f32.mrb[94].mxu1  ;;  %v10122_v47 = vsel %vm1346_vm11, %v10110_v42, -inf }
 0x8ef   :  { %v10124_v3 = vpop.f32.mrb[63].mxu0  ;;  %v10126_v13 = vpop.f32.mrb[95].mxu1  ;;  %v1914_v32 = vmax.f32 %v10108_v26, %v1913_v35 }
 0x8f0   :  { %14079 = vst [vmem:[#allocation79_spill] sm:$0xff] %v10124_v3  ;;  %v1917_v28 = vsel %vm1346_vm11, %v10126_v13, -inf  ;;  %v10135_v50 = vsel %vm1346_vm11, %v10124_v3, -inf }
 0x8f1   :  { %1915 = vmax.xlane.f32.xlu1 %v1914_v32  ;;  %v1918_v20 = vmax.f32 %v10118_v44, %v1917_v28 }
 0x8f3   :  { %1919 = vmax.xlane.f32.xlu0 %v1918_v20 }
 0x8f4   :  { %v10140_v40 = vpop.f32.mrb[64].mxu0  ;;  %v10142_v35 = vpop.f32.mrb[96].mxu1 }
 0x8f5   :  { %v10144_v33 = vpop.f32.mrb[65].mxu0  ;;  %v10146_v12 = vpop.f32.mrb[97].mxu1 }
 0x8f6   :  { %14080 = vst [vmem:[#allocation80_spill] sm:$0xff] %v10144_v33  ;;  %v1921_v38 = vsel %vm1346_vm11, %v10146_v12, -inf  ;;  %v10150_v39 = vpop.f32.mrb[66].mxu0  ;;  %v10152_v32 = vpop.f32.mrb[98].mxu1  ;;  %v10156_v28 = vsel %vm1346_vm11, %v10144_v33, -inf }
 0x8f7   :  { %v10158_v20 = vpop.f32.mrb[67].mxu0  ;;  %v10160_v29 = vpop.f32.mrb[99].mxu1  ;;  %v1922_v19 = vmax.f32 %v10142_v35, %v1921_v38 }
 0x8f8   :  { %14081 = vst [vmem:[#allocation81_spill] sm:$0xff] %v10158_v20  ;;  %v1925_v46 = vsel %vm1346_vm11, %v10160_v29, -inf  ;;  %v10169_v54 = vsel %vm1346_vm11, %v10158_v20, -inf }
 0x8f9   :  { %1923 = vmax.xlane.f32.xlu1 %v1922_v19  ;;  %v1926_v33 = vmax.f32 %v10152_v32, %v1925_v46 }
 0x8fb   :  { %1927 = vmax.xlane.f32.xlu0 %v1926_v33 }
 0x8fc   :  { %v10174_v42 = vpop.f32.mrb[68].mxu0  ;;  %v10176_v38 = vpop.f32.mrb[100].mxu1 }
 0x8fd   :  { %14082 = vst [vmem:[#allocation82_spill] sm:$0xff] %v10176_v38  ;;  %v10178_v63 = vpop.f32.mrb[69].mxu0  ;;  %v10180_v21 = vpop.f32.mrb[101].mxu1 }
 0x8fe   :  { %14083 = vst [vmem:[#allocation83_spill] sm:$0xff] %v10178_v63  ;;  %14084 = vst [vmem:[#allocation84_spill] sm:$0xff] %v10180_v21  ;;  %v1929_v7 = vsel %vm1346_vm11, %v10180_v21, -inf  ;;  %v10184_v20 = vpop.f32.mrb[70].mxu0  ;;  %v10186_v19 = vpop.f32.mrb[102].mxu1  ;;  %v10190_v46 = vsel %vm1346_vm11, %v10178_v63, -inf }
 0x8ff   :  { %14085 = vst [vmem:[#allocation85_spill] sm:$0xff] %v10184_v20  ;;  %14086 = vst [vmem:[#allocation86_spill] sm:$0xff] %v10186_v19  ;;  %v10192_v33 = vpop.f32.mrb[71].mxu0  ;;  %v10194_v3 = vpop.f32.mrb[103].mxu1  ;;  %v1930_v31 = vmax.f32 %v10176_v38, %v1929_v7 }
 0x900   :  { %14087 = vst [vmem:[#allocation87_spill] sm:$0xff] %v10190_v46  ;;  %14088 = vst [vmem:[#allocation88_spill] sm:$0xff] %v10192_v33  ;;  %v1933_v24 = vsel %vm1346_vm11, %v10194_v3, -inf  ;;  %v10203_v11 = vsel %vm1346_vm11, %v10192_v33, -inf }
 0x901   :  { %14089 = vst [vmem:[#allocation89_spill] sm:$0xff] %v10194_v3  ;;  %14090 = vst [vmem:[#allocation90_spill] sm:$0xff] %v10203_v11  ;;  %1931 = vmax.xlane.f32.xlu1 %v1930_v31  ;;  %v1934_v63 = vmax.f32 %v10186_v19, %v1933_v24 }
 0x903   :  { %1935 = vmax.xlane.f32.xlu0 %v1934_v63 }
 0x904   :  { %v10208_v25 = vpop.f32.mrb[72].mxu0  ;;  %v10210_v7 = vpop.f32.mrb[104].mxu1 }
 0x905   :  { %14091 = vst [vmem:[#allocation91_spill] sm:$0xff] %v10210_v7  ;;  %v10212_v21 = vpop.f32.mrb[73].mxu0  ;;  %v10214_v4 = vpop.f32.mrb[105].mxu1 }
 0x906   :  { %14092 = vst [vmem:[#allocation92_spill] sm:$0xff] %v10212_v21  ;;  %14093 = vst [vmem:[#allocation93_spill] sm:$0xff] %v10214_v4  ;;  %v1937_v3 = vsel %vm1346_vm11, %v10214_v4, -inf  ;;  %v10218_v33 = vpop.f32.mrb[74].mxu0  ;;  %v10220_v31 = vpop.f32.mrb[106].mxu1  ;;  %v10224_v24 = vsel %vm1346_vm11, %v10212_v21, -inf }
 0x907   :  { %14094 = vst [vmem:[#allocation94_spill] sm:$0xff] %v10218_v33  ;;  %14095 = vst [vmem:[#allocation95_spill] sm:$0xff] %v10220_v31  ;;  %v10226_v63 = vpop.f32.mrb[75].mxu0  ;;  %v10228_v17 = vpop.f32.mrb[107].mxu1  ;;  %v1938_v11 = vmax.f32 %v10210_v7, %v1937_v3  ;;  %v14104_v33 = vmax.f32 %v9980_v59, %v9999_v49 }
 0x908   :  { %14096 = vst [vmem:[#allocation96_spill] sm:$0xff] %v10224_v24  ;;  %14097 = vst [vmem:[#allocation97_spill] sm:$0xff] %v10226_v63  ;;  %v1941_v4 = vsel %vm1346_vm11, %v10228_v17, -inf  ;;  %v10237_v19 = vsel %vm1346_vm11, %v10226_v63, -inf }
 0x909   :  { %14098 = vst [vmem:[#allocation98_spill] sm:$0xff] %v10228_v17  ;;  %14099 = vst [vmem:[#allocation99_spill] sm:$0xff] %v10237_v19  ;;  %1939 = vmax.xlane.f32.xlu1 %v1938_v11  ;;  %v1942_v21 = vmax.f32 %v10220_v31, %v1941_v4 }
 0x90b   :  { %1943 = vmax.xlane.f32.xlu0 %v1942_v21 }
 0x90c   :  { %v10242_v46 = vpop.f32.mrb[76].mxu0  ;;  %v10244_v3 = vpop.f32.mrb[108].mxu1 }
 0x90d   :  { %v10246_v7 = vpop.f32.mrb[77].mxu0  ;;  %v10248_v20 = vpop.f32.mrb[109].mxu1 }
 0x90e   :  { %14100 = vst [vmem:[#allocation100_spill] sm:$0xff] %v10246_v7  ;;  %14101 = vst [vmem:[#allocation101_spill] sm:$0xff] %v10248_v20  ;;  %v1945_v17 = vsel %vm1346_vm11, %v10248_v20, -inf  ;;  %v10252_v63 = vpop.f32.mrb[78].mxu0  ;;  %v10254_v11 = vpop.f32.mrb[110].mxu1  ;;  %v10258_v4 = vsel %vm1346_vm11, %v10246_v7, -inf }
 0x90f   :  { %v10260_v21 = vpop.f32.mrb[79].mxu0  ;;  %v10262_v38 = vpop.f32.mrb[111].mxu1  ;;  %v1946_v19 = vmax.f32 %v10244_v3, %v1945_v17  ;;  %v14103_v17 = vmax.f32 %v9970_v5, %v9986_v58  ;;  %v14108_v58 = vmax.f32 %v10048_v27, %v10067_v15 }
 0x910   :  { %14102 = vst [vmem:[#allocation102_spill] sm:$0xff] %v10260_v21  ;;  %v10269_v20 = vsel %vm1346_vm11, %v10260_v21, -inf  ;;  %v1949_v31 = vsel %vm1346_vm11, %v10262_v38, -inf  ;;  %v14105_v21 = vmax.f32 %v10004_v43, %v10020_v9 }
 0x911   :  { %1947 = vmax.xlane.f32.xlu1 %v1946_v19  ;;  %v1950_v7 = vmax.f32 %v10254_v11, %v1949_v31  ;;  %v14106_v19 = vmax.f32 %v10014_v1, %v10033_v30  ;;  %v14107_v31 = vmax.f32 %v10038_v56, %v10054_v60 }
 0x913   :  { %1951 = vmax.xlane.f32.xlu0 %v1950_v7 }
 0x915   :  { %1349 = vmax.xlane.f32.xlu1 %v14103_v17 }
 0x917   :  { %1353 = vmax.xlane.f32.xlu0 %v14104_v33 }
 0x919   :  { %1357 = vmax.xlane.f32.xlu1 %v14105_v21 }
 0x91b   :  { %1361 = vmax.xlane.f32.xlu0 %v14106_v19 }
 0x91d   :  { %1365 = vmax.xlane.f32.xlu1 %v14107_v31 }
 0x91f   :  { %1369 = vmax.xlane.f32.xlu0 %v14108_v58 }
 0x95e   :  { %v1884_v7 = vpop.xlane.xlu1 %1883 }
 0x95f   :  { %v1953_v49 = vsub.f32 %v9972_v2, %v1884_v7  ;;  %v1954_v33 = vsub.f32 %v9976_v55, %v1884_v7 }
 0x960   :  { %v1888_v17 = vpop.xlane.xlu0 %1887 }
 0x961   :  { %v1989_v9 = vmul.f32 1.442695, %v1953_v49  ;;  %v1991_v21 = vmul.f32 1.442695, %v1954_v33  ;;  %v1955_v24 = vsub.f32 %v9982_v61, %v1888_v17  ;;  %v1956_v30 = vsub.f32 %v9990_v41, %v1888_v17 }
 0x963   :  { %8212 = vpow2.f32 %v1989_v9  ;;  %v1993_v19 = vmul.f32 1.442695, %v1955_v24  ;;  %v1995_v60 = vmul.f32 1.442695, %v1956_v30 }
 0x964   :  { %8214 = vpow2.f32 %v1991_v21 }
 0x965   :  { %8216 = vpow2.f32 %v1993_v19 }
 0x966   :  { %8218 = vpow2.f32 %v1995_v60  ;;  %v1892_v15 = vpop.xlane.xlu0 %1891 }
 0x967   :  { %v1957_v31 = vsub.f32 %v10006_v53, %v1892_v15  ;;  %v1958_v2 = vsub.f32 %v10010_v8, %v1892_v15 }
 0x969   :  { %v1997_v58 = vmul.f32 1.442695, %v1957_v31  ;;  %v1999_v55 = vmul.f32 1.442695, %v1958_v2 }
 0x96a   :  { %v1896_v7 = vpop.xlane.xlu0 %1895 }
 0x96b   :  { %8220 = vpow2.f32 %v1997_v58  ;;  %v1959_v49 = vsub.f32 %v10016_v37, %v1896_v7  ;;  %v1960_v61 = vsub.f32 %v10024_v57, %v1896_v7 }
 0x96c   :  { %8222 = vpow2.f32 %v1999_v55 }
 0x96d   :  { %v10302_v41 = vpop.eup %8212  ;;  %v2001_v24 = vmul.f32 1.442695, %v1959_v49  ;;  %v2003_v33 = vmul.f32 1.442695, %v1960_v61 }
 0x96e   :  { %v10304_v17 = vpop.eup %8214  ;;  %v1900_v9 = vpop.xlane.xlu1 %1899 }
 0x96f   :  { %v10306_v21 = vpop.eup %8216  ;;  %8224 = vpow2.f32 %v2001_v24  ;;  %v1961_v53 = vsub.f32 %v10040_v51, %v1900_v9  ;;  %v1962_v8 = vsub.f32 %v10044_v45, %v1900_v9  ;;  %v2061_v37 = vsel %vm1346_vm11, %v10304_v17, 0.0 }
 0x970   :  { %v10312_v30 = vpop.eup %8218  ;;  %8226 = vpow2.f32 %v2003_v33  ;;  %v1904_v57 = vpop.xlane.xlu0 %1903  ;;  %v2062_v19 = vadd.f32 %v10302_v41, %v2061_v37 }
 0x971   :  { %v2005_v60 = vmul.f32 1.442695, %v1961_v53  ;;  %v2007_v15 = vmul.f32 1.442695, %v1962_v8  ;;  %v1963_v31 = vsub.f32 %v10050_v18, %v1904_v57  ;;  %v1964_v2 = vsub.f32 %v10058_v48, %v1904_v57 }
 0x972   :  { %2063 = vadd.xlane.f32.xlu1 %v2062_v19  ;;  %v2065_v51 = vsel %vm1346_vm11, %v10312_v30, 0.0  ;;  %v14109_v18 = vmax.f32 %v10072_v10, %v10088_v16  ;;  %v14110_v16 = vmax.f32 %v10082_v23, %v10101_v34 }
 0x973   :  { %8228 = vpow2.f32 %v2005_v60  ;;  %v2009_v45 = vmul.f32 1.442695, %v1963_v31  ;;  %v2011_v58 = vmul.f32 1.442695, %v1964_v2  ;;  %v2066_v55 = vadd.f32 %v10306_v21, %v2065_v51 }
 0x974   :  { %8230 = vpow2.f32 %v2007_v15 }
 0x975   :  { %v10320_v7 = vpop.eup %8220  ;;  %2067 = vadd.xlane.f32.xlu0 %v2066_v55  ;;  %8232 = vpow2.f32 %v2011_v58 }
 0x976   :  { %v10322_v49 = vpop.eup %8222  ;;  %1373 = vmax.xlane.f32.xlu1 %v14109_v18  ;;  %v1908_v48 = vpop.xlane.xlu1 %1907  ;;  %8234 = vpow2.f32 %v2009_v45 }
 0x977   :  { %v1965_v61 = vsub.f32 %v10074_v6, %v1908_v48  ;;  %v1966_v24 = vsub.f32 %v10078_v62, %v1908_v48  ;;  %v2069_v33 = vsel %vm1346_vm11, %v10322_v49, 0.0 }
 0x978   :  { %v1912_v9 = vpop.xlane.xlu0 %1911  ;;  %v2070_v53 = vadd.f32 %v10320_v7, %v2069_v33 }
 0x979   :  { %v10332_v8 = vpop.eup %8224  ;;  %v2013_v37 = vmul.f32 1.442695, %v1965_v61  ;;  %v2015_v57 = vmul.f32 1.442695, %v1966_v24  ;;  %1377 = vmax.xlane.f32.xlu0 %v14110_v16  ;;  %v1967_v19 = vsub.f32 %v10084_v22, %v1912_v9  ;;  %v1968_v6 = vsub.f32 %v10092_v52, %v1912_v9 }
 0x97a   :  { %v10339_v60 = vpop.eup %8226  ;;  %2071 = vadd.xlane.f32.xlu1 %v2070_v53  ;;  %v14111_v22 = vmax.f32 %v10106_v0, %v10122_v47 }
 0x97b   :  { %8236 = vpow2.f32 %v2013_v37  ;;  %v2017_v62 = vmul.f32 1.442695, %v1967_v19  ;;  %v2019_v15 = vmul.f32 1.442695, %v1968_v6  ;;  %v2073_v31 = vsel %vm1346_vm11, %v10339_v60, 0.0 }
 0x97c   :  { %8238 = vpow2.f32 %v2015_v57  ;;  %v2074_v2 = vadd.f32 %v10332_v8, %v2073_v31 }
 0x97d   :  { %v10344_v51 = vpop.eup %8228  ;;  %8240 = vpow2.f32 %v2019_v15 }
 0x97e   :  { %v10346_v34 = vpop.eup %8230  ;;  %2075 = vadd.xlane.f32.xlu0 %v2074_v2  ;;  %1381 = vmax.xlane.f32.xlu1 %v14111_v22  ;;  %v1916_v52 = vpop.xlane.xlu1 %1915  ;;  %8242 = vpow2.f32 %v2017_v62 }
 0x97f   :  { %v1969_v45 = vsub.f32 %v10108_v26, %v1916_v52  ;;  %v1970_v58 = vsub.f32 %v10112_v14, %v1916_v52  ;;  %v2077_v55 = vsel %vm1346_vm11, %v10346_v34, 0.0  ;;  %v10355_v18 = vpop.eup %8232  ;;  %v14112_v26 = vmax.f32 %v10116_v36, %v10135_v50 }
 0x980   :  { %v1920_v48 = vpop.xlane.xlu0 %1919  ;;  %v2078_v61 = vadd.f32 %v10344_v51, %v2077_v55  ;;  %v10358_v24 = vpop.eup %8234  ;;  %v2081_v14 = vsel %vm1346_vm11, %v10355_v18, 0.0 }
 0x981   :  { %v2021_v33 = vmul.f32 1.442695, %v1969_v45  ;;  %v2023_v9 = vmul.f32 1.442695, %v1970_v58  ;;  %v1971_v47 = vsub.f32 %v10118_v44, %v1920_v48  ;;  %v1972_v53 = vsub.f32 %v10126_v13, %v1920_v48 }
 0x982   :  { %2079 = vadd.xlane.f32.xlu1 %v2078_v61  ;;  %1385 = vmax.xlane.f32.xlu0 %v14112_v26  ;;  %v2082_v16 = vadd.f32 %v10358_v24, %v2081_v14  ;;  %v14113_v44 = vmax.f32 %v10140_v40, %v10156_v28  ;;  %v14118_v14 = vld [vmem:[#allocation84_spill] sm:$0xff] }
 0x983   :  { %8244 = vpow2.f32 %v2021_v33  ;;  %v2025_v37 = vmul.f32 1.442695, %v1971_v47  ;;  %v2027_v57 = vmul.f32 1.442695, %v1972_v53  ;;  %v14117_v53 = vld [vmem:[#allocation82_spill] sm:$0xff] }
 0x984   :  { %8246 = vpow2.f32 %v2023_v9 }
 0x985   :  { %v10368_v19 = vpop.eup %8236  ;;  %8248 = vpow2.f32 %v2027_v57 }
 0x986   :  { %v10370_v6 = vpop.eup %8238  ;;  %2083 = vadd.xlane.f32.xlu0 %v2082_v16  ;;  %1389 = vmax.xlane.f32.xlu1 %v14113_v44  ;;  %v1924_v50 = vpop.xlane.xlu1 %1923  ;;  %8250 = vpow2.f32 %v2025_v37 }
 0x987   :  { %v1973_v13 = vsub.f32 %v10142_v35, %v1924_v50  ;;  %v1974_v62 = vsub.f32 %v10146_v12, %v1924_v50  ;;  %v2085_v15 = vsel %vm1346_vm11, %v10370_v6, 0.0  ;;  %v10379_v31 = vpop.eup %8240  ;;  %v14114_v12 = vmax.f32 %v10150_v39, %v10169_v54 }
 0x988   :  { %v1928_v2 = vpop.xlane.xlu0 %1927  ;;  %v2086_v22 = vadd.f32 %v10368_v19, %v2085_v15  ;;  %v10382_v52 = vpop.eup %8242  ;;  %v2089_v35 = vsel %vm1346_vm11, %v10379_v31, 0.0 }
 0x989   :  { %v2029_v45 = vmul.f32 1.442695, %v1973_v13  ;;  %v2031_v58 = vmul.f32 1.442695, %v1974_v62  ;;  %v1975_v28 = vsub.f32 %v10152_v32, %v1928_v2  ;;  %v1976_v55 = vsub.f32 %v10160_v29, %v1928_v2  ;;  %v14115_v29 = vld [vmem:[#allocation87_spill] sm:$0xff]  ;;  %v14119_v2 = vld [vmem:[#allocation86_spill] sm:$0xff] }
 0x98a   :  { %2087 = vadd.xlane.f32.xlu1 %v2086_v22  ;;  %1393 = vmax.xlane.f32.xlu0 %v14114_v12  ;;  %v2090_v33 = vadd.f32 %v10382_v52, %v2089_v35  ;;  %v14116_v32 = vmax.f32 %v10174_v42, %v14115_v29 }
 0x98b   :  { %8252 = vpow2.f32 %v2029_v45  ;;  %v2033_v48 = vmul.f32 1.442695, %v1975_v28  ;;  %v2035_v61 = vmul.f32 1.442695, %v1976_v55  ;;  %v14120_v45 = vld [vmem:[#allocation89_spill] sm:$0xff]  ;;  %v14122_v55 = vld [vmem:[#allocation90_spill] sm:$0xff] }
 0x98c   :  { %8254 = vpow2.f32 %v2031_v58  ;;  %v14121_v28 = vld [vmem:[#allocation85_spill] sm:$0xff] }
 0x98d   :  { %v10392_v9 = vpop.eup %8244  ;;  %8256 = vpow2.f32 %v2035_v61  ;;  %v14123_v12 = vmax.f32 %v14121_v28, %v14122_v55  ;;  %v14128_v55 = vld [vmem:[#allocation95_spill] sm:$0xff] }
 0x98e   :  { %v10394_v47 = vpop.eup %8246  ;;  %2091 = vadd.xlane.f32.xlu0 %v2090_v33  ;;  %1397 = vmax.xlane.f32.xlu1 %v14116_v32  ;;  %v1932_v54 = vpop.xlane.xlu1 %1931  ;;  %8258 = vpow2.f32 %v2033_v48 }
 0x98f   :  { %v1977_v26 = vsub.f32 %v14117_v53, %v1932_v54  ;;  %v1978_v37 = vsub.f32 %v14118_v14, %v1932_v54  ;;  %v2093_v57 = vsel %vm1346_vm11, %v10394_v47, 0.0  ;;  %v10403_v16 = vpop.eup %8248  ;;  %v14124_v54 = vld [vmem:[#allocation96_spill] sm:$0xff]  ;;  %v14126_v14 = vld [vmem:[#allocation91_spill] sm:$0xff] }
 0x990   :  { %v1936_v44 = vpop.xlane.xlu0 %1935  ;;  %v2094_v50 = vadd.f32 %v10392_v9, %v2093_v57  ;;  %v10406_v13 = vpop.eup %8250  ;;  %v2097_v35 = vsel %vm1346_vm11, %v10403_v16, 0.0  ;;  %v14125_v53 = vmax.f32 %v10208_v25, %v14124_v54  ;;  %v14127_v57 = vld [vmem:[#allocation93_spill] sm:$0xff] }
 0x991   :  { %v2037_v62 = vmul.f32 1.442695, %v1977_v26  ;;  %v2039_v15 = vmul.f32 1.442695, %v1978_v37  ;;  %v1979_v22 = vsub.f32 %v14119_v2, %v1936_v44  ;;  %v1980_v58 = vsub.f32 %v14120_v45, %v1936_v44 }
 0x992   :  { %2095 = vadd.xlane.f32.xlu1 %v2094_v50  ;;  %1401 = vmax.xlane.f32.xlu0 %v14123_v12  ;;  %v2098_v33 = vadd.f32 %v10406_v13, %v2097_v35  ;;  %v14129_v35 = vld [vmem:[#allocation98_spill] sm:$0xff] }
 0x993   :  { %8260 = vpow2.f32 %v2037_v62  ;;  %v2041_v48 = vmul.f32 1.442695, %v1979_v22  ;;  %v2043_v61 = vmul.f32 1.442695, %v1980_v58 }
 0x994   :  { %8262 = vpow2.f32 %v2039_v15 }
 0x995   :  { %v10416_v29 = vpop.eup %8252  ;;  %8264 = vpow2.f32 %v2043_v61  ;;  %v14130_v61 = vld [vmem:[#allocation94_spill] sm:$0xff] }
 0x996   :  { %v10418_v32 = vpop.eup %8254  ;;  %2099 = vadd.xlane.f32.xlu0 %v2098_v33  ;;  %1405 = vmax.xlane.f32.xlu1 %v14125_v53  ;;  %v1940_v26 = vpop.xlane.xlu1 %1939  ;;  %8266 = vpow2.f32 %v2041_v48  ;;  %v14131_v33 = vld [vmem:[#allocation99_spill] sm:$0xff] }
 0x997   :  { %v1981_v37 = vsub.f32 %v14126_v14, %v1940_v26  ;;  %v1982_v44 = vsub.f32 %v14127_v57, %v1940_v26  ;;  %v2101_v50 = vsel %vm1346_vm11, %v10418_v32, 0.0  ;;  %v10427_v62 = vpop.eup %8256  ;;  %v14132_v54 = vmax.f32 %v14130_v61, %v14131_v33 }
 0x998   :  { %v1944_v15 = vpop.xlane.xlu0 %1943  ;;  %v2102_v2 = vadd.f32 %v10416_v29, %v2101_v50  ;;  %v10430_v22 = vpop.eup %8258  ;;  %v2105_v53 = vsel %vm1346_vm11, %v10427_v62, 0.0 }
 0x999   :  { %v2045_v45 = vmul.f32 1.442695, %v1981_v37  ;;  %v2047_v58 = vmul.f32 1.442695, %v1982_v44  ;;  %v1983_v12 = vsub.f32 %v14128_v55, %v1944_v15  ;;  %v1984_v48 = vsub.f32 %v14129_v35, %v1944_v15  ;;  %v14134_v55 = vld [vmem:[#allocation101_spill] sm:$0xff] }
 0x99a   :  { %2103 = vadd.xlane.f32.xlu1 %v2102_v2  ;;  %1409 = vmax.xlane.f32.xlu0 %v14132_v54  ;;  %v2106_v57 = vadd.f32 %v10430_v22, %v2105_v53  ;;  %v14133_v44 = vmax.f32 %v10242_v46, %v10258_v4 }
 0x99b   :  { %v2049_v26 = vmul.f32 1.442695, %v1983_v12  ;;  %v2051_v14 = vmul.f32 1.442695, %v1984_v48  ;;  %8268 = vpow2.f32 %v2047_v58 }
 0x99c   :  { %8270 = vpow2.f32 %v2045_v45 }
 0x99d   :  { %v10440_v50 = vpop.eup %8260  ;;  %8272 = vpow2.f32 %v2051_v14 }
 0x99e   :  { %v10442_v37 = vpop.eup %8262  ;;  %2107 = vadd.xlane.f32.xlu0 %v2106_v57  ;;  %1413 = vmax.xlane.f32.xlu1 %v14133_v44  ;;  %v1948_v15 = vpop.xlane.xlu1 %1947  ;;  %8274 = vpow2.f32 %v2049_v26 }
 0x99f   :  { %v1985_v2 = vsub.f32 %v10244_v3, %v1948_v15  ;;  %v1986_v12 = vsub.f32 %v14134_v55, %v1948_v15  ;;  %v2109_v58 = vsel %vm1346_vm11, %v10442_v37, 0.0  ;;  %v10451_v35 = vpop.eup %8264  ;;  %v14135_v3 = vmax.f32 %v10252_v63, %v10269_v20 }
 0x9a0   :  { %v1952_v45 = vpop.xlane.xlu0 %1951  ;;  %v2110_v48 = vadd.f32 %v10440_v50, %v2109_v58  ;;  %v10454_v33 = vpop.eup %8266  ;;  %v2113_v57 = vsel %vm1346_vm11, %v10451_v35, 0.0 }
 0x9a1   :  { %v2053_v54 = vmul.f32 1.442695, %v1985_v2  ;;  %v2055_v53 = vmul.f32 1.442695, %v1986_v12  ;;  %v1987_v4 = vsub.f32 %v10254_v11, %v1952_v45  ;;  %v1988_v26 = vsub.f32 %v10262_v38, %v1952_v45  ;;  %v14136_v2 = vld [vmem:[#allocation65_spill] sm:$0xff]  ;;  %v14137_v45 = vld [vmem:[#allocation64_spill] sm:$0xff] }
 0x9a2   :  { %2111 = vadd.xlane.f32.xlu1 %v2110_v48  ;;  %1417 = vmax.xlane.f32.xlu0 %v14135_v3  ;;  %v1350_v14 = vpop.xlane.xlu1 %1349  ;;  %v2114_v38 = vadd.f32 %v10454_v33, %v2113_v57 }
 0x9a3   :  { %8276 = vpow2.f32 %v2053_v54  ;;  %v2057_v44 = vmul.f32 1.442695, %v1987_v4  ;;  %v2059_v15 = vmul.f32 1.442695, %v1988_v26  ;;  %v1419_v55 = vsub.f32 %v9970_v5, %v1350_v14 }
 0x9a4   :  { %8278 = vpow2.f32 %v2055_v53  ;;  %v1420_v12 = vsub.f32 %v14136_v2, %v1350_v14  ;;  %v1354_v11 = vpop.xlane.xlu0 %1353 }
 0x9a5   :  { %8280 = vpow2.f32 %v2057_v44  ;;  %v1455_v58 = vmul.f32 1.442695, %v1419_v55  ;;  %v1421_v20 = vsub.f32 %v9980_v59, %v1354_v11  ;;  %v1422_v48 = vsub.f32 %v14137_v45, %v1354_v11  ;;  %v10468_v3 = vpop.eup %8268  ;;  %v14139_v44 = vld [vmem:[#allocation69_spill] sm:$0xff] }
 0x9a6   :  { %8282 = vpow2.f32 %v2059_v15  ;;  %v1457_v54 = vmul.f32 1.442695, %v1420_v12  ;;  %2115 = vadd.xlane.f32.xlu0 %v2114_v38  ;;  %v1358_v4 = vpop.xlane.xlu1 %1357  ;;  %v10470_v26 = vpop.eup %8270  ;;  %v2117_v2 = vsel %vm1346_vm11, %v10468_v3, 0.0  ;;  %v14140_v38 = vld [vmem:[#allocation68_spill] sm:$0xff] }
 0x9a7   :  { %14138 = vst [vmem:[#allocation87_spill] sm:$0xff] %v10470_v26  ;;  %8284 = vpow2.f32 %v1455_v58  ;;  %v1459_v5 = vmul.f32 1.442695, %v1421_v20  ;;  %v1461_v53 = vmul.f32 1.442695, %v1422_v48  ;;  %v1423_v14 = vsub.f32 %v10004_v43, %v1358_v4  ;;  %v10473_v57 = vpop.eup %8272 }
 0x9a8   :  { %8286 = vpow2.f32 %v1457_v54  ;;  %v1424_v59 = vsub.f32 %v14139_v44, %v1358_v4  ;;  %v1362_v55 = vpop.xlane.xlu0 %1361  ;;  %v10478_v15 = vpop.eup %8274  ;;  %v2118_v43 = vadd.f32 %v10470_v26, %v2117_v2  ;;  %v2121_v48 = vsel %vm1346_vm11, %v10473_v57, 0.0 }
 0x9a9   :  { %8288 = vpow2.f32 %v1459_v5  ;;  %v1463_v12 = vmul.f32 1.442695, %v1423_v14  ;;  %v1425_v11 = vsub.f32 %v10014_v1, %v1362_v55  ;;  %v1426_v58 = vsub.f32 %v14140_v38, %v1362_v55  ;;  %v14141_v5 = vld [vmem:[#allocation74_spill] sm:$0xff]  ;;  %v14143_v38 = vld [vmem:[#allocation75_spill] sm:$0xff] }
 0x9aa   :  { %8290 = vpow2.f32 %v1461_v53  ;;  %v1465_v20 = vmul.f32 1.442695, %v1424_v59  ;;  %v1366_v45 = vpop.xlane.xlu1 %1365  ;;  %2119 = vadd.xlane.f32.xlu1 %v2118_v43  ;;  %v2122_v1 = vadd.f32 %v10478_v15, %v2121_v48 }
 0x9ab   :  { %8292 = vpow2.f32 %v1463_v12  ;;  %v1467_v54 = vmul.f32 1.442695, %v1425_v11  ;;  %v1469_v4 = vmul.f32 1.442695, %v1426_v58  ;;  %v1427_v44 = vsub.f32 %v10038_v56, %v1366_v45 }
 0x9ac   :  { %8294 = vpow2.f32 %v1465_v20  ;;  %v1428_v14 = vsub.f32 %v14141_v5, %v1366_v45  ;;  %v1370_v55 = vpop.xlane.xlu0 %1369  ;;  %2123 = vadd.xlane.f32.xlu0 %v2122_v1 }
 0x9ad   :  { %v10488_v53 = vpop.eup %8276  ;;  %8296 = vpow2.f32 %v1467_v54  ;;  %v1471_v59 = vmul.f32 1.442695, %v1427_v44  ;;  %v1429_v2 = vsub.f32 %v10048_v27, %v1370_v55  ;;  %v1430_v26 = vsub.f32 %v14143_v38, %v1370_v55 }
 0x9ae   :  { %14142 = vst [vmem:[#allocation82_spill] sm:$0xff] %v10488_v53  ;;  %v10492_v12 = vpop.eup %8278  ;;  %8298 = vpow2.f32 %v1469_v4  ;;  %v1473_v11 = vmul.f32 1.442695, %v1428_v14 }
 0x9af   :  { %v10494_v56 = vpop.eup %8280  ;;  %8300 = vpow2.f32 %v1471_v59  ;;  %v1475_v58 = vmul.f32 1.442695, %v1429_v2  ;;  %v1477_v20 = vmul.f32 1.442695, %v1430_v26  ;;  %v2125_v43 = vsel %vm1346_vm11, %v10492_v12, 0.0 }
 0x9b0   :  { %v10498_v45 = vpop.eup %8282  ;;  %8302 = vpow2.f32 %v1473_v11  ;;  %v2126_v27 = vadd.f32 %v10488_v53, %v2125_v43 }
 0x9b1   :  { %v10501_v48 = vpop.eup %8284  ;;  %8304 = vpow2.f32 %v1475_v58  ;;  %v2129_v54 = vsel %vm1346_vm11, %v10498_v45, 0.0 }
 0x9b2   :  { %14144 = vst [vmem:[#allocation84_spill] sm:$0xff] %v10501_v48  ;;  %v10505_v4 = vpop.eup %8286  ;;  %8306 = vpow2.f32 %v1477_v20  ;;  %2127 = vadd.xlane.f32.xlu1 %v2126_v27  ;;  %v2130_v26 = vadd.f32 %v10494_v56, %v2129_v54 }
 0x9b3   :  { %v10508_v44 = vpop.eup %8288  ;;  %v1527_v5 = vsel %vm1346_vm11, %v10505_v4, 0.0 }
 0x9b4   :  { %14145 = vst [vmem:[#allocation86_spill] sm:$0xff] %v10508_v44  ;;  %v10512_v14 = vpop.eup %8290  ;;  %2131 = vadd.xlane.f32.xlu0 %v2130_v26  ;;  %v1528_v1 = vadd.f32 %v10501_v48, %v1527_v5 }
 0x9b5   :  { %v10515_v55 = vpop.eup %8292  ;;  %v1531_v59 = vsel %vm1346_vm11, %v10512_v14, 0.0 }
 0x9b6   :  { %14146 = vst [vmem:[#allocation89_spill] sm:$0xff] %v10515_v55  ;;  %v10519_v2 = vpop.eup %8294  ;;  %1529 = vadd.xlane.f32.xlu1 %v1528_v1  ;;  %v1532_v38 = vadd.f32 %v10508_v44, %v1531_v59 }
 0x9b7   :  { %14147 = vst [vmem:[#allocation85_spill] sm:$0xff] %v10519_v2  ;;  %v10522_v11 = vpop.eup %8296  ;;  %v1535_v58 = vsel %vm1346_vm11, %v10519_v2, 0.0 }
 0x9b8   :  { %14148 = vst [vmem:[#allocation90_spill] sm:$0xff] %v10522_v11  ;;  %v10526_v20 = vpop.eup %8298  ;;  %1533 = vadd.xlane.f32.xlu0 %v1532_v38  ;;  %v1536_v43 = vadd.f32 %v10515_v55, %v1535_v58 }
 0x9b9   :  { %14149 = vst [vmem:[#allocation96_spill] sm:$0xff] %v10526_v20  ;;  %v10529_v27 = vpop.eup %8300  ;;  %v1539_v54 = vsel %vm1346_vm11, %v10526_v20, 0.0 }
 0x9ba   :  { %14150 = vst [vmem:[#allocation91_spill] sm:$0xff] %v10529_v27  ;;  %v10533_v26 = vpop.eup %8302  ;;  %1537 = vadd.xlane.f32.xlu1 %v1536_v43  ;;  %v1540_v5 = vadd.f32 %v10522_v11, %v1539_v54 }
 0x9bb   :  { %14151 = vst [vmem:[#allocation93_spill] sm:$0xff] %v10533_v26  ;;  %v10536_v1 = vpop.eup %8304  ;;  %v1543_v59 = vsel %vm1346_vm11, %v10533_v26, 0.0  ;;  %v14154_v26 = vld [vmem:[#allocation76_spill] sm:$0xff] }
 0x9bc   :  { %14152 = vst [vmem:[#allocation95_spill] sm:$0xff] %v10536_v1  ;;  %v10540_v2 = vpop.eup %8306  ;;  %1541 = vadd.xlane.f32.xlu0 %v1540_v5  ;;  %v1544_v38 = vadd.f32 %v10529_v27, %v1543_v59  ;;  %v14155_v27 = vld [vmem:[#allocation77_spill] sm:$0xff] }
 0x9bd   :  { %14153 = vst [vmem:[#allocation98_spill] sm:$0xff] %v10540_v2  ;;  %v1547_v58 = vsel %vm1346_vm11, %v10540_v2, 0.0 }
 0x9be   :  { %1545 = vadd.xlane.f32.xlu1 %v1544_v38  ;;  %v1548_v55 = vadd.f32 %v10536_v1, %v1547_v58 }
 0x9c0   :  { %1549 = vadd.xlane.f32.xlu0 %v1548_v55 }
 0x9ff   :  { %v2064_v43 = vpop.xlane.xlu1 %2063 }
 0xa00   :  { %8308 = vrcp.f32 %v2064_v43 }
 0xa02   :  { %v2068_v54 = vpop.xlane.xlu0 %2067 }
 0xa03   :  { %8310 = vrcp.f32 %v2068_v54  ;;  %v1374_v11 = vpop.xlane.xlu1 %1373 }
 0xa04   :  { %v1431_v48 = vsub.f32 %v10072_v10, %v1374_v11  ;;  %v1432_v20 = vsub.f32 %v14154_v26, %v1374_v11 }
 0xa06   :  { %v1479_v44 = vmul.f32 1.442695, %v1431_v48  ;;  %v1481_v5 = vmul.f32 1.442695, %v1432_v20  ;;  %v1378_v53 = vpop.xlane.xlu0 %1377  ;;  %v14156_v48 = vld [vmem:[#allocation78_spill] sm:$0xff] }
 0xa07   :  { %v1433_v59 = vsub.f32 %v10082_v23, %v1378_v53  ;;  %v1434_v2 = vsub.f32 %v14155_v27, %v1378_v53  ;;  %v2072_v38 = vpop.xlane.xlu1 %2071 }
 0xa08   :  { %8312 = vpow2.f32 %v1479_v44 }
 0xa09   :  { %8314 = vpow2.f32 %v1481_v5  ;;  %v1483_v55 = vmul.f32 1.442695, %v1433_v59  ;;  %v1485_v58 = vmul.f32 1.442695, %v1434_v2 }
 0xa0a   :  { %v8309_v43 = vpop.eup %8308  ;;  %8316 = vrcp.f32 %v2072_v38 }
 0xa0b   :  { %8318 = vpow2.f32 %v1483_v55  ;;  %v2076_v54 = vpop.xlane.xlu0 %2075  ;;  %v1382_v1 = vpop.xlane.xlu1 %1381  ;;  %v2135_v23 = vmul.f32 %v8309_v43, %v10304_v17  ;;  %v2134_v26 = vmul.f32 %v8309_v43, %v10302_v41 }
 0xa0c   :  { %8320 = vpow2.f32 %v1485_v58  ;;  %v1435_v10 = vsub.f32 %v10106_v0, %v1382_v1  ;;  %v1436_v11 = vsub.f32 %v14156_v48, %v1382_v1  ;;  %v14157_v0 = vld [vmem:[#allocation79_spill] sm:$0xff]  ;;  %v14159_v48 = vld [vmem:[#allocation52_spill] sm:$0xff] }
 0xa0d   :  { %v8311_v20 = vpop.eup %8310  ;;  %8322 = vrcp.f32 %v2076_v54 }
 0xa0e   :  { %v2137_v53 = vmul.f32 %v8311_v20, %v10306_v21  ;;  %v1487_v44 = vmul.f32 1.442695, %v1435_v10  ;;  %v1489_v27 = vmul.f32 1.442695, %v1436_v11  ;;  %v2138_v2 = vmul.f32 %v8311_v20, %v10312_v30 }
 0xa0f   :  { %v2080_v5 = vpop.xlane.xlu1 %2079  ;;  %v1386_v59 = vpop.xlane.xlu0 %1385 }
 0xa10   :  { %8324 = vpow2.f32 %v1487_v44  ;;  %v1437_v38 = vsub.f32 %v10116_v36, %v1386_v59  ;;  %v1438_v55 = vsub.f32 %v14157_v0, %v1386_v59  ;;  %v2188_v1 = vpack.c.bf16 %v2138_v2, %v2135_v23  ;;  %v14158_v36 = vld [vmem:[#allocation53_spill] sm:$0xff]  ;;  %v14161_v23 = vld [vmem:[#allocation80_spill] sm:$0xff] }
 0xa11   :  { %8326 = vpow2.f32 %v1489_v27  ;;  %v2187_v58 = vpack.c.bf16 %v2137_v53, %v2134_v26  ;;  %v14160_v11 = vpack.c.bf16 %v14158_v36, %v14159_v48  ;;  %v14162_v2 = vmov 0   ;;  %v14166_v48 = vld [vmem:[#allocation81_spill] sm:$0xff] }
 0xa12   :  { %v10558_v54 = vpop.eup %8312  ;;  %8328 = vrcp.f32 %v2080_v5  ;;  %v1491_v17 = vmul.f32 1.442695, %v1437_v38  ;;  %v1493_v21 = vmul.f32 1.442695, %v1438_v55  ;;  %7180 = vmatprep.mubr.msk.bf16.mxu0 %vm1346_vm11, %v2188_v1 }
 0xa13   :  { %v10561_v30 = vpop.eup %8314  ;;  %2292 = vmatmul.mubr.bf16.vlgmr.msra.gmra.mrb[80].mxu0 %v2187_v58  ;;  %v2084_v41 = vpop.xlane.xlu0 %2083 }
 0xa14   :  { %v1390_v43 = vpop.xlane.xlu1 %1389  ;;  %v8317_v10 = vpop.eup %8316  ;;  %8330 = vpow2.f32 %v1491_v17  ;;  %2392 = vmatpush1.bf16.msra.mxu0 %v14160_v11  ;;  %v1551_v44 = vsel %vm1346_vm11, %v10561_v30, 0.0  ;;  %v14163_v17 = vld [vmem:[#allocation55_spill] sm:$0xff] }
 0xa15   :  { %v1439_v20 = vsub.f32 %v10140_v40, %v1390_v43  ;;  %v1440_v53 = vsub.f32 %v14161_v23, %v1390_v43  ;;  %v10570_v27 = vpop.eup %8318  ;;  %8332 = vpow2.f32 %v1493_v21  ;;  %2393 = vmatprep.subr.bf16.mxu0 %v14162_v2  ;;  %v1552_v26 = vadd.f32 %v10558_v54, %v1551_v44  ;;  %v14164_v21 = vld [vmem:[#allocation54_spill] sm:$0xff] }
 0xa16   :  { %v10574_v5 = vpop.eup %8320  ;;  %8334 = vrcp.f32 %v2084_v41  ;;  %v2141_v58 = vmul.f32 %v8317_v10, %v10322_v49  ;;  %v14165_v43 = vpack.c.bf16 %v14163_v17, %v14164_v21  ;;  %v2140_v23 = vmul.f32 %v8317_v10, %v10320_v7  ;;  %v14167_v21 = vld [vmem:[#allocation57_spill] sm:$0xff] }
 0xa17   :  { %v1495_v59 = vmul.f32 1.442695, %v1439_v20  ;;  %v1497_v38 = vmul.f32 1.442695, %v1440_v53  ;;  %v8323_v0 = vpop.eup %8322  ;;  %1553 = vadd.xlane.f32.xlu1 %v1552_v26  ;;  %v1394_v55 = vpop.xlane.xlu0 %1393  ;;  %v1555_v1 = vsel %vm1346_vm11, %v10574_v5, 0.0 }
 0xa18   :  { %v2088_v40 = vpop.xlane.xlu1 %2087  ;;  %2394 = vmatpush1.bf16.msra.mxu0 %v14165_v43  ;;  %v1441_v36 = vsub.f32 %v10150_v39, %v1394_v55  ;;  %v1442_v41 = vsub.f32 %v14166_v48, %v1394_v55  ;;  %v1556_v11 = vadd.f32 %v10570_v27, %v1555_v1  ;;  %v2144_v20 = vmul.f32 %v8323_v0, %v10339_v60  ;;  %v14168_v60 = vld [vmem:[#allocation56_spill] sm:$0xff] }
 0xa19   :  { %8336 = vpow2.f32 %v1495_v59  ;;  %2395 = vmatprep.subr.bf16.mxu0 %v14162_v2  ;;  %v2143_v49 = vmul.f32 %v8323_v0, %v10332_v8  ;;  %v14169_v43 = vpack.c.bf16 %v14167_v21, %v14168_v60  ;;  %v14170_v8 = vld [vmem:[#allocation83_spill] sm:$0xff] }
 0xa1a   :  { %8338 = vpow2.f32 %v1497_v38  ;;  %v10589_v53 = vpop.eup %8324  ;;  %v1499_v44 = vmul.f32 1.442695, %v1441_v36  ;;  %v1501_v26 = vmul.f32 1.442695, %v1442_v41  ;;  %1557 = vadd.xlane.f32.xlu0 %v1556_v11  ;;  %v2190_v59 = vpack.c.bf16 %v2144_v20, %v2141_v58 }
 0xa1b   :  { %8340 = vrcp.f32 %v2088_v40  ;;  %v10591_v39 = vpop.eup %8326  ;;  %v2092_v55 = vpop.xlane.xlu0 %2091  ;;  %v2189_v38 = vpack.c.bf16 %v2143_v49, %v2140_v23 }
 0xa1c   :  { %v1398_v1 = vpop.xlane.xlu1 %1397  ;;  %v8329_v17 = vpop.eup %8328  ;;  %8342 = vpow2.f32 %v1499_v44  ;;  %2396 = vmatpush1.bf16.msra.mxu0 %v14169_v43  ;;  %v1559_v0 = vsel %vm1346_vm11, %v10591_v39, 0.0  ;;  %7181 = vmatprep.mubr.msk.bf16.mxu0 %vm1346_vm11, %v2190_v59  ;;  %v14171_v44 = vld [vmem:[#allocation59_spill] sm:$0xff] }
 0xa1d   :  { %v1443_v7 = vsub.f32 %v10174_v42, %v1398_v1  ;;  %v1444_v10 = vsub.f32 %v14170_v8, %v1398_v1  ;;  %8344 = vpow2.f32 %v1501_v26  ;;  %2397 = vmatprep.subr.bf16.mxu0 %v14162_v2  ;;  %v1560_v40 = vadd.f32 %v10589_v53, %v1559_v0  ;;  %2300 = vmatmul.mubr.bf16.gmra.mrb[84].mxu0 %v2189_v38  ;;  %v14172_v26 = vld [vmem:[#allocation58_spill] sm:$0xff]  ;;  %v14174_v1 = vld [vmem:[#allocation88_spill] sm:$0xff] }
 0xa1e   :  { %v10603_v58 = vpop.eup %8330  ;;  %8346 = vrcp.f32 %v2092_v55  ;;  %v2147_v20 = vmul.f32 %v8329_v17, %v10346_v34  ;;  %v2146_v23 = vmul.f32 %v8329_v17, %v10344_v51  ;;  %v14173_v59 = vpack.c.bf16 %v14171_v44, %v14172_v26 }
 0xa1f   :  { %v1503_v36 = vmul.f32 1.442695, %v1443_v7  ;;  %v1505_v48 = vmul.f32 1.442695, %v1444_v10  ;;  %v10605_v41 = vpop.eup %8332  ;;  %1561 = vadd.xlane.f32.xlu1 %v1560_v40  ;;  %v1402_v11 = vpop.xlane.xlu0 %1401 }
 0xa20   :  { %v2096_v42 = vpop.xlane.xlu1 %2095  ;;  %v8335_v49 = vpop.eup %8334  ;;  %2398 = vmatpush1.bf16.msra.mxu0 %v14173_v59  ;;  %v1445_v55 = vsub.f32 %v14121_v28, %v1402_v11  ;;  %v1446_v21 = vsub.f32 %v14174_v1, %v1402_v11  ;;  %v1563_v38 = vsel %vm1346_vm11, %v10605_v41, 0.0  ;;  %v14176_v11 = vld [vmem:[#allocation60_spill] sm:$0xff] }
 0xa21   :  { %8348 = vpow2.f32 %v1503_v36  ;;  %2399 = vmatprep.subr.bf16.mxu0 %v14162_v2  ;;  %v1564_v34 = vadd.f32 %v10603_v58, %v1563_v38  ;;  %v2150_v51 = vmul.f32 %v8335_v49, %v10355_v18  ;;  %v2149_v17 = vmul.f32 %v8335_v49, %v10358_v24  ;;  %v14178_v24 = vld [vmem:[#allocation92_spill] sm:$0xff] }
 0xa22   :  { %8350 = vpow2.f32 %v1505_v48  ;;  %v1507_v43 = vmul.f32 1.442695, %v1445_v55  ;;  %v1509_v7 = vmul.f32 1.442695, %v1446_v21  ;;  %v14175_v48 = vld [vmem:[#allocation61_spill] sm:$0xff] }
 0xa23   :  { %v10620_v60 = vpop.eup %8336  ;;  %8352 = vrcp.f32 %v2096_v42  ;;  %1565 = vadd.xlane.f32.xlu0 %v1564_v34  ;;  %v2192_v8 = vpack.c.bf16 %v2150_v51, %v2147_v20  ;;  %v2100_v10 = vpop.xlane.xlu0 %2099  ;;  %v2191_v40 = vpack.c.bf16 %v2149_v17, %v2146_v23  ;;  %v14177_v44 = vpack.c.bf16 %v14175_v48, %v14176_v11  ;;  %v14179_v51 = vld [vmem:[#allocation63_spill] sm:$0xff]  ;;  %v14180_v17 = vld [vmem:[#allocation62_spill] sm:$0xff] }
 0xa24   :  { %v10622_v28 = vpop.eup %8338  ;;  %v1406_v0 = vpop.xlane.xlu1 %1405  ;;  %8354 = vpow2.f32 %v1507_v43  ;;  %v14181_v43 = vpack.c.bf16 %v14179_v51, %v14180_v17 }
 0xa25   :  { %v8341_v36 = vpop.eup %8340  ;;  %2400 = vmatpush1.bf16.msra.mxu0 %v14177_v44  ;;  %v1447_v18 = vsub.f32 %v10208_v25, %v1406_v0  ;;  %v1448_v49 = vsub.f32 %v14178_v24, %v1406_v0  ;;  %v1567_v42 = vsel %vm1346_vm11, %v10622_v28, 0.0  ;;  %8356 = vpow2.f32 %v1509_v7  ;;  %7182 = vmatprep.mubr.msk.bf16.mxu0 %vm1346_vm11, %v2192_v8  ;;  %v14182_v8 = vld [vmem:[#allocation97_spill] sm:$0xff] }
 0xa26   :  { %2401 = vmatprep.subr.bf16.mxu0 %v14162_v2  ;;  %v1568_v20 = vadd.f32 %v10620_v60, %v1567_v42  ;;  %v10634_v23 = vpop.eup %8342  ;;  %8358 = vrcp.f32 %v2100_v10  ;;  %2308 = vmatmul.mubr.bf16.gmra.mrb[88].mxu0 %v2191_v40  ;;  %v2153_v21 = vmul.f32 %v8341_v36, %v10370_v6  ;;  %v2152_v38 = vmul.f32 %v8341_v36, %v10368_v19 }
 0xa27   :  { %v1511_v26 = vmul.f32 1.442695, %v1447_v18  ;;  %v1513_v59 = vmul.f32 1.442695, %v1448_v49  ;;  %v10636_v55 = vpop.eup %8344  ;;  %v1410_v1 = vpop.xlane.xlu0 %1409 }
 0xa28   :  { %1569 = vadd.xlane.f32.xlu1 %v1568_v20  ;;  %v2104_v25 = vpop.xlane.xlu1 %2103  ;;  %v8347_v34 = vpop.eup %8346  ;;  %v1449_v7 = vsub.f32 %v14130_v61, %v1410_v1  ;;  %v1450_v10 = vsub.f32 %v14182_v8, %v1410_v1  ;;  %v1571_v0 = vsel %vm1346_vm11, %v10636_v55, 0.0  ;;  %v14183_v20 = vld [vmem:[#allocation67_spill] sm:$0xff] }
 0xa29   :  { %8360 = vpow2.f32 %v1511_v26  ;;  %2402 = vmatpush1.bf16.msra.mxu0 %v14181_v43  ;;  %v1572_v6 = vadd.f32 %v10634_v23, %v1571_v0  ;;  %v2156_v19 = vmul.f32 %v8347_v34, %v10379_v31  ;;  %v2155_v40 = vmul.f32 %v8347_v34, %v10382_v52  ;;  %v14184_v26 = vld [vmem:[#allocation66_spill] sm:$0xff]  ;;  %v14186_v52 = vld [vmem:[#allocation100_spill] sm:$0xff] }
 0xa2a   :  { %8362 = vpow2.f32 %v1513_v59  ;;  %2403 = vmatprep.subr.bf16.mxu0 %v14162_v2  ;;  %v1515_v48 = vmul.f32 1.442695, %v1449_v7  ;;  %v1517_v11 = vmul.f32 1.442695, %v1450_v10  ;;  %v14185_v59 = vpack.c.bf16 %v14183_v20, %v14184_v26  ;;  %v14187_v10 = vld [vmem:[#allocation71_spill] sm:$0xff]  ;;  %v14188_v0 = vld [vmem:[#allocation70_spill] sm:$0xff] }
 0xa2b   :  { %v10651_v36 = vpop.eup %8348  ;;  %8364 = vrcp.f32 %v2104_v25  ;;  %1573 = vadd.xlane.f32.xlu0 %v1572_v6  ;;  %v2194_v61 = vpack.c.bf16 %v2156_v19, %v2153_v21  ;;  %v2108_v18 = vpop.xlane.xlu0 %2107  ;;  %v2193_v49 = vpack.c.bf16 %v2155_v40, %v2152_v38  ;;  %v14189_v6 = vpack.c.bf16 %v14187_v10, %v14188_v0 }
 0xa2c   :  { %v10653_v44 = vpop.eup %8350  ;;  %v1414_v24 = vpop.xlane.xlu1 %1413  ;;  %8366 = vpow2.f32 %v1515_v48  ;;  %v14190_v48 = vld [vmem:[#allocation102_spill] sm:$0xff] }
 0xa2d   :  { %v8353_v42 = vpop.eup %8352  ;;  %2404 = vmatpush1.bf16.msra.mxu0 %v14185_v59  ;;  %v1451_v31 = vsub.f32 %v10242_v46, %v1414_v24  ;;  %v1452_v1 = vsub.f32 %v14186_v52, %v1414_v24  ;;  %v1575_v34 = vsel %vm1346_vm11, %v10653_v44, 0.0  ;;  %8368 = vpow2.f32 %v1517_v11  ;;  %7183 = vmatprep.mubr.msk.bf16.mxu0 %vm1346_vm11, %v2194_v61  ;;  %v14192_v52 = vld [vmem:[#allocation72_spill] sm:$0xff] }
 0xa2e   :  { %2405 = vmatprep.subr.bf16.mxu0 %v14162_v2  ;;  %v1576_v25 = vadd.f32 %v10651_v36, %v1575_v34  ;;  %v10665_v21 = vpop.eup %8354  ;;  %8370 = vrcp.f32 %v2108_v18  ;;  %2316 = vmatmul.mubr.bf16.gmra.mrb[92].mxu0 %v2193_v49  ;;  %v2159_v43 = vmul.f32 %v8353_v42, %v10394_v47  ;;  %v2158_v7 = vmul.f32 %v8353_v42, %v10392_v9 }
 0xa2f   :  { %v1519_v38 = vmul.f32 1.442695, %v1451_v31  ;;  %v1521_v51 = vmul.f32 1.442695, %v1452_v1  ;;  %v10667_v17 = vpop.eup %8356  ;;  %v1418_v46 = vpop.xlane.xlu0 %1417  ;;  %v14191_v31 = vld [vmem:[#allocation73_spill] sm:$0xff] }
 0xa30   :  { %1577 = vadd.xlane.f32.xlu1 %v1576_v25  ;;  %v8359_v8 = vpop.eup %8358  ;;  %v2112_v19 = vpop.xlane.xlu1 %2111  ;;  %v1453_v40 = vsub.f32 %v10252_v63, %v1418_v46  ;;  %v1454_v11 = vsub.f32 %v14190_v48, %v1418_v46  ;;  %v1579_v61 = vsel %vm1346_vm11, %v10667_v17, 0.0  ;;  %v14193_v1 = vpack.c.bf16 %v14191_v31, %v14192_v52 }
 0xa31   :  { %8372 = vpow2.f32 %v1519_v38  ;;  %2406 = vmatpush1.bf16.msra.mxu0 %v14189_v6  ;;  %v1580_v47 = vadd.f32 %v10665_v21, %v1579_v61  ;;  %v2162_v9 = vmul.f32 %v8359_v8, %v10403_v16  ;;  %v2161_v18 = vmul.f32 %v8359_v8, %v10406_v13 }
 0xa32   :  { %8374 = vpow2.f32 %v1521_v51  ;;  %2407 = vmatprep.subr.bf16.mxu0 %v14162_v2  ;;  %v1523_v49 = vmul.f32 1.442695, %v1453_v40  ;;  %v1525_v42 = vmul.f32 1.442695, %v1454_v11  ;;  %v14194_v25 = vmov 0.0  }
 0xa33   :  { %v10682_v24 = vpop.eup %8360  ;;  %8376 = vrcp.f32 %v2112_v19  ;;  %1581 = vadd.xlane.f32.xlu0 %v1580_v47  ;;  %v2196_v63 = vpack.c.bf16 %v2162_v9, %v2159_v43  ;;  %v2116_v26 = vpop.xlane.xlu0 %2115  ;;  %v2195_v59 = vpack.c.bf16 %v2161_v18, %v2158_v7 }
 0xa34   :  { %v10684_v20 = vpop.eup %8362  ;;  %8378 = vpow2.f32 %v1523_v49 }
 0xa35   :  { %2408 = vmatpush1.bf16.msra.mxu0 %v14193_v1  ;;  %v1583_v16 = vsel %vm1346_vm11, %v10684_v20, 0.0  ;;  %v8365_v13 = vpop.eup %8364  ;;  %8380 = vpow2.f32 %v1525_v42  ;;  %7184 = vmatprep.mubr.msk.bf16.mxu0 %vm1346_vm11, %v2196_v63 }
 0xa36   :  { %v1584_v34 = vadd.f32 %v10682_v24, %v1583_v16  ;;  %7703 = vmatprep.subr.bf16.mxu0 %v14194_v25  ;;  %v10694_v38 = vpop.eup %8366  ;;  %8382 = vrcp.f32 %v2116_v26  ;;  %2324 = vmatmul.mubr.bf16.gmra.mrb[96].mxu0 %v2195_v59  ;;  %v2165_v7 = vmul.f32 %v8365_v13, %v10418_v32  ;;  %v2164_v6 = vmul.f32 %v8365_v13, %v10416_v29 }
 0xa37   :  { %v10696_v51 = vpop.eup %8368  ;;  %v2120_v8 = vpop.xlane.xlu1 %2119 }
 0xa38   :  { %1585 = vadd.xlane.f32.xlu1 %v1584_v34  ;;  %v8371_v46 = vpop.eup %8370  ;;  %v1587_v43 = vsel %vm1346_vm11, %v10696_v51, 0.0  ;;  %8384 = vrcp.f32 %v2120_v8 }
 0xa39   :  { %v1588_v10 = vadd.f32 %v10694_v38, %v1587_v43  ;;  %v2168_v0 = vmul.f32 %v8371_v46, %v10427_v62  ;;  %v2167_v19 = vmul.f32 %v8371_v46, %v10430_v22  ;;  %v2124_v11 = vpop.xlane.xlu0 %2123 }
 0xa3a   :  { %8386 = vrcp.f32 %v2124_v11 }
 0xa3b   :  { %v10705_v40 = vpop.eup %8372  ;;  %1589 = vadd.xlane.f32.xlu0 %v1588_v10  ;;  %v2198_v61 = vpack.c.bf16 %v2168_v0, %v2165_v7  ;;  %v2197_v47 = vpack.c.bf16 %v2167_v19, %v2164_v6  ;;  %v14195_v0 = vld [vmem:[#allocation87_spill] sm:$0xff] }
 0xa3c   :  { %v10707_v48 = vpop.eup %8374 }
 0xa3d   :  { %v1591_v32 = vsel %vm1346_vm11, %v10707_v48, 0.0  ;;  %v8377_v9 = vpop.eup %8376  ;;  %7185 = vmatprep.mubr.msk.bf16.mxu0 %vm1346_vm11, %v2198_v61 }
 0xa3e   :  { %v1592_v29 = vadd.f32 %v10705_v40, %v1591_v32  ;;  %v10713_v62 = vpop.eup %8378  ;;  %2332 = vmatmul.mubr.bf16.gmra.mrb[100].mxu0 %v2197_v47  ;;  %v2171_v63 = vmul.f32 %v8377_v9, %v10442_v37  ;;  %v2170_v52 = vmul.f32 %v8377_v9, %v10440_v50 }
 0xa3f   :  { %v10715_v22 = vpop.eup %8380  ;;  %v2128_v18 = vpop.xlane.xlu1 %2127 }
 0xa40   :  { %1593 = vadd.xlane.f32.xlu1 %v1592_v29  ;;  %v8383_v49 = vpop.eup %8382  ;;  %8388 = vrcp.f32 %v2128_v18  ;;  %v1595_v42 = vsel %vm1346_vm11, %v10715_v22, 0.0 }
 0xa41   :  { %v2132_v26 = vpop.xlane.xlu0 %2131  ;;  %v1596_v59 = vadd.f32 %v10713_v62, %v1595_v42  ;;  %v2174_v31 = vmul.f32 %v8383_v49, %v10451_v35  ;;  %v2173_v1 = vmul.f32 %v8383_v49, %v10454_v33  ;;  %v14196_v42 = vld [vmem:[#allocation82_spill] sm:$0xff] }
 0xa42   :  { %8390 = vrcp.f32 %v2132_v26  ;;  %v8385_v46 = vpop.eup %8384 }
 0xa43   :  { %1597 = vadd.xlane.f32.xlu0 %v1596_v59  ;;  %v1530_v16 = vpop.xlane.xlu1 %1529  ;;  %v2200_v13 = vpack.c.bf16 %v2174_v31, %v2171_v63  ;;  %v2199_v34 = vpack.c.bf16 %v2173_v1, %v2170_v52  ;;  %v2177_v7 = vmul.f32 %v8385_v46, %v10468_v3  ;;  %v2176_v6 = vmul.f32 %v8385_v46, %v14195_v0  ;;  %v14198_v1 = vld [vmem:[#allocation96_spill] sm:$0xff]  ;;  %v14203_v0 = vld [vmem:[#allocation89_spill] sm:$0xff] }
 0xa44   :  { %8392 = vrcp.f32 %v1530_v16  ;;  %v8387_v37 = vpop.eup %8386 }
 0xa45   :  { %7186 = vmatprep.mubr.msk.bf16.mxu0 %vm1346_vm11, %v2200_v13  ;;  %v1534_v43 = vpop.xlane.xlu0 %1533  ;;  %v2180_v35 = vmul.f32 %v8387_v37, %v10473_v57  ;;  %v2179_v50 = vmul.f32 %v8387_v37, %v10478_v15  ;;  %v14199_v13 = vld [vmem:[#allocation84_spill] sm:$0xff] }
 0xa46   :  { %2340 = vmatmul.mubr.bf16.gmra.mrb[104].mxu0 %v2199_v34  ;;  %8394 = vrcp.f32 %v1534_v43  ;;  %v14200_v34 = vld [vmem:[#allocation85_spill] sm:$0xff] }
 0xa47   :  { %v2202_v33 = vpack.c.bf16 %v2180_v35, %v2177_v7  ;;  %v1538_v19 = vpop.xlane.xlu1 %1537  ;;  %v2201_v61 = vpack.c.bf16 %v2179_v50, %v2176_v6  ;;  %v14201_v35 = vld [vmem:[#allocation90_spill] sm:$0xff] }
 0xa49   :  { %v1542_v8 = vpop.xlane.xlu0 %1541  ;;  %7187 = vmatprep.mubr.msk.bf16.mxu0 %vm1346_vm11, %v2202_v33  ;;  %v14202_v33 = vld [vmem:[#allocation98_spill] sm:$0xff] }
 0xa4a   :  { %v8389_v10 = vpop.eup %8388  ;;  %8396 = vrcp.f32 %v1542_v8 }
 0xa4b   :  { %v2183_v47 = vmul.f32 %v8389_v10, %v10492_v12  ;;  %8398 = vrcp.f32 %v1538_v19  ;;  %v2182_v63 = vmul.f32 %v8389_v10, %v14196_v42  ;;  %v1546_v26 = vpop.xlane.xlu1 %1545  ;;  %v8172_v10 = vld [vmem:[%s13754_s1 + $0xa0] ss:$8 sps:$4 sm:$0xff]  }
 0xa4c   :  { %v8391_v11 = vpop.eup %8390  ;;  %v14204_v19 = vld [vmem:[#allocation93_spill] sm:$0xff]  ;;  %7616 = vmatpush3.bf16.msra.mxu1 %v8172_v10 }
 0xa4d   :  { %v2186_v32 = vmul.f32 %v8391_v11, %v10498_v45  ;;  %v2185_v9 = vmul.f32 %v8391_v11, %v10494_v56  ;;  %v1550_v29 = vpop.xlane.xlu0 %1549  ;;  %v14197_v56 = vld [vmem:[#allocation86_spill] sm:$0xff]  ;;  %7617 = vmatprep.subr.bf16.mxu1 %v14194_v25 }
 0xa4e   :  { %v8393_v3 = vpop.eup %8392  ;;  %2348 = vmatmul.mubr.bf16.gmra.mrb[108].mxu0 %v2201_v61  ;;  %8400 = vrcp.f32 %v1550_v29  ;;  %v8173_v61 = vld [vmem:[%s13754_s1 + $0xb0] ss:$8 sps:$4 sm:$0xff]  }
 0xa4f   :  { %v2204_v57 = vpack.c.bf16 %v2186_v32, %v2183_v47  ;;  %v1601_v18 = vmul.f32 %v8393_v3, %v10505_v4  ;;  %v2203_v45 = vpack.c.bf16 %v2185_v9, %v2182_v63  ;;  %8402 = vrcp.f32 %v1546_v26  ;;  %v14206_v9 = vld [vmem:[#allocation91_spill] sm:$0xff] }
 0xa50   :  { %v8395_v15 = vpop.eup %8394  ;;  %v1600_v4 = vmul.f32 %v8393_v3, %v14199_v13  ;;  %7618 = vmatpush3.bf16.msra.mxu1 %v8173_v61  ;;  %v8174_v3 = vld [vmem:[%s13754_s1 + $0xc0] ss:$8 sps:$4 sm:$0xff]  }
 0xa51   :  { %7188 = vmatprep.mubr.msk.bf16.mxu0 %vm1346_vm11, %v2204_v57  ;;  %v1604_v49 = vmul.f32 %v8395_v15, %v10512_v14  ;;  %v1603_v52 = vmul.f32 %v8395_v15, %v14197_v56  ;;  %v14205_v57 = vld [vmem:[#allocation95_spill] sm:$0xff]  ;;  %7619 = vmatprep.subr.bf16.mxu1 %v14194_v25 }
 0xa53   :  { %v1654_v12 = vpack.c.bf16 %v1604_v49, %v1601_v18  ;;  %v1653_v46 = vpack.c.bf16 %v1603_v52, %v1600_v4 }
 0xa54   :  { %v8397_v59 = vpop.eup %8396  ;;  %7620 = vmatpush3.bf16.msra.mxu1 %v8174_v3 }
 0xa55   :  { %v8399_v31 = vpop.eup %8398  ;;  %v1610_v16 = vmul.f32 %v8397_v59, %v14198_v1  ;;  %v1609_v50 = vmul.f32 %v8397_v59, %v14201_v35  ;;  %7621 = vmatprep.subr.bf16.mxu1 %v14194_v25 }
 0xa56   :  { %2356 = vmatmul.mubr.bf16.gmra.mrb[112].mxu0 %v2203_v45  ;;  %v1607_v14 = vmul.f32 %v8399_v31, %v14200_v34  ;;  %v1606_v6 = vmul.f32 %v8399_v31, %v14203_v0  ;;  %v8175_v45 = vld [vmem:[%s13754_s1 + $0xd0] ss:$8 sps:$4 sm:$0xff]  }
 0xa57   :  { %7189 = vmatprep.mubr.msk.bf16.mxu0 %vm1346_vm11, %v1654_v12 }
 0xa58   :  { %v1656_v43 = vpack.c.bf16 %v1610_v16, %v1607_v14  ;;  %v8401_v37 = vpop.eup %8400  ;;  %v1655_v47 = vpack.c.bf16 %v1609_v50, %v1606_v6  ;;  %7622 = vmatpush3.bf16.msra.mxu1 %v8175_v45 }
 0xa59   :  { %v8403_v7 = vpop.eup %8402  ;;  %v1616_v8 = vmul.f32 %v8401_v37, %v14202_v33  ;;  %v1615_v15 = vmul.f32 %v8401_v37, %v14205_v57  ;;  %7659 = vmatprep.subr.bf16.mxu1 %v14194_v25 }
 0xa5a   :  { %v1613_v11 = vmul.f32 %v8403_v7, %v14204_v19  ;;  %v1612_v29 = vmul.f32 %v8403_v7, %v14206_v9 }
 0xa5c   :  { %v1658_v32 = vpack.c.bf16 %v1616_v8, %v1613_v11  ;;  %v1657_v18 = vpack.c.bf16 %v1615_v15, %v1612_v29 }
 0xa5e   :  { %2424 = vmatmul.mubr.bf16.vlgmr.msra.gmra.mrb[80].mxu0 %v1653_v46 }
 0xa5f   :  { %7190 = vmatprep.mubr.msk.bf16.mxu0 %vm1346_vm11, %v1656_v43 }
 0xa66   :  { %2432 = vmatmul.mubr.bf16.gmra.mrb[84].mxu0 %v1655_v47 }
 0xa67   :  { %7191 = vmatprep.mubr.msk.bf16.mxu0 %vm1346_vm11, %v1658_v32 }
 0xa6e   :  { %2440 = vmatmul.mubr.bf16.gmra.mrb[88].mxu0 %v1657_v18 }
 0xaa4   :  { %v1554_v49 = vpop.xlane.xlu1 %1553 }
 0xaa5   :  { %8404 = vrcp.f32 %v1554_v49 }
 0xaa7   :  { %v1558_v42 = vpop.xlane.xlu0 %1557 }
 0xaa8   :  { %8406 = vrcp.f32 %v1558_v42 }
 0xaac   :  { %v1562_v63 = vpop.xlane.xlu1 %1561 }
 0xaad   :  { %8408 = vrcp.f32 %v1562_v63 }
 0xaaf   :  { %v8405_v26 = vpop.eup %8404 }
 0xab0   :  { %v1566_v12 = vpop.xlane.xlu0 %1565  ;;  %v1619_v31 = vmul.f32 %v8405_v26, %v10561_v30  ;;  %v1618_v52 = vmul.f32 %v8405_v26, %v10558_v54 }
 0xab1   :  { %8410 = vrcp.f32 %v1566_v12 }
 0xab2   :  { %v8407_v59 = vpop.eup %8406 }
 0xab3   :  { %v1622_v56 = vmul.f32 %v8407_v59, %v10574_v5  ;;  %v1621_v1 = vmul.f32 %v8407_v59, %v10570_v27 }
 0xab5   :  { %v1570_v16 = vpop.xlane.xlu1 %1569  ;;  %v1660_v13 = vpack.c.bf16 %v1622_v56, %v1619_v31  ;;  %v1659_v4 = vpack.c.bf16 %v1621_v1, %v1618_v52 }
 0xab6   :  { %8412 = vrcp.f32 %v1570_v16 }
 0xab7   :  { %7192 = vmatprep.mubr.msk.bf16.mxu0 %vm1346_vm11, %v1660_v13  ;;  %v8409_v14 = vpop.eup %8408 }
 0xab8   :  { %2448 = vmatmul.mubr.bf16.gmra.mrb[92].mxu0 %v1659_v4  ;;  %v1574_v34 = vpop.xlane.xlu0 %1573  ;;  %v1625_v5 = vmul.f32 %v8409_v14, %v10591_v39  ;;  %v1624_v27 = vmul.f32 %v8409_v14, %v10589_v53 }
 0xab9   :  { %8414 = vrcp.f32 %v1574_v34 }
 0xabb   :  { %v8411_v30 = vpop.eup %8410 }
 0xabc   :  { %v1628_v54 = vmul.f32 %v8411_v30, %v10605_v41  ;;  %v1627_v43 = vmul.f32 %v8411_v30, %v10603_v58 }
 0xabd   :  { %v1578_v46 = vpop.xlane.xlu1 %1577 }
 0xabe   :  { %v1662_v37 = vpack.c.bf16 %v1628_v54, %v1625_v5  ;;  %v1661_v7 = vpack.c.bf16 %v1627_v43, %v1624_v27  ;;  %8416 = vrcp.f32 %v1578_v46 }
 0xac0   :  { %7193 = vmatprep.mubr.msk.bf16.mxu0 %vm1346_vm11, %v1662_v37  ;;  %v1582_v35 = vpop.xlane.xlu0 %1581  ;;  %v8413_v50 = vpop.eup %8412 }
 0xac1   :  { %8418 = vrcp.f32 %v1582_v35  ;;  %2456 = vmatmul.mubr.bf16.gmra.mrb[96].mxu0 %v1661_v7  ;;  %v1631_v10 = vmul.f32 %v8413_v50, %v10622_v28  ;;  %v1630_v41 = vmul.f32 %v8413_v50, %v10620_v60 }
 0xac3   :  { %v8415_v33 = vpop.eup %8414 }
 0xac4   :  { %v1634_v39 = vmul.f32 %v8415_v33, %v10636_v55  ;;  %v1633_v53 = vmul.f32 %v8415_v33, %v10634_v23 }
 0xac5   :  { %v1586_v8 = vpop.xlane.xlu1 %1585 }
 0xac6   :  { %v1664_v58 = vpack.c.bf16 %v1634_v39, %v1631_v10  ;;  %v1663_v0 = vpack.c.bf16 %v1633_v53, %v1630_v41  ;;  %8420 = vrcp.f32 %v1586_v8 }
 0xac8   :  { %7194 = vmatprep.mubr.msk.bf16.mxu0 %vm1346_vm11, %v1664_v58  ;;  %v1590_v6 = vpop.xlane.xlu0 %1589  ;;  %v8417_v19 = vpop.eup %8416 }
 0xac9   :  { %8422 = vrcp.f32 %v1590_v6  ;;  %2464 = vmatmul.mubr.bf16.gmra.mrb[100].mxu0 %v1663_v0  ;;  %v1637_v47 = vmul.f32 %v8417_v19, %v10653_v44  ;;  %v1636_v55 = vmul.f32 %v8417_v19, %v10651_v36 }
 0xacb   :  { %v8419_v11 = vpop.eup %8418 }
 0xacc   :  { %v1640_v28 = vmul.f32 %v8419_v11, %v10667_v17  ;;  %v1639_v60 = vmul.f32 %v8419_v11, %v10665_v21 }
 0xacd   :  { %v1594_v61 = vpop.xlane.xlu1 %1593 }
 0xace   :  { %v1666_v23 = vpack.c.bf16 %v1640_v28, %v1637_v47  ;;  %v1665_v32 = vpack.c.bf16 %v1639_v60, %v1636_v55  ;;  %8424 = vrcp.f32 %v1594_v61 }
 0xad0   :  { %7195 = vmatprep.mubr.msk.bf16.mxu0 %vm1346_vm11, %v1666_v23  ;;  %v1598_v3 = vpop.xlane.xlu0 %1597  ;;  %v8421_v57 = vpop.eup %8420 }
 0xad1   :  { %8426 = vrcp.f32 %v1598_v3  ;;  %2472 = vmatmul.mubr.bf16.gmra.mrb[104].mxu0 %v1665_v32  ;;  %v1643_v9 = vmul.f32 %v8421_v57, %v10684_v20  ;;  %v1642_v17 = vmul.f32 %v8421_v57, %v10682_v24  ;;  %v10828_v3 = vld [vmem:[%s13755_s2 + $0x80] ss:$0 sm:$0xff] }
 0xad3   :  { %v8423_v15 = vpop.eup %8422 }
 0xad4   :  { %v1646_v44 = vmul.f32 %v8423_v15, %v10696_v51  ;;  %v1645_v36 = vmul.f32 %v8423_v15, %v10694_v38 }
 0xad6   :  { %v1668_v29 = vpack.c.bf16 %v1646_v44, %v1643_v9  ;;  %v1667_v21 = vpack.c.bf16 %v1645_v36, %v1642_v17  ;;  %v14207_v17 = vld [vmem:[#allocation34_spill] sm:$0xff] }
 0xad8   :  { %7196 = vmatprep.mubr.msk.bf16.mxu0 %vm1346_vm11, %v1668_v29  ;;  %v8425_v18 = vpop.eup %8424 }
 0xad9   :  { %2480 = vmatmul.mubr.bf16.gmra.mrb[108].mxu0 %v1667_v21  ;;  %v1649_v42 = vmul.f32 %v8425_v18, %v10707_v48  ;;  %v1648_v26 = vmul.f32 %v8425_v18, %v10705_v40  ;;  %v14208_v18 = vld [vmem:[#allocation35_spill] sm:$0xff] }
 0xadb   :  { %v8427_v49 = vpop.eup %8426 }
 0xadc   :  { %v1652_v63 = vmul.f32 %v8427_v49, %v10715_v22  ;;  %v1651_v20 = vmul.f32 %v8427_v49, %v10713_v62 }
 0xade   :  { %v1670_v51 = vpack.c.bf16 %v1652_v63, %v1649_v42  ;;  %v1669_v12 = vpack.c.bf16 %v1651_v20, %v1648_v26 }
 0xae0   :  { %7197 = vmatprep.mubr.msk.bf16.mxu0 %vm1346_vm11, %v1670_v51 }
 0xae1   :  { %2488 = vmatmul.mubr.bf16.gmra.mrb[112].mxu0 %v1669_v12 }
 0xae2   :  { %7719 = vmatprep.mubr.msk.bf16.mxu0 %vm8861_vm0, %v14194_v25 }
 0xb31   :  { %v2425_v24 = vpop.f32.mrb[80].mxu0 }
 0xb32   :  { %v2427_v38 = vpop.f32.mrb[81].mxu0 }
 0xb33   :  { %v2428_v45 = vpop.f32.mrb[82].mxu0 }
 0xb34   :  { %v2504_v59 = vpack.c.bf16 %v2428_v45, %v2425_v24  ;;  %v2430_v31 = vpop.f32.mrb[83].mxu0  ;;  %v14209_v24 = vld [vmem:[#allocation36_spill] sm:$0xff] }
 0xb35   :  { %v14210_v31 = vld [vmem:[#allocation37_spill] sm:$0xff] }
 0xb36   :  { %7624 = vmatmul.mubr.msk.bf16.vlgmr.msra.gmra.mrb[112].mxu1 %vm949_vm6, %v2504_v59 }
 0xb37   :  { %7627 = vmatprep.mubr.msk.bf16.mxu1 %vm8861_vm0, %v14194_v25 }
 0xb39   :  { %v2433_v40 = vpop.f32.mrb[84].mxu0 }
 0xb3a   :  { %v2435_v48 = vpop.f32.mrb[85].mxu0 }
 0xb3b   :  { %v2436_v62 = vpop.f32.mrb[86].mxu0 }
 0xb3c   :  { %v2505_v22 = vpack.c.bf16 %v2436_v62, %v2433_v40  ;;  %v2438_v56 = vpop.f32.mrb[87].mxu0 }
 0xb3e   :  { %7628 = vmatmul.mubr.msk.bf16.gmra.mrb[116].mxu1 %vm949_vm6, %v2505_v22 }
 0xb3f   :  { %7631 = vmatprep.mubr.msk.bf16.mxu1 %vm8861_vm0, %v14194_v25 }
 0xb41   :  { %v2441_v52 = vpop.f32.mrb[88].mxu0 }
 0xb42   :  { %v2443_v1 = vpop.f32.mrb[89].mxu0 }
 0xb43   :  { %v2444_v16 = vpop.f32.mrb[90].mxu0 }
 0xb44   :  { %v2506_v13 = vpack.c.bf16 %v2444_v16, %v2441_v52  ;;  %v2446_v4 = vpop.f32.mrb[91].mxu0  ;;  %v14211_v16 = vld [vmem:[#allocation38_spill] sm:$0xff] }
 0xb46   :  { %7632 = vmatmul.mubr.msk.bf16.gmra.mrb[120].mxu1 %vm949_vm6, %v2506_v13 }
 0xb47   :  { %7635 = vmatprep.mubr.msk.bf16.mxu1 %vm8861_vm0, %v14194_v25 }
 0xb8b   :  { %v2449_v34 = vpop.f32.mrb[92].mxu0 }
 0xb8c   :  { %v2451_v14 = vpop.f32.mrb[93].mxu0 }
 0xb8d   :  { %v2452_v30 = vpop.f32.mrb[94].mxu0  ;;  %v14212_v14 = vld [vmem:[#allocation39_spill] sm:$0xff] }
 0xb8e   :  { %v2507_v46 = vpack.c.bf16 %v2452_v30, %v2449_v34  ;;  %v2454_v5 = vpop.f32.mrb[95].mxu0 }
 0xb90   :  { %7636 = vmatmul.mubr.msk.bf16.gmra.mrb[124].mxu1 %vm949_vm6, %v2507_v46 }
 0xb91   :  { %7639 = vmatprep.mubr.msk.bf16.mxu1 %vm8861_vm0, %v14194_v25 }
 0xb94   :  { %v2457_v54 = vpop.f32.mrb[96].mxu0 }
 0xb95   :  { %v2459_v27 = vpop.f32.mrb[97].mxu0 }
 0xb96   :  { %v2460_v43 = vpop.f32.mrb[98].mxu0 }
 0xb97   :  { %v2508_v37 = vpack.c.bf16 %v2460_v43, %v2457_v54  ;;  %v2462_v7 = vpop.f32.mrb[99].mxu0 }
 0xb98   :  { %v14213_v7 = vld [vmem:[#allocation40_spill] sm:$0xff] }
 0xb99   :  { %7640 = vmatmul.mubr.msk.bf16.gmra.mrb[128].mxu1 %vm949_vm6, %v2508_v37 }
 0xb9a   :  { %7643 = vmatprep.mubr.msk.bf16.mxu1 %vm8861_vm0, %v14194_v25 }
 0xb9c   :  { %v2465_v35 = vpop.f32.mrb[100].mxu0 }
 0xb9d   :  { %v2467_v50 = vpop.f32.mrb[101].mxu0 }
 0xb9e   :  { %v2468_v33 = vpop.f32.mrb[102].mxu0 }
 0xb9f   :  { %v2509_v8 = vpack.c.bf16 %v2468_v33, %v2465_v35  ;;  %v2470_v10 = vpop.f32.mrb[103].mxu0 }
 0xba1   :  { %7644 = vmatmul.mubr.msk.bf16.gmra.mrb[132].mxu1 %vm949_vm6, %v2509_v8  ;;  %v14214_v8 = vld [vmem:[#allocation41_spill] sm:$0xff] }
 0xba2   :  { %7647 = vmatprep.mubr.msk.bf16.mxu1 %vm8861_vm0, %v14194_v25 }
 0xba4   :  { %v2473_v39 = vpop.f32.mrb[104].mxu0 }
 0xba5   :  { %v2475_v41 = vpop.f32.mrb[105].mxu0 }
 0xba6   :  { %v2476_v53 = vpop.f32.mrb[106].mxu0 }
 0xba7   :  { %v2510_v58 = vpack.c.bf16 %v2476_v53, %v2473_v39  ;;  %v2478_v0 = vpop.f32.mrb[107].mxu0 }
 0xba9   :  { %7648 = vmatmul.mubr.msk.bf16.gmra.mrb[136].mxu1 %vm949_vm6, %v2510_v58 }
 0xbaa   :  { %7651 = vmatprep.mubr.msk.bf16.mxu1 %vm8861_vm0, %v14194_v25 }
 0xbac   :  { %v2481_v6 = vpop.f32.mrb[108].mxu0 }
 0xbad   :  { %v2483_v19 = vpop.f32.mrb[109].mxu0 }
 0xbae   :  { %v2484_v11 = vpop.f32.mrb[110].mxu0  ;;  %v14215_v19 = vld [vmem:[#allocation42_spill] sm:$0xff] }
 0xbaf   :  { %v2511_v61 = vpack.c.bf16 %v2484_v11, %v2481_v6  ;;  %v2486_v47 = vpop.f32.mrb[111].mxu0 }
 0xbb1   :  { %7652 = vmatmul.mubr.msk.bf16.gmra.mrb[140].mxu1 %vm949_vm6, %v2511_v61 }
 0xbb2   :  { %7655 = vmatprep.mubr.msk.bf16.mxu1 %vm8861_vm0, %v14194_v25 }
 0xbb4   :  { %v2489_v28 = vpop.f32.mrb[112].mxu0 }
 0xbb5   :  { %v2491_v55 = vpop.f32.mrb[113].mxu0 }
 0xbb6   :  { %v2492_v60 = vpop.f32.mrb[114].mxu0 }
 0xbb7   :  { %v2512_v23 = vpack.c.bf16 %v2492_v60, %v2489_v28  ;;  %v2494_v32 = vpop.f32.mrb[115].mxu0  ;;  %v14216_v28 = vld [vmem:[#allocation43_spill] sm:$0xff] }
 0xbb9   :  { %7656 = vmatmul.mubr.msk.bf16.gmra.mrb[144].mxu1 %vm949_vm6, %v2512_v23 }
 0xbba   :  { %7667 = vmatprep.mubr.msk.bf16.mxu1 %vm8861_vm0, %v14194_v25 }
 0xc09   :  { %v2599_v57 = vpop.f32.mrb[112].mxu1 }
 0xc0a   :  { %v2600_v15 = vadd.f32 %v2599_v57, %v10828_v3  ;;  %v7625_v9 = vpop.f32.mrb[113].mxu1 }
 0xc0b   :  { %v2602_v44 = vpop.f32.mrb[114].mxu1 }
 0xc0c   :  { %v10832_v36 = vadd.f32 %v2600_v15, %v14207_v17  ;;  %v2603_v29 = vadd.f32 %v2602_v44, %v10828_v3  ;;  %v7626_v21 = vpop.f32.mrb[115].mxu1  ;;  %v14217_v44 = vld [vmem:[#allocation44_spill] sm:$0xff] }
 0xc0e   :  { %v10836_v49 = vadd.f32 %v2603_v29, %v14208_v18  ;;  %v2690_v42 = vsel %vm949_vm6, %v10832_v36, 0.0  ;;  %v14218_v18 = vld [vmem:[#allocation45_spill] sm:$0xff] }
 0xc0f   :  { %2691 = vadd.xlane.f32.xlu1 %v2690_v42 }
 0xc10   :  { %v2693_v63 = vsel %vm949_vm6, %v10836_v49, 0.0 }
 0xc11   :  { %2694 = vadd.xlane.f32.xlu0 %v2693_v63  ;;  %v2607_v26 = vpop.f32.mrb[116].mxu1 }
 0xc12   :  { %v2608_v20 = vadd.f32 %v2607_v26, %v10828_v3  ;;  %v7629_v51 = vpop.f32.mrb[117].mxu1 }
 0xc13   :  { %v2610_v12 = vpop.f32.mrb[118].mxu1 }
 0xc14   :  { %v10844_v38 = vadd.f32 %v2608_v20, %v14209_v24  ;;  %v2611_v45 = vadd.f32 %v2610_v12, %v10828_v3  ;;  %v7630_v59 = vpop.f32.mrb[119].mxu1 }
 0xc16   :  { %v10848_v40 = vadd.f32 %v2611_v45, %v14210_v31  ;;  %v2696_v48 = vsel %vm949_vm6, %v10844_v38, 0.0  ;;  %v14219_v45 = vld [vmem:[#allocation46_spill] sm:$0xff] }
 0xc17   :  { %2697 = vadd.xlane.f32.xlu1 %v2696_v48 }
 0xc18   :  { %v2699_v62 = vsel %vm949_vm6, %v10848_v40, 0.0 }
 0xc19   :  { %2700 = vadd.xlane.f32.xlu0 %v2699_v62  ;;  %v2615_v22 = vpop.f32.mrb[120].mxu1  ;;  %v14220_v62 = vld [vmem:[#allocation47_spill] sm:$0xff] }
 0xc1a   :  { %v2616_v56 = vadd.f32 %v2615_v22, %v10828_v3  ;;  %v7633_v52 = vpop.f32.mrb[121].mxu1 }
 0xc1b   :  { %v2618_v1 = vpop.f32.mrb[122].mxu1 }
 0xc1c   :  { %v10856_v13 = vadd.f32 %v2616_v56, %v14211_v16  ;;  %v2619_v4 = vadd.f32 %v2618_v1, %v10828_v3  ;;  %v7634_v34 = vpop.f32.mrb[123].mxu1 }
 0xc1e   :  { %v10860_v30 = vadd.f32 %v2619_v4, %v14212_v14  ;;  %v2702_v46 = vsel %vm949_vm6, %v10856_v13, 0.0  ;;  %v14221_v14 = vld [vmem:[#allocation48_spill] sm:$0xff] }
 0xc1f   :  { %2703 = vadd.xlane.f32.xlu1 %v2702_v46 }
 0xc20   :  { %v2705_v5 = vsel %vm949_vm6, %v10860_v30, 0.0 }
 0xc21   :  { %2706 = vadd.xlane.f32.xlu0 %v2705_v5 }
 0xc63   :  { %v2623_v54 = vpop.f32.mrb[124].mxu1 }
 0xc64   :  { %v2624_v27 = vadd.f32 %v2623_v54, %v10828_v3  ;;  %v7637_v43 = vpop.f32.mrb[125].mxu1 }
 0xc65   :  { %v2626_v37 = vpop.f32.mrb[126].mxu1 }
 0xc66   :  { %v10868_v35 = vadd.f32 %v2624_v27, %v14213_v7  ;;  %v2627_v50 = vadd.f32 %v2626_v37, %v10828_v3  ;;  %v7638_v33 = vpop.f32.mrb[127].mxu1  ;;  %v14222_v27 = vld [vmem:[#allocation49_spill] sm:$0xff] }
 0xc68   :  { %v10872_v10 = vadd.f32 %v2627_v50, %v14214_v8  ;;  %v2708_v39 = vsel %vm949_vm6, %v10868_v35, 0.0 }
 0xc69   :  { %2709 = vadd.xlane.f32.xlu1 %v2708_v39 }
 0xc6a   :  { %v2711_v41 = vsel %vm949_vm6, %v10872_v10, 0.0 }
 0xc6b   :  { %2712 = vadd.xlane.f32.xlu0 %v2711_v41  ;;  %v14223_v41 = vld [vmem:[#allocation50_spill] sm:$0xff] }
 0xc6c   :  { %v2631_v53 = vpop.f32.mrb[128].mxu1 }
 0xc6d   :  { %v2632_v58 = vadd.f32 %v2631_v53, %v10828_v3  ;;  %v7641_v0 = vpop.f32.mrb[129].mxu1 }
 0xc6e   :  { %v2634_v6 = vpop.f32.mrb[130].mxu1 }
 0xc6f   :  { %v10880_v11 = vadd.f32 %v2632_v58, %v14215_v19  ;;  %v2635_v61 = vadd.f32 %v2634_v6, %v10828_v3  ;;  %v7642_v47 = vpop.f32.mrb[131].mxu1  ;;  %v14224_v6 = vld [vmem:[#allocation51_spill] sm:$0xff] }
 0xc71   :  { %v10884_v55 = vadd.f32 %v2635_v61, %v14216_v28  ;;  %v2714_v60 = vsel %vm949_vm6, %v10880_v11, 0.0 }
 0xc72   :  { %2715 = vadd.xlane.f32.xlu1 %v2714_v60 }
 0xc73   :  { %v2717_v23 = vsel %vm949_vm6, %v10884_v55, 0.0 }
 0xc74   :  { %2718 = vadd.xlane.f32.xlu0 %v2717_v23  ;;  %v2639_v32 = vpop.f32.mrb[132].mxu1 }
 0xc75   :  { %v2640_v57 = vadd.f32 %v2639_v32, %v10828_v3  ;;  %v7645_v15 = vpop.f32.mrb[133].mxu1 }
 0xc76   :  { %v2642_v9 = vpop.f32.mrb[134].mxu1 }
 0xc77   :  { %v10892_v17 = vadd.f32 %v2640_v57, %v14217_v44  ;;  %v2643_v29 = vadd.f32 %v2642_v9, %v10828_v3  ;;  %v7646_v21 = vpop.f32.mrb[135].mxu1 }
 0xc79   :  { %v10896_v42 = vadd.f32 %v2643_v29, %v14218_v18  ;;  %v2720_v63 = vsel %vm949_vm6, %v10892_v17, 0.0 }
 0xc7a   :  { %2721 = vadd.xlane.f32.xlu1 %v2720_v63 }
 0xc7b   :  { %v2723_v26 = vsel %vm949_vm6, %v10896_v42, 0.0 }
 0xc7c   :  { %2724 = vadd.xlane.f32.xlu0 %v2723_v26  ;;  %v2647_v20 = vpop.f32.mrb[136].mxu1 }
 0xc7d   :  { %v2648_v51 = vadd.f32 %v2647_v20, %v10828_v3  ;;  %v7649_v12 = vpop.f32.mrb[137].mxu1 }
 0xc7e   :  { %v2650_v24 = vpop.f32.mrb[138].mxu1 }
 0xc7f   :  { %v10904_v59 = vadd.f32 %v2648_v51, %v14219_v45  ;;  %v2651_v31 = vadd.f32 %v2650_v24, %v10828_v3  ;;  %v7650_v48 = vpop.f32.mrb[139].mxu1 }
 0xc81   :  { %v10908_v22 = vadd.f32 %v2651_v31, %v14220_v62  ;;  %v2726_v56 = vsel %vm949_vm6, %v10904_v59, 0.0 }
 0xc82   :  { %2727 = vadd.xlane.f32.xlu1 %v2726_v56 }
 0xc83   :  { %v2729_v52 = vsel %vm949_vm6, %v10908_v22, 0.0 }
 0xc84   :  { %2730 = vadd.xlane.f32.xlu0 %v2729_v52  ;;  %v2655_v1 = vpop.f32.mrb[140].mxu1 }
 0xc85   :  { %v2656_v16 = vadd.f32 %v2655_v1, %v10828_v3  ;;  %v7653_v4 = vpop.f32.mrb[141].mxu1 }
 0xc86   :  { %v2658_v34 = vpop.f32.mrb[142].mxu1  ;;  %v8178_v4 = vld [vmem:[%s13754_s1 + $0x100] ss:$8 sps:$4 sm:$0xff]  }
 0xc87   :  { %v10916_v46 = vadd.f32 %v2656_v16, %v14221_v14  ;;  %v2659_v5 = vadd.f32 %v2658_v34, %v10828_v3  ;;  %v7654_v54 = vpop.f32.mrb[143].mxu1  ;;  %v8179_v34 = vld [vmem:[%s13754_s1 + $0x110] ss:$8 sps:$4 sm:$0xff]  }
 0xc89   :  { %v10920_v43 = vadd.f32 %v2659_v5, %v14222_v27  ;;  %v2732_v37 = vsel %vm949_vm6, %v10916_v46, 0.0 }
 0xc8a   :  { %2733 = vadd.xlane.f32.xlu1 %v2732_v37 }
 0xc8b   :  { %v2735_v7 = vsel %vm949_vm6, %v10920_v43, 0.0 }
 0xc8c   :  { %2736 = vadd.xlane.f32.xlu0 %v2735_v7  ;;  %v2663_v50 = vpop.f32.mrb[144].mxu1 }
 0xc8d   :  { %v2664_v33 = vadd.f32 %v2663_v50, %v10828_v3  ;;  %v7657_v8 = vpop.f32.mrb[145].mxu1 }
 0xc8e   :  { %v2666_v39 = vpop.f32.mrb[146].mxu1 }
 0xc8f   :  { %v10928_v53 = vadd.f32 %v2664_v33, %v14223_v41  ;;  %v2667_v58 = vadd.f32 %v2666_v39, %v10828_v3  ;;  %v7658_v0 = vpop.f32.mrb[147].mxu1 }
 0xc91   :  { %v10932_v19 = vadd.f32 %v2667_v58, %v14224_v6  ;;  %v2738_v61 = vsel %vm949_vm6, %v10928_v53, 0.0 }
 0xc92   :  { %2739 = vadd.xlane.f32.xlu1 %v2738_v61 }
 0xc93   :  { %v2741_v47 = vsel %vm949_vm6, %v10932_v19, 0.0 }
 0xc94   :  { %2742 = vadd.xlane.f32.xlu0 %v2741_v47 }
 0xc9c   :  { %v2692_v28 = vpop.xlane.xlu1 %2691 }
 0xc9d   :  { %v2745_v60 = vmul.f32 0.015625, %v2692_v28 }
 0xc9e   :  { %v2695_v23 = vpop.xlane.xlu0 %2694 }
 0xc9f   :  { %v10939_v32 = vsub.f32 %v10832_v36, %v2745_v60  ;;  %v2746_v57 = vmul.f32 0.015625, %v2695_v23 }
 0xca1   :  { %v10942_v3 = vsub.f32 %v10836_v49, %v2746_v57  ;;  %v2781_v15 = vmul.f32 %v10939_v32, %v10939_v32 }
 0xca3   :  { %v2799_v9 = vsel %vm949_vm6, %v2781_v15, 0.0  ;;  %v2782_v44 = vmul.f32 %v10942_v3, %v10942_v3 }
 0xca4   :  { %v2698_v29 = vpop.xlane.xlu1 %2697  ;;  %2800 = vadd.xlane.f32.xlu1 %v2799_v9 }
 0xca5   :  { %v2747_v21 = vmul.f32 0.015625, %v2698_v29  ;;  %v2802_v18 = vsel %vm949_vm6, %v2782_v44, 0.0 }
 0xca6   :  { %2803 = vadd.xlane.f32.xlu0 %v2802_v18  ;;  %v2701_v36 = vpop.xlane.xlu0 %2700 }
 0xca7   :  { %v10951_v63 = vsub.f32 %v10844_v38, %v2747_v21  ;;  %v2748_v49 = vmul.f32 0.015625, %v2701_v36 }
 0xca9   :  { %v10954_v26 = vsub.f32 %v10848_v40, %v2748_v49  ;;  %v2783_v20 = vmul.f32 %v10951_v63, %v10951_v63 }
 0xcab   :  { %v2805_v51 = vsel %vm949_vm6, %v2783_v20, 0.0  ;;  %v2784_v12 = vmul.f32 %v10954_v26, %v10954_v26 }
 0xcac   :  { %v2704_v24 = vpop.xlane.xlu1 %2703  ;;  %2806 = vadd.xlane.f32.xlu1 %v2805_v51 }
 0xcad   :  { %v2749_v45 = vmul.f32 0.015625, %v2704_v24  ;;  %v2808_v31 = vsel %vm949_vm6, %v2784_v12, 0.0 }
 0xcae   :  { %2809 = vadd.xlane.f32.xlu0 %v2808_v31  ;;  %v2707_v38 = vpop.xlane.xlu0 %2706 }
 0xcaf   :  { %v10963_v48 = vsub.f32 %v10856_v13, %v2749_v45  ;;  %v2750_v40 = vmul.f32 0.015625, %v2707_v38  ;;  %v8176_v13 = vld [vmem:[%s13754_s1 + $0xe0] ss:$8 sps:$4 sm:$0xff]  }
 0xcb0   :  { %7660 = vmatpush3.bf16.msra.mxu1 %v8176_v13 }
 0xcb1   :  { %v10966_v62 = vsub.f32 %v10860_v30, %v2750_v40  ;;  %v2785_v56 = vmul.f32 %v10963_v48, %v10963_v48  ;;  %7661 = vmatprep.subr.bf16.mxu1 %v14194_v25  ;;  %v8177_v30 = vld [vmem:[%s13754_s1 + $0xf0] ss:$8 sps:$4 sm:$0xff]  }
 0xcb3   :  { %v2811_v52 = vsel %vm949_vm6, %v2785_v56, 0.0  ;;  %v2786_v1 = vmul.f32 %v10966_v62, %v10966_v62 }
 0xcb4   :  { %2812 = vadd.xlane.f32.xlu1 %v2811_v52  ;;  %7662 = vmatpush3.bf16.msra.mxu1 %v8177_v30 }
 0xcb5   :  { %v2814_v16 = vsel %vm949_vm6, %v2786_v1, 0.0  ;;  %7663 = vmatprep.subr.bf16.mxu1 %v14194_v25 }
 0xcb6   :  { %2815 = vadd.xlane.f32.xlu0 %v2814_v16 }
 0xcb8   :  { %7664 = vmatpush3.bf16.msra.mxu1 %v8178_v4 }
 0xcb9   :  { %7665 = vmatprep.subr.bf16.mxu1 %v14194_v25 }
 0xcbc   :  { %7666 = vmatpush3.bf16.msra.mxu1 %v8179_v34 }
 0xcbd   :  { %7755 = vmatprep.subr.bf16.mxu1 %v14194_v25 }
 0xcf6   :  { %v2710_v14 = vpop.xlane.xlu1 %2709 }
 0xcf7   :  { %v2751_v5 = vmul.f32 0.015625, %v2710_v14 }
 0xcf8   :  { %v2713_v54 = vpop.xlane.xlu0 %2712 }
 0xcf9   :  { %v10991_v27 = vsub.f32 %v10868_v35, %v2751_v5  ;;  %v2752_v37 = vmul.f32 0.015625, %v2713_v54 }
 0xcfb   :  { %v10994_v7 = vsub.f32 %v10872_v10, %v2752_v37  ;;  %v2787_v50 = vmul.f32 %v10991_v27, %v10991_v27 }
 0xcfd   :  { %v2817_v33 = vsel %vm949_vm6, %v2787_v50, 0.0  ;;  %v2788_v8 = vmul.f32 %v10994_v7, %v10994_v7 }
 0xcfe   :  { %2818 = vadd.xlane.f32.xlu1 %v2817_v33 }
 0xcff   :  { %v2716_v39 = vpop.xlane.xlu1 %2715  ;;  %v2820_v41 = vsel %vm949_vm6, %v2788_v8, 0.0 }
 0xd00   :  { %v2753_v58 = vmul.f32 0.015625, %v2716_v39  ;;  %2821 = vadd.xlane.f32.xlu0 %v2820_v41 }
 0xd01   :  { %v2719_v35 = vpop.xlane.xlu0 %2718 }
 0xd02   :  { %v11003_v0 = vsub.f32 %v10880_v11, %v2753_v58  ;;  %v2754_v10 = vmul.f32 0.015625, %v2719_v35 }
 0xd04   :  { %v11006_v6 = vsub.f32 %v10884_v55, %v2754_v10  ;;  %v2789_v61 = vmul.f32 %v11003_v0, %v11003_v0 }
 0xd06   :  { %v2823_v47 = vsel %vm949_vm6, %v2789_v61, 0.0  ;;  %v2790_v28 = vmul.f32 %v11006_v6, %v11006_v6 }
 0xd07   :  { %v2722_v60 = vpop.xlane.xlu1 %2721  ;;  %2824 = vadd.xlane.f32.xlu1 %v2823_v47 }
 0xd08   :  { %v2755_v23 = vmul.f32 0.015625, %v2722_v60  ;;  %v2826_v57 = vsel %vm949_vm6, %v2790_v28, 0.0 }
 0xd09   :  { %2827 = vadd.xlane.f32.xlu0 %v2826_v57  ;;  %v2725_v11 = vpop.xlane.xlu0 %2724  ;;  %v11065_v57 = vld [vmem:[%s13755_s2 + $0x90] ss:$0 sm:$0xff] }
 0xd0a   :  { %v11015_v15 = vsub.f32 %v10892_v17, %v2755_v23  ;;  %v2756_v55 = vmul.f32 0.015625, %v2725_v11 }
 0xd0c   :  { %v11018_v9 = vsub.f32 %v10896_v42, %v2756_v55  ;;  %v2791_v44 = vmul.f32 %v11015_v15, %v11015_v15 }
 0xd0e   :  { %v2829_v29 = vsel %vm949_vm6, %v2791_v44, 0.0  ;;  %v2792_v21 = vmul.f32 %v11018_v9, %v11018_v9 }
 0xd0f   :  { %v2728_v18 = vpop.xlane.xlu1 %2727  ;;  %2830 = vadd.xlane.f32.xlu1 %v2829_v29 }
 0xd10   :  { %v2757_v36 = vmul.f32 0.015625, %v2728_v18  ;;  %v2832_v49 = vsel %vm949_vm6, %v2792_v21, 0.0 }
 0xd11   :  { %2833 = vadd.xlane.f32.xlu0 %v2832_v49  ;;  %v2731_v17 = vpop.xlane.xlu0 %2730  ;;  %v11073_v49 = vld [vmem:[%s13755_s2 + $0xa0] ss:$0 sm:$0xff] }
 0xd12   :  { %v11027_v20 = vsub.f32 %v10904_v59, %v2757_v36  ;;  %v2758_v42 = vmul.f32 0.015625, %v2731_v17 }
 0xd14   :  { %v11030_v51 = vsub.f32 %v10908_v22, %v2758_v42  ;;  %v2793_v12 = vmul.f32 %v11027_v20, %v11027_v20 }
 0xd16   :  { %v2835_v24 = vsel %vm949_vm6, %v2793_v12, 0.0  ;;  %v2794_v45 = vmul.f32 %v11030_v51, %v11030_v51 }
 0xd17   :  { %v2734_v31 = vpop.xlane.xlu1 %2733  ;;  %2836 = vadd.xlane.f32.xlu1 %v2835_v24 }
 0xd18   :  { %v2759_v38 = vmul.f32 0.015625, %v2734_v31  ;;  %v2838_v40 = vsel %vm949_vm6, %v2794_v45, 0.0 }
 0xd19   :  { %2839 = vadd.xlane.f32.xlu0 %v2838_v40  ;;  %v2737_v59 = vpop.xlane.xlu0 %2736 }
 0xd1a   :  { %v11039_v56 = vsub.f32 %v10916_v46, %v2759_v38  ;;  %v2760_v22 = vmul.f32 0.015625, %v2737_v59 }
 0xd1c   :  { %v11042_v52 = vsub.f32 %v10920_v43, %v2760_v22  ;;  %v2795_v1 = vmul.f32 %v11039_v56, %v11039_v56 }
 0xd1e   :  { %v2841_v16 = vsel %vm949_vm6, %v2795_v1, 0.0  ;;  %v2796_v13 = vmul.f32 %v11042_v52, %v11042_v52 }
 0xd1f   :  { %2842 = vadd.xlane.f32.xlu1 %v2841_v16  ;;  %v2740_v30 = vpop.xlane.xlu1 %2739  ;;  %v8180_v16 = vld [vmem:[%s13754_s1 + $0x120] ss:$8 sps:$4 sm:$0xff]  }
 0xd20   :  { %v2761_v4 = vmul.f32 0.015625, %v2740_v30  ;;  %v2844_v34 = vsel %vm949_vm6, %v2796_v13, 0.0  ;;  %7704 = vmatpush3.bf16.msra.mxu0 %v8180_v16 }
 0xd21   :  { %2845 = vadd.xlane.f32.xlu0 %v2844_v34  ;;  %v2743_v46 = vpop.xlane.xlu0 %2742  ;;  %7705 = vmatprep.subr.bf16.mxu0 %v14194_v25 }
 0xd22   :  { %v11051_v14 = vsub.f32 %v10928_v53, %v2761_v4  ;;  %v2762_v43 = vmul.f32 0.015625, %v2743_v46 }
 0xd24   :  { %v11054_v5 = vsub.f32 %v10932_v19, %v2762_v43  ;;  %v2797_v54 = vmul.f32 %v11051_v14, %v11051_v14 }
 0xd26   :  { %v2847_v37 = vsel %vm949_vm6, %v2797_v54, 0.0  ;;  %v2798_v50 = vmul.f32 %v11054_v5, %v11054_v5 }
 0xd27   :  { %2848 = vadd.xlane.f32.xlu1 %v2847_v37  ;;  %v8182_v37 = vld [vmem:[%s13754_s1 + $0x140] ss:$8 sps:$4 sm:$0xff]  }
 0xd28   :  { %v2850_v33 = vsel %vm949_vm6, %v2798_v50, 0.0 }
 0xd29   :  { %2851 = vadd.xlane.f32.xlu0 %v2850_v33 }
 0xd31   :  { %v2801_v8 = vpop.xlane.xlu1 %2800 }
 0xd32   :  { %v2853_v39 = vmul.f32 0.015625, %v2801_v8 }
 0xd33   :  { %v2804_v53 = vpop.xlane.xlu0 %2803 }
 0xd34   :  { %v2871_v41 = vadd.f32 1e-05, %v2853_v39  ;;  %v2854_v58 = vmul.f32 0.015625, %v2804_v53  ;;  %v8184_v39 = vld [vmem:[%s13754_s1 + $0x160] ss:$8 sps:$4 sm:$0xff]  }
 0xd35   :  { %v8185_v53 = vld [vmem:[%s13754_s1 + $0x170] ss:$8 sps:$4 sm:$0xff]  }
 0xd36   :  { %8428 = vrsqrt.f32 %v2871_v41  ;;  %v2872_v19 = vadd.f32 1e-05, %v2854_v58 }
 0xd38   :  { %8430 = vrsqrt.f32 %v2872_v19 }
 0xd39   :  { %v2807_v35 = vpop.xlane.xlu1 %2806 }
 0xd3a   :  { %v2855_v10 = vmul.f32 0.015625, %v2807_v35 }
 0xd3b   :  { %v2810_v61 = vpop.xlane.xlu0 %2809 }
 0xd3c   :  { %v2873_v47 = vadd.f32 1e-05, %v2855_v10  ;;  %v2856_v28 = vmul.f32 0.015625, %v2810_v61 }
 0xd3e   :  { %8432 = vrsqrt.f32 %v2873_v47  ;;  %v2874_v60 = vadd.f32 1e-05, %v2856_v28 }
 0xd40   :  { %v8429_v23 = vpop.eup %8428  ;;  %8434 = vrsqrt.f32 %v2874_v60 }
 0xd41   :  { %v2907_v11 = vmul.f32 %v8429_v23, %v10939_v32  ;;  %v2813_v55 = vpop.xlane.xlu1 %2812 }
 0xd42   :  { %v8431_v44 = vpop.eup %8430  ;;  %v2857_v29 = vmul.f32 0.015625, %v2813_v55 }
 0xd43   :  { %v2925_v21 = vmul.f32 %v2907_v11, %v11065_v57  ;;  %v2908_v18 = vmul.f32 %v8431_v44, %v10942_v3  ;;  %v2816_v36 = vpop.xlane.xlu0 %2815 }
 0xd44   :  { %v2875_v17 = vadd.f32 1e-05, %v2857_v29  ;;  %v2858_v42 = vmul.f32 0.015625, %v2816_v36 }
 0xd45   :  { %v2926_v12 = vmul.f32 %v2908_v18, %v11065_v57  ;;  %v11077_v32 = vadd.f32 %v2925_v21, %v11073_v49 }
 0xd46   :  { %8436 = vrsqrt.f32 %v2875_v17  ;;  %v2876_v24 = vadd.f32 1e-05, %v2858_v42 }
 0xd47   :  { %v11080_v45 = vadd.f32 %v2926_v12, %v11073_v49 }
 0xd48   :  { %v8433_v31 = vpop.eup %8432  ;;  %8438 = vrsqrt.f32 %v2876_v24  ;;  %v8186_v24 = vld [vmem:[%s13754_s1 + $0x180] ss:$8 sps:$4 sm:$0xff]  }
 0xd49   :  { %v2969_v3 = vpack.c.bf16 %v11080_v45, %v11077_v32  ;;  %v2909_v38 = vmul.f32 %v8433_v31, %v10951_v63 }
 0xd4a   :  { %v8435_v40 = vpop.eup %8434 }
 0xd4b   :  { %7668 = vmatmul.mubr.msk.bf16.vlgmr.msra.gmra.mrb[148].mxu1 %vm949_vm6, %v2969_v3  ;;  %v2910_v59 = vmul.f32 %v8435_v40, %v10954_v26  ;;  %v2927_v22 = vmul.f32 %v2909_v38, %v11065_v57  ;;  %v8181_v26 = vld [vmem:[%s13754_s1 + $0x130] ss:$8 sps:$4 sm:$0xff]  }
 0xd4c   :  { %7671 = vmatprep.mubr.msk.bf16.mxu1 %vm8861_vm0, %v14194_v25  ;;  %7706 = vmatpush3.bf16.msra.mxu0 %v8181_v26 }
 0xd4d   :  { %v2928_v1 = vmul.f32 %v2910_v59, %v11065_v57  ;;  %v11095_v13 = vadd.f32 %v2927_v22, %v11073_v49  ;;  %7707 = vmatprep.subr.bf16.mxu0 %v14194_v25 }
 0xd4f   :  { %v11098_v63 = vadd.f32 %v2928_v1, %v11073_v49 }
 0xd50   :  { %v8437_v30 = vpop.eup %8436  ;;  %7708 = vmatpush3.bf16.msra.mxu0 %v8182_v37 }
 0xd51   :  { %v2970_v4 = vpack.c.bf16 %v11098_v63, %v11095_v13  ;;  %v2911_v34 = vmul.f32 %v8437_v30, %v10963_v48  ;;  %7709 = vmatprep.subr.bf16.mxu0 %v14194_v25 }
 0xd52   :  { %v8439_v46 = vpop.eup %8438 }
 0xd53   :  { %7672 = vmatmul.mubr.msk.bf16.gmra.mrb[152].mxu1 %vm949_vm6, %v2970_v4  ;;  %v2912_v43 = vmul.f32 %v8439_v46, %v10966_v62  ;;  %v2929_v54 = vmul.f32 %v2911_v34, %v11065_v57  ;;  %v8183_v62 = vld [vmem:[%s13754_s1 + $0x150] ss:$8 sps:$4 sm:$0xff]  }
 0xd54   :  { %7675 = vmatprep.mubr.msk.bf16.mxu1 %vm8861_vm0, %v14194_v25  ;;  %7710 = vmatpush3.bf16.msra.mxu0 %v8183_v62 }
 0xd55   :  { %v2930_v50 = vmul.f32 %v2912_v43, %v11065_v57  ;;  %v11118_v48 = vadd.f32 %v2929_v54, %v11073_v49  ;;  %7711 = vmatprep.subr.bf16.mxu0 %v14194_v25 }
 0xd57   :  { %v11121_v33 = vadd.f32 %v2930_v50, %v11073_v49 }
 0xd58   :  { %7712 = vmatpush3.bf16.msra.mxu0 %v8184_v39 }
 0xd59   :  { %v2971_v8 = vpack.c.bf16 %v11121_v33, %v11118_v48  ;;  %7713 = vmatprep.subr.bf16.mxu0 %v14194_v25 }
 0xd5b   :  { %7676 = vmatmul.mubr.msk.bf16.gmra.mrb[156].mxu1 %vm949_vm6, %v2971_v8 }
 0xd5c   :  { %7679 = vmatprep.mubr.msk.bf16.mxu1 %vm8861_vm0, %v14194_v25  ;;  %7714 = vmatpush3.bf16.msra.mxu0 %v8185_v53 }
 0xd5d   :  { %7715 = vmatprep.subr.bf16.mxu0 %v14194_v25 }
 0xd60   :  { %7716 = vmatpush3.bf16.msra.mxu0 %v8186_v24 }
 0xd61   :  { %7717 = vmatprep.subr.bf16.mxu0 %v14194_v25 }
 0xd8b   :  { %v2819_v41 = vpop.xlane.xlu1 %2818 }
 0xd8c   :  { %v2859_v58 = vmul.f32 0.015625, %v2819_v41 }
 0xd8d   :  { %v2822_v19 = vpop.xlane.xlu0 %2821 }
 0xd8e   :  { %v2877_v35 = vadd.f32 1e-05, %v2859_v58  ;;  %v2860_v10 = vmul.f32 0.015625, %v2822_v19 }
 0xd90   :  { %8440 = vrsqrt.f32 %v2877_v35  ;;  %v2878_v61 = vadd.f32 1e-05, %v2860_v10 }
 0xd92   :  { %8442 = vrsqrt.f32 %v2878_v61 }
 0xd94   :  { %v2825_v47 = vpop.xlane.xlu1 %2824 }
 0xd95   :  { %v2861_v28 = vmul.f32 0.015625, %v2825_v47 }
 0xd96   :  { %v2828_v60 = vpop.xlane.xlu0 %2827 }
 0xd97   :  { %v2879_v23 = vadd.f32 1e-05, %v2861_v28  ;;  %v2862_v11 = vmul.f32 0.015625, %v2828_v60 }
 0xd99   :  { %8444 = vrsqrt.f32 %v2879_v23  ;;  %v2880_v55 = vadd.f32 1e-05, %v2862_v11 }
 0xd9a   :  { %v8441_v44 = vpop.eup %8440 }
 0xd9b   :  { %8446 = vrsqrt.f32 %v2880_v55  ;;  %v2913_v29 = vmul.f32 %v8441_v44, %v10991_v27 }
 0xd9c   :  { %v8443_v21 = vpop.eup %8442  ;;  %v2831_v18 = vpop.xlane.xlu1 %2830 }
 0xd9d   :  { %v2863_v36 = vmul.f32 0.015625, %v2831_v18  ;;  %v2914_v17 = vmul.f32 %v8443_v21, %v10994_v7  ;;  %v2931_v42 = vmul.f32 %v2913_v29, %v11065_v57  ;;  %v8187_v7 = vld [vmem:[%s13754_s1 + $0x190] ss:$8 sps:$4 sm:$0xff]  }
 0xd9e   :  { %v2834_v12 = vpop.xlane.xlu0 %2833  ;;  %7718 = vmatpush3.bf16.msra.mxu0 %v8187_v7 }
 0xd9f   :  { %v2881_v31 = vadd.f32 1e-05, %v2863_v36  ;;  %v2864_v3 = vmul.f32 0.015625, %v2834_v12  ;;  %v2932_v38 = vmul.f32 %v2914_v17, %v11065_v57  ;;  %v11149_v27 = vadd.f32 %v2931_v42, %v11073_v49  ;;  %7799 = vmatprep.subr.bf16.mxu0 %v14194_v25 }
 0xda1   :  { %8448 = vrsqrt.f32 %v2881_v31  ;;  %v2882_v40 = vadd.f32 1e-05, %v2864_v3  ;;  %v11152_v59 = vadd.f32 %v2932_v38, %v11073_v49 }
 0xda3   :  { %v8445_v22 = vpop.eup %8444  ;;  %8450 = vrsqrt.f32 %v2882_v40  ;;  %v2972_v1 = vpack.c.bf16 %v11152_v59, %v11149_v27 }
 0xda4   :  { %v2837_v16 = vpop.xlane.xlu1 %2836  ;;  %v2915_v30 = vmul.f32 %v8445_v22, %v11003_v0 }
 0xda5   :  { %v8447_v26 = vpop.eup %8446  ;;  %v2865_v4 = vmul.f32 0.015625, %v2837_v16  ;;  %7680 = vmatmul.mubr.msk.bf16.gmra.mrb[160].mxu1 %vm949_vm6, %v2972_v1 }
 0xda6   :  { %v2840_v34 = vpop.xlane.xlu0 %2839  ;;  %7683 = vmatprep.mubr.msk.bf16.mxu1 %vm8861_vm0, %v14194_v25  ;;  %v2916_v46 = vmul.f32 %v8447_v26, %v11006_v6  ;;  %v2933_v43 = vmul.f32 %v2915_v30, %v11065_v57 }
 0xda7   :  { %v2883_v54 = vadd.f32 1e-05, %v2865_v4  ;;  %v2866_v37 = vmul.f32 0.015625, %v2840_v34 }
 0xda8   :  { %v2934_v50 = vmul.f32 %v2916_v46, %v11065_v57  ;;  %v11169_v62 = vadd.f32 %v2933_v43, %v11073_v49 }
 0xda9   :  { %8452 = vrsqrt.f32 %v2883_v54  ;;  %v2884_v0 = vadd.f32 1e-05, %v2866_v37 }
 0xdaa   :  { %v11172_v8 = vadd.f32 %v2934_v50, %v11073_v49 }
 0xdab   :  { %v8449_v39 = vpop.eup %8448  ;;  %8454 = vrsqrt.f32 %v2884_v0 }
 0xdac   :  { %v2843_v53 = vpop.xlane.xlu1 %2842  ;;  %v2973_v6 = vpack.c.bf16 %v11172_v8, %v11169_v62  ;;  %v2917_v41 = vmul.f32 %v8449_v39, %v11015_v15 }
 0xdad   :  { %v8451_v58 = vpop.eup %8450  ;;  %v2867_v19 = vmul.f32 0.015625, %v2843_v53 }
 0xdae   :  { %7684 = vmatmul.mubr.msk.bf16.gmra.mrb[164].mxu1 %vm949_vm6, %v2973_v6  ;;  %v2846_v35 = vpop.xlane.xlu0 %2845  ;;  %v2918_v10 = vmul.f32 %v8451_v58, %v11018_v9  ;;  %v2935_v61 = vmul.f32 %v2917_v41, %v11065_v57 }
 0xdaf   :  { %v2885_v47 = vadd.f32 1e-05, %v2867_v19  ;;  %v2868_v28 = vmul.f32 0.015625, %v2846_v35  ;;  %7687 = vmatprep.mubr.msk.bf16.mxu1 %vm8861_vm0, %v14194_v25 }
 0xdb0   :  { %v2936_v60 = vmul.f32 %v2918_v10, %v11065_v57  ;;  %v11184_v15 = vadd.f32 %v2935_v61, %v11073_v49 }
 0xdb1   :  { %8456 = vrsqrt.f32 %v2885_v47  ;;  %v2886_v23 = vadd.f32 1e-05, %v2868_v28 }
 0xdb2   :  { %v11187_v11 = vadd.f32 %v2936_v60, %v11073_v49 }
 0xdb3   :  { %v8453_v55 = vpop.eup %8452  ;;  %8458 = vrsqrt.f32 %v2886_v23 }
 0xdb4   :  { %v2849_v9 = vpop.xlane.xlu1 %2848  ;;  %v2974_v44 = vpack.c.bf16 %v11187_v11, %v11184_v15  ;;  %v2919_v29 = vmul.f32 %v8453_v55, %v11027_v20 }
 0xdb5   :  { %v8455_v21 = vpop.eup %8454  ;;  %v2869_v18 = vmul.f32 0.015625, %v2849_v9 }
 0xdb6   :  { %7688 = vmatmul.mubr.msk.bf16.gmra.mrb[168].mxu1 %vm949_vm6, %v2974_v44  ;;  %v2852_v36 = vpop.xlane.xlu0 %2851  ;;  %v2920_v17 = vmul.f32 %v8455_v21, %v11030_v51  ;;  %v2937_v42 = vmul.f32 %v2919_v29, %v11065_v57 }
 0xdb7   :  { %v2887_v12 = vadd.f32 1e-05, %v2869_v18  ;;  %v2870_v24 = vmul.f32 0.015625, %v2852_v36  ;;  %7691 = vmatprep.mubr.msk.bf16.mxu1 %vm8861_vm0, %v14194_v25 }
 0xdb8   :  { %v2938_v31 = vmul.f32 %v2920_v17, %v11065_v57  ;;  %v11199_v20 = vadd.f32 %v2937_v42, %v11073_v49 }
 0xdb9   :  { %8460 = vrsqrt.f32 %v2887_v12  ;;  %v2888_v3 = vadd.f32 1e-05, %v2870_v24 }
 0xdba   :  { %v11202_v38 = vadd.f32 %v2938_v31, %v11073_v49 }
 0xdbb   :  { %v8457_v40 = vpop.eup %8456  ;;  %8462 = vrsqrt.f32 %v2888_v3 }
 0xdbc   :  { %v2975_v51 = vpack.c.bf16 %v11202_v38, %v11199_v20  ;;  %v2921_v7 = vmul.f32 %v8457_v40, %v11039_v56 }
 0xdbd   :  { %v8459_v22 = vpop.eup %8458 }
 0xdbe   :  { %7692 = vmatmul.mubr.msk.bf16.gmra.mrb[172].mxu1 %vm949_vm6, %v2975_v51  ;;  %v2922_v1 = vmul.f32 %v8459_v22, %v11042_v52  ;;  %v2939_v16 = vmul.f32 %v2921_v7, %v11065_v57 }
 0xdbf   :  { %7695 = vmatprep.mubr.msk.bf16.mxu1 %vm8861_vm0, %v14194_v25 }
 0xdc0   :  { %v2940_v30 = vmul.f32 %v2922_v1, %v11065_v57  ;;  %v11214_v26 = vadd.f32 %v2939_v16, %v11073_v49 }
 0xdc2   :  { %v11217_v4 = vadd.f32 %v2940_v30, %v11073_v49 }
 0xdc3   :  { %v8461_v34 = vpop.eup %8460 }
 0xdc4   :  { %v2976_v56 = vpack.c.bf16 %v11217_v4, %v11214_v26  ;;  %v2923_v46 = vmul.f32 %v8461_v34, %v11051_v14 }
 0xdc5   :  { %v8463_v52 = vpop.eup %8462 }
 0xdc6   :  { %7696 = vmatmul.mubr.msk.bf16.gmra.mrb[176].mxu1 %vm949_vm6, %v2976_v56  ;;  %v2924_v43 = vmul.f32 %v8463_v52, %v11054_v5  ;;  %v2941_v54 = vmul.f32 %v2923_v46, %v11065_v57  ;;  %v11242_v5 = vld [vmem:[%s13755_s2 + $0xb0] ss:$0 sm:$0xff] }
 0xdc7   :  { %7699 = vmatprep.mubr.msk.bf16.mxu1 %vm8861_vm0, %v14194_v25 }
 0xdc8   :  { %v2942_v37 = vmul.f32 %v2924_v43, %v11065_v57  ;;  %v11229_v50 = vadd.f32 %v2941_v54, %v11073_v49 }
 0xdca   :  { %v11232_v0 = vadd.f32 %v2942_v37, %v11073_v49 }
 0xdcc   :  { %v2977_v14 = vpack.c.bf16 %v11232_v0, %v11229_v50 }
 0xdce   :  { %7700 = vmatmul.mubr.msk.bf16.gmra.mrb[180].mxu1 %vm949_vm6, %v2977_v14 }
 0xdcf   :  { %7763 = vmatprep.mubr.msk.bf16.mxu1 %vm8861_vm0, %v14194_v25 }
 0xe1e   :  { %v3064_v57 = vpop.f32.mrb[148].mxu1 }
 0xe1f   :  { %v3065_v39 = vadd.f32 %v3064_v57, %v11242_v5  ;;  %v7669_v53 = vpop.f32.mrb[149].mxu1 }
 0xe20   :  { %v3067_v6 = vpop.f32.mrb[150].mxu1 }
 0xe21   :  { %v3068_v49 = vadd.f32 %v3067_v6, %v11242_v5  ;;  %v7670_v41 = vpop.f32.mrb[151].mxu1  ;;  %v3135_v58 = vmax.f32 %v3065_v39, 0.0 }
 0xe23   :  { %v3136_v19 = vmax.f32 %v3068_v49, 0.0 }
 0xe25   :  { %v3169_v35 = vpack.c.bf16 %v3136_v19, %v3135_v58 }
 0xe26   :  { %v3072_v10 = vpop.f32.mrb[152].mxu1 }
 0xe27   :  { %v3073_v61 = vadd.f32 %v3072_v10, %v11242_v5  ;;  %v7673_v47 = vpop.f32.mrb[153].mxu1  ;;  %7720 = vmatmul.mubr.bf16.vlgmr.msra.gmra.mrb[116].mxu0 %v3169_v35 }
 0xe28   :  { %v3075_v28 = vpop.f32.mrb[154].mxu1  ;;  %7723 = vmatprep.mubr.msk.bf16.mxu0 %vm8861_vm0, %v14194_v25 }
 0xe29   :  { %v3076_v60 = vadd.f32 %v3075_v28, %v11242_v5  ;;  %v7674_v23 = vpop.f32.mrb[155].mxu1  ;;  %v3137_v55 = vmax.f32 %v3073_v61, 0.0 }
 0xe2b   :  { %v3138_v9 = vmax.f32 %v3076_v60, 0.0 }
 0xe2d   :  { %v3170_v44 = vpack.c.bf16 %v3138_v9, %v3137_v55 }
 0xe2e   :  { %v3080_v29 = vpop.f32.mrb[156].mxu1 }
 0xe2f   :  { %v3081_v21 = vadd.f32 %v3080_v29, %v11242_v5  ;;  %v7677_v18 = vpop.f32.mrb[157].mxu1  ;;  %7724 = vmatmul.mubr.bf16.gmra.mrb[120].mxu0 %v3170_v44 }
 0xe30   :  { %v3083_v36 = vpop.f32.mrb[158].mxu1  ;;  %7727 = vmatprep.mubr.msk.bf16.mxu0 %vm8861_vm0, %v14194_v25 }
 0xe31   :  { %v3084_v17 = vadd.f32 %v3083_v36, %v11242_v5  ;;  %v7678_v42 = vpop.f32.mrb[159].mxu1  ;;  %v3139_v12 = vmax.f32 %v3081_v21, 0.0 }
 0xe33   :  { %v3140_v24 = vmax.f32 %v3084_v17, 0.0 }
 0xe35   :  { %v3171_v31 = vpack.c.bf16 %v3140_v24, %v3139_v12 }
 0xe37   :  { %7728 = vmatmul.mubr.bf16.gmra.mrb[124].mxu0 %v3171_v31 }
 0xe38   :  { %7731 = vmatprep.mubr.msk.bf16.mxu0 %vm8861_vm0, %v14194_v25 }
 0xe78   :  { %v3088_v3 = vpop.f32.mrb[160].mxu1 }
 0xe79   :  { %v3089_v40 = vadd.f32 %v3088_v3, %v11242_v5  ;;  %v7681_v51 = vpop.f32.mrb[161].mxu1 }
 0xe7a   :  { %v3091_v7 = vpop.f32.mrb[162].mxu1 }
 0xe7b   :  { %v3092_v22 = vadd.f32 %v3091_v7, %v11242_v5  ;;  %v7682_v1 = vpop.f32.mrb[163].mxu1  ;;  %v3141_v16 = vmax.f32 %v3089_v40, 0.0 }
 0xe7d   :  { %v3142_v30 = vmax.f32 %v3092_v22, 0.0 }
 0xe7f   :  { %v3172_v34 = vpack.c.bf16 %v3142_v30, %v3141_v16 }
 0xe81   :  { %7732 = vmatmul.mubr.bf16.gmra.mrb[128].mxu0 %v3172_v34  ;;  %v3096_v56 = vpop.f32.mrb[164].mxu1 }
 0xe82   :  { %v3097_v46 = vadd.f32 %v3096_v56, %v11242_v5  ;;  %v7685_v52 = vpop.f32.mrb[165].mxu1  ;;  %7735 = vmatprep.mubr.msk.bf16.mxu0 %vm8861_vm0, %v14194_v25 }
 0xe83   :  { %v3099_v43 = vpop.f32.mrb[166].mxu1  ;;  %v11283_v52 = vld [vmem:[%s13755_s2 + $0xc0] ss:$0 sm:$0xff] }
 0xe84   :  { %v3100_v54 = vadd.f32 %v3099_v43, %v11242_v5  ;;  %v7686_v37 = vpop.f32.mrb[167].mxu1  ;;  %v3143_v14 = vmax.f32 %v3097_v46, 0.0 }
 0xe86   :  { %v3144_v57 = vmax.f32 %v3100_v54, 0.0 }
 0xe88   :  { %v3173_v39 = vpack.c.bf16 %v3144_v57, %v3143_v14 }
 0xe89   :  { %v3104_v53 = vpop.f32.mrb[168].mxu1 }
 0xe8a   :  { %v3105_v6 = vadd.f32 %v3104_v53, %v11242_v5  ;;  %v7689_v49 = vpop.f32.mrb[169].mxu1  ;;  %7736 = vmatmul.mubr.bf16.gmra.mrb[132].mxu0 %v3173_v39 }
 0xe8b   :  { %v3107_v41 = vpop.f32.mrb[170].mxu1  ;;  %7739 = vmatprep.mubr.msk.bf16.mxu0 %vm8861_vm0, %v14194_v25 }
 0xe8c   :  { %v3108_v58 = vadd.f32 %v3107_v41, %v11242_v5  ;;  %v7690_v19 = vpop.f32.mrb[171].mxu1  ;;  %v3145_v35 = vmax.f32 %v3105_v6, 0.0 }
 0xe8e   :  { %v3146_v10 = vmax.f32 %v3108_v58, 0.0 }
 0xe90   :  { %v3174_v61 = vpack.c.bf16 %v3146_v10, %v3145_v35 }
 0xe91   :  { %v3112_v47 = vpop.f32.mrb[172].mxu1 }
 0xe92   :  { %v3113_v28 = vadd.f32 %v3112_v47, %v11242_v5  ;;  %v7693_v60 = vpop.f32.mrb[173].mxu1  ;;  %7740 = vmatmul.mubr.bf16.gmra.mrb[136].mxu0 %v3174_v61 }
 0xe93   :  { %v3115_v23 = vpop.f32.mrb[174].mxu1  ;;  %7743 = vmatprep.mubr.msk.bf16.mxu0 %vm8861_vm0, %v14194_v25 }
 0xe94   :  { %v3116_v55 = vadd.f32 %v3115_v23, %v11242_v5  ;;  %v7694_v9 = vpop.f32.mrb[175].mxu1  ;;  %v3147_v44 = vmax.f32 %v3113_v28, 0.0 }
 0xe96   :  { %v3148_v29 = vmax.f32 %v3116_v55, 0.0 }
 0xe98   :  { %v3175_v21 = vpack.c.bf16 %v3148_v29, %v3147_v44 }
 0xe99   :  { %v3120_v18 = vpop.f32.mrb[176].mxu1 }
 0xe9a   :  { %v3121_v36 = vadd.f32 %v3120_v18, %v11242_v5  ;;  %v7697_v17 = vpop.f32.mrb[177].mxu1  ;;  %7744 = vmatmul.mubr.bf16.gmra.mrb[140].mxu0 %v3175_v21 }
 0xe9b   :  { %v3123_v42 = vpop.f32.mrb[178].mxu1  ;;  %7747 = vmatprep.mubr.msk.bf16.mxu0 %vm8861_vm0, %v14194_v25 }
 0xe9c   :  { %v3124_v12 = vadd.f32 %v3123_v42, %v11242_v5  ;;  %v7698_v24 = vpop.f32.mrb[179].mxu1  ;;  %v3149_v31 = vmax.f32 %v3121_v36, 0.0 }
 0xe9e   :  { %v3150_v3 = vmax.f32 %v3124_v12, 0.0 }
 0xea0   :  { %v3176_v40 = vpack.c.bf16 %v3150_v3, %v3149_v31 }
 0xea1   :  { %v3128_v51 = vpop.f32.mrb[180].mxu1 }
 0xea2   :  { %v3129_v7 = vadd.f32 %v3128_v51, %v11242_v5  ;;  %v7701_v22 = vpop.f32.mrb[181].mxu1  ;;  %7748 = vmatmul.mubr.bf16.gmra.mrb[144].mxu0 %v3176_v40 }
 0xea3   :  { %v3131_v1 = vpop.f32.mrb[182].mxu1  ;;  %7751 = vmatprep.mubr.msk.bf16.mxu0 %vm8861_vm0, %v14194_v25 }
 0xea4   :  { %v3132_v16 = vadd.f32 %v3131_v1, %v11242_v5  ;;  %v7702_v30 = vpop.f32.mrb[183].mxu1  ;;  %v3151_v34 = vmax.f32 %v3129_v7, 0.0 }
 0xea6   :  { %v3152_v56 = vmax.f32 %v3132_v16, 0.0 }
 0xea8   :  { %v3177_v46 = vpack.c.bf16 %v3152_v56, %v3151_v34 }
 0xeaa   :  { %7752 = vmatmul.mubr.bf16.gmra.mrb[148].mxu0 %v3177_v46 }
 0xeab   :  { %7801 = vmatprep.mubr.msk.bf16.mxu0 %vm8861_vm0, %v14194_v25 }
 0xefa   :  { %v3261_v43 = vpop.f32.mrb[116].mxu0 }
 0xefb   :  { %v3262_v54 = vadd.f32 %v3261_v43, %v11283_v52  ;;  %v7721_v37 = vpop.f32.mrb[117].mxu0 }
 0xefc   :  { %v3264_v14 = vpop.f32.mrb[118].mxu0 }
 0xefd   :  { %v11287_v5 = vadd.f32 %v3262_v54, %v11077_v32  ;;  %v3265_v57 = vadd.f32 %v3264_v14, %v11283_v52  ;;  %v7722_v39 = vpop.f32.mrb[119].mxu0 }
 0xeff   :  { %v11291_v53 = vadd.f32 %v3265_v57, %v11080_v45  ;;  %v3352_v6 = vsel %vm949_vm6, %v11287_v5, 0.0 }
 0xf00   :  { %3353 = vadd.xlane.f32.xlu1 %v3352_v6 }
 0xf01   :  { %v3355_v49 = vsel %vm949_vm6, %v11291_v53, 0.0 }
 0xf02   :  { %3356 = vadd.xlane.f32.xlu0 %v3355_v49  ;;  %v3269_v41 = vpop.f32.mrb[120].mxu0 }
 0xf03   :  { %v3270_v58 = vadd.f32 %v3269_v41, %v11283_v52  ;;  %v7725_v19 = vpop.f32.mrb[121].mxu0 }
 0xf04   :  { %v3272_v32 = vpop.f32.mrb[122].mxu0 }
 0xf05   :  { %v11299_v35 = vadd.f32 %v3270_v58, %v11095_v13  ;;  %v3273_v10 = vadd.f32 %v3272_v32, %v11283_v52  ;;  %v7726_v45 = vpop.f32.mrb[123].mxu0 }
 0xf07   :  { %v11303_v61 = vadd.f32 %v3273_v10, %v11098_v63  ;;  %v3358_v47 = vsel %vm949_vm6, %v11299_v35, 0.0 }
 0xf08   :  { %3359 = vadd.xlane.f32.xlu1 %v3358_v47 }
 0xf09   :  { %v3361_v28 = vsel %vm949_vm6, %v11303_v61, 0.0 }
 0xf0a   :  { %3362 = vadd.xlane.f32.xlu0 %v3361_v28  ;;  %v3277_v60 = vpop.f32.mrb[124].mxu0 }
 0xf0b   :  { %v3278_v23 = vadd.f32 %v3277_v60, %v11283_v52  ;;  %v7729_v55 = vpop.f32.mrb[125].mxu0 }
 0xf0c   :  { %v3280_v13 = vpop.f32.mrb[126].mxu0 }
 0xf0d   :  { %v11311_v9 = vadd.f32 %v3278_v23, %v11118_v48  ;;  %v3281_v44 = vadd.f32 %v3280_v13, %v11283_v52  ;;  %v7730_v63 = vpop.f32.mrb[127].mxu0 }
 0xf0f   :  { %v11315_v29 = vadd.f32 %v3281_v44, %v11121_v33  ;;  %v3364_v21 = vsel %vm949_vm6, %v11311_v9, 0.0 }
 0xf10   :  { %3365 = vadd.xlane.f32.xlu1 %v3364_v21 }
 0xf11   :  { %v3367_v18 = vsel %vm949_vm6, %v11315_v29, 0.0 }
 0xf12   :  { %3368 = vadd.xlane.f32.xlu0 %v3367_v18 }
 0xf54   :  { %v3285_v36 = vpop.f32.mrb[128].mxu0 }
 0xf55   :  { %v3286_v17 = vadd.f32 %v3285_v36, %v11283_v52  ;;  %v7733_v42 = vpop.f32.mrb[129].mxu0 }
 0xf56   :  { %v3288_v48 = vpop.f32.mrb[130].mxu0 }
 0xf57   :  { %v11323_v12 = vadd.f32 %v3286_v17, %v11149_v27  ;;  %v3289_v24 = vadd.f32 %v3288_v48, %v11283_v52  ;;  %v7734_v33 = vpop.f32.mrb[131].mxu0 }
 0xf59   :  { %v11327_v31 = vadd.f32 %v3289_v24, %v11152_v59  ;;  %v3370_v3 = vsel %vm949_vm6, %v11323_v12, 0.0 }
 0xf5a   :  { %3371 = vadd.xlane.f32.xlu1 %v3370_v3 }
 0xf5b   :  { %v3373_v40 = vsel %vm949_vm6, %v11327_v31, 0.0 }
 0xf5c   :  { %3374 = vadd.xlane.f32.xlu0 %v3373_v40 }
 0xf5d   :  { %v3293_v51 = vpop.f32.mrb[132].mxu0 }
 0xf5e   :  { %v3294_v7 = vadd.f32 %v3293_v51, %v11283_v52  ;;  %v7737_v22 = vpop.f32.mrb[133].mxu0 }
 0xf5f   :  { %v3296_v27 = vpop.f32.mrb[134].mxu0 }
 0xf60   :  { %v11335_v1 = vadd.f32 %v3294_v7, %v11169_v62  ;;  %v3297_v16 = vadd.f32 %v3296_v27, %v11283_v52  ;;  %v7738_v59 = vpop.f32.mrb[135].mxu0 }
 0xf62   :  { %v11339_v30 = vadd.f32 %v3297_v16, %v11172_v8  ;;  %v3376_v34 = vsel %vm949_vm6, %v11335_v1, 0.0 }
 0xf63   :  { %3377 = vadd.xlane.f32.xlu1 %v3376_v34 }
 0xf64   :  { %v3379_v56 = vsel %vm949_vm6, %v11339_v30, 0.0 }
 0xf65   :  { %3380 = vadd.xlane.f32.xlu0 %v3379_v56  ;;  %v3301_v46 = vpop.f32.mrb[136].mxu0 }
 0xf66   :  { %v3302_v43 = vadd.f32 %v3301_v46, %v11283_v52  ;;  %v7741_v54 = vpop.f32.mrb[137].mxu0 }
 0xf67   :  { %v3304_v62 = vpop.f32.mrb[138].mxu0 }
 0xf68   :  { %v11347_v37 = vadd.f32 %v3302_v43, %v11184_v15  ;;  %v3305_v14 = vadd.f32 %v3304_v62, %v11283_v52  ;;  %v7742_v8 = vpop.f32.mrb[139].mxu0 }
 0xf6a   :  { %v11351_v57 = vadd.f32 %v3305_v14, %v11187_v11  ;;  %v3382_v39 = vsel %vm949_vm6, %v11347_v37, 0.0 }
 0xf6b   :  { %3383 = vadd.xlane.f32.xlu1 %v3382_v39 }
 0xf6c   :  { %v3385_v6 = vsel %vm949_vm6, %v11351_v57, 0.0 }
 0xf6d   :  { %3386 = vadd.xlane.f32.xlu0 %v3385_v6  ;;  %v3309_v49 = vpop.f32.mrb[140].mxu0 }
 0xf6e   :  { %v3310_v41 = vadd.f32 %v3309_v49, %v11283_v52  ;;  %v7745_v58 = vpop.f32.mrb[141].mxu0 }
 0xf6f   :  { %v3312_v15 = vpop.f32.mrb[142].mxu0 }
 0xf70   :  { %v11359_v19 = vadd.f32 %v3310_v41, %v11199_v20  ;;  %v3313_v32 = vadd.f32 %v3312_v15, %v11283_v52  ;;  %v7746_v11 = vpop.f32.mrb[143].mxu0 }
 0xf72   :  { %v11363_v10 = vadd.f32 %v3313_v32, %v11202_v38  ;;  %v3388_v45 = vsel %vm949_vm6, %v11359_v19, 0.0 }
 0xf73   :  { %3389 = vadd.xlane.f32.xlu1 %v3388_v45  ;;  %v8190_v45 = vld [vmem:[%s13754_s1 + $0x1c0] ss:$8 sps:$4 sm:$0xff]  }
 0xf74   :  { %v3391_v47 = vsel %vm949_vm6, %v11363_v10, 0.0 }
 0xf75   :  { %3392 = vadd.xlane.f32.xlu0 %v3391_v47  ;;  %v3317_v28 = vpop.f32.mrb[144].mxu0  ;;  %v8191_v47 = vld [vmem:[%s13754_s1 + $0x1d0] ss:$8 sps:$4 sm:$0xff]  }
 0xf76   :  { %v3318_v60 = vadd.f32 %v3317_v28, %v11283_v52  ;;  %v7749_v23 = vpop.f32.mrb[145].mxu0 }
 0xf77   :  { %v3320_v20 = vpop.f32.mrb[146].mxu0 }
 0xf78   :  { %v11371_v55 = vadd.f32 %v3318_v60, %v11214_v26  ;;  %v3321_v13 = vadd.f32 %v3320_v20, %v11283_v52  ;;  %v7750_v38 = vpop.f32.mrb[147].mxu0 }
 0xf7a   :  { %v11375_v44 = vadd.f32 %v3321_v13, %v11217_v4  ;;  %v3394_v63 = vsel %vm949_vm6, %v11371_v55, 0.0 }
 0xf7b   :  { %3395 = vadd.xlane.f32.xlu1 %v3394_v63 }
 0xf7c   :  { %v3397_v21 = vsel %vm949_vm6, %v11375_v44, 0.0 }
 0xf7d   :  { %3398 = vadd.xlane.f32.xlu0 %v3397_v21  ;;  %v3325_v18 = vpop.f32.mrb[148].mxu0 }
 0xf7e   :  { %v3326_v36 = vadd.f32 %v3325_v18, %v11283_v52  ;;  %v7753_v17 = vpop.f32.mrb[149].mxu0 }
 0xf7f   :  { %v3328_v26 = vpop.f32.mrb[150].mxu0 }
 0xf80   :  { %v11383_v42 = vadd.f32 %v3326_v36, %v11229_v50  ;;  %v3329_v48 = vadd.f32 %v3328_v26, %v11283_v52  ;;  %v7754_v4 = vpop.f32.mrb[151].mxu0 }
 0xf82   :  { %v11387_v24 = vadd.f32 %v3329_v48, %v11232_v0  ;;  %v3400_v33 = vsel %vm949_vm6, %v11383_v42, 0.0 }
 0xf83   :  { %3401 = vadd.xlane.f32.xlu1 %v3400_v33 }
 0xf84   :  { %v3403_v3 = vsel %vm949_vm6, %v11387_v24, 0.0 }
 0xf85   :  { %3404 = vadd.xlane.f32.xlu0 %v3403_v3 }
 0xf8d   :  { %v3354_v40 = vpop.xlane.xlu1 %3353 }
 0xf8e   :  { %v3406_v51 = vmul.f32 0.015625, %v3354_v40 }
 0xf8f   :  { %v3357_v7 = vpop.xlane.xlu0 %3356 }
 0xf90   :  { %v11394_v50 = vsub.f32 %v11287_v5, %v3406_v51  ;;  %v3407_v22 = vmul.f32 0.015625, %v3357_v7 }
 0xf92   :  { %v11397_v52 = vsub.f32 %v11291_v53, %v3407_v22  ;;  %v3442_v0 = vmul.f32 %v11394_v50, %v11394_v50 }
 0xf94   :  { %v3460_v27 = vsel %vm949_vm6, %v3442_v0, 0.0  ;;  %v3443_v16 = vmul.f32 %v11397_v52, %v11397_v52 }
 0xf95   :  { %v3360_v59 = vpop.xlane.xlu1 %3359  ;;  %3461 = vadd.xlane.f32.xlu1 %v3460_v27 }
 0xf96   :  { %v3408_v34 = vmul.f32 0.015625, %v3360_v59  ;;  %v3463_v56 = vsel %vm949_vm6, %v3443_v16, 0.0 }
 0xf97   :  { %3464 = vadd.xlane.f32.xlu0 %v3463_v56  ;;  %v3363_v5 = vpop.xlane.xlu0 %3362 }
 0xf98   :  { %v11406_v46 = vsub.f32 %v11299_v35, %v3408_v34  ;;  %v3409_v53 = vmul.f32 0.015625, %v3363_v5 }
 0xf9a   :  { %v11409_v43 = vsub.f32 %v11303_v61, %v3409_v53  ;;  %v3444_v54 = vmul.f32 %v11406_v46, %v11406_v46 }
 0xf9c   :  { %v3466_v62 = vsel %vm949_vm6, %v3444_v54, 0.0  ;;  %v3445_v14 = vmul.f32 %v11409_v43, %v11409_v43 }
 0xf9d   :  { %v3366_v8 = vpop.xlane.xlu1 %3365  ;;  %3467 = vadd.xlane.f32.xlu1 %v3466_v62 }
 0xf9e   :  { %v3410_v39 = vmul.f32 0.015625, %v3366_v8  ;;  %v3469_v6 = vsel %vm949_vm6, %v3445_v14, 0.0 }
 0xf9f   :  { %3470 = vadd.xlane.f32.xlu0 %v3469_v6  ;;  %v3369_v35 = vpop.xlane.xlu0 %3368 }
 0xfa0   :  { %v11418_v49 = vsub.f32 %v11311_v9, %v3410_v39  ;;  %v3411_v61 = vmul.f32 0.015625, %v3369_v35  ;;  %v8188_v9 = vld [vmem:[%s13754_s1 + $0x1a0] ss:$8 sps:$4 sm:$0xff]  }
 0xfa1   :  { %7756 = vmatpush3.bf16.msra.mxu1 %v8188_v9 }
 0xfa2   :  { %v11421_v41 = vsub.f32 %v11315_v29, %v3411_v61  ;;  %v3446_v58 = vmul.f32 %v11418_v49, %v11418_v49  ;;  %7757 = vmatprep.subr.bf16.mxu1 %v14194_v25  ;;  %v8189_v29 = vld [vmem:[%s13754_s1 + $0x1b0] ss:$8 sps:$4 sm:$0xff]  }
 0xfa4   :  { %v3472_v15 = vsel %vm949_vm6, %v3446_v58, 0.0  ;;  %v3447_v32 = vmul.f32 %v11421_v41, %v11421_v41 }
 0xfa5   :  { %3473 = vadd.xlane.f32.xlu1 %v3472_v15  ;;  %7758 = vmatpush3.bf16.msra.mxu1 %v8189_v29 }
 0xfa6   :  { %v3475_v11 = vsel %vm949_vm6, %v3447_v32, 0.0  ;;  %7759 = vmatprep.subr.bf16.mxu1 %v14194_v25 }
 0xfa7   :  { %3476 = vadd.xlane.f32.xlu0 %v3475_v11 }
 0xfa9   :  { %7760 = vmatpush3.bf16.msra.mxu1 %v8190_v45 }
 0xfaa   :  { %7761 = vmatprep.subr.bf16.mxu1 %v14194_v25 }
 0xfad   :  { %7762 = vmatpush3.bf16.msra.mxu1 %v8191_v47 }
 0xfae   :  { %4068 = vmatprep.subr.bf16.mxu1 %v14162_v2 }
 0xfe7   :  { %v3372_v28 = vpop.xlane.xlu1 %3371 }
 0xfe8   :  { %v3412_v60 = vmul.f32 0.015625, %v3372_v28 }
 0xfe9   :  { %v3375_v23 = vpop.xlane.xlu0 %3374 }
 0xfea   :  { %v11446_v20 = vsub.f32 %v11323_v12, %v3412_v60  ;;  %v3413_v13 = vmul.f32 0.015625, %v3375_v23 }
 0xfec   :  { %v11449_v38 = vsub.f32 %v11327_v31, %v3413_v13  ;;  %v3448_v63 = vmul.f32 %v11446_v20, %v11446_v20 }
 0xfee   :  { %v3478_v21 = vsel %vm949_vm6, %v3448_v63, 0.0  ;;  %v3449_v18 = vmul.f32 %v11449_v38, %v11449_v38 }
 0xfef   :  { %3479 = vadd.xlane.f32.xlu1 %v3478_v21 }
 0xff0   :  { %v3378_v36 = vpop.xlane.xlu1 %3377  ;;  %v3481_v17 = vsel %vm949_vm6, %v3449_v18, 0.0 }
 0xff1   :  { %v3414_v26 = vmul.f32 0.015625, %v3378_v36  ;;  %3482 = vadd.xlane.f32.xlu0 %v3481_v17 }
 0xff2   :  { %v3381_v12 = vpop.xlane.xlu0 %3380 }
 0xff3   :  { %v11458_v48 = vsub.f32 %v11335_v1, %v3414_v26  ;;  %v3415_v31 = vmul.f32 0.015625, %v3381_v12 }
 0xff5   :  { %v11461_v4 = vsub.f32 %v11339_v30, %v3415_v31  ;;  %v3450_v33 = vmul.f32 %v11458_v48, %v11458_v48 }
 0xff7   :  { %v3484_v3 = vsel %vm949_vm6, %v3450_v33, 0.0  ;;  %v3451_v40 = vmul.f32 %v11461_v4, %v11461_v4 }
 0xff8   :  { %v3384_v51 = vpop.xlane.xlu1 %3383  ;;  %3485 = vadd.xlane.f32.xlu1 %v3484_v3 }
 0xff9   :  { %v3416_v7 = vmul.f32 0.015625, %v3384_v51  ;;  %v3487_v22 = vsel %vm949_vm6, %v3451_v40, 0.0 }
 0xffa   :  { %3488 = vadd.xlane.f32.xlu0 %v3487_v22  ;;  %v3387_v1 = vpop.xlane.xlu0 %3386  ;;  %v11520_v22 = vld [vmem:[%s13755_s2 + $0xd0] ss:$0 sm:$0xff] }
 0xffb   :  { %v11470_v0 = vsub.f32 %v11347_v37, %v3416_v7  ;;  %v3417_v30 = vmul.f32 0.015625, %v3387_v1 }
 0xffd   :  { %v11473_v27 = vsub.f32 %v11351_v57, %v3417_v30  ;;  %v3452_v16 = vmul.f32 %v11470_v0, %v11470_v0 }
 0xfff   :  { %v3490_v59 = vsel %vm949_vm6, %v3452_v16, 0.0  ;;  %v3453_v34 = vmul.f32 %v11473_v27, %v11473_v27 }
0x1000   :  { %v3390_v56 = vpop.xlane.xlu1 %3389  ;;  %3491 = vadd.xlane.f32.xlu1 %v3490_v59 }
0x1001   :  { %v3418_v5 = vmul.f32 0.015625, %v3390_v56  ;;  %v3493_v53 = vsel %vm949_vm6, %v3453_v34, 0.0 }
0x1002   :  { %3494 = vadd.xlane.f32.xlu0 %v3493_v53  ;;  %v3393_v37 = vpop.xlane.xlu0 %3392  ;;  %v11528_v53 = vld [vmem:[%s13755_s2 + $0xe0] ss:$0 sm:$0xff] }
0x1003   :  { %v11482_v54 = vsub.f32 %v11359_v19, %v3418_v5  ;;  %v3419_v57 = vmul.f32 0.015625, %v3393_v37 }
0x1005   :  { %v11485_v62 = vsub.f32 %v11363_v10, %v3419_v57  ;;  %v3454_v14 = vmul.f32 %v11482_v54, %v11482_v54 }
0x1007   :  { %v3496_v8 = vsel %vm949_vm6, %v3454_v14, 0.0  ;;  %v3455_v39 = vmul.f32 %v11485_v62, %v11485_v62 }
0x1008   :  { %v3396_v6 = vpop.xlane.xlu1 %3395  ;;  %3497 = vadd.xlane.f32.xlu1 %v3496_v8 }
0x1009   :  { %v3420_v35 = vmul.f32 0.015625, %v3396_v6  ;;  %v3499_v61 = vsel %vm949_vm6, %v3455_v39, 0.0 }
0x100a   :  { %3500 = vadd.xlane.f32.xlu0 %v3499_v61  ;;  %v3399_v19 = vpop.xlane.xlu0 %3398 }
0x100b   :  { %v11494_v58 = vsub.f32 %v11371_v55, %v3420_v35  ;;  %v3421_v10 = vmul.f32 0.015625, %v3399_v19 }
0x100d   :  { %v11497_v15 = vsub.f32 %v11375_v44, %v3421_v10  ;;  %v3456_v32 = vmul.f32 %v11494_v58, %v11494_v58 }
0x100f   :  { %v3502_v11 = vsel %vm949_vm6, %v3456_v32, 0.0  ;;  %v3457_v9 = vmul.f32 %v11497_v15, %v11497_v15 }
0x1010   :  { %3503 = vadd.xlane.f32.xlu1 %v3502_v11  ;;  %v3402_v29 = vpop.xlane.xlu1 %3401 }
0x1011   :  { %v3422_v45 = vmul.f32 0.015625, %v3402_v29  ;;  %v3505_v47 = vsel %vm949_vm6, %v3457_v9, 0.0 }
0x1012   :  { %3506 = vadd.xlane.f32.xlu0 %v3505_v47  ;;  %v3405_v55 = vpop.xlane.xlu0 %3404 }
0x1013   :  { %v11506_v28 = vsub.f32 %v11383_v42, %v3422_v45  ;;  %v3423_v44 = vmul.f32 0.015625, %v3405_v55 }
0x1015   :  { %v11509_v60 = vsub.f32 %v11387_v24, %v3423_v44  ;;  %v3458_v23 = vmul.f32 %v11506_v28, %v11506_v28 }
0x1017   :  { %v3508_v13 = vsel %vm949_vm6, %v3458_v23, 0.0  ;;  %v3459_v63 = vmul.f32 %v11509_v60, %v11509_v60 }
0x1018   :  { %3509 = vadd.xlane.f32.xlu1 %v3508_v13 }
0x1019   :  { %v3511_v21 = vsel %vm949_vm6, %v3459_v63, 0.0 }
0x101a   :  { %3512 = vadd.xlane.f32.xlu0 %v3511_v21 }
0x1022   :  { %v3462_v18 = vpop.xlane.xlu1 %3461 }
0x1023   :  { %v3514_v36 = vmul.f32 0.015625, %v3462_v18 }
0x1024   :  { %v3465_v42 = vpop.xlane.xlu0 %3464 }
0x1025   :  { %v3532_v17 = vadd.f32 1e-05, %v3514_v36  ;;  %v3515_v26 = vmul.f32 0.015625, %v3465_v42 }
0x1027   :  { %8464 = vrsqrt.f32 %v3532_v17  ;;  %v3533_v24 = vadd.f32 1e-05, %v3515_v26 }
0x1029   :  { %8466 = vrsqrt.f32 %v3533_v24 }
0x102a   :  { %v3468_v12 = vpop.xlane.xlu1 %3467 }
0x102b   :  { %v3516_v31 = vmul.f32 0.015625, %v3468_v12 }
0x102c   :  { %v3471_v33 = vpop.xlane.xlu0 %3470 }
0x102d   :  { %v3534_v3 = vadd.f32 1e-05, %v3516_v31  ;;  %v3517_v40 = vmul.f32 0.015625, %v3471_v33 }
0x102f   :  { %8468 = vrsqrt.f32 %v3534_v3  ;;  %v3535_v51 = vadd.f32 1e-05, %v3517_v40 }
0x1031   :  { %v8465_v7 = vpop.eup %8464  ;;  %8470 = vrsqrt.f32 %v3535_v51 }
0x1032   :  { %v3568_v1 = vmul.f32 %v8465_v7, %v11394_v50  ;;  %v3474_v30 = vpop.xlane.xlu1 %3473 }
0x1033   :  { %v8467_v16 = vpop.eup %8466  ;;  %v3518_v59 = vmul.f32 0.015625, %v3474_v30 }
0x1034   :  { %v3586_v34 = vmul.f32 %v3568_v1, %v11520_v22  ;;  %v3569_v56 = vmul.f32 %v8467_v16, %v11397_v52  ;;  %v3477_v5 = vpop.xlane.xlu0 %3476 }
0x1035   :  { %v3536_v37 = vadd.f32 1e-05, %v3518_v59  ;;  %v3519_v57 = vmul.f32 0.015625, %v3477_v5 }
0x1036   :  { %v3587_v14 = vmul.f32 %v3569_v56, %v11520_v22  ;;  %v3604_v50 = vadd.f32 %v3586_v34, %v11528_v53 }
0x1037   :  { %8472 = vrsqrt.f32 %v3536_v37  ;;  %v3537_v8 = vadd.f32 1e-05, %v3519_v57  ;;  %v8192_v37 = vld [vmem:[%s13754_s1 + $0x1e0] ss:$8 sps:$4 sm:$0xff]  }
0x1038   :  { %v3605_v39 = vadd.f32 %v3587_v14, %v11528_v53  ;;  %7800 = vmatpush3.bf16.msra.mxu0 %v8192_v37 }
0x1039   :  { %v8469_v6 = vpop.eup %8468  ;;  %8474 = vrsqrt.f32 %v3537_v8  ;;  %4606 = vmatprep.subr.bf16.mxu0 %v14162_v2 }
0x103a   :  { %v3630_v35 = vpack.c.bf16 %v3605_v39, %v3604_v50  ;;  %v3570_v52 = vmul.f32 %v8469_v6, %v11406_v46 }
0x103b   :  { %v8471_v61 = vpop.eup %8470 }
0x103c   :  { %7764 = vmatmul.mubr.msk.bf16.vlgmr.msra.gmra.mrb[184].mxu1 %vm949_vm6, %v3630_v35  ;;  %v3571_v19 = vmul.f32 %v8471_v61, %v11409_v43  ;;  %v3588_v10 = vmul.f32 %v3570_v52, %v11520_v22 }
0x103d   :  { %7767 = vmatprep.mubr.msk.bf16.mxu1 %vm8861_vm0, %v14194_v25 }
0x103e   :  { %v3589_v32 = vmul.f32 %v3571_v19, %v11520_v22  ;;  %v3606_v11 = vadd.f32 %v3588_v10, %v11528_v53 }
0x1040   :  { %v3607_v9 = vadd.f32 %v3589_v32, %v11528_v53 }
0x1041   :  { %v8473_v29 = vpop.eup %8472 }
0x1042   :  { %v3631_v45 = vpack.c.bf16 %v3607_v9, %v3606_v11  ;;  %v3572_v46 = vmul.f32 %v8473_v29, %v11418_v49 }
0x1043   :  { %v8475_v47 = vpop.eup %8474 }
0x1044   :  { %7768 = vmatmul.mubr.msk.bf16.gmra.mrb[188].mxu1 %vm949_vm6, %v3631_v45  ;;  %v3573_v43 = vmul.f32 %v8475_v47, %v11421_v41  ;;  %v3590_v55 = vmul.f32 %v3572_v46, %v11520_v22 }
0x1045   :  { %7771 = vmatprep.mubr.msk.bf16.mxu1 %vm8861_vm0, %v14194_v25 }
0x1046   :  { %v3591_v44 = vmul.f32 %v3573_v43, %v11520_v22  ;;  %v3608_v23 = vadd.f32 %v3590_v55, %v11528_v53 }
0x1048   :  { %v3609_v13 = vadd.f32 %v3591_v44, %v11528_v53 }
0x104a   :  { %v3632_v63 = vpack.c.bf16 %v3609_v13, %v3608_v23 }
0x104c   :  { %7772 = vmatmul.mubr.msk.bf16.gmra.mrb[192].mxu1 %vm949_vm6, %v3632_v63 }
0x104d   :  { %7775 = vmatprep.mubr.msk.bf16.mxu1 %vm8861_vm0, %v14194_v25 }
0x107c   :  { %v3480_v49 = vpop.xlane.xlu1 %3479 }
0x107d   :  { %v3520_v21 = vmul.f32 0.015625, %v3480_v49 }
0x107e   :  { %v3483_v41 = vpop.xlane.xlu0 %3482 }
0x107f   :  { %v3538_v18 = vadd.f32 1e-05, %v3520_v21  ;;  %v3521_v36 = vmul.f32 0.015625, %v3483_v41 }
0x1081   :  { %8476 = vrsqrt.f32 %v3538_v18  ;;  %v3539_v42 = vadd.f32 1e-05, %v3521_v36 }
0x1083   :  { %8478 = vrsqrt.f32 %v3539_v42 }
0x1085   :  { %v3486_v17 = vpop.xlane.xlu1 %3485 }
0x1086   :  { %v3522_v26 = vmul.f32 0.015625, %v3486_v17 }
0x1087   :  { %v3489_v24 = vpop.xlane.xlu0 %3488 }
0x1088   :  { %v3540_v12 = vadd.f32 1e-05, %v3522_v26  ;;  %v3523_v31 = vmul.f32 0.015625, %v3489_v24 }
0x108a   :  { %8480 = vrsqrt.f32 %v3540_v12  ;;  %v3541_v33 = vadd.f32 1e-05, %v3523_v31 }
0x108b   :  { %v8477_v3 = vpop.eup %8476 }
0x108c   :  { %8482 = vrsqrt.f32 %v3541_v33  ;;  %v3574_v40 = vmul.f32 %v8477_v3, %v11446_v20 }
0x108d   :  { %v8479_v51 = vpop.eup %8478  ;;  %v3492_v7 = vpop.xlane.xlu1 %3491 }
0x108e   :  { %v3524_v1 = vmul.f32 0.015625, %v3492_v7  ;;  %v3575_v30 = vmul.f32 %v8479_v51, %v11449_v38  ;;  %v3592_v16 = vmul.f32 %v3574_v40, %v11520_v22 }
0x108f   :  { %v3495_v59 = vpop.xlane.xlu0 %3494 }
0x1090   :  { %v3542_v34 = vadd.f32 1e-05, %v3524_v1  ;;  %v3525_v56 = vmul.f32 0.015625, %v3495_v59  ;;  %v3593_v5 = vmul.f32 %v3575_v30, %v11520_v22  ;;  %v3610_v20 = vadd.f32 %v3592_v16, %v11528_v53 }
0x1092   :  { %8484 = vrsqrt.f32 %v3542_v34  ;;  %v3543_v57 = vadd.f32 1e-05, %v3525_v56  ;;  %v3611_v14 = vadd.f32 %v3593_v5, %v11528_v53 }
0x1094   :  { %v8481_v8 = vpop.eup %8480  ;;  %8486 = vrsqrt.f32 %v3543_v57  ;;  %v3633_v38 = vpack.c.bf16 %v3611_v14, %v3610_v20 }
0x1095   :  { %v3498_v50 = vpop.xlane.xlu1 %3497  ;;  %v3576_v39 = vmul.f32 %v8481_v8, %v11458_v48 }
0x1096   :  { %v8483_v6 = vpop.eup %8482  ;;  %v3526_v35 = vmul.f32 0.015625, %v3498_v50  ;;  %7776 = vmatmul.mubr.msk.bf16.gmra.mrb[196].mxu1 %vm949_vm6, %v3633_v38 }
0x1097   :  { %v3501_v52 = vpop.xlane.xlu0 %3500  ;;  %7779 = vmatprep.mubr.msk.bf16.mxu1 %vm8861_vm0, %v14194_v25  ;;  %v3577_v61 = vmul.f32 %v8483_v6, %v11461_v4  ;;  %v3594_v19 = vmul.f32 %v3576_v39, %v11520_v22 }
0x1098   :  { %v3544_v10 = vadd.f32 1e-05, %v3526_v35  ;;  %v3527_v32 = vmul.f32 0.015625, %v3501_v52 }
0x1099   :  { %v3595_v11 = vmul.f32 %v3577_v61, %v11520_v22  ;;  %v3612_v48 = vadd.f32 %v3594_v19, %v11528_v53 }
0x109a   :  { %8488 = vrsqrt.f32 %v3544_v10  ;;  %v3545_v9 = vadd.f32 1e-05, %v3527_v32 }
0x109b   :  { %v3613_v29 = vadd.f32 %v3595_v11, %v11528_v53 }
0x109c   :  { %v8485_v45 = vpop.eup %8484  ;;  %8490 = vrsqrt.f32 %v3545_v9 }
0x109d   :  { %v3504_v46 = vpop.xlane.xlu1 %3503  ;;  %v3634_v47 = vpack.c.bf16 %v3613_v29, %v3612_v48  ;;  %v3578_v43 = vmul.f32 %v8485_v45, %v11470_v0 }
0x109e   :  { %v8487_v55 = vpop.eup %8486  ;;  %v3528_v4 = vmul.f32 0.015625, %v3504_v46 }
0x109f   :  { %7780 = vmatmul.mubr.msk.bf16.gmra.mrb[200].mxu1 %vm949_vm6, %v3634_v47  ;;  %v3507_v44 = vpop.xlane.xlu0 %3506  ;;  %v3579_v23 = vmul.f32 %v8487_v55, %v11473_v27  ;;  %v3596_v13 = vmul.f32 %v3578_v43, %v11520_v22 }
0x10a0   :  { %v3546_v63 = vadd.f32 1e-05, %v3528_v4  ;;  %v3529_v49 = vmul.f32 0.015625, %v3507_v44  ;;  %7783 = vmatprep.mubr.msk.bf16.mxu1 %vm8861_vm0, %v14194_v25 }
0x10a1   :  { %v3597_v21 = vmul.f32 %v3579_v23, %v11520_v22  ;;  %v3614_v0 = vadd.f32 %v3596_v13, %v11528_v53 }
0x10a2   :  { %8492 = vrsqrt.f32 %v3546_v63  ;;  %v3547_v41 = vadd.f32 1e-05, %v3529_v49 }
0x10a3   :  { %v3615_v18 = vadd.f32 %v3597_v21, %v11528_v53 }
0x10a4   :  { %v8489_v36 = vpop.eup %8488  ;;  %8494 = vrsqrt.f32 %v3547_v41 }
0x10a5   :  { %v3510_v42 = vpop.xlane.xlu1 %3509  ;;  %v3635_v17 = vpack.c.bf16 %v3615_v18, %v3614_v0  ;;  %v3580_v27 = vmul.f32 %v8489_v36, %v11482_v54 }
0x10a6   :  { %v8491_v26 = vpop.eup %8490  ;;  %v3530_v24 = vmul.f32 0.015625, %v3510_v42 }
0x10a7   :  { %7784 = vmatmul.mubr.msk.bf16.gmra.mrb[204].mxu1 %vm949_vm6, %v3635_v17  ;;  %v3513_v12 = vpop.xlane.xlu0 %3512  ;;  %v3581_v31 = vmul.f32 %v8491_v26, %v11485_v62  ;;  %v3598_v33 = vmul.f32 %v3580_v27, %v11520_v22 }
0x10a8   :  { %v3548_v3 = vadd.f32 1e-05, %v3530_v24  ;;  %v3531_v40 = vmul.f32 0.015625, %v3513_v12  ;;  %7787 = vmatprep.mubr.msk.bf16.mxu1 %vm8861_vm0, %v14194_v25 }
0x10a9   :  { %v3599_v51 = vmul.f32 %v3581_v31, %v11520_v22  ;;  %v3616_v54 = vadd.f32 %v3598_v33, %v11528_v53 }
0x10aa   :  { %8496 = vrsqrt.f32 %v3548_v3  ;;  %v3549_v7 = vadd.f32 1e-05, %v3531_v40 }
0x10ab   :  { %v3617_v1 = vadd.f32 %v3599_v51, %v11528_v53 }
0x10ac   :  { %v8493_v30 = vpop.eup %8492  ;;  %8498 = vrsqrt.f32 %v3549_v7 }
0x10ad   :  { %v3636_v16 = vpack.c.bf16 %v3617_v1, %v3616_v54  ;;  %v3582_v62 = vmul.f32 %v8493_v30, %v11494_v58 }
0x10ae   :  { %v8495_v59 = vpop.eup %8494 }
0x10af   :  { %7788 = vmatmul.mubr.msk.bf16.gmra.mrb[208].mxu1 %vm949_vm6, %v3636_v16  ;;  %v3583_v34 = vmul.f32 %v8495_v59, %v11497_v15  ;;  %v3600_v56 = vmul.f32 %v3582_v62, %v11520_v22 }
0x10b0   :  { %7791 = vmatprep.mubr.msk.bf16.mxu1 %vm8861_vm0, %v14194_v25 }
0x10b1   :  { %v3601_v5 = vmul.f32 %v3583_v34, %v11520_v22  ;;  %v3618_v37 = vadd.f32 %v3600_v56, %v11528_v53 }
0x10b3   :  { %v3619_v57 = vadd.f32 %v3601_v5, %v11528_v53 }
0x10b4   :  { %v8497_v20 = vpop.eup %8496 }
0x10b5   :  { %v3637_v14 = vpack.c.bf16 %v3619_v57, %v3618_v37  ;;  %v3584_v58 = vmul.f32 %v8497_v20, %v11506_v28  ;;  %v11614_v28 = vld [vmem:[%s13755_s2 + $0xf0] ss:$0 sm:$0xff] }
0x10b6   :  { %v8499_v8 = vpop.eup %8498 }
0x10b7   :  { %7792 = vmatmul.mubr.msk.bf16.gmra.mrb[212].mxu1 %vm949_vm6, %v3637_v14  ;;  %v3585_v15 = vmul.f32 %v8499_v8, %v11509_v60  ;;  %v3602_v38 = vmul.f32 %v3584_v58, %v11520_v22 }
0x10b8   :  { %7795 = vmatprep.mubr.msk.bf16.mxu1 %vm8861_vm0, %v14194_v25 }
0x10b9   :  { %v3603_v50 = vmul.f32 %v3585_v15, %v11520_v22  ;;  %v3620_v39 = vadd.f32 %v3602_v38, %v11528_v53 }
0x10bb   :  { %v3621_v6 = vadd.f32 %v3603_v50, %v11528_v53 }
0x10bd   :  { %v3638_v35 = vpack.c.bf16 %v3621_v6, %v3620_v39 }
0x10bf   :  { %7796 = vmatmul.mubr.msk.bf16.gmra.mrb[216].mxu1 %vm949_vm6, %v3638_v35 }
0x10c0   :  { %4100 = vmatprep.mubr.bf16.mxu1 %v14162_v2 }
0x110f   :  { %v3725_v60 = vpop.f32.mrb[184].mxu1 }
0x1110   :  { %v7765_v52 = vpop.f32.mrb[185].mxu1  ;;  %v11617_v19 = vadd.f32 %v3725_v60, %v11614_v28 }
0x1111   :  { %v3728_v61 = vpop.f32.mrb[186].mxu1 }
0x1112   :  { %14225 = vst [vmem:[#allocation94_spill] sm:$0xff] %v11617_v19  ;;  %v11620_v22 = vadd.f32 %v3728_v61, %v11614_v28  ;;  %v7766_v53 = vpop.f32.mrb[187].mxu1  ;;  %v11717_v61 = vld [vmem:[%s13755_s2 + $0x100] ss:$0 sm:$0xff] }
0x1114   :  { %14226 = vst [vmem:[#allocation99_spill] sm:$0xff] %v11620_v22  ;;  %v3798_v10 = vpack.c.bf16 %v11620_v22, %v11617_v19 }
0x1116   :  { %7802 = vmatmul.mubr.msk.bf16.vlgmr.msra.gmra.mrb[152].mxu0 %vm1346_vm11, %v3798_v10 }
0x1117   :  { %v3733_v32 = vpop.f32.mrb[188].mxu1  ;;  %7805 = vmatprep.mubr.msk.bf16.mxu0 %vm8861_vm0, %v14194_v25 }
0x1118   :  { %v7769_v11 = vpop.f32.mrb[189].mxu1  ;;  %v11628_v48 = vadd.f32 %v3733_v32, %v11614_v28 }
0x1119   :  { %v3736_v9 = vpop.f32.mrb[190].mxu1 }
0x111a   :  { %14227 = vst [vmem:[#allocation101_spill] sm:$0xff] %v11628_v48  ;;  %v11631_v29 = vadd.f32 %v3736_v9, %v11614_v28  ;;  %v7770_v45 = vpop.f32.mrb[191].mxu1 }
0x111c   :  { %14228 = vst [vmem:[#allocation65_spill] sm:$0xff] %v11631_v29  ;;  %v3799_v46 = vpack.c.bf16 %v11631_v29, %v11628_v48 }
0x111e   :  { %7806 = vmatmul.mubr.msk.bf16.gmra.mrb[156].mxu0 %vm1346_vm11, %v3799_v46 }
0x111f   :  { %v3741_v47 = vpop.f32.mrb[192].mxu1  ;;  %7809 = vmatprep.mubr.msk.bf16.mxu0 %vm8861_vm0, %v14194_v25 }
0x1120   :  { %v7773_v43 = vpop.f32.mrb[193].mxu1  ;;  %v11639_v4 = vadd.f32 %v3741_v47, %v11614_v28 }
0x1121   :  { %v3744_v55 = vpop.f32.mrb[194].mxu1 }
0x1122   :  { %14229 = vst [vmem:[#allocation64_spill] sm:$0xff] %v11639_v4  ;;  %v11642_v44 = vadd.f32 %v3744_v55, %v11614_v28  ;;  %v7774_v23 = vpop.f32.mrb[195].mxu1 }
0x1124   :  { %14230 = vst [vmem:[#allocation69_spill] sm:$0xff] %v11642_v44  ;;  %v3800_v13 = vpack.c.bf16 %v11642_v44, %v11639_v4 }
0x1126   :  { %7810 = vmatmul.mubr.msk.bf16.gmra.mrb[160].mxu0 %vm1346_vm11, %v3800_v13 }
0x1127   :  { %7813 = vmatprep.mubr.msk.bf16.mxu0 %vm8861_vm0, %v14194_v25 }
0x1169   :  { %v3749_v63 = vpop.f32.mrb[196].mxu1 }
0x116a   :  { %v7777_v49 = vpop.f32.mrb[197].mxu1  ;;  %v11650_v41 = vadd.f32 %v3749_v63, %v11614_v28 }
0x116b   :  { %v3752_v21 = vpop.f32.mrb[198].mxu1 }
0x116c   :  { %14231 = vst [vmem:[#allocation68_spill] sm:$0xff] %v11650_v41  ;;  %v11653_v0 = vadd.f32 %v3752_v21, %v11614_v28  ;;  %v7778_v18 = vpop.f32.mrb[199].mxu1 }
0x116e   :  { %14232 = vst [vmem:[#allocation74_spill] sm:$0xff] %v11653_v0  ;;  %v3801_v36 = vpack.c.bf16 %v11653_v0, %v11650_v41 }
0x1170   :  { %7814 = vmatmul.mubr.msk.bf16.gmra.mrb[164].mxu0 %vm1346_vm11, %v3801_v36 }
0x1171   :  { %7817 = vmatprep.mubr.msk.bf16.mxu0 %vm8861_vm0, %v14194_v25 }
0x1172   :  { %v3757_v42 = vpop.f32.mrb[200].mxu1 }
0x1173   :  { %v7781_v17 = vpop.f32.mrb[201].mxu1  ;;  %v11661_v26 = vadd.f32 %v3757_v42, %v11614_v28 }
0x1174   :  { %v3760_v27 = vpop.f32.mrb[202].mxu1 }
0x1175   :  { %14233 = vst [vmem:[#allocation75_spill] sm:$0xff] %v11661_v26  ;;  %v11664_v24 = vadd.f32 %v3760_v27, %v11614_v28  ;;  %v7782_v12 = vpop.f32.mrb[203].mxu1 }
0x1177   :  { %14234 = vst [vmem:[#allocation76_spill] sm:$0xff] %v11664_v24  ;;  %v3802_v31 = vpack.c.bf16 %v11664_v24, %v11661_v26 }
0x1179   :  { %7818 = vmatmul.mubr.msk.bf16.gmra.mrb[168].mxu0 %vm1346_vm11, %v3802_v31 }
0x117a   :  { %v3765_v33 = vpop.f32.mrb[204].mxu1  ;;  %7821 = vmatprep.mubr.msk.bf16.mxu0 %vm8861_vm0, %v14194_v25 }
0x117b   :  { %v7785_v3 = vpop.f32.mrb[205].mxu1  ;;  %v11672_v51 = vadd.f32 %v3765_v33, %v11614_v28 }
0x117c   :  { %v3768_v40 = vpop.f32.mrb[206].mxu1 }
0x117d   :  { %14235 = vst [vmem:[#allocation77_spill] sm:$0xff] %v11672_v51  ;;  %v11675_v7 = vadd.f32 %v3768_v40, %v11614_v28  ;;  %v7786_v54 = vpop.f32.mrb[207].mxu1 }
0x117f   :  { %14236 = vst [vmem:[#allocation78_spill] sm:$0xff] %v11675_v7  ;;  %v3803_v1 = vpack.c.bf16 %v11675_v7, %v11672_v51 }
0x1181   :  { %7822 = vmatmul.mubr.msk.bf16.gmra.mrb[172].mxu0 %vm1346_vm11, %v3803_v1 }
0x1182   :  { %v3773_v30 = vpop.f32.mrb[208].mxu1  ;;  %7825 = vmatprep.mubr.msk.bf16.mxu0 %vm8861_vm0, %v14194_v25 }
0x1183   :  { %v7789_v16 = vpop.f32.mrb[209].mxu1  ;;  %v11683_v59 = vadd.f32 %v3773_v30, %v11614_v28 }
0x1184   :  { %v3776_v62 = vpop.f32.mrb[210].mxu1 }
0x1185   :  { %14237 = vst [vmem:[#allocation79_spill] sm:$0xff] %v11683_v59  ;;  %v11686_v34 = vadd.f32 %v3776_v62, %v11614_v28  ;;  %v7790_v56 = vpop.f32.mrb[211].mxu1 }
0x1187   :  { %14238 = vst [vmem:[#allocation53_spill] sm:$0xff] %v11686_v34  ;;  %v3804_v5 = vpack.c.bf16 %v11686_v34, %v11683_v59 }
0x1189   :  { %7826 = vmatmul.mubr.msk.bf16.gmra.mrb[176].mxu0 %vm1346_vm11, %v3804_v5 }
0x118a   :  { %v3781_v37 = vpop.f32.mrb[212].mxu1  ;;  %7829 = vmatprep.mubr.msk.bf16.mxu0 %vm8861_vm0, %v14194_v25 }
0x118b   :  { %v7793_v57 = vpop.f32.mrb[213].mxu1  ;;  %v11694_v14 = vadd.f32 %v3781_v37, %v11614_v28 }
0x118c   :  { %v3784_v20 = vpop.f32.mrb[214].mxu1 }
0x118d   :  { %14239 = vst [vmem:[#allocation52_spill] sm:$0xff] %v11694_v14  ;;  %v11697_v58 = vadd.f32 %v3784_v20, %v11614_v28  ;;  %v7794_v8 = vpop.f32.mrb[215].mxu1 }
0x118f   :  { %14240 = vst [vmem:[#allocation80_spill] sm:$0xff] %v11697_v58  ;;  %v3805_v15 = vpack.c.bf16 %v11697_v58, %v11694_v14 }
0x1191   :  { %7830 = vmatmul.mubr.msk.bf16.gmra.mrb[180].mxu0 %vm1346_vm11, %v3805_v15 }
0x1192   :  { %v3789_v38 = vpop.f32.mrb[216].mxu1  ;;  %7833 = vmatprep.mubr.msk.bf16.mxu0 %vm8861_vm0, %v14194_v25 }
0x1193   :  { %v7797_v50 = vpop.f32.mrb[217].mxu1  ;;  %v11705_v6 = vadd.f32 %v3789_v38, %v11614_v28 }
0x1194   :  { %v3792_v39 = vpop.f32.mrb[218].mxu1 }
0x1195   :  { %14241 = vst [vmem:[#allocation55_spill] sm:$0xff] %v11705_v6  ;;  %v11708_v35 = vadd.f32 %v3792_v39, %v11614_v28  ;;  %v7798_v60 = vpop.f32.mrb[219].mxu1 }
0x1197   :  { %14242 = vst [vmem:[#allocation54_spill] sm:$0xff] %v11708_v35  ;;  %v3806_v52 = vpack.c.bf16 %v11708_v35, %v11705_v6 }
0x1199   :  { %7834 = vmatmul.mubr.msk.bf16.gmra.mrb[184].mxu0 %vm1346_vm11, %v3806_v52 }
0x119a   :  { %4638 = vmatprep.mubr.bf16.mxu0 %v14162_v2 }
0x11e9   :  { %v3875_v53 = vpop.f32.mrb[152].mxu0 }
0x11ea   :  { %v7803_v10 = vpop.f32.mrb[153].mxu0  ;;  %v11720_v11 = vadd.f32 %v3875_v53, %v11717_v61 }
0x11eb   :  { %v3878_v32 = vpop.f32.mrb[154].mxu0 }
0x11ec   :  { %v11723_v28 = vadd.f32 %v3878_v32, %v11717_v61  ;;  %v7804_v9 = vpop.f32.mrb[155].mxu0 }
0x11ee   :  { %v3946_v45 = vpack.c.bf16 %v11723_v28, %v11720_v11 }
0x11f0   :  { %3996 = vrot.lane.b32.xlu1 %v3946_v45, %s8865_s19 }
0x11f1   :  { %v3883_v46 = vpop.f32.mrb[156].mxu0 }
0x11f2   :  { %v7807_v47 = vpop.f32.mrb[157].mxu0  ;;  %v11729_v55 = vadd.f32 %v3883_v46, %v11717_v61 }
0x11f3   :  { %v3886_v43 = vpop.f32.mrb[158].mxu0 }
0x11f4   :  { %v11732_v23 = vadd.f32 %v3886_v43, %v11717_v61  ;;  %v7808_v13 = vpop.f32.mrb[159].mxu0 }
0x11f6   :  { %v3947_v63 = vpack.c.bf16 %v11732_v23, %v11729_v55 }
0x11f8   :  { %3998 = vrot.lane.b32.xlu0 %v3947_v63, %s8865_s19  ;;  %v14245_v63 = vld [vmem:[#allocation12_spill] sm:$0xff] }
0x11f9   :  { %v3891_v49 = vpop.f32.mrb[160].mxu0  ;;  %vm4546_vm6 = vcmp.ge.s32.totalorder %v14245_v63, 8  ;;  %vm4547_vm15 = vcmp.lt.s32.totalorder %v14245_v63, 16  ;;  %vm3955_vm5 = vcmp.lt.s32.totalorder %v14245_v63, 8 }
0x11fa   :  { %v7811_v21 = vpop.f32.mrb[161].mxu0  ;;  %v11738_v36 = vadd.f32 %v3891_v49, %v11717_v61  ;;  %vm4548_vm12 = vmand %vm4546_vm6, %vm4547_vm15 }
0x11fb   :  { %v3894_v18 = vpop.f32.mrb[162].mxu0 }
0x11fc   :  { %v11741_v42 = vadd.f32 %v3894_v18, %v11717_v61  ;;  %v7812_v17 = vpop.f32.mrb[163].mxu0 }
0x11fe   :  { %v3948_v27 = vpack.c.bf16 %v11741_v42, %v11738_v36 }
0x1200   :  { %4000 = vrot.lane.b32.xlu1 %v3948_v27, %s8865_s19 }
0x1243   :  { %v3899_v12 = vpop.f32.mrb[164].mxu0 }
0x1244   :  { %v7815_v31 = vpop.f32.mrb[165].mxu0  ;;  %v11747_v3 = vadd.f32 %v3899_v12, %v11717_v61 }
0x1245   :  { %v3902_v33 = vpop.f32.mrb[166].mxu0 }
0x1246   :  { %v11750_v40 = vadd.f32 %v3902_v33, %v11717_v61  ;;  %v7816_v54 = vpop.f32.mrb[167].mxu0  ;;  %v7255_v33 = vsel %vm3955_vm5, 1.0, %v14194_v25 }
0x1247   :  { %v7265_v54 = vsel %vm4548_vm12, 1.0, %v14194_v25 }
0x1248   :  { %v3949_v1 = vpack.c.bf16 %v11750_v40, %v11747_v3 }
0x124a   :  { %4002 = vrot.lane.b32.xlu1 %v3949_v1, %s8865_s19 }
0x124c   :  { %v3907_v30 = vpop.f32.mrb[168].mxu0 }
0x124d   :  { %v7819_v16 = vpop.f32.mrb[169].mxu0  ;;  %v11756_v56 = vadd.f32 %v3907_v30, %v11717_v61  ;;  %v8102_v30 = vpack.i.bf16 %v7255_v33, %v7265_v54 }
0x124e   :  { %v3910_v62 = vpop.f32.mrb[170].mxu0 }
0x124f   :  { %v11759_v5 = vadd.f32 %v3910_v62, %v11717_v61  ;;  %v7820_v37 = vpop.f32.mrb[171].mxu0 }
0x1251   :  { %v3950_v57 = vpack.c.bf16 %v11759_v5, %v11756_v56 }
0x1253   :  { %4004 = vrot.lane.b32.xlu1 %v3950_v57, %s8865_s19 }
0x1254   :  { %v3915_v20 = vpop.f32.mrb[172].mxu0 }
0x1255   :  { %v7823_v8 = vpop.f32.mrb[173].mxu0  ;;  %v11765_v38 = vadd.f32 %v3915_v20, %v11717_v61 }
0x1256   :  { %v3918_v15 = vpop.f32.mrb[174].mxu0 }
0x1257   :  { %v11768_v50 = vadd.f32 %v3918_v15, %v11717_v61  ;;  %v7824_v39 = vpop.f32.mrb[175].mxu0 }
0x1259   :  { %v3951_v60 = vpack.c.bf16 %v11768_v50, %v11765_v38 }
0x125b   :  { %4006 = vrot.lane.b32.xlu0 %v3951_v60, %s8865_s19 }
0x125c   :  { %v3923_v52 = vpop.f32.mrb[176].mxu0 }
0x125d   :  { %v7827_v53 = vpop.f32.mrb[177].mxu0  ;;  %v11774_v32 = vadd.f32 %v3923_v52, %v11717_v61 }
0x125e   :  { %v3926_v10 = vpop.f32.mrb[178].mxu0 }
0x125f   :  { %14243 = vst [vmem:[#allocation81_spill] sm:$0xff] %v11774_v32  ;;  %v11777_v9 = vadd.f32 %v3926_v10, %v11717_v61  ;;  %v7828_v45 = vpop.f32.mrb[179].mxu0 }
0x1261   :  { %14244 = vst [vmem:[#allocation57_spill] sm:$0xff] %v11777_v9  ;;  %v3952_v46 = vpack.c.bf16 %v11777_v9, %v11774_v32 }
0x1262   :  { %v3997_v47 = vpop.permute.xlu1 %3996 }
0x1263   :  { %v4042_v43 = vsel %vm1346_vm11, %v3997_v47, 0  ;;  %4008 = vrot.lane.b32.xlu1 %v3952_v46, %s8865_s19 }
0x1264   :  { %4069 = vmatpush1.bf16.xpose.msra.mxu1 %v4042_v43  ;;  %4607 = vmatpush1.bf16.xpose.msra.mxu0 %v4042_v43  ;;  %v3931_v13 = vpop.f32.mrb[180].mxu0 }
0x1265   :  { %v7831_v49 = vpop.f32.mrb[181].mxu0  ;;  %4070 = vmatprep.subr.bf16.mxu1 %v14162_v2  ;;  %4608 = vmatprep.subr.bf16.mxu0 %v14162_v2  ;;  %v11788_v18 = vadd.f32 %v3931_v13, %v11717_v61 }
0x1266   :  { %v3934_v21 = vpop.f32.mrb[182].mxu0 }
0x1267   :  { %14246 = vst [vmem:[#allocation56_spill] sm:$0xff] %v11788_v18  ;;  %v11791_v17 = vadd.f32 %v3934_v21, %v11717_v61  ;;  %v7832_v27 = vpop.f32.mrb[183].mxu0 }
0x1269   :  { %14247 = vst [vmem:[#allocation83_spill] sm:$0xff] %v11791_v17  ;;  %v3953_v12 = vpack.c.bf16 %v11791_v17, %v11788_v18 }
0x126a   :  { %v3999_v31 = vpop.permute.xlu0 %3998 }
0x126b   :  { %v4045_v1 = vsel %vm1346_vm11, %v3999_v31, 0  ;;  %4010 = vrot.lane.b32.xlu0 %v3953_v12, %s8865_s19  ;;  %v11832_v12 = vmul.f32 0.35355338, %v7265_v54 }
0x126c   :  { %4071 = vmatpush1.bf16.xpose.msra.mxu1 %v4045_v1  ;;  %4609 = vmatpush1.bf16.xpose.msra.mxu0 %v4045_v1  ;;  %v3939_v16 = vpop.f32.mrb[184].mxu0 }
0x126d   :  { %v7835_v62 = vpop.f32.mrb[185].mxu0  ;;  %4072 = vmatprep.subr.bf16.mxu1 %v14162_v2  ;;  %4610 = vmatprep.subr.bf16.mxu0 %v14162_v2  ;;  %v11803_v57 = vadd.f32 %v3939_v16, %v11717_v61 }
0x126e   :  { %v3942_v37 = vpop.f32.mrb[186].mxu0  ;;  %v11842_v62 = vmul.f32 0.35355338, %v7255_v33 }
0x126f   :  { %14248 = vst [vmem:[#allocation59_spill] sm:$0xff] %v11803_v57  ;;  %v11806_v20 = vadd.f32 %v3942_v37, %v11717_v61  ;;  %8103 = vrot.lane.b32.xlu0 %v8102_v30, %s8863_s7  ;;  %v7836_v8 = vpop.f32.mrb[187].mxu0  ;;  %s8866_s7 = smov 96  }
0x1270   :  { %v3961_v33 = vmul.f32 %v11842_v62, %v11723_v28 }
0x1271   :  { %14249 = vst [vmem:[#allocation58_spill] sm:$0xff] %v11806_v20  ;;  %v3954_v15 = vpack.c.bf16 %v11806_v20, %v11803_v57 }
0x1272   :  { %v4001_v39 = vpop.permute.xlu1 %4000 }
0x1273   :  { %v4048_v60 = vsel %vm1346_vm11, %v4001_v39, 0  ;;  %4012 = vrot.lane.b32.xlu1 %v3954_v15, %s8865_s19 }
0x1274   :  { %4073 = vmatpush1.bf16.xpose.msra.mxu1 %v4048_v60  ;;  %4611 = vmatpush1.bf16.xpose.msra.mxu0 %v4048_v60 }
0x1275   :  { %4074 = vmatprep.subr.bf16.mxu1 %v14162_v2  ;;  %4612 = vmatprep.subr.bf16.mxu0 %v14162_v2 }
0x12bc   :  { %v4003_v52 = vpop.permute.xlu1 %4002 }
0x12bd   :  { %v4051_v61 = vsel %vm1346_vm11, %v4003_v52, 0 }
0x12be   :  { %4075 = vmatpush1.bf16.xpose.msra.mxu1 %v4051_v61  ;;  %4613 = vmatpush1.bf16.xpose.msra.mxu0 %v4051_v61 }
0x12bf   :  { %4076 = vmatprep.subr.bf16.mxu1 %v14162_v2  ;;  %4614 = vmatprep.subr.bf16.mxu0 %v14162_v2 }
0x12c5   :  { %v4005_v53 = vpop.permute.xlu1 %4004 }
0x12c6   :  { %v4054_v10 = vsel %vm1346_vm11, %v4005_v53, 0  ;;  %v4553_v53 = vmul.f32 %v11832_v12, %v11723_v28 }
0x12c7   :  { %4077 = vmatpush1.bf16.xpose.msra.mxu1 %v4054_v10  ;;  %4615 = vmatpush1.bf16.xpose.msra.mxu0 %v4054_v10  ;;  %v3960_v10 = vmul.f32 %v11842_v62, %v11720_v11 }
0x12c8   :  { %4078 = vmatprep.subr.bf16.mxu1 %v14162_v2  ;;  %4616 = vmatprep.subr.bf16.mxu0 %v14162_v2 }
0x12cd   :  { %v4007_v45 = vpop.permute.xlu0 %4006 }
0x12ce   :  { %v4057_v46 = vsel %vm1346_vm11, %v4007_v45, 0  ;;  %v4552_v45 = vmul.f32 %v11832_v12, %v11720_v11 }
0x12cf   :  { %4079 = vmatpush1.bf16.xpose.msra.mxu1 %v4057_v46  ;;  %4617 = vmatpush1.bf16.xpose.msra.mxu0 %v4057_v46 }
0x12d0   :  { %4080 = vmatprep.subr.bf16.mxu1 %v14162_v2  ;;  %4618 = vmatprep.subr.bf16.mxu0 %v14162_v2 }
0x12d5   :  { %v4009_v47 = vpop.permute.xlu1 %4008 }
0x12d6   :  { %v4060_v43 = vsel %vm1346_vm11, %v4009_v47, 0 }
0x12d7   :  { %4081 = vmatpush1.bf16.xpose.msra.mxu1 %v4060_v43  ;;  %4619 = vmatpush1.bf16.xpose.msra.mxu0 %v4060_v43 }
0x12d8   :  { %4082 = vmatprep.subr.bf16.mxu1 %v14162_v2  ;;  %4620 = vmatprep.subr.bf16.mxu0 %v14162_v2 }
0x12dd   :  { %v4011_v13 = vpop.permute.xlu0 %4010 }
0x12de   :  { %v4063_v49 = vsel %vm1346_vm11, %v4011_v13, 0 }
0x12df   :  { %4083 = vmatpush1.bf16.xpose.msra.mxu1 %v4063_v49  ;;  %4621 = vmatpush1.bf16.xpose.msra.mxu0 %v4063_v49 }
0x12e0   :  { %4084 = vmatprep.subr.bf16.mxu1 %v14162_v2  ;;  %4622 = vmatprep.subr.bf16.mxu0 %v14162_v2 }
0x12e1   :  { %v8104_v21 = vpop.permute.xlu0 %8103 }
0x12e2   :  { %v11830_v27 = vunpack.i.l.bf16 %v8104_v21 }
0x12e4   :  { %v5059_v31 = vmul.f32 %v11830_v27, %v11729_v55  ;;  %v5060_v1 = vmul.f32 %v11830_v27, %v11732_v23  ;;  %v5057_v30 = vmul.f32 %v11830_v27, %v11720_v11  ;;  %v5058_v16 = vmul.f32 %v11830_v27, %v11723_v28 }
0x12e5   :  { %v4013_v37 = vpop.permute.xlu1 %4012  ;;  %v5063_v8 = vmul.f32 %v11830_v27, %v11747_v3  ;;  %v5064_v54 = vmul.f32 %v11830_v27, %v11750_v40  ;;  %v5061_v15 = vmul.f32 %v11830_v27, %v11738_v36  ;;  %v5062_v61 = vmul.f32 %v11830_v27, %v11741_v42 }
0x12e6   :  { %v4066_v39 = vsel %vm1346_vm11, %v4013_v37, 0  ;;  %v5076_v60 = vpack.c.bf16 %v5060_v1, %v5059_v31  ;;  %v5075_v52 = vpack.c.bf16 %v5058_v16, %v5057_v30  ;;  %v5067_v46 = vmul.f32 %v11830_v27, %v11765_v38 }
0x12e7   :  { %4085 = vmatpush1.bf16.xpose.msra.mxu1 %v4066_v39  ;;  %4623 = vmatpush1.bf16.xpose.msra.mxu0 %v4066_v39  ;;  %v5068_v47 = vmul.f32 %v11830_v27, %v11768_v50  ;;  %v5078_v43 = vpack.c.bf16 %v5064_v54, %v5063_v8  ;;  %v5077_v13 = vpack.c.bf16 %v5062_v61, %v5061_v15  ;;  %v11875_v16 = vunpack.i.h.bf16 %v8104_v21 }
0x12e8   :  { %5095 = vrot.lane.b32.xlu0 %v5076_v60, %s8866_s7  ;;  %5093 = vrot.lane.b32.xlu1 %v5075_v52, %s8866_s7  ;;  %v5065_v49 = vmul.f32 %v11830_v27, %v11756_v56  ;;  %v5066_v31 = vmul.f32 %v11830_v27, %v11759_v5  ;;  %v3978_v1 = vpack.c.bf16 %v3961_v33, %v3960_v10 }
0x12e9   :  { %5147 = vmatprep.subr.bf16.mxu1 %v14162_v2  ;;  %7837 = vmatprep.subr.bf16.mxu0 %v14194_v25  ;;  %v4570_v30 = vpack.c.bf16 %v4553_v53, %v4552_v45  ;;  %v5080_v37 = vpack.c.bf16 %v5068_v47, %v5067_v46  ;;  %v5071_v8 = vmul.f32 %v11830_v27, %v11788_v18 }
0x12ea   :  { %v5072_v54 = vmul.f32 %v11830_v27, %v11791_v17  ;;  %v5079_v15 = vpack.c.bf16 %v5066_v31, %v5065_v49  ;;  %v5069_v39 = vmul.f32 %v11830_v27, %v11774_v32  ;;  %v5070_v60 = vmul.f32 %v11830_v27, %v11777_v9 }
0x12eb   :  { %v3963_v21 = vmul.f32 %v11842_v62, %v11732_v23  ;;  %v4555_v52 = vmul.f32 %v11832_v12, %v11732_v23  ;;  %v3962_v61 = vmul.f32 %v11842_v62, %v11729_v55  ;;  %v4554_v33 = vmul.f32 %v11832_v12, %v11729_v55 }
0x12ec   :  { %5099 = vrot.lane.b32.xlu0 %v5078_v43, %s8866_s7  ;;  %5097 = vrot.lane.b32.xlu1 %v5077_v13, %s8866_s7  ;;  %v4519_v53 = vmul.f32 %v11875_v16, %v11720_v11  ;;  %v4520_v10 = vmul.f32 %v11875_v16, %v11723_v28  ;;  %v5082_v45 = vpack.c.bf16 %v5072_v54, %v5071_v8 }
0x12ed   :  { %v5081_v46 = vpack.c.bf16 %v5070_v60, %v5069_v39  ;;  %v4521_v47 = vmul.f32 %v11875_v16, %v11729_v55  ;;  %v4522_v43 = vmul.f32 %v11875_v16, %v11732_v23  ;;  %v3979_v13 = vpack.c.bf16 %v3963_v21, %v3962_v61 }
0x12ee   :  { %7256 = vmatmul.mubr.msk.bf16.vlgmr.msra.gmra.mrb[220].mxu1 %vm1346_vm11, %v3978_v1  ;;  %7266 = vmatmul.mubr.msk.bf16.vlgmr.msra.gmra.mrb[188].mxu0 %vm1346_vm11, %v4570_v30  ;;  %v4571_v49 = vpack.c.bf16 %v4555_v52, %v4554_v33  ;;  %v4537_v31 = vpack.c.bf16 %v4520_v10, %v4519_v53  ;;  %v4523_v11 = vmul.f32 %v11875_v16, %v11738_v36 }
0x12ef   :  { %4110 = vmatprep.mubr.bf16.mxu1 %v14162_v2  ;;  %4648 = vmatprep.mubr.bf16.mxu0 %v14162_v2  ;;  %v4524_v28 = vmul.f32 %v11875_v16, %v11741_v42  ;;  %v4538_v55 = vpack.c.bf16 %v4522_v43, %v4521_v47  ;;  %v4525_v23 = vmul.f32 %v11875_v16, %v11747_v3 }
0x12f0   :  { %5103 = vrot.lane.b32.xlu0 %v5080_v37, %s8866_s7  ;;  %5101 = vrot.lane.b32.xlu1 %v5079_v15, %s8866_s7  ;;  %v4526_v1 = vmul.f32 %v11875_v16, %v11750_v40  ;;  %v3965_v30 = vmul.f32 %v11842_v62, %v11741_v42  ;;  %v4557_v37 = vmul.f32 %v11832_v12, %v11741_v42 }
0x12f1   :  { %v3964_v8 = vmul.f32 %v11842_v62, %v11738_v36  ;;  %v4556_v54 = vmul.f32 %v11832_v12, %v11738_v36  ;;  %v4527_v15 = vmul.f32 %v11875_v16, %v11756_v56  ;;  %v4528_v39 = vmul.f32 %v11875_v16, %v11759_v5 }
0x12f2   :  { %v4539_v60 = vpack.c.bf16 %v4524_v28, %v4523_v11  ;;  %v4540_v21 = vpack.c.bf16 %v4526_v1, %v4525_v23  ;;  %v5073_v52 = vmul.f32 %v11830_v27, %v11803_v57  ;;  %v5074_v42 = vmul.f32 %v11830_v27, %v11806_v20 }
0x12f3   :  { %v3980_v61 = vpack.c.bf16 %v3965_v30, %v3964_v8  ;;  %v4572_v36 = vpack.c.bf16 %v4557_v37, %v4556_v54  ;;  %v4541_v33 = vpack.c.bf16 %v4528_v39, %v4527_v15  ;;  %v3967_v27 = vmul.f32 %v11842_v62, %v11750_v40 }
0x12f4   :  { %5107 = vrot.lane.b32.xlu0 %v5082_v45, %s8866_s7  ;;  %5105 = vrot.lane.b32.xlu1 %v5081_v46, %s8866_s7  ;;  %v5083_v53 = vpack.c.bf16 %v5074_v42, %v5073_v52  ;;  %v4559_v10 = vmul.f32 %v11832_v12, %v11750_v40  ;;  %v3966_v45 = vmul.f32 %v11842_v62, %v11747_v3 }
0x12f5   :  { %v4558_v46 = vmul.f32 %v11832_v12, %v11747_v3  ;;  %v4561_v40 = vmul.f32 %v11832_v12, %v11759_v5  ;;  %v4560_v3 = vmul.f32 %v11832_v12, %v11756_v56  ;;  %v3971_v28 = vmul.f32 %v11842_v62, %v11768_v50 }
0x12f6   :  { %7257 = vmatmul.mubr.msk.bf16.gmra.mrb[224].mxu1 %vm1346_vm11, %v3979_v13  ;;  %7267 = vmatmul.mubr.msk.bf16.gmra.mrb[192].mxu0 %vm1346_vm11, %v4571_v49  ;;  %v3981_v47 = vpack.c.bf16 %v3967_v27, %v3966_v45  ;;  %v3969_v13 = vmul.f32 %v11842_v62, %v11759_v5  ;;  %v3968_v49 = vmul.f32 %v11842_v62, %v11756_v56 }
0x12f7   :  { %4120 = vmatprep.mubr.bf16.mxu1 %v14162_v2  ;;  %4658 = vmatprep.mubr.bf16.mxu0 %v14162_v2  ;;  %v4573_v43 = vpack.c.bf16 %v4559_v10, %v4558_v46  ;;  %v4574_v11 = vpack.c.bf16 %v4561_v40, %v4560_v3  ;;  %v4563_v5 = vmul.f32 %v11832_v12, %v11768_v50 }
0x12f8   :  { %5261 = vrot.lane.b32.xlu0 %v4537_v31, %s8866_s7  ;;  %5263 = vrot.lane.b32.xlu1 %v4538_v55, %s8866_s7  ;;  %v3982_v31 = vpack.c.bf16 %v3969_v13, %v3968_v49  ;;  %v3970_v55 = vmul.f32 %v11842_v62, %v11765_v38  ;;  %v4562_v56 = vmul.f32 %v11832_v12, %v11765_v38 }
0x12f9   :  { %v3973_v30 = vmul.f32 %v11842_v62, %v11777_v9  ;;  %v4565_v37 = vmul.f32 %v11832_v12, %v11777_v9  ;;  %v3972_v8 = vmul.f32 %v11842_v62, %v11774_v32  ;;  %v4564_v54 = vmul.f32 %v11832_v12, %v11774_v32 }
0x12fa   :  { %v3983_v23 = vpack.c.bf16 %v3971_v28, %v3970_v55  ;;  %v4575_v1 = vpack.c.bf16 %v4563_v5, %v4562_v56  ;;  %v3974_v52 = vmul.f32 %v11842_v62, %v11788_v18  ;;  %v4566_v42 = vmul.f32 %v11832_v12, %v11788_v18 }
0x12fb   :  { %v3984_v15 = vpack.c.bf16 %v3973_v30, %v3972_v8  ;;  %v4576_v39 = vpack.c.bf16 %v4565_v37, %v4564_v54  ;;  %v3976_v27 = vmul.f32 %v11842_v62, %v11803_v57  ;;  %v4568_v10 = vmul.f32 %v11832_v12, %v11803_v57 }
0x12fc   :  { %5265 = vrot.lane.b32.xlu0 %v4539_v60, %s8866_s7  ;;  %5267 = vrot.lane.b32.xlu1 %v4540_v21, %s8866_s7  ;;  %v3975_v60 = vmul.f32 %v11842_v62, %v11791_v17  ;;  %v4567_v21 = vmul.f32 %v11832_v12, %v11791_v17 }
0x12fe   :  { %7258 = vmatmul.mubr.msk.bf16.gmra.mrb[228].mxu1 %vm1346_vm11, %v3980_v61  ;;  %7268 = vmatmul.mubr.msk.bf16.gmra.mrb[196].mxu0 %vm1346_vm11, %v4572_v36  ;;  %v3985_v61 = vpack.c.bf16 %v3975_v60, %v3974_v52  ;;  %v4577_v36 = vpack.c.bf16 %v4567_v21, %v4566_v42 }
0x12ff   :  { %4130 = vmatprep.mubr.bf16.mxu1 %v14162_v2  ;;  %4668 = vmatprep.mubr.bf16.mxu0 %v14162_v2 }
0x1300   :  { %5269 = vrot.lane.b32.xlu0 %v4541_v33, %s8866_s7  ;;  %5109 = vrot.lane.b32.xlu1 %v5083_v53, %s8866_s7  ;;  %v3977_v33 = vmul.f32 %v11842_v62, %v11806_v20  ;;  %v4569_v53 = vmul.f32 %v11832_v12, %v11806_v20 }
0x1302   :  { %v3986_v45 = vpack.c.bf16 %v3977_v33, %v3976_v27  ;;  %v4578_v46 = vpack.c.bf16 %v4569_v53, %v4568_v10 }
0x1306   :  { %7259 = vmatmul.mubr.msk.bf16.gmra.mrb[232].mxu1 %vm1346_vm11, %v3981_v47  ;;  %7269 = vmatmul.mubr.msk.bf16.gmra.mrb[200].mxu0 %vm1346_vm11, %v4573_v43 }
0x1307   :  { %4140 = vmatprep.mubr.bf16.mxu1 %v14162_v2  ;;  %4678 = vmatprep.mubr.bf16.mxu0 %v14162_v2 }
0x130e   :  { %7260 = vmatmul.mubr.msk.bf16.gmra.mrb[236].mxu1 %vm1346_vm11, %v3982_v31  ;;  %7270 = vmatmul.mubr.msk.bf16.gmra.mrb[204].mxu0 %vm1346_vm11, %v4574_v11 }
0x130f   :  { %4150 = vmatprep.mubr.bf16.mxu1 %v14162_v2  ;;  %4688 = vmatprep.mubr.bf16.mxu0 %v14162_v2 }
0x1316   :  { %7261 = vmatmul.mubr.msk.bf16.gmra.mrb[240].mxu1 %vm1346_vm11, %v3983_v23  ;;  %7271 = vmatmul.mubr.msk.bf16.gmra.mrb[208].mxu0 %vm1346_vm11, %v4575_v1 }
0x1317   :  { %4160 = vmatprep.mubr.bf16.mxu1 %v14162_v2  ;;  %4698 = vmatprep.mubr.bf16.mxu0 %v14162_v2 }
0x131e   :  { %7262 = vmatmul.mubr.msk.bf16.gmra.mrb[244].mxu1 %vm1346_vm11, %v3984_v15  ;;  %7272 = vmatmul.mubr.msk.bf16.gmra.mrb[212].mxu0 %vm1346_vm11, %v4576_v39 }
0x131f   :  { %4170 = vmatprep.mubr.bf16.mxu1 %v14162_v2  ;;  %4708 = vmatprep.mubr.bf16.mxu0 %v14162_v2 }
0x1326   :  { %7263 = vmatmul.mubr.msk.bf16.gmra.mrb[248].mxu1 %vm1346_vm11, %v3985_v61  ;;  %7273 = vmatmul.mubr.msk.bf16.gmra.mrb[216].mxu0 %vm1346_vm11, %v4577_v36 }
0x1327   :  { %4180 = vmatprep.mubr.bf16.mxu1 %v14162_v2  ;;  %4718 = vmatprep.mubr.bf16.mxu0 %v14162_v2 }
0x132e   :  { %7264 = vmatmul.mubr.msk.bf16.gmra.mrb[252].mxu1 %vm1346_vm11, %v3986_v45  ;;  %7274 = vmatmul.mubr.msk.bf16.gmra.mrb[220].mxu0 %vm1346_vm11, %v4578_v46 }
0x132f   :  { %7839 = vmatprep.mubr.msk.bf16.mxu0 %vm8861_vm0, %v14194_v25 }
0x135a   :  { %v5094_v47 = vpop.permute.xlu1 %5093  ;;  %v5096_v43 = vpop.permute.xlu0 %5095 }
0x135b   :  { %5148 = vmatpush1.bf16.msra.mxu1 %v5094_v47 }
0x135c   :  { %5149 = vmatprep.subr.bf16.mxu1 %v14162_v2 }
0x135e   :  { %v5098_v13 = vpop.permute.xlu1 %5097  ;;  %v5100_v12 = vpop.permute.xlu0 %5099 }
0x135f   :  { %5150 = vmatpush1.bf16.msra.mxu1 %v5096_v43 }
0x1360   :  { %5151 = vmatprep.subr.bf16.mxu1 %v14162_v2 }
0x1362   :  { %v5102_v62 = vpop.permute.xlu1 %5101  ;;  %v5104_v49 = vpop.permute.xlu0 %5103 }
0x1363   :  { %5152 = vmatpush1.bf16.msra.mxu1 %v5098_v13 }
0x1364   :  { %5153 = vmatprep.subr.bf16.mxu1 %v14162_v2 }
0x1366   :  { %v5106_v40 = vpop.permute.xlu1 %5105  ;;  %v5108_v11 = vpop.permute.xlu0 %5107 }
0x1367   :  { %5154 = vmatpush1.bf16.msra.mxu1 %v5100_v12 }
0x1368   :  { %5155 = vmatprep.subr.bf16.mxu1 %v14162_v2 }
0x136a   :  { %v12024_v3 = vpop.permute.xlu1 %5263 }
0x136b   :  { %5156 = vmatpush1.bf16.msra.mxu1 %v5102_v62  ;;  %14250 = vst [vmem:[#allocation88_spill] sm:$0xff] %v12024_v3 }
0x136c   :  { %5157 = vmatprep.subr.bf16.mxu1 %v14162_v2 }
0x136e   :  { %v12027_v31 = vpop.permute.xlu1 %5267 }
0x136f   :  { %5158 = vmatpush1.bf16.msra.mxu1 %v5104_v49  ;;  %14251 = vst [vmem:[#allocation61_spill] sm:$0xff] %v12027_v31 }
0x1370   :  { %5159 = vmatprep.subr.bf16.mxu1 %v14162_v2 }
0x1372   :  { %v5110_v28 = vpop.permute.xlu1 %5109 }
0x1373   :  { %5160 = vmatpush1.bf16.msra.mxu1 %v5106_v40 }
0x1374   :  { %5161 = vmatprep.subr.bf16.mxu1 %v14162_v2 }
0x1377   :  { %5162 = vmatpush1.bf16.msra.mxu1 %v5108_v11 }
0x1378   :  { %5163 = vmatprep.subr.bf16.mxu1 %v14162_v2 }
0x137b   :  { %5164 = vmatpush1.bf16.msra.mxu1 %v5110_v28 }
0x137c   :  { %5315 = vmatprep.subr.bf16.mxu1 %v14162_v2 }
0x13c1   :  { %v12032_v5 = vpop.f32.mrb[220].mxu1  ;;  %v12034_v55 = vpop.f32.mrb[188].mxu0 }
0x13c2   :  { %v12036_v56 = vpop.f32.mrb[221].mxu1  ;;  %v12038_v23 = vpop.f32.mrb[189].mxu0 }
0x13c3   :  { %v4191_v1 = vsel %vm1346_vm11, %v12036_v56, -inf  ;;  %v4729_v30 = vsel %vm1346_vm11, %v12038_v23, -inf  ;;  %v12044_v37 = vpop.f32.mrb[222].mxu1  ;;  %v12046_v8 = vpop.f32.mrb[190].mxu0 }
0x13c4   :  { %v4192_v54 = vmax.f32 %v12032_v5, %v4191_v1  ;;  %v4730_v15 = vmax.f32 %v12034_v55, %v4729_v30  ;;  %v12050_v39 = vpop.f32.mrb[223].mxu1  ;;  %v12052_v60 = vpop.f32.mrb[191].mxu0 }
0x13c5   :  { %v4195_v21 = vsel %vm1346_vm11, %v12050_v39, -inf  ;;  %v4733_v52 = vsel %vm1346_vm11, %v12052_v60, -inf }
0x13c6   :  { %v4196_v42 = vmax.f32 %v12044_v37, %v4195_v21  ;;  %v4734_v61 = vmax.f32 %v12046_v8, %v4733_v52  ;;  %4731 = vmax.xlane.f32.xlu0 %v4730_v15  ;;  %4193 = vmax.xlane.f32.xlu1 %v4192_v54 }
0x13c9   :  { %v12060_v36 = vpop.f32.mrb[224].mxu1  ;;  %v12062_v33 = vpop.f32.mrb[192].mxu0 }
0x13ca   :  { %v12064_v53 = vpop.f32.mrb[225].mxu1  ;;  %v12066_v27 = vpop.f32.mrb[193].mxu0  ;;  %4735 = vmax.xlane.f32.xlu1 %v4734_v61 }
0x13cb   :  { %v4199_v10 = vsel %vm1346_vm11, %v12064_v53, -inf  ;;  %v4737_v45 = vsel %vm1346_vm11, %v12066_v27, -inf  ;;  %v12072_v46 = vpop.f32.mrb[226].mxu1  ;;  %v12074_v47 = vpop.f32.mrb[194].mxu0 }
0x13cc   :  { %v4200_v43 = vmax.f32 %v12060_v36, %v4199_v10  ;;  %v4738_v13 = vmax.f32 %v12062_v33, %v4737_v45  ;;  %v12078_v62 = vpop.f32.mrb[227].mxu1  ;;  %v12080_v12 = vpop.f32.mrb[195].mxu0 }
0x13cd   :  { %v4203_v40 = vsel %vm1346_vm11, %v12078_v62, -inf  ;;  %v4741_v49 = vsel %vm1346_vm11, %v12080_v12, -inf }
0x13ce   :  { %v4204_v11 = vmax.f32 %v12072_v46, %v4203_v40  ;;  %v4742_v28 = vmax.f32 %v12074_v47, %v4741_v49  ;;  %4739 = vmax.xlane.f32.xlu0 %v4738_v13  ;;  %4197 = vmax.xlane.f32.xlu1 %v4196_v42 }
0x13d1   :  { %v12088_v1 = vpop.f32.mrb[228].mxu1  ;;  %v12090_v30 = vpop.f32.mrb[196].mxu0 }
0x13d2   :  { %v12092_v54 = vpop.f32.mrb[229].mxu1  ;;  %v12094_v15 = vpop.f32.mrb[197].mxu0  ;;  %4743 = vmax.xlane.f32.xlu0 %v4742_v28  ;;  %4201 = vmax.xlane.f32.xlu1 %v4200_v43 }
0x13d3   :  { %v4207_v21 = vsel %vm1346_vm11, %v12092_v54, -inf  ;;  %v4745_v52 = vsel %vm1346_vm11, %v12094_v15, -inf  ;;  %v12100_v61 = vpop.f32.mrb[230].mxu1  ;;  %v12102_v10 = vpop.f32.mrb[198].mxu0 }
0x13d4   :  { %v4208_v42 = vmax.f32 %v12088_v1, %v4207_v21  ;;  %v4746_v45 = vmax.f32 %v12090_v30, %v4745_v52  ;;  %v12106_v13 = vpop.f32.mrb[231].mxu1  ;;  %v12108_v40 = vpop.f32.mrb[199].mxu0 }
0x13d5   :  { %v4211_v43 = vsel %vm1346_vm11, %v12106_v13, -inf  ;;  %v4749_v49 = vsel %vm1346_vm11, %v12108_v40, -inf }
0x13d6   :  { %v4212_v28 = vmax.f32 %v12100_v61, %v4211_v43  ;;  %v4750_v63 = vmax.f32 %v12102_v10, %v4749_v49  ;;  %4205 = vmax.xlane.f32.xlu0 %v4204_v11 }
0x13d8   :  { %4751 = vmax.xlane.f32.xlu1 %v4750_v63 }
0x13d9   :  { %v12116_v35 = vpop.f32.mrb[232].mxu1  ;;  %v12118_v21 = vpop.f32.mrb[200].mxu0 }
0x13da   :  { %14252 = vst [vmem:[#allocation60_spill] sm:$0xff] %v12116_v35  ;;  %v12120_v52 = vpop.f32.mrb[233].mxu1  ;;  %v12122_v6 = vpop.f32.mrb[201].mxu0  ;;  %4747 = vmax.xlane.f32.xlu0 %v4746_v45 }
0x13db   :  { %14253 = vst [vmem:[#allocation92_spill] sm:$0xff] %v12120_v52  ;;  %v4215_v58 = vsel %vm1346_vm11, %v12120_v52, -inf  ;;  %v4753_v14 = vsel %vm1346_vm11, %v12122_v6, -inf  ;;  %v12128_v43 = vpop.f32.mrb[234].mxu1  ;;  %v12130_v49 = vpop.f32.mrb[202].mxu0 }
0x13dc   :  { %14254 = vst [vmem:[#allocation63_spill] sm:$0xff] %v12128_v43  ;;  %v4216_v63 = vmax.f32 %v12116_v35, %v4215_v58  ;;  %v4754_v11 = vmax.f32 %v12118_v21, %v4753_v14  ;;  %v12134_v34 = vpop.f32.mrb[235].mxu1  ;;  %v12136_v59 = vpop.f32.mrb[203].mxu0 }
0x13dd   :  { %14255 = vst [vmem:[#allocation62_spill] sm:$0xff] %v12134_v34  ;;  %v4219_v45 = vsel %vm1346_vm11, %v12134_v34, -inf  ;;  %v4757_v7 = vsel %vm1346_vm11, %v12136_v59, -inf }
0x13de   :  { %v4220_v51 = vmax.f32 %v12128_v43, %v4219_v45  ;;  %v4758_v24 = vmax.f32 %v12130_v49, %v4757_v7  ;;  %4209 = vmax.xlane.f32.xlu0 %v4208_v42  ;;  %4755 = vmax.xlane.f32.xlu1 %v4754_v11 }
0x13e1   :  { %v12144_v26 = vpop.f32.mrb[236].mxu1  ;;  %v12146_v58 = vpop.f32.mrb[204].mxu0 }
0x13e2   :  { %14256 = vst [vmem:[#allocation97_spill] sm:$0xff] %v12144_v26  ;;  %v12148_v14 = vpop.f32.mrb[237].mxu1  ;;  %v12150_v0 = vpop.f32.mrb[205].mxu0  ;;  %4213 = vmax.xlane.f32.xlu0 %v4212_v28  ;;  %4759 = vmax.xlane.f32.xlu1 %v4758_v24 }
0x13e3   :  { %14257 = vst [vmem:[#allocation67_spill] sm:$0xff] %v12148_v14  ;;  %v4223_v41 = vsel %vm1346_vm11, %v12148_v14, -inf  ;;  %v4761_v45 = vsel %vm1346_vm11, %v12150_v0, -inf  ;;  %v12156_v44 = vpop.f32.mrb[238].mxu1  ;;  %v12158_v7 = vpop.f32.mrb[206].mxu0 }
0x13e4   :  { %14258 = vst [vmem:[#allocation66_spill] sm:$0xff] %v12156_v44  ;;  %v4224_v42 = vmax.f32 %v12144_v26, %v4223_v41  ;;  %v4762_v11 = vmax.f32 %v12146_v58, %v4761_v45  ;;  %v12162_v4 = vpop.f32.mrb[239].mxu1  ;;  %v12164_v29 = vpop.f32.mrb[207].mxu0 }
0x13e5   :  { %14259 = vst [vmem:[#allocation100_spill] sm:$0xff] %v12162_v4  ;;  %v4227_v24 = vsel %vm1346_vm11, %v12162_v4, -inf  ;;  %v4765_v28 = vsel %vm1346_vm11, %v12164_v29, -inf }
0x13e6   :  { %v4228_v48 = vmax.f32 %v12156_v44, %v4227_v24  ;;  %v4766_v22 = vmax.f32 %v12158_v7, %v4765_v28  ;;  %4217 = vmax.xlane.f32.xlu0 %v4216_v63  ;;  %4763 = vmax.xlane.f32.xlu1 %v4762_v11 }
0x13e9   :  { %v12172_v19 = vpop.f32.mrb[240].mxu1  ;;  %v12174_v41 = vpop.f32.mrb[208].mxu0 }
0x13ea   :  { %14260 = vst [vmem:[#allocation71_spill] sm:$0xff] %v12172_v19  ;;  %v12176_v45 = vpop.f32.mrb[241].mxu1  ;;  %v12178_v25 = vpop.f32.mrb[209].mxu0  ;;  %4221 = vmax.xlane.f32.xlu0 %v4220_v51  ;;  %4767 = vmax.xlane.f32.xlu1 %v4766_v22 }
0x13eb   :  { %14261 = vst [vmem:[#allocation70_spill] sm:$0xff] %v12176_v45  ;;  %v4231_v31 = vsel %vm1346_vm11, %v12176_v45, -inf  ;;  %v4769_v24 = vsel %vm1346_vm11, %v12178_v25, -inf  ;;  %v12184_v3 = vpop.f32.mrb[242].mxu1  ;;  %v12186_v63 = vpop.f32.mrb[210].mxu0 }
0x13ec   :  { %14262 = vst [vmem:[#allocation102_spill] sm:$0xff] %v12184_v3  ;;  %v4232_v11 = vmax.f32 %v12172_v19, %v4231_v31  ;;  %v4770_v28 = vmax.f32 %v12174_v41, %v4769_v24  ;;  %v12190_v2 = vpop.f32.mrb[243].mxu1  ;;  %v12192_v20 = vpop.f32.mrb[211].mxu0 }
0x13ed   :  { %14263 = vst [vmem:[#allocation73_spill] sm:$0xff] %v12190_v2  ;;  %v4235_v22 = vsel %vm1346_vm11, %v12190_v2, -inf  ;;  %v4773_v51 = vsel %vm1346_vm11, %v12192_v20, -inf }
0x13ee   :  { %v4236_v57 = vmax.f32 %v12184_v3, %v4235_v22  ;;  %v4774_v45 = vmax.f32 %v12186_v63, %v4773_v51  ;;  %4225 = vmax.xlane.f32.xlu0 %v4224_v42  ;;  %4229 = vmax.xlane.f32.xlu1 %v4228_v48 }
0x13f1   :  { %v12200_v44 = vpop.f32.mrb[244].mxu1  ;;  %v12202_v31 = vpop.f32.mrb[212].mxu0 }
0x13f2   :  { %14264 = vst [vmem:[#allocation72_spill] sm:$0xff] %v12200_v44  ;;  %v12204_v24 = vpop.f32.mrb[245].mxu1  ;;  %v12206_v19 = vpop.f32.mrb[213].mxu0  ;;  %4233 = vmax.xlane.f32.xlu0 %v4232_v11  ;;  %4771 = vmax.xlane.f32.xlu1 %v4770_v28 }
0x13f3   :  { %14265 = vst [vmem:[#allocation87_spill] sm:$0xff] %v12204_v24  ;;  %v4239_v2 = vsel %vm1346_vm11, %v12204_v24, -inf  ;;  %v4777_v22 = vsel %vm1346_vm11, %v12206_v19, -inf  ;;  %v12212_v3 = vpop.f32.mrb[246].mxu1  ;;  %v12214_v42 = vpop.f32.mrb[214].mxu0 }
0x13f4   :  { %14266 = vst [vmem:[#allocation82_spill] sm:$0xff] %v12212_v3  ;;  %v4240_v48 = vmax.f32 %v12200_v44, %v4239_v2  ;;  %v4778_v51 = vmax.f32 %v12202_v31, %v4777_v22  ;;  %v12218_v4 = vpop.f32.mrb[247].mxu1  ;;  %v12220_v26 = vpop.f32.mrb[215].mxu0 }
0x13f5   :  { %14267 = vst [vmem:[#allocation86_spill] sm:$0xff] %v12218_v4  ;;  %v4243_v11 = vsel %vm1346_vm11, %v12218_v4, -inf  ;;  %v4781_v28 = vsel %vm1346_vm11, %v12220_v26, -inf }
0x13f6   :  { %v4244_v24 = vmax.f32 %v12212_v3, %v4243_v11  ;;  %v4782_v14 = vmax.f32 %v12214_v42, %v4781_v28  ;;  %4779 = vmax.xlane.f32.xlu0 %v4778_v51  ;;  %4775 = vmax.xlane.f32.xlu1 %v4774_v45 }
0x13f9   :  { %v12228_v35 = vpop.f32.mrb[248].mxu1  ;;  %v12230_v2 = vpop.f32.mrb[216].mxu0 }
0x13fa   :  { %14268 = vst [vmem:[#allocation96_spill] sm:$0xff] %v12228_v35  ;;  %v12232_v22 = vpop.f32.mrb[249].mxu1  ;;  %v12234_v44 = vpop.f32.mrb[217].mxu0  ;;  %4241 = vmax.xlane.f32.xlu0 %v4240_v48  ;;  %4237 = vmax.xlane.f32.xlu1 %v4236_v57 }
0x13fb   :  { %14269 = vst [vmem:[#allocation84_spill] sm:$0xff] %v12232_v22  ;;  %v4247_v4 = vsel %vm1346_vm11, %v12232_v22, -inf  ;;  %v4785_v11 = vsel %vm1346_vm11, %v12234_v44, -inf  ;;  %v12240_v3 = vpop.f32.mrb[250].mxu1  ;;  %v12242_v51 = vpop.f32.mrb[218].mxu0 }
0x13fc   :  { %14270 = vst [vmem:[#allocation85_spill] sm:$0xff] %v12240_v3  ;;  %v4248_v45 = vmax.f32 %v12228_v35, %v4247_v4  ;;  %v4786_v28 = vmax.f32 %v12230_v2, %v4785_v11  ;;  %v12246_v52 = vpop.f32.mrb[251].mxu1  ;;  %v12248_v17 = vpop.f32.mrb[219].mxu0 }
0x13fd   :  { %14271 = vst [vmem:[#allocation90_spill] sm:$0xff] %v12246_v52  ;;  %v4251_v57 = vsel %vm1346_vm11, %v12246_v52, -inf  ;;  %v4789_v48 = vsel %vm1346_vm11, %v12248_v17, -inf }
0x13fe   :  { %v4252_v22 = vmax.f32 %v12240_v3, %v4251_v57  ;;  %v4790_v18 = vmax.f32 %v12242_v51, %v4789_v48  ;;  %4249 = vmax.xlane.f32.xlu0 %v4248_v45  ;;  %4783 = vmax.xlane.f32.xlu1 %v4782_v14 }
0x1401   :  { %v12256_v43 = vpop.f32.mrb[252].mxu1  ;;  %v12258_v4 = vpop.f32.mrb[220].mxu0 }
0x1402   :  { %14272 = vst [vmem:[#allocation98_spill] sm:$0xff] %v12256_v43  ;;  %14273 = vst [vmem:[#allocation89_spill] sm:$0xff] %v12258_v4  ;;  %v12260_v11 = vpop.f32.mrb[253].mxu1  ;;  %v12262_v35 = vpop.f32.mrb[221].mxu0  ;;  %4253 = vmax.xlane.f32.xlu0 %v4252_v22  ;;  %4245 = vmax.xlane.f32.xlu1 %v4244_v24 }
0x1403   :  { %14274 = vst [vmem:[#allocation93_spill] sm:$0xff] %v12260_v11  ;;  %14275 = vst [vmem:[#allocation95_spill] sm:$0xff] %v12262_v35  ;;  %v4255_v52 = vsel %vm1346_vm11, %v12260_v11, -inf  ;;  %v4793_v57 = vsel %vm1346_vm11, %v12262_v35, -inf  ;;  %v12268_v3 = vpop.f32.mrb[254].mxu1  ;;  %v12270_v45 = vpop.f32.mrb[222].mxu0 }
0x1404   :  { %v4256_v14 = vmax.f32 %v12256_v43, %v4255_v52  ;;  %v4794_v48 = vmax.f32 %v12258_v4, %v4793_v57  ;;  %v12274_v34 = vpop.f32.mrb[255].mxu1  ;;  %v12276_v9 = vpop.f32.mrb[223].mxu0 }
0x1405   :  { %14276 = vst [vmem:[#allocation91_spill] sm:$0xff] %v12274_v34  ;;  %v4259_v24 = vsel %vm1346_vm11, %v12274_v34, -inf  ;;  %v4797_v22 = vsel %vm1346_vm11, %v12276_v9, -inf  ;;  %v12284_v52 = vpop.permute.xlu0 %5261 }
0x1406   :  { %v4260_v11 = vmax.f32 %v12268_v3, %v4259_v24  ;;  %v4798_v35 = vmax.f32 %v12270_v45, %v4797_v22  ;;  %4257 = vmax.xlane.f32.xlu0 %v4256_v14  ;;  %4787 = vmax.xlane.f32.xlu1 %v4786_v28  ;;  %14277 = vst [vmem:[#allocation34_spill] sm:$0xff] %v12284_v52 }
0x1409   :  { %v12286_v57 = vpop.permute.xlu0 %5265 }
0x140a   :  { %4261 = vmax.xlane.f32.xlu0 %v4260_v11  ;;  %4791 = vmax.xlane.f32.xlu1 %v4790_v18  ;;  %14278 = vst [vmem:[#allocation35_spill] sm:$0xff] %v12286_v57 }
0x140d   :  { %v12288_v43 = vpop.permute.xlu0 %5269 }
0x140e   :  { %4795 = vmax.xlane.f32.xlu1 %v4794_v48  ;;  %14279 = vst [vmem:[#allocation36_spill] sm:$0xff] %v12288_v43 }
0x1412   :  { %4799 = vmax.xlane.f32.xlu1 %v4798_v35 }
0x1453   :  { %v4732_v34 = vpop.xlane.xlu0 %4731  ;;  %v4194_v4 = vpop.xlane.xlu1 %4193 }
0x1454   :  { %v4801_v32 = vsub.f32 %v12034_v55, %v4732_v34  ;;  %v4802_v24 = vsub.f32 %v12038_v23, %v4732_v34  ;;  %v4263_v22 = vsub.f32 %v12032_v5, %v4194_v4  ;;  %v4264_v28 = vsub.f32 %v12036_v56, %v4194_v4 }
0x1456   :  { %v4837_v11 = vmul.f32 1.442695, %v4801_v32  ;;  %v4839_v18 = vmul.f32 1.442695, %v4802_v24  ;;  %v4299_v14 = vmul.f32 1.442695, %v4263_v22 }
0x1457   :  { %v4301_v35 = vmul.f32 1.442695, %v4264_v28  ;;  %v4736_v48 = vpop.xlane.xlu1 %4735 }
0x1458   :  { %8500 = vpow2.f32 %v4837_v11  ;;  %v4803_v57 = vsub.f32 %v12046_v8, %v4736_v48  ;;  %v4804_v43 = vsub.f32 %v12052_v60, %v4736_v48 }
0x1459   :  { %8502 = vpow2.f32 %v4839_v18 }
0x145a   :  { %8504 = vpow2.f32 %v4299_v14  ;;  %v4841_v52 = vmul.f32 1.442695, %v4803_v57  ;;  %v4843_v55 = vmul.f32 1.442695, %v4804_v43 }
0x145b   :  { %8506 = vpow2.f32 %v4301_v35  ;;  %v4740_v34 = vpop.xlane.xlu0 %4739  ;;  %v4198_v23 = vpop.xlane.xlu1 %4197 }
0x145c   :  { %8508 = vpow2.f32 %v4841_v52  ;;  %v4805_v5 = vsub.f32 %v12062_v33, %v4740_v34  ;;  %v4806_v32 = vsub.f32 %v12066_v27, %v4740_v34  ;;  %v4265_v56 = vsub.f32 %v12044_v37, %v4198_v23 }
0x145d   :  { %8510 = vpow2.f32 %v4843_v55  ;;  %v4266_v4 = vsub.f32 %v12050_v39, %v4198_v23 }
0x145e   :  { %v4845_v8 = vmul.f32 1.442695, %v4805_v5  ;;  %v4847_v24 = vmul.f32 1.442695, %v4806_v32  ;;  %v4303_v60 = vmul.f32 1.442695, %v4265_v56 }
0x145f   :  { %v4305_v22 = vmul.f32 1.442695, %v4266_v4  ;;  %v4744_v28 = vpop.xlane.xlu0 %4743  ;;  %v4202_v57 = vpop.xlane.xlu1 %4201 }
0x1460   :  { %8512 = vpow2.f32 %v4845_v8  ;;  %v4807_v43 = vsub.f32 %v12074_v47, %v4744_v28  ;;  %v4808_v52 = vsub.f32 %v12080_v12, %v4744_v28  ;;  %v4267_v33 = vsub.f32 %v12060_v36, %v4202_v57 }
0x1461   :  { %8514 = vpow2.f32 %v4847_v24  ;;  %v4268_v27 = vsub.f32 %v12064_v53, %v4202_v57 }
0x1462   :  { %v12304_v37 = vpop.eup %8500  ;;  %8516 = vpow2.f32 %v4303_v60  ;;  %v4849_v39 = vmul.f32 1.442695, %v4807_v43  ;;  %v4851_v11 = vmul.f32 1.442695, %v4808_v52  ;;  %v4307_v18 = vmul.f32 1.442695, %v4267_v33 }
0x1463   :  { %v12306_v14 = vpop.eup %8502  ;;  %8518 = vpow2.f32 %v4305_v22  ;;  %v4309_v35 = vmul.f32 1.442695, %v4268_v27  ;;  %v4206_v48 = vpop.xlane.xlu0 %4205 }
0x1464   :  { %v12308_v55 = vpop.eup %8504  ;;  %8520 = vpow2.f32 %v4849_v39  ;;  %v4269_v47 = vsub.f32 %v12072_v46, %v4206_v48  ;;  %v4270_v36 = vsub.f32 %v12078_v62, %v4206_v48  ;;  %v4909_v53 = vsel %vm1346_vm11, %v12306_v14, 0.0 }
0x1465   :  { %14280 = vst [vmem:[#allocation37_spill] sm:$0xff] %v12308_v55  ;;  %v12314_v12 = vpop.eup %8506  ;;  %8522 = vpow2.f32 %v4851_v11  ;;  %v4752_v34 = vpop.xlane.xlu1 %4751  ;;  %v4910_v23 = vadd.f32 %v12304_v37, %v4909_v53 }
0x1466   :  { %14281 = vst [vmem:[#allocation38_spill] sm:$0xff] %v12314_v12  ;;  %v12317_v5 = vpop.eup %8508  ;;  %8524 = vpow2.f32 %v4307_v18  ;;  %v4311_v32 = vmul.f32 1.442695, %v4269_v47  ;;  %v4313_v56 = vmul.f32 1.442695, %v4270_v36  ;;  %v4811_v4 = vsub.f32 %v12102_v10, %v4752_v34 }
0x1467   :  { %v12320_v8 = vpop.eup %8510  ;;  %8526 = vpow2.f32 %v4309_v35  ;;  %v4812_v46 = vsub.f32 %v12108_v40, %v4752_v34  ;;  %4911 = vadd.xlane.f32.xlu1 %v4910_v23  ;;  %v4748_v62 = vpop.xlane.xlu0 %4747  ;;  %v4371_v24 = vsel %vm1346_vm11, %v12314_v12, 0.0 }
0x1468   :  { %8528 = vpow2.f32 %v4311_v32  ;;  %v4857_v60 = vmul.f32 1.442695, %v4811_v4  ;;  %v4809_v22 = vsub.f32 %v12090_v30, %v4748_v62  ;;  %v4810_v28 = vsub.f32 %v12094_v15, %v4748_v62 }
0x1469   :  { %8530 = vpow2.f32 %v4313_v56  ;;  %v4859_v57 = vmul.f32 1.442695, %v4812_v46  ;;  %v4372_v10 = vadd.f32 %v12308_v55, %v4371_v24  ;;  %v4913_v43 = vsel %vm1346_vm11, %v12320_v8, 0.0 }
0x146a   :  { %v12330_v52 = vpop.eup %8512  ;;  %v4853_v40 = vmul.f32 1.442695, %v4809_v22  ;;  %v4855_v33 = vmul.f32 1.442695, %v4810_v28  ;;  %v4914_v27 = vadd.f32 %v12317_v5, %v4913_v43 }
0x146b   :  { %v12333_v39 = vpop.eup %8514  ;;  %8532 = vpow2.f32 %v4859_v57  ;;  %4373 = vadd.xlane.f32.xlu1 %v4372_v10  ;;  %v12335_v30 = vpop.xlane.xlu0 %4209 }
0x146c   :  { %v4756_v15 = vpop.xlane.xlu1 %4755  ;;  %v12337_v11 = vpop.eup %8516  ;;  %8534 = vpow2.f32 %v4857_v60  ;;  %4915 = vadd.xlane.f32.xlu0 %v4914_v27  ;;  %v4917_v47 = vsel %vm1346_vm11, %v12333_v39, 0.0 }
0x146d   :  { %14282 = vst [vmem:[#allocation39_spill] sm:$0xff] %v12337_v11  ;;  %v4813_v18 = vsub.f32 %v12118_v21, %v4756_v15  ;;  %v12340_v35 = vpop.eup %8518  ;;  %8536 = vpow2.f32 %v4855_v33  ;;  %v4814_v48 = vsub.f32 %v12122_v6, %v4756_v15  ;;  %v4918_v34 = vadd.f32 %v12330_v52, %v4917_v47 }
0x146e   :  { %v12345_v36 = vpop.eup %8520  ;;  %8538 = vpow2.f32 %v4853_v40  ;;  %v4375_v21 = vsel %vm1346_vm11, %v12340_v35, 0.0 }
0x146f   :  { %v4861_v53 = vmul.f32 1.442695, %v4813_v18  ;;  %v12348_v23 = vpop.eup %8522  ;;  %v4863_v32 = vmul.f32 1.442695, %v4814_v48  ;;  %v4214_v56 = vpop.xlane.xlu0 %4213  ;;  %4919 = vadd.xlane.f32.xlu1 %v4918_v34  ;;  %v4376_v6 = vadd.f32 %v12337_v11, %v4375_v21 }
0x1470   :  { %v4760_v4 = vpop.xlane.xlu1 %4759  ;;  %v12352_v46 = vpop.eup %8524  ;;  %v4273_v62 = vsub.f32 %v12100_v61, %v4214_v56  ;;  %v4274_v24 = vsub.f32 %v12106_v13, %v4214_v56  ;;  %v4921_v57 = vsel %vm1346_vm11, %v12348_v23, 0.0 }
0x1471   :  { %14283 = vst [vmem:[#allocation40_spill] sm:$0xff] %v12352_v46  ;;  %v12357_v60 = vpop.eup %8526  ;;  %v4815_v22 = vsub.f32 %v12130_v49, %v4760_v4  ;;  %v4816_v28 = vsub.f32 %v12136_v59, %v4760_v4  ;;  %8540 = vpow2.f32 %v4861_v53  ;;  %4377 = vadd.xlane.f32.xlu0 %v4376_v6  ;;  %v4922_v33 = vadd.f32 %v12345_v36, %v4921_v57 }
0x1472   :  { %14284 = vst [vmem:[#allocation41_spill] sm:$0xff] %v12357_v60  ;;  %v12363_v10 = vpop.eup %8528  ;;  %v4319_v43 = vmul.f32 1.442695, %v4273_v62  ;;  %v4321_v40 = vmul.f32 1.442695, %v4274_v24  ;;  %8542 = vpow2.f32 %v4863_v32  ;;  %v4379_v49 = vsel %vm1346_vm11, %v12357_v60, 0.0 }
0x1473   :  { %14285 = vst [vmem:[#allocation42_spill] sm:$0xff] %v12363_v10  ;;  %v12366_v61 = vpop.eup %8530  ;;  %v4865_v13 = vmul.f32 1.442695, %v4815_v22  ;;  %v4867_v27 = vmul.f32 1.442695, %v4816_v28  ;;  %v12370_v59 = vpop.xlane.xlu0 %4217  ;;  %v4380_v18 = vadd.f32 %v12352_v46, %v4379_v49 }
0x1474   :  { %14286 = vst [vmem:[#allocation43_spill] sm:$0xff] %v12366_v61  ;;  %v4764_v15 = vpop.xlane.xlu1 %4763  ;;  %8544 = vpow2.f32 %v4319_v43  ;;  %v4383_v34 = vsel %vm1346_vm11, %v12366_v61, 0.0  ;;  %v14306_v61 = vld [vmem:[#allocation66_spill] sm:$0xff] }
0x1475   :  { %v12373_v48 = vpop.eup %8532  ;;  %8546 = vpow2.f32 %v4321_v40  ;;  %v4817_v47 = vsub.f32 %v12146_v58, %v4764_v15  ;;  %v4818_v53 = vsub.f32 %v12150_v0, %v4764_v15  ;;  %4923 = vadd.xlane.f32.xlu0 %v4922_v33  ;;  %4381 = vadd.xlane.f32.xlu1 %v4380_v18  ;;  %v4384_v21 = vadd.f32 %v12363_v10, %v4383_v34 }
0x1476   :  { %v12379_v32 = vpop.eup %8534  ;;  %8548 = vpow2.f32 %v4865_v13  ;;  %v4929_v0 = vsel %vm1346_vm11, %v12373_v48, 0.0 }
0x1477   :  { %v12382_v56 = vpop.eup %8536  ;;  %8550 = vpow2.f32 %v4867_v27  ;;  %v4869_v4 = vmul.f32 1.442695, %v4817_v47  ;;  %v4871_v6 = vmul.f32 1.442695, %v4818_v53  ;;  %v12384_v62 = vpop.xlane.xlu0 %4221  ;;  %v4930_v57 = vadd.f32 %v12379_v32, %v4929_v0 }
0x1478   :  { %v4768_v58 = vpop.xlane.xlu1 %4767  ;;  %v12388_v24 = vpop.eup %8538  ;;  %v4925_v43 = vsel %vm1346_vm11, %v12382_v56, 0.0 }
0x1479   :  { %v4819_v22 = vsub.f32 %v12158_v7, %v4768_v58  ;;  %v4820_v28 = vsub.f32 %v12164_v29, %v4768_v58  ;;  %8552 = vpow2.f32 %v4869_v4  ;;  %4385 = vadd.xlane.f32.xlu0 %v4384_v21  ;;  %4931 = vadd.xlane.f32.xlu1 %v4930_v57  ;;  %v4926_v13 = vadd.f32 %v12388_v24, %v4925_v43 }
0x147a   :  { %8554 = vpow2.f32 %v4871_v6 }
0x147b   :  { %v4873_v40 = vmul.f32 1.442695, %v4819_v22  ;;  %v4875_v33 = vmul.f32 1.442695, %v4820_v28  ;;  %v12396_v27 = vpop.xlane.xlu0 %4225  ;;  %v12400_v7 = vpop.eup %8540 }
0x147c   :  { %v12398_v49 = vpop.xlane.xlu1 %4229  ;;  %v12402_v29 = vpop.eup %8542 }
0x147d   :  { %8556 = vpow2.f32 %v4873_v40  ;;  %4927 = vadd.xlane.f32.xlu0 %v4926_v13  ;;  %v4933_v47 = vsel %vm1346_vm11, %v12402_v29, 0.0 }
0x147e   :  { %v12404_v15 = vpop.eup %8544  ;;  %8558 = vpow2.f32 %v4875_v33  ;;  %v4934_v4 = vadd.f32 %v12400_v7, %v4933_v47 }
0x147f   :  { %14287 = vst [vmem:[#allocation44_spill] sm:$0xff] %v12404_v15  ;;  %v12406_v18 = vpop.eup %8546  ;;  %v12410_v53 = vpop.xlane.xlu0 %4233 }
0x1480   :  { %14288 = vst [vmem:[#allocation45_spill] sm:$0xff] %v12406_v18  ;;  %v4772_v34 = vpop.xlane.xlu1 %4771  ;;  %v12412_v21 = vpop.eup %8548  ;;  %v4391_v22 = vsel %vm1346_vm11, %v12406_v18, 0.0 }
0x1481   :  { %v12415_v6 = vpop.eup %8550  ;;  %v4821_v58 = vsub.f32 %v12174_v41, %v4772_v34  ;;  %v4822_v0 = vsub.f32 %v12178_v25, %v4772_v34  ;;  %4935 = vadd.xlane.f32.xlu0 %v4934_v4  ;;  %v4392_v28 = vadd.f32 %v12404_v15, %v4391_v22 }
0x1482   :  { %v4937_v40 = vsel %vm1346_vm11, %v12415_v6, 0.0 }
0x1483   :  { %v4877_v57 = vmul.f32 1.442695, %v4821_v58  ;;  %v4879_v43 = vmul.f32 1.442695, %v4822_v0  ;;  %v4780_v33 = vpop.xlane.xlu0 %4779  ;;  %v12424_v47 = vpop.eup %8552  ;;  %v4938_v46 = vadd.f32 %v12412_v21, %v4937_v40 }
0x1484   :  { %v4776_v13 = vpop.xlane.xlu1 %4775  ;;  %v4826_v41 = vsub.f32 %v12206_v19, %v4780_v33  ;;  %v12428_v25 = vpop.eup %8554  ;;  %v4825_v58 = vsub.f32 %v12202_v31, %v4780_v33 }
0x1485   :  { %v4823_v34 = vsub.f32 %v12186_v63, %v4776_v13  ;;  %v4824_v4 = vsub.f32 %v12192_v20, %v4776_v13  ;;  %8560 = vpow2.f32 %v4877_v57  ;;  %4393 = vadd.xlane.f32.xlu0 %v4392_v28  ;;  %4939 = vadd.xlane.f32.xlu1 %v4938_v46  ;;  %v4941_v0 = vsel %vm1346_vm11, %v12428_v25, 0.0 }
0x1486   :  { %8562 = vpow2.f32 %v4879_v43  ;;  %v4942_v40 = vadd.f32 %v12424_v47, %v4941_v0  ;;  %v4887_v63 = vmul.f32 1.442695, %v4826_v41  ;;  %v4885_v20 = vmul.f32 1.442695, %v4825_v58 }
0x1487   :  { %v4881_v22 = vmul.f32 1.442695, %v4823_v34  ;;  %v4883_v15 = vmul.f32 1.442695, %v4824_v4  ;;  %v12438_v18 = vpop.eup %8556  ;;  %v4529_v13 = vmul.f32 %v11875_v16, %v11765_v38 }
0x1488   :  { %v12436_v19 = vpop.xlane.xlu1 %4237  ;;  %v12440_v10 = vpop.eup %8558 }
0x1489   :  { %8564 = vpow2.f32 %v4881_v22  ;;  %4943 = vadd.xlane.f32.xlu0 %v4942_v40  ;;  %v4945_v31 = vsel %vm1346_vm11, %v12440_v10, 0.0 }
0x148a   :  { %8566 = vpow2.f32 %v4883_v15  ;;  %v4946_v28 = vadd.f32 %v12438_v18, %v4945_v31  ;;  %v4530_v15 = vmul.f32 %v11875_v16, %v11768_v50 }
0x148b   :  { %8568 = vpow2.f32 %v4887_v63 }
0x148c   :  { %v4784_v46 = vpop.xlane.xlu1 %4783  ;;  %8570 = vpow2.f32 %v4885_v20  ;;  %v4542_v22 = vpack.c.bf16 %v4530_v15, %v4529_v13  ;;  %v4272_v15 = vsub.f32 %v12092_v54, %v12335_v30 }
0x148d   :  { %4947 = vadd.xlane.f32.xlu0 %v4946_v28 }
0x148f   :  { %v12447_v43 = vpop.eup %8560 }
0x1490   :  { %v12445_v57 = vpop.xlane.xlu1 %4245  ;;  %v12449_v33 = vpop.eup %8562 }
0x1491   :  { %v4949_v41 = vsel %vm1346_vm11, %v12449_v33, 0.0 }
0x1492   :  { %v4950_v58 = vadd.f32 %v12447_v43, %v4949_v41 }
0x1493   :  { %v12457_v4 = vpop.eup %8564 }
0x1494   :  { %v4788_v34 = vpop.xlane.xlu1 %4787  ;;  %v12460_v0 = vpop.eup %8566  ;;  %4951 = vadd.xlane.f32.xlu0 %v4950_v58  ;;  %v4271_v58 = vsub.f32 %v12088_v1, %v12335_v30 }
0x1495   :  { %v4829_v40 = vsub.f32 %v12230_v2, %v4788_v34  ;;  %v4830_v63 = vsub.f32 %v12234_v44, %v4788_v34  ;;  %v12464_v20 = vpop.eup %8568  ;;  %v4953_v38 = vsel %vm1346_vm11, %v12460_v0, 0.0 }
0x1496   :  { %5271 = vrot.lane.b32.xlu1 %v4542_v22, %s8866_s7  ;;  %v4954_v28 = vadd.f32 %v12457_v4, %v4953_v38  ;;  %v12470_v41 = vpop.eup %8570  ;;  %v4957_v13 = vsel %vm1346_vm11, %v12464_v20, 0.0  ;;  %v4828_v38 = vsub.f32 %v12220_v26, %v4784_v46 }
0x1497   :  { %v4893_v50 = vmul.f32 1.442695, %v4829_v40  ;;  %v4895_v31 = vmul.f32 1.442695, %v4830_v63  ;;  %v4958_v44 = vadd.f32 %v12470_v41, %v4957_v13  ;;  %v4317_v63 = vmul.f32 1.442695, %v4272_v15 }
0x1498   :  { %4955 = vadd.xlane.f32.xlu0 %v4954_v28  ;;  %v4792_v2 = vpop.xlane.xlu1 %4791  ;;  %v4315_v28 = vmul.f32 1.442695, %v4271_v58  ;;  %v4827_v13 = vsub.f32 %v12214_v42, %v4784_v46  ;;  %v4891_v54 = vmul.f32 1.442695, %v4828_v38  ;;  %v14291_v38 = vld [vmem:[#allocation81_spill] sm:$0xff] }
0x1499   :  { %8572 = vpow2.f32 %v4893_v50  ;;  %v4831_v15 = vsub.f32 %v12242_v51, %v4792_v2 }
0x149a   :  { %8574 = vpow2.f32 %v4895_v31  ;;  %v4889_v30 = vmul.f32 1.442695, %v4827_v13 }
0x149b   :  { %8576 = vpow2.f32 %v4317_v63  ;;  %v4897_v55 = vmul.f32 1.442695, %v4831_v15 }
0x149c   :  { %4959 = vadd.xlane.f32.xlu0 %v4958_v44  ;;  %v4796_v22 = vpop.xlane.xlu1 %4795  ;;  %v4832_v44 = vsub.f32 %v12248_v17, %v4792_v2  ;;  %8578 = vpow2.f32 %v4315_v28 }
0x149d   :  { %8580 = vpow2.f32 %v4891_v54 }
0x149e   :  { %v4899_v26 = vmul.f32 1.442695, %v4832_v44  ;;  %8582 = vpow2.f32 %v4889_v30 }
0x14a0   :  { %v4800_v1 = vpop.xlane.xlu1 %4799  ;;  %8584 = vpow2.f32 %v4899_v26 }
0x14a1   :  { %v4836_v60 = vsub.f32 %v12276_v9, %v4800_v1  ;;  %v4835_v58 = vsub.f32 %v12270_v45, %v4800_v1  ;;  %8586 = vpow2.f32 %v4897_v55  ;;  %v4531_v45 = vmul.f32 %v11875_v16, %v14291_v38 }
0x14a3   :  { %v12477_v34 = vpop.eup %8572  ;;  %v4907_v42 = vmul.f32 1.442695, %v4836_v60  ;;  %v4905_v17 = vmul.f32 1.442695, %v4835_v58 }
0x14a4   :  { %v12481_v40 = vpop.eup %8574 }
0x14a5   :  { %v4965_v50 = vsel %vm1346_vm11, %v12481_v40, 0.0  ;;  %v12492_v46 = vpop.eup %8576  ;;  %8588 = vpow2.f32 %v4907_v42  ;;  %v14293_v42 = vld [vmem:[#allocation95_spill] sm:$0xff] }
0x14a6   :  { %v4966_v31 = vadd.f32 %v12477_v34, %v4965_v50  ;;  %14289 = vst [vmem:[#allocation46_spill] sm:$0xff] %v12492_v46  ;;  %v12494_v63 = vpop.eup %8578  ;;  %v4387_v51 = vsel %vm1346_vm11, %v12492_v46, 0.0  ;;  %8590 = vpow2.f32 %v4905_v17  ;;  %v14292_v50 = vld [vmem:[#allocation57_spill] sm:$0xff]  ;;  %v4834_v17 = vsub.f32 %v14293_v42, %v4796_v22 }
0x14a7   :  { %14290 = vst [vmem:[#allocation47_spill] sm:$0xff] %v12494_v63  ;;  %v12498_v2 = vpop.eup %8580  ;;  %v4388_v9 = vadd.f32 %v12494_v63, %v4387_v51  ;;  %v4532_v60 = vmul.f32 %v11875_v16, %v14292_v50  ;;  %v14304_v46 = vld [vmem:[#allocation97_spill] sm:$0xff] }
0x14a8   :  { %4967 = vadd.xlane.f32.xlu0 %v4966_v31  ;;  %v12505_v31 = vpop.eup %8582  ;;  %v4961_v55 = vsel %vm1346_vm11, %v12498_v2, 0.0 }
0x14a9   :  { %v4962_v13 = vadd.f32 %v12505_v31, %v4961_v55  ;;  %v4543_v54 = vpack.c.bf16 %v4532_v60, %v4531_v45  ;;  %v14295_v45 = vld [vmem:[#allocation62_spill] sm:$0xff]  ;;  %v4903_v60 = vmul.f32 1.442695, %v4834_v17  ;;  %v14296_v55 = vld [vmem:[#allocation63_spill] sm:$0xff] }
0x14aa   :  { %v12509_v28 = vpop.eup %8584  ;;  %v4278_v50 = vsub.f32 %v14295_v45, %v12384_v62 }
0x14ab   :  { %v12512_v44 = vpop.eup %8586  ;;  %v4969_v1 = vsel %vm1346_vm11, %v12509_v28, 0.0  ;;  %8592 = vpow2.f32 %v4903_v60  ;;  %v4242_v60 = vpop.xlane.xlu0 %4241 }
0x14ac   :  { %v4970_v15 = vadd.f32 %v12512_v44, %v4969_v1  ;;  %v4329_v1 = vmul.f32 1.442695, %v4278_v50 }
0x14af   :  { %v12516_v30 = vpop.eup %8588 }
0x14b0   :  { %v12520_v26 = vpop.eup %8590  ;;  %v4977_v58 = vsel %vm1346_vm11, %v12516_v30, 0.0 }
0x14b1   :  { %v4978_v51 = vadd.f32 %v12520_v26, %v4977_v58  ;;  %v14298_v58 = vld [vmem:[#allocation83_spill] sm:$0xff] }
0x14ba   :  { %4389 = vadd.xlane.f32.xlu1 %v4388_v9  ;;  %v14294_v9 = vld [vmem:[#allocation89_spill] sm:$0xff] }
0x14bb   :  { %v4833_v38 = vsub.f32 %v14294_v9, %v4796_v22  ;;  %v4534_v22 = vmul.f32 %v11875_v16, %v14298_v58 }
0x14be   :  { %4963 = vadd.xlane.f32.xlu1 %v4962_v13  ;;  %5273 = vrot.lane.b32.xlu0 %v4543_v54, %s8866_s7  ;;  %v4277_v13 = vsub.f32 %v14296_v55, %v12384_v62  ;;  %v4901_v54 = vmul.f32 1.442695, %v4833_v38 }
0x14c0   :  { %v4327_v63 = vmul.f32 1.442695, %v4277_v13  ;;  %8594 = vpow2.f32 %v4901_v54  ;;  %v14301_v13 = vld [vmem:[#allocation92_spill] sm:$0xff] }
0x14c1   :  { %8596 = vpow2.f32 %v4329_v1  ;;  %v4276_v54 = vsub.f32 %v14301_v13, %v12370_v59  ;;  %v12552_v1 = vpop.xlane.xlu0 %4249  ;;  %v14305_v13 = vld [vmem:[#allocation100_spill] sm:$0xff] }
0x14c2   :  { %4971 = vadd.xlane.f32.xlu1 %v4970_v15  ;;  %v14297_v15 = vld [vmem:[#allocation56_spill] sm:$0xff]  ;;  %8598 = vpow2.f32 %v4327_v63 }
0x14c3   :  { %v4533_v42 = vmul.f32 %v11875_v16, %v14297_v15  ;;  %v14302_v15 = vld [vmem:[#allocation60_spill] sm:$0xff]  ;;  %v4325_v58 = vmul.f32 1.442695, %v4276_v54 }
0x14c5   :  { %v4544_v9 = vpack.c.bf16 %v4534_v22, %v4533_v42  ;;  %v4275_v42 = vsub.f32 %v14302_v15, %v12370_v59  ;;  %v14303_v22 = vld [vmem:[#allocation67_spill] sm:$0xff]  ;;  %8600 = vpow2.f32 %v4325_v58  ;;  %v4281_v59 = vsub.f32 %v14306_v61, %v12398_v49  ;;  %v14307_v15 = vld [vmem:[#allocation70_spill] sm:$0xff] }
0x14c6   :  { %4979 = vadd.xlane.f32.xlu1 %v4978_v51  ;;  %v12535_v51 = vpop.eup %8592 }
0x14c7   :  { %v4973_v62 = vsel %vm1346_vm11, %v12535_v51, 0.0  ;;  %v4335_v58 = vmul.f32 1.442695, %v4281_v59 }
0x14ca   :  { %v12538_v17 = vpop.eup %8594 }
0x14cb   :  { %v12542_v38 = vpop.eup %8596  ;;  %v4974_v45 = vadd.f32 %v12538_v17, %v4973_v62  ;;  %v4323_v62 = vmul.f32 1.442695, %v4275_v42  ;;  %v4284_v42 = vsub.f32 %v14307_v15, %v12410_v53 }
0x14cc   :  { %14299 = vst [vmem:[#allocation48_spill] sm:$0xff] %v12542_v38  ;;  %v12545_v50 = vpop.eup %8598  ;;  %v4399_v63 = vsel %vm1346_vm11, %v12542_v38, 0.0  ;;  %v4279_v38 = vsub.f32 %v14304_v46, %v12396_v27 }
0x14cd   :  { %14300 = vst [vmem:[#allocation49_spill] sm:$0xff] %v12545_v50  ;;  %v4400_v55 = vadd.f32 %v12545_v50, %v4399_v63  ;;  %8602 = vpow2.f32 %v4323_v62  ;;  %v14310_v62 = vld [vmem:[#allocation59_spill] sm:$0xff] }
0x14ce   :  { %v4331_v50 = vmul.f32 1.442695, %v4279_v38  ;;  %v4341_v38 = vmul.f32 1.442695, %v4284_v42  ;;  %v4535_v61 = vmul.f32 %v11875_v16, %v14310_v62  ;;  %v14316_v62 = vld [vmem:[#allocation72_spill] sm:$0xff] }
0x14cf   :  { %v12578_v15 = vpop.eup %8600 }
0x14d0   :  { %14312 = vst [vmem:[#allocation50_spill] sm:$0xff] %v12578_v15 }
0x14d7   :  { %5275 = vrot.lane.b32.xlu1 %v4544_v9, %s8866_s7  ;;  %v4280_v9 = vsub.f32 %v14303_v22, %v12396_v27  ;;  %v14308_v22 = vld [vmem:[#allocation71_spill] sm:$0xff]  ;;  %v12585_v12 = vpop.eup %8602 }
0x14d8   :  { %v4283_v27 = vsub.f32 %v14308_v22, %v12410_v53  ;;  %v14313_v53 = vld [vmem:[#allocation102_spill] sm:$0xff]  ;;  %14315 = vst [vmem:[#allocation51_spill] sm:$0xff] %v12585_v12 }
0x14d9   :  { %v4333_v63 = vmul.f32 1.442695, %v4280_v9  ;;  %v14309_v9 = vld [vmem:[#allocation73_spill] sm:$0xff] }
0x14db   :  { %8604 = vpow2.f32 %v4333_v63 }
0x14dc   :  { %8606 = vpow2.f32 %v4331_v50  ;;  %v4285_v50 = vsub.f32 %v14313_v53, %v12436_v19 }
0x14dd   :  { %4975 = vadd.xlane.f32.xlu0 %v4974_v45  ;;  %v12560_v45 = vpop.xlane.xlu0 %4253 }
0x14e1   :  { %4401 = vadd.xlane.f32.xlu0 %v4400_v55  ;;  %v4282_v55 = vsub.f32 %v14305_v13, %v12398_v49  ;;  %v12570_v46 = vpop.xlane.xlu0 %4257  ;;  %v4286_v13 = vsub.f32 %v14309_v9, %v12436_v19  ;;  %v14311_v49 = vld [vmem:[#allocation58_spill] sm:$0xff] }
0x14e2   :  { %v4536_v63 = vmul.f32 %v11875_v16, %v14311_v49  ;;  %v4287_v16 = vsub.f32 %v14316_v62, %v4242_v60 }
0x14e3   :  { %v4337_v54 = vmul.f32 1.442695, %v4282_v55  ;;  %v4339_v55 = vmul.f32 1.442695, %v4283_v27  ;;  %v4345_v59 = vmul.f32 1.442695, %v4286_v13 }
0x14e4   :  { %v4545_v9 = vpack.c.bf16 %v4536_v63, %v4535_v61  ;;  %v4395_v27 = vsel %vm1346_vm11, %v12578_v15, 0.0  ;;  %v14319_v61 = vld [vmem:[#allocation86_spill] sm:$0xff]  ;;  %v4347_v62 = vmul.f32 1.442695, %v4287_v16 }
0x14e5   :  { %8608 = vpow2.f32 %v4337_v54  ;;  %v12582_v22 = vpop.xlane.xlu0 %4261  ;;  %v14314_v54 = vld [vmem:[#allocation87_spill] sm:$0xff]  ;;  %v12590_v49 = vpop.eup %8604  ;;  %v4290_v63 = vsub.f32 %v14319_v61, %v12445_v57  ;;  %v4396_v53 = vadd.f32 %v12585_v12, %v4395_v27 }
0x14e6   :  { %8610 = vpow2.f32 %v4335_v58  ;;  %v4288_v42 = vsub.f32 %v14314_v54, %v4242_v60  ;;  %14317 = vst [vmem:[#allocation81_spill] sm:$0xff] %v12590_v49  ;;  %v14318_v58 = vld [vmem:[#allocation84_spill] sm:$0xff]  ;;  %v12600_v54 = vpop.eup %8606 }
0x14e7   :  { %8612 = vpow2.f32 %v4341_v38  ;;  %v4292_v19 = vsub.f32 %v14318_v58, %v12552_v1  ;;  %v4343_v38 = vmul.f32 1.442695, %v4285_v50  ;;  %14320 = vst [vmem:[#allocation57_spill] sm:$0xff] %v12600_v54  ;;  %v14321_v58 = vld [vmem:[#allocation82_spill] sm:$0xff] }
0x14e8   :  { %8614 = vpow2.f32 %v4339_v55  ;;  %v4349_v60 = vmul.f32 1.442695, %v4288_v42  ;;  %v14323_v42 = vld [vmem:[#allocation90_spill] sm:$0xff] }
0x14e9   :  { %v4357_v50 = vmul.f32 1.442695, %v4292_v19  ;;  %v4294_v61 = vsub.f32 %v14323_v42, %v12560_v45 }
0x14ef   :  { %v12606_v15 = vpop.eup %8608 }
0x14f0   :  { %14322 = vst [vmem:[#allocation95_spill] sm:$0xff] %v12606_v15  ;;  %v12611_v16 = vpop.eup %8610  ;;  %v4407_v19 = vsel %vm1346_vm11, %v12606_v15, 0.0 }
0x14f1   :  { %14324 = vst [vmem:[#allocation89_spill] sm:$0xff] %v12611_v16  ;;  %v4408_v42 = vadd.f32 %v12611_v16, %v4407_v19 }
0x14f4   :  { %v4912_v11 = vpop.xlane.xlu1 %4911 }
0x14f5   :  { %8616 = vrcp.f32 %v4912_v11  ;;  %v4289_v11 = vsub.f32 %v14321_v58, %v12445_v57  ;;  %v14325_v57 = vld [vmem:[#allocation96_spill] sm:$0xff] }
0x14f6   :  { %8618 = vpow2.f32 %v4345_v59  ;;  %v4353_v59 = vmul.f32 1.442695, %v4290_v63  ;;  %v4291_v58 = vsub.f32 %v14325_v57, %v12552_v1  ;;  %v14327_v63 = vld [vmem:[#allocation85_spill] sm:$0xff] }
0x14f7   :  { %5277 = vrot.lane.b32.xlu0 %v4545_v9, %s8866_s7  ;;  %v4403_v9 = vsel %vm1346_vm11, %v12590_v49, 0.0  ;;  %v4351_v49 = vmul.f32 1.442695, %v4289_v11  ;;  %v14328_v1 = vld [vmem:[#allocation93_spill] sm:$0xff] }
0x14f8   :  { %v12595_v13 = vpop.xlane.xlu1 %4373  ;;  %v4296_v11 = vsub.f32 %v14328_v1, %v12570_v46 }
0x14f9   :  { %v4916_v55 = vpop.xlane.xlu0 %4915 }
0x14fa   :  { %8620 = vrcp.f32 %v4916_v55  ;;  %v4404_v55 = vadd.f32 %v12600_v54, %v4403_v9  ;;  %v4361_v9 = vmul.f32 1.442695, %v4294_v61  ;;  %v4355_v54 = vmul.f32 1.442695, %v4291_v58 }
0x14fb   :  { %4397 = vadd.xlane.f32.xlu1 %v4396_v53  ;;  %8622 = vpow2.f32 %v4343_v38  ;;  %v12619_v38 = vpop.eup %8612  ;;  %v4365_v1 = vmul.f32 1.442695, %v4296_v11 }
0x14fc   :  { %8624 = vpow2.f32 %v4349_v60  ;;  %v4920_v27 = vpop.xlane.xlu1 %4919  ;;  %14326 = vst [vmem:[#allocation62_spill] sm:$0xff] %v12619_v38  ;;  %v4293_v60 = vsub.f32 %v14327_v63, %v12560_v45  ;;  %v12623_v53 = vpop.eup %8614  ;;  %v4411_v45 = vsel %vm1346_vm11, %v12619_v38, 0.0  ;;  %v14330_v38 = vld [vmem:[#allocation91_spill] sm:$0xff] }
0x14fd   :  { %8626 = vpow2.f32 %v4347_v62  ;;  %v4412_v16 = vadd.f32 %v12623_v53, %v4411_v45 }
0x14fe   :  { %v12615_v12 = vpop.xlane.xlu0 %4377  ;;  %8628 = vpow2.f32 %v4357_v50  ;;  %v4359_v63 = vmul.f32 1.442695, %v4293_v60  ;;  %v4298_v60 = vsub.f32 %v14330_v38, %v12582_v22 }
0x14ff   :  { %4405 = vadd.xlane.f32.xlu1 %v4404_v55  ;;  %8630 = vpow2.f32 %v4353_v59  ;;  %v8617_v62 = vpop.eup %8616  ;;  %v14329_v59 = vld [vmem:[#allocation98_spill] sm:$0xff] }
0x1500   :  { %8632 = vrcp.f32 %v4920_v27  ;;  %v12628_v57 = vpop.eup %8618  ;;  %v4295_v15 = vsub.f32 %v14329_v59, %v12570_v46  ;;  %v4982_v27 = vmul.f32 %v8617_v62, %v12304_v37  ;;  %v4983_v58 = vmul.f32 %v8617_v62, %v12306_v14 }
0x1501   :  { %8634 = vpow2.f32 %v4351_v49  ;;  %v4369_v11 = vmul.f32 1.442695, %v4298_v60 }
0x1502   :  { %v4924_v50 = vpop.xlane.xlu0 %4923  ;;  %v12634_v61 = vpop.xlane.xlu1 %4381  ;;  %v4363_v38 = vmul.f32 1.442695, %v4295_v15 }
0x1503   :  { %8636 = vrcp.f32 %v4924_v50  ;;  %4409 = vadd.xlane.f32.xlu1 %v4408_v42 }
0x1504   :  { %v8621_v55 = vpop.eup %8620  ;;  %8638 = vpow2.f32 %v4361_v9  ;;  %v4297_v9 = vsub.f32 %v12268_v3, %v12582_v22  ;;  %v14332_v3 = vmov 0  }
0x1505   :  { %v4985_v19 = vmul.f32 %v8621_v55, %v12317_v5  ;;  %v4986_v49 = vmul.f32 %v8621_v55, %v12320_v8  ;;  %v12643_v46 = vpop.eup %8622  ;;  %8640 = vpow2.f32 %v4355_v54  ;;  %v4415_v5 = vsel %vm1346_vm11, %v12628_v57, 0.0 }
0x1506   :  { %v12645_v42 = vpop.xlane.xlu0 %4385  ;;  %v12649_v14 = vpop.eup %8624  ;;  %8642 = vpow2.f32 %v4359_v63  ;;  %v4416_v45 = vadd.f32 %v12643_v46, %v4415_v5  ;;  %v14331_v63 = vld [vmem:[#allocation34_spill] sm:$0xff] }
0x1507   :  { %v5035_v50 = vpack.c.bf16 %v4985_v19, %v4982_v27  ;;  %v5036_v37 = vpack.c.bf16 %v4986_v49, %v4983_v58  ;;  %4413 = vadd.xlane.f32.xlu1 %v4412_v16  ;;  %v4932_v8 = vpop.xlane.xlu1 %4931  ;;  %v12651_v62 = vpop.eup %8626  ;;  %v4419_v15 = vsel %vm1346_vm11, %v12649_v14, 0.0  ;;  %v4367_v27 = vmul.f32 1.442695, %v4297_v9 }
0x1508   :  { %8644 = vrcp.f32 %v4932_v8  ;;  %v12656_v54 = vpop.eup %8628  ;;  %v4420_v58 = vadd.f32 %v12651_v62, %v4419_v15  ;;  %v14334_v15 = vld [vmem:[#allocation35_spill] sm:$0xff] }
0x1509   :  { %7275 = vmatprep.mubr.msk.bf16.mxu1 %vm1346_vm11, %v5036_v37  ;;  %8646 = vpow2.f32 %v4365_v1  ;;  %v12659_v55 = vpop.eup %8630  ;;  %v14333_v37 = vld [vmem:[#allocation88_spill] sm:$0xff] }
0x150a   :  { %5180 = vmatmul.mubr.bf16.vlgmr.msra.gmra.mrb[0].mxu1 %v5035_v50  ;;  %v4928_v16 = vpop.xlane.xlu0 %4927  ;;  %v8633_v59 = vpop.eup %8632  ;;  %v4423_v49 = vsel %vm1346_vm11, %v12659_v55, 0.0 }
0x150b   :  { %5316 = vmatpush1.bf16.msra.mxu1 %v14331_v63  ;;  %8648 = vrcp.f32 %v4928_v16  ;;  %4417 = vadd.xlane.f32.xlu1 %v4416_v45  ;;  %v12665_v22 = vpop.eup %8634  ;;  %v4988_v1 = vmul.f32 %v8633_v59, %v12330_v52  ;;  %v4989_v5 = vmul.f32 %v8633_v59, %v12333_v39  ;;  %v4427_v39 = vsel %vm1346_vm11, %v12656_v54, 0.0 }
0x150c   :  { %5317 = vmatprep.subr.bf16.mxu1 %v14332_v3  ;;  %8650 = vpow2.f32 %v4363_v38 }
0x150d   :  { %v8637_v19 = vpop.eup %8636  ;;  %8652 = vpow2.f32 %v4369_v11 }
0x150e   :  { %v4991_v60 = vmul.f32 %v8637_v19, %v12345_v36  ;;  %v4936_v50 = vpop.xlane.xlu0 %4935  ;;  %v4992_v8 = vmul.f32 %v8637_v19, %v12348_v23  ;;  %v12675_v38 = vpop.eup %8638  ;;  %8654 = vpow2.f32 %v4367_v27  ;;  %v4424_v36 = vadd.f32 %v12665_v22, %v4423_v49 }
0x150f   :  { %5318 = vmatpush1.bf16.msra.mxu1 %v14333_v37  ;;  %4421 = vadd.xlane.f32.xlu1 %v4420_v58  ;;  %v12678_v9 = vpop.eup %8640  ;;  %8656 = vrcp.f32 %v4936_v50  ;;  %v4431_v59 = vsel %vm1346_vm11, %v12675_v38, 0.0 }
0x1510   :  { %5319 = vmatprep.subr.bf16.mxu1 %v14332_v3  ;;  %v5037_v11 = vpack.c.bf16 %v4991_v60, %v4988_v1  ;;  %v5038_v45 = vpack.c.bf16 %v4992_v8, %v4989_v5  ;;  %v12680_v52 = vpop.eup %8642  ;;  %v4428_v19 = vadd.f32 %v12678_v9, %v4427_v39  ;;  %v14335_v5 = vld [vmem:[#allocation61_spill] sm:$0xff] }
0x1511   :  { %v4432_v1 = vadd.f32 %v12680_v52, %v4431_v59 }
0x1512   :  { %v8645_v16 = vpop.eup %8644  ;;  %v12685_v23 = vpop.xlane.xlu0 %4393  ;;  %7276 = vmatprep.mubr.msk.bf16.mxu1 %vm1346_vm11, %v5038_v45 }
0x1513   :  { %v4940_v63 = vpop.xlane.xlu1 %4939  ;;  %5320 = vmatpush1.bf16.msra.mxu1 %v14334_v15  ;;  %v12691_v27 = vpop.eup %8646  ;;  %4425 = vadd.xlane.f32.xlu1 %v4424_v36  ;;  %v4997_v49 = vmul.f32 %v8645_v16, %v12379_v32 }
0x1514   :  { %5188 = vmatmul.mubr.bf16.gmra.mrb[4].mxu1 %v5037_v11  ;;  %8658 = vrcp.f32 %v4940_v63  ;;  %5321 = vmatprep.subr.bf16.mxu1 %v14332_v3  ;;  %v4998_v11 = vmul.f32 %v8645_v16, %v12373_v48  ;;  %v4435_v45 = vsel %vm1346_vm11, %v12691_v27, 0.0 }
0x1515   :  { %v8649_v58 = vpop.eup %8648 }
0x1516   :  { %v12697_v60 = vpop.eup %8650  ;;  %v4994_v50 = vmul.f32 %v8649_v58, %v12388_v24  ;;  %v4944_v37 = vpop.xlane.xlu0 %4943  ;;  %4429 = vadd.xlane.f32.xlu0 %v4428_v19  ;;  %v4995_v8 = vmul.f32 %v8649_v58, %v12382_v56  ;;  %v14336_v56 = vld [vmem:[#allocation36_spill] sm:$0xff] }
0x1517   :  { %5322 = vmatpush1.bf16.msra.mxu1 %v14335_v5  ;;  %v12705_v36 = vpop.eup %8652  ;;  %4433 = vadd.xlane.f32.xlu1 %v4432_v1  ;;  %8660 = vrcp.f32 %v4944_v37  ;;  %v4436_v24 = vadd.f32 %v12697_v60, %v4435_v45  ;;  %v5272_v59 = vpop.permute.xlu1 %5271 }
0x1518   :  { %5323 = vmatprep.subr.bf16.mxu1 %v14332_v3  ;;  %v5039_v32 = vpack.c.bf16 %v4997_v49, %v4994_v50  ;;  %v5040_v39 = vpack.c.bf16 %v4998_v11, %v4995_v8  ;;  %v12709_v63 = vpop.eup %8654  ;;  %v4439_v48 = vsel %vm1346_vm11, %v12705_v36, 0.0 }
0x1519   :  { %v8657_v16 = vpop.eup %8656  ;;  %v4440_v19 = vadd.f32 %v12709_v63, %v4439_v48 }
0x151a   :  { %v4948_v15 = vpop.xlane.xlu0 %4947  ;;  %7277 = vmatprep.mubr.msk.bf16.mxu1 %vm1346_vm11, %v5040_v39  ;;  %v5000_v49 = vmul.f32 %v8657_v16, %v12400_v7  ;;  %v5001_v50 = vmul.f32 %v8657_v16, %v12402_v29 }
0x151b   :  { %5324 = vmatpush1.bf16.msra.mxu1 %v14336_v56  ;;  %8662 = vrcp.f32 %v4948_v15  ;;  %4437 = vadd.xlane.f32.xlu1 %v4436_v24 }
0x151c   :  { %5196 = vmatmul.mubr.bf16.gmra.mrb[8].mxu1 %v5039_v32  ;;  %5325 = vmatprep.subr.bf16.mxu1 %v14332_v3 }
0x151e   :  { %v8659_v58 = vpop.eup %8658 }
0x151f   :  { %5326 = vmatpush1.bf16.msra.mxu1 %v5272_v59  ;;  %v5003_v1 = vmul.f32 %v8659_v58, %v12412_v21  ;;  %4441 = vadd.xlane.f32.xlu1 %v4440_v19  ;;  %v5004_v37 = vmul.f32 %v8659_v58, %v12415_v6 }
0x1520   :  { %5327 = vmatprep.subr.bf16.mxu1 %v14332_v3 }
0x1521   :  { %v5041_v5 = vpack.c.bf16 %v5003_v1, %v5000_v49  ;;  %v5042_v8 = vpack.c.bf16 %v5004_v37, %v5001_v50  ;;  %v4952_v11 = vpop.xlane.xlu0 %4951  ;;  %v8661_v45 = vpop.eup %8660 }
0x1522   :  { %8664 = vrcp.f32 %v4952_v11  ;;  %v5006_v7 = vmul.f32 %v8661_v45, %v12424_v47  ;;  %v5007_v29 = vmul.f32 %v8661_v45, %v12428_v25 }
0x1523   :  { %7278 = vmatprep.mubr.msk.bf16.mxu1 %vm1346_vm11, %v5042_v8 }
0x1524   :  { %5204 = vmatmul.mubr.bf16.gmra.mrb[12].mxu1 %v5041_v5 }
0x1525   :  { %v8663_v32 = vpop.eup %8662  ;;  %v4956_v39 = vpop.xlane.xlu0 %4955 }
0x1526   :  { %v5009_v21 = vmul.f32 %v8663_v32, %v12438_v18  ;;  %v5010_v6 = vmul.f32 %v8663_v32, %v12440_v10  ;;  %8666 = vrcp.f32 %v4956_v39 }
0x1528   :  { %v5043_v24 = vpack.c.bf16 %v5009_v21, %v5006_v7  ;;  %v5044_v15 = vpack.c.bf16 %v5010_v6, %v5007_v29 }
0x1529   :  { %v4960_v16 = vpop.xlane.xlu0 %4959 }
0x152a   :  { %7279 = vmatprep.mubr.msk.bf16.mxu1 %vm1346_vm11, %v5044_v15  ;;  %8668 = vrcp.f32 %v4960_v16 }
0x152c   :  { %5212 = vmatmul.mubr.bf16.gmra.mrb[16].mxu1 %v5043_v24  ;;  %v8665_v56 = vpop.eup %8664 }
0x152d   :  { %v5012_v59 = vmul.f32 %v8665_v56, %v12447_v43  ;;  %v5013_v18 = vmul.f32 %v8665_v56, %v12449_v33  ;;  %v8193_v43 = vld [vmem:[%s13754_s1 + $0x1f0] ss:$8 sps:$4 sm:$0xff]  }
0x152e   :  { %7838 = vmatpush3.bf16.msra.mxu0 %v8193_v43 }
0x1530   :  { %v8667_v48 = vpop.eup %8666 }
0x1531   :  { %v5015_v47 = vmul.f32 %v8667_v48, %v12457_v4  ;;  %v5016_v19 = vmul.f32 %v8667_v48, %v12460_v0  ;;  %v14337_v4 = vmov 0.0  }
0x1532   :  { %7875 = vmatprep.subr.bf16.mxu0 %v14337_v4 }
0x1533   :  { %v5045_v25 = vpack.c.bf16 %v5015_v47, %v5012_v59  ;;  %v5046_v58 = vpack.c.bf16 %v5016_v19, %v5013_v18 }
0x1534   :  { %v8669_v37 = vpop.eup %8668 }
0x1535   :  { %v4968_v10 = vpop.xlane.xlu0 %4967  ;;  %7280 = vmatprep.mubr.msk.bf16.mxu1 %vm1346_vm11, %v5046_v58  ;;  %v5018_v8 = vmul.f32 %v8669_v37, %v12470_v41  ;;  %v5019_v32 = vmul.f32 %v8669_v37, %v12464_v20 }
0x1536   :  { %5220 = vmatmul.mubr.bf16.gmra.mrb[20].mxu1 %v5045_v25  ;;  %v14338_v25 = vld [vmem:[#allocation38_spill] sm:$0xff] }
0x1539   :  { %v5274_v49 = vpop.permute.xlu0 %5273 }
0x153a   :  { %5328 = vmatpush1.bf16.msra.mxu1 %v5274_v49 }
0x153b   :  { %5329 = vmatprep.subr.bf16.mxu1 %v14332_v3 }
0x1547   :  { %v4390_v33 = vpop.xlane.xlu1 %4389 }
0x154b   :  { %v4964_v0 = vpop.xlane.xlu1 %4963 }
0x154c   :  { %8670 = vrcp.f32 %v4964_v0  ;;  %v14342_v0 = vld [vmem:[#allocation41_spill] sm:$0xff] }
0x154d   :  { %8672 = vrcp.f32 %v4968_v10 }
0x154f   :  { %v4972_v1 = vpop.xlane.xlu1 %4971 }
0x1550   :  { %8674 = vrcp.f32 %v4972_v1 }
0x1551   :  { %8676 = vrcp.f32 %v12615_v12 }
0x1553   :  { %v4980_v50 = vpop.xlane.xlu1 %4979 }
0x1554   :  { %8678 = vrcp.f32 %v4980_v50 }
0x1555   :  { %8680 = vrcp.f32 %v12595_v13 }
0x1556   :  { %v8671_v5 = vpop.eup %8670 }
0x1557   :  { %v5021_v11 = vmul.f32 %v8671_v5, %v12505_v31  ;;  %v5276_v45 = vpop.permute.xlu1 %5275  ;;  %v5022_v7 = vmul.f32 %v8671_v5, %v12498_v2  ;;  %v8673_v21 = vpop.eup %8672 }
0x1558   :  { %5330 = vmatpush1.bf16.msra.mxu1 %v5276_v45  ;;  %v5025_v24 = vmul.f32 %v8673_v21, %v12481_v40  ;;  %v5024_v20 = vmul.f32 %v8673_v21, %v12477_v34 }
0x1559   :  { %v5047_v39 = vpack.c.bf16 %v5021_v11, %v5018_v8  ;;  %v5048_v29 = vpack.c.bf16 %v5022_v7, %v5019_v32  ;;  %5331 = vmatprep.subr.bf16.mxu1 %v14332_v3  ;;  %v14344_v11 = vld [vmem:[#allocation46_spill] sm:$0xff]  ;;  %v14345_v32 = vld [vmem:[#allocation40_spill] sm:$0xff] }
0x155a   :  { %v8675_v6 = vpop.eup %8674 }
0x155b   :  { %7281 = vmatprep.mubr.msk.bf16.mxu1 %vm1346_vm11, %v5048_v29  ;;  %v5028_v41 = vmul.f32 %v8675_v6, %v12509_v28  ;;  %v5027_v15 = vmul.f32 %v8675_v6, %v12512_v44  ;;  %v8677_v28 = vpop.eup %8676 }
0x155c   :  { %5228 = vmatmul.mubr.bf16.gmra.mrb[24].mxu1 %v5047_v39  ;;  %v4448_v12 = vmul.f32 %v8677_v28, %v12340_v35  ;;  %v14346_v39 = vld [vmem:[#allocation45_spill] sm:$0xff] }
0x155d   :  { %v5050_v31 = vpack.c.bf16 %v5028_v41, %v5025_v24  ;;  %v5049_v2 = vpack.c.bf16 %v5027_v15, %v5024_v20  ;;  %v14348_v20 = vld [vmem:[#allocation44_spill] sm:$0xff] }
0x155e   :  { %v8679_v16 = vpop.eup %8678 }
0x155f   :  { %7282 = vmatprep.mubr.msk.bf16.mxu1 %vm1346_vm11, %v5050_v31  ;;  %v8681_v44 = vpop.eup %8680  ;;  %v5033_v59 = vmul.f32 %v8679_v16, %v12520_v26  ;;  %v14339_v26 = vld [vmem:[#allocation39_spill] sm:$0xff] }
0x1560   :  { %v4445_v58 = vmul.f32 %v8681_v44, %v14338_v25  ;;  %v14347_v31 = vld [vmem:[#allocation47_spill] sm:$0xff] }
0x1564   :  { %5236 = vmatmul.mubr.bf16.gmra.mrb[28].mxu1 %v5049_v2 }
0x156a   :  { %v4976_v56 = vpop.xlane.xlu0 %4975 }
0x156b   :  { %8682 = vrcp.f32 %v4976_v56 }
0x156c   :  { %8684 = vrcp.f32 %v12645_v42  ;;  %v5034_v42 = vmul.f32 %v8679_v16, %v12516_v30  ;;  %v14341_v30 = vld [vmem:[#allocation37_spill] sm:$0xff] }
0x156d   :  { %8686 = vrcp.f32 %v12634_v61  ;;  %v4498_v61 = vpack.c.bf16 %v4448_v12, %v4445_v58  ;;  %v4444_v43 = vmul.f32 %v8681_v44, %v14341_v30  ;;  %v14349_v44 = vld [vmem:[#allocation50_spill] sm:$0xff]  ;;  %v14350_v12 = vld [vmem:[#allocation48_spill] sm:$0xff]  ;;  %v14355_v30 = vld [vmem:[#allocation89_spill] sm:$0xff] }
0x156e   :  { %v4402_v40 = vpop.xlane.xlu0 %4401  ;;  %8688 = vrcp.f32 %v4390_v33 }
0x156f   :  { %8690 = vrcp.f32 %v12685_v23  ;;  %v14343_v23 = vld [vmem:[#allocation42_spill] sm:$0xff] }
0x1570   :  { %8692 = vrcp.f32 %v4402_v40 }
0x1572   :  { %v5278_v48 = vpop.permute.xlu0 %5277 }
0x1573   :  { %5332 = vmatpush1.bf16.msra.mxu1 %v5278_v48 }
0x1574   :  { %7913 = vmatprep.subr.bf16.mxu1 %v14337_v4 }
0x1575   :  { %v8683_v34 = vpop.eup %8682 }
0x1576   :  { %v5030_v13 = vmul.f32 %v8683_v34, %v12538_v17  ;;  %v5031_v47 = vmul.f32 %v8683_v34, %v12535_v51  ;;  %v8685_v10 = vpop.eup %8684  ;;  %v4447_v17 = vmul.f32 %v8677_v28, %v14339_v26  ;;  %v14340_v51 = vld [vmem:[#allocation43_spill] sm:$0xff]  ;;  %v14353_v26 = vld [vmem:[#allocation81_spill] sm:$0xff] }
0x1577   :  { %v8687_v35 = vpop.eup %8686  ;;  %v4454_v49 = vmul.f32 %v8685_v10, %v14340_v51  ;;  %v4453_v8 = vmul.f32 %v8685_v10, %v14343_v23  ;;  %v14354_v51 = vld [vmem:[#allocation95_spill] sm:$0xff] }
0x1578   :  { %v5051_v18 = vpack.c.bf16 %v5033_v59, %v5030_v13  ;;  %v5052_v19 = vpack.c.bf16 %v5034_v42, %v5031_v47  ;;  %v4451_v1 = vmul.f32 %v8687_v35, %v14342_v0  ;;  %v4497_v50 = vpack.c.bf16 %v4447_v17, %v4444_v43  ;;  %v8689_v37 = vpop.eup %8688  ;;  %v14351_v13 = vld [vmem:[#allocation51_spill] sm:$0xff] }
0x1579   :  { %v8691_v5 = vpop.eup %8690  ;;  %v4457_v45 = vmul.f32 %v8689_v37, %v14344_v11  ;;  %v4450_v7 = vmul.f32 %v8687_v35, %v14345_v32  ;;  %v4456_v15 = vmul.f32 %v8689_v37, %v14347_v31 }
0x157a   :  { %7283 = vmatprep.mubr.msk.bf16.mxu1 %vm1346_vm11, %v5052_v19  ;;  %v4500_v33 = vpack.c.bf16 %v4454_v49, %v4451_v1  ;;  %v4460_v29 = vmul.f32 %v8691_v5, %v14346_v39  ;;  %v4459_v2 = vmul.f32 %v8691_v5, %v14348_v20  ;;  %v8693_v28 = vpop.eup %8692  ;;  %v14356_v1 = vld [vmem:[#allocation57_spill] sm:$0xff] }
0x157b   :  { %5244 = vmatmul.mubr.bf16.gmra.mrb[32].mxu1 %v5051_v18  ;;  %v4499_v6 = vpack.c.bf16 %v4453_v8, %v4450_v7  ;;  %v4466_v59 = vmul.f32 %v8693_v28, %v14350_v12  ;;  %v14352_v18 = vld [vmem:[#allocation49_spill] sm:$0xff] }
0x157c   :  { %7284 = vmatprep.mubr.msk.bf16.mxu1 %vm1346_vm11, %v4498_v61  ;;  %v4502_v24 = vpack.c.bf16 %v4460_v29, %v4457_v45  ;;  %v4501_v48 = vpack.c.bf16 %v4459_v2, %v4456_v15  ;;  %v4465_v19 = vmul.f32 %v8693_v28, %v14352_v18  ;;  %v14357_v45 = vld [vmem:[#allocation62_spill] sm:$0xff] }
0x1583   :  { %5348 = vmatmul.mubr.bf16.vlgmr.msra.gmra.mrb[0].mxu1 %v4497_v50 }
0x1584   :  { %7285 = vmatprep.mubr.msk.bf16.mxu1 %vm1346_vm11, %v4500_v33 }
0x1588   :  { %v4398_v21 = vpop.xlane.xlu1 %4397 }
0x1589   :  { %8694 = vrcp.f32 %v4398_v21 }
0x158b   :  { %5356 = vmatmul.mubr.bf16.gmra.mrb[4].mxu1 %v4499_v6 }
0x158c   :  { %v4406_v41 = vpop.xlane.xlu1 %4405  ;;  %7286 = vmatprep.mubr.msk.bf16.mxu1 %vm1346_vm11, %v4502_v24 }
0x158d   :  { %8696 = vrcp.f32 %v4406_v41 }
0x1590   :  { %v4410_v56 = vpop.xlane.xlu1 %4409 }
0x1591   :  { %8698 = vrcp.f32 %v4410_v56 }
0x1593   :  { %v8695_v40 = vpop.eup %8694  ;;  %5364 = vmatmul.mubr.bf16.gmra.mrb[8].mxu1 %v4501_v48 }
0x1594   :  { %v4414_v16 = vpop.xlane.xlu1 %4413  ;;  %v4463_v34 = vmul.f32 %v8695_v40, %v14349_v44  ;;  %v4462_v47 = vmul.f32 %v8695_v40, %v14351_v13 }
0x1595   :  { %8700 = vrcp.f32 %v4414_v16 }
0x1596   :  { %v4504_v42 = vpack.c.bf16 %v4466_v59, %v4463_v34  ;;  %v4503_v61 = vpack.c.bf16 %v4465_v19, %v4462_v47 }
0x1597   :  { %v8697_v58 = vpop.eup %8696 }
0x1598   :  { %7287 = vmatprep.mubr.msk.bf16.mxu1 %vm1346_vm11, %v4504_v42  ;;  %v4418_v25 = vpop.xlane.xlu1 %4417  ;;  %v4469_v17 = vmul.f32 %v8697_v58, %v14353_v26  ;;  %v4468_v50 = vmul.f32 %v8697_v58, %v14356_v1 }
0x1599   :  { %8702 = vrcp.f32 %v4418_v25 }
0x159b   :  { %v8699_v10 = vpop.eup %8698  ;;  %5372 = vmatmul.mubr.bf16.gmra.mrb[12].mxu1 %v4503_v61 }
0x159c   :  { %v4422_v35 = vpop.xlane.xlu1 %4421  ;;  %v4472_v49 = vmul.f32 %v8699_v10, %v14354_v51  ;;  %v4471_v43 = vmul.f32 %v8699_v10, %v14355_v30 }
0x159d   :  { %8704 = vrcp.f32 %v4422_v35 }
0x159e   :  { %v4506_v0 = vpack.c.bf16 %v4472_v49, %v4469_v17  ;;  %v4505_v5 = vpack.c.bf16 %v4471_v43, %v4468_v50 }
0x159f   :  { %v8701_v37 = vpop.eup %8700 }
0x15a0   :  { %7288 = vmatprep.mubr.msk.bf16.mxu1 %vm1346_vm11, %v4506_v0  ;;  %v4426_v33 = vpop.xlane.xlu1 %4425  ;;  %v4475_v32 = vmul.f32 %v8701_v37, %v14357_v45  ;;  %v4474_v29 = vmul.f32 %v8701_v37, %v12623_v53 }
0x15a1   :  { %8706 = vrcp.f32 %v4426_v33 }
0x15a3   :  { %v8703_v23 = vpop.eup %8702  ;;  %v4430_v8 = vpop.xlane.xlu0 %4429  ;;  %5380 = vmatmul.mubr.bf16.gmra.mrb[16].mxu1 %v4505_v5 }
0x15a4   :  { %8708 = vrcp.f32 %v4430_v8  ;;  %v4434_v11 = vpop.xlane.xlu1 %4433  ;;  %v4478_v7 = vmul.f32 %v8703_v23, %v12628_v57  ;;  %v4477_v21 = vmul.f32 %v8703_v23, %v12643_v46 }
0x15a5   :  { %8710 = vrcp.f32 %v4434_v11 }
0x15a6   :  { %v4508_v39 = vpack.c.bf16 %v4478_v7, %v4475_v32  ;;  %v4507_v41 = vpack.c.bf16 %v4477_v21, %v4474_v29 }
0x15a7   :  { %v8705_v24 = vpop.eup %8704 }
0x15a8   :  { %7289 = vmatprep.mubr.msk.bf16.mxu1 %vm1346_vm11, %v4508_v39  ;;  %v4438_v6 = vpop.xlane.xlu1 %4437  ;;  %v4481_v20 = vmul.f32 %v8705_v24, %v12649_v14  ;;  %v4480_v53 = vmul.f32 %v8705_v24, %v12651_v62 }
0x15a9   :  { %8712 = vrcp.f32 %v4438_v6 }
0x15ab   :  { %v8707_v31 = vpop.eup %8706  ;;  %5388 = vmatmul.mubr.bf16.gmra.mrb[20].mxu1 %v4507_v41 }
0x15ac   :  { %v4442_v15 = vpop.xlane.xlu1 %4441  ;;  %v4484_v2 = vmul.f32 %v8707_v31, %v12659_v55  ;;  %v4483_v57 = vmul.f32 %v8707_v31, %v12665_v22 }
0x15ad   :  { %8714 = vrcp.f32 %v4442_v15 }
0x15ae   :  { %v8709_v46 = vpop.eup %8708  ;;  %v4510_v56 = vpack.c.bf16 %v4484_v2, %v4481_v20  ;;  %v4509_v16 = vpack.c.bf16 %v4483_v57, %v4480_v53 }
0x15af   :  { %v8711_v28 = vpop.eup %8710  ;;  %v4487_v48 = vmul.f32 %v8709_v46, %v12656_v54  ;;  %v4486_v55 = vmul.f32 %v8709_v46, %v12678_v9 }
0x15b0   :  { %7290 = vmatprep.mubr.msk.bf16.mxu1 %vm1346_vm11, %v4510_v56  ;;  %v4490_v40 = vmul.f32 %v8711_v28, %v12675_v38  ;;  %v4489_v22 = vmul.f32 %v8711_v28, %v12680_v52  ;;  %v12837_v28 = vld [vmem:[%s13755_s2 + $0x110] ss:$0 sm:$0xff] }
0x15b2   :  { %v4512_v44 = vpack.c.bf16 %v4490_v40, %v4487_v48  ;;  %v4511_v54 = vpack.c.bf16 %v4489_v22, %v4486_v55 }
0x15b3   :  { %5396 = vmatmul.mubr.bf16.gmra.mrb[24].mxu1 %v4509_v16  ;;  %v8713_v14 = vpop.eup %8712 }
0x15b4   :  { %7291 = vmatprep.mubr.msk.bf16.mxu1 %vm1346_vm11, %v4512_v44  ;;  %v4493_v12 = vmul.f32 %v8713_v14, %v12691_v27  ;;  %v4492_v13 = vmul.f32 %v8713_v14, %v12697_v60  ;;  %v14358_v44 = vld [vmem:[#allocation94_spill] sm:$0xff] }
0x15b7   :  { %v8715_v34 = vpop.eup %8714 }
0x15b8   :  { %v4496_v62 = vmul.f32 %v8715_v34, %v12705_v36  ;;  %v4495_v38 = vmul.f32 %v8715_v34, %v12709_v63  ;;  %v14359_v34 = vld [vmem:[#allocation99_spill] sm:$0xff] }
0x15ba   :  { %v4514_v59 = vpack.c.bf16 %v4496_v62, %v4493_v12  ;;  %v4513_v47 = vpack.c.bf16 %v4495_v38, %v4492_v13 }
0x15bb   :  { %5404 = vmatmul.mubr.bf16.gmra.mrb[28].mxu1 %v4511_v54 }
0x15bc   :  { %7292 = vmatprep.mubr.msk.bf16.mxu1 %vm1346_vm11, %v4514_v59 }
0x15c3   :  { %5412 = vmatmul.mubr.bf16.gmra.mrb[32].mxu1 %v4513_v47 }
0x15c4   :  { %7929 = vmatprep.mubr.msk.bf16.mxu1 %vm8861_vm0, %v14337_v4 }
0x1656   :  { %v5349_v9 = vpop.f32.mrb[0].mxu1 }
0x1657   :  { %v5351_v52 = vpop.f32.mrb[1].mxu1 }
0x1658   :  { %v5352_v42 = vpop.f32.mrb[2].mxu1 }
0x1659   :  { %v5422_v27 = vpack.c.bf16 %v5352_v42, %v5349_v9  ;;  %v5354_v18 = vpop.f32.mrb[3].mxu1  ;;  %v14360_v9 = vld [vmem:[#allocation101_spill] sm:$0xff] }
0x165a   :  { %v14361_v18 = vld [vmem:[#allocation65_spill] sm:$0xff] }
0x165b   :  { %7840 = vmatmul.mubr.msk.bf16.vlgmr.msra.gmra.mrb[224].mxu0 %vm1346_vm11, %v5422_v27 }
0x165c   :  { %7843 = vmatprep.mubr.msk.bf16.mxu0 %vm8861_vm0, %v14337_v4 }
0x165e   :  { %v5357_v36 = vpop.f32.mrb[4].mxu1 }
0x165f   :  { %v5359_v19 = vpop.f32.mrb[5].mxu1 }
0x1660   :  { %v5360_v63 = vpop.f32.mrb[6].mxu1 }
0x1661   :  { %v5423_v25 = vpack.c.bf16 %v5360_v63, %v5357_v36  ;;  %v5362_v60 = vpop.f32.mrb[7].mxu1 }
0x1663   :  { %7844 = vmatmul.mubr.msk.bf16.gmra.mrb[228].mxu0 %vm1346_vm11, %v5423_v25 }
0x1664   :  { %7847 = vmatprep.mubr.msk.bf16.mxu0 %vm8861_vm0, %v14337_v4 }
0x1666   :  { %v5365_v58 = vpop.f32.mrb[8].mxu1 }
0x1667   :  { %v5367_v61 = vpop.f32.mrb[9].mxu1 }
0x1668   :  { %v5368_v10 = vpop.f32.mrb[10].mxu1 }
0x1669   :  { %v5424_v35 = vpack.c.bf16 %v5368_v10, %v5365_v58  ;;  %v5370_v26 = vpop.f32.mrb[11].mxu1  ;;  %v14362_v10 = vld [vmem:[#allocation64_spill] sm:$0xff] }
0x166b   :  { %7848 = vmatmul.mubr.msk.bf16.gmra.mrb[232].mxu0 %vm1346_vm11, %v5424_v35 }
0x166c   :  { %7851 = vmatprep.mubr.msk.bf16.mxu0 %vm8861_vm0, %v14337_v4 }
0x166e   :  { %v5373_v17 = vpop.f32.mrb[12].mxu1 }
0x166f   :  { %v5375_v51 = vpop.f32.mrb[13].mxu1 }
0x1670   :  { %v5376_v49 = vpop.f32.mrb[14].mxu1  ;;  %v14363_v51 = vld [vmem:[#allocation69_spill] sm:$0xff] }
0x1671   :  { %v5425_v30 = vpack.c.bf16 %v5376_v49, %v5373_v17  ;;  %v5378_v43 = vpop.f32.mrb[15].mxu1 }
0x1673   :  { %7852 = vmatmul.mubr.msk.bf16.gmra.mrb[236].mxu0 %vm1346_vm11, %v5425_v30 }
0x1674   :  { %7855 = vmatprep.mubr.msk.bf16.mxu0 %vm8861_vm0, %v14337_v4 }
0x1676   :  { %v5381_v0 = vpop.f32.mrb[16].mxu1 }
0x1677   :  { %v5383_v1 = vpop.f32.mrb[17].mxu1 }
0x1678   :  { %v5384_v50 = vpop.f32.mrb[18].mxu1 }
0x1679   :  { %v5426_v33 = vpack.c.bf16 %v5384_v50, %v5381_v0  ;;  %v5386_v37 = vpop.f32.mrb[19].mxu1 }
0x167a   :  { %v14364_v37 = vld [vmem:[#allocation68_spill] sm:$0xff] }
0x167b   :  { %7856 = vmatmul.mubr.msk.bf16.gmra.mrb[240].mxu0 %vm1346_vm11, %v5426_v33 }
0x167c   :  { %7859 = vmatprep.mubr.msk.bf16.mxu0 %vm8861_vm0, %v14337_v4 }
0x167e   :  { %v5389_v5 = vpop.f32.mrb[20].mxu1 }
0x167f   :  { %v5391_v23 = vpop.f32.mrb[21].mxu1 }
0x1680   :  { %v5392_v8 = vpop.f32.mrb[22].mxu1 }
0x1681   :  { %v5427_v11 = vpack.c.bf16 %v5392_v8, %v5389_v5  ;;  %v5394_v45 = vpop.f32.mrb[23].mxu1 }
0x1683   :  { %7860 = vmatmul.mubr.msk.bf16.gmra.mrb[244].mxu0 %vm1346_vm11, %v5427_v11  ;;  %v14365_v11 = vld [vmem:[#allocation74_spill] sm:$0xff] }
0x1684   :  { %7863 = vmatprep.mubr.msk.bf16.mxu0 %vm8861_vm0, %v14337_v4 }
0x1686   :  { %v5397_v32 = vpop.f32.mrb[24].mxu1 }
0x1687   :  { %v5399_v7 = vpop.f32.mrb[25].mxu1 }
0x1688   :  { %v5400_v21 = vpop.f32.mrb[26].mxu1 }
0x1689   :  { %v5428_v39 = vpack.c.bf16 %v5400_v21, %v5397_v32  ;;  %v5402_v29 = vpop.f32.mrb[27].mxu1 }
0x168b   :  { %7864 = vmatmul.mubr.msk.bf16.gmra.mrb[248].mxu0 %vm1346_vm11, %v5428_v39 }
0x168c   :  { %7867 = vmatprep.mubr.msk.bf16.mxu0 %vm8861_vm0, %v14337_v4 }
0x168e   :  { %v5405_v6 = vpop.f32.mrb[28].mxu1 }
0x168f   :  { %v5407_v24 = vpop.f32.mrb[29].mxu1 }
0x1690   :  { %v5408_v41 = vpop.f32.mrb[30].mxu1  ;;  %v14366_v24 = vld [vmem:[#allocation75_spill] sm:$0xff] }
0x1691   :  { %v5429_v31 = vpack.c.bf16 %v5408_v41, %v5405_v6  ;;  %v5410_v15 = vpop.f32.mrb[31].mxu1 }
0x1693   :  { %7868 = vmatmul.mubr.msk.bf16.gmra.mrb[252].mxu0 %vm1346_vm11, %v5429_v31 }
0x1694   :  { %7871 = vmatprep.mubr.msk.bf16.mxu0 %vm8861_vm0, %v14337_v4 }
0x1696   :  { %v5413_v20 = vpop.f32.mrb[32].mxu1 }
0x1697   :  { %v5415_v2 = vpop.f32.mrb[33].mxu1 }
0x1698   :  { %v5416_v57 = vpop.f32.mrb[34].mxu1 }
0x1699   :  { %v5430_v46 = vpack.c.bf16 %v5416_v57, %v5413_v20  ;;  %v5418_v56 = vpop.f32.mrb[35].mxu1  ;;  %v14367_v20 = vld [vmem:[#allocation76_spill] sm:$0xff] }
0x169b   :  { %7872 = vmatmul.mubr.msk.bf16.gmra.mrb[0].mxu0 %vm1346_vm11, %v5430_v46 }
0x169c   :  { %7877 = vmatprep.mubr.msk.bf16.mxu0 %vm8861_vm0, %v14337_v4 }
0x172e   :  { %v5499_v53 = vpop.f32.mrb[224].mxu0 }
0x172f   :  { %v5500_v48 = vadd.f32 %v5499_v53, %v12837_v28  ;;  %v7841_v40 = vpop.f32.mrb[225].mxu0 }
0x1730   :  { %v5502_v16 = vpop.f32.mrb[226].mxu0 }
0x1731   :  { %v12841_v14 = vadd.f32 %v5500_v48, %v14358_v44  ;;  %v5503_v55 = vadd.f32 %v5502_v16, %v12837_v28  ;;  %v7842_v22 = vpop.f32.mrb[227].mxu0  ;;  %v14368_v16 = vld [vmem:[#allocation77_spill] sm:$0xff] }
0x1733   :  { %v12845_v12 = vadd.f32 %v5503_v55, %v14359_v34  ;;  %v5590_v62 = vsel %vm1346_vm11, %v12841_v14, 0.0  ;;  %v14369_v34 = vld [vmem:[#allocation78_spill] sm:$0xff] }
0x1734   :  { %5591 = vadd.xlane.f32.xlu1 %v5590_v62 }
0x1735   :  { %v5593_v13 = vsel %vm1346_vm11, %v12845_v12, 0.0 }
0x1736   :  { %v5507_v54 = vpop.f32.mrb[228].mxu0 }
0x1737   :  { %v5508_v59 = vadd.f32 %v5507_v54, %v12837_v28  ;;  %v7845_v38 = vpop.f32.mrb[229].mxu0 }
0x1738   :  { %5594 = vadd.xlane.f32.xlu1 %v5593_v13  ;;  %v5510_v47 = vpop.f32.mrb[230].mxu0 }
0x1739   :  { %v12853_v52 = vadd.f32 %v5508_v59, %v14360_v9  ;;  %v5511_v42 = vadd.f32 %v5510_v47, %v12837_v28  ;;  %v7846_v27 = vpop.f32.mrb[231].mxu0 }
0x173b   :  { %v12857_v36 = vadd.f32 %v5511_v42, %v14361_v18  ;;  %v5596_v19 = vsel %vm1346_vm11, %v12853_v52, 0.0  ;;  %v14370_v42 = vld [vmem:[#allocation79_spill] sm:$0xff] }
0x173c   :  { %5597 = vadd.xlane.f32.xlu1 %v5596_v19 }
0x173d   :  { %v5599_v58 = vsel %vm1346_vm11, %v12857_v36, 0.0 }
0x173e   :  { %v5515_v63 = vpop.f32.mrb[232].mxu0 }
0x173f   :  { %v5516_v25 = vadd.f32 %v5515_v63, %v12837_v28  ;;  %v7849_v60 = vpop.f32.mrb[233].mxu0  ;;  %v14371_v63 = vld [vmem:[#allocation53_spill] sm:$0xff] }
0x1740   :  { %5600 = vadd.xlane.f32.xlu1 %v5599_v58  ;;  %v5518_v61 = vpop.f32.mrb[234].mxu0 }
0x1741   :  { %v12865_v35 = vadd.f32 %v5516_v25, %v14362_v10  ;;  %v5519_v26 = vadd.f32 %v5518_v61, %v12837_v28  ;;  %v7850_v17 = vpop.f32.mrb[235].mxu0 }
0x1743   :  { %v12869_v49 = vadd.f32 %v5519_v26, %v14363_v51  ;;  %v5602_v30 = vsel %vm1346_vm11, %v12865_v35, 0.0  ;;  %v14372_v51 = vld [vmem:[#allocation52_spill] sm:$0xff] }
0x1744   :  { %5603 = vadd.xlane.f32.xlu1 %v5602_v30 }
0x1745   :  { %v5605_v43 = vsel %vm1346_vm11, %v12869_v49, 0.0 }
0x1746   :  { %5606 = vadd.xlane.f32.xlu0 %v5605_v43  ;;  %v5523_v0 = vpop.f32.mrb[236].mxu0 }
0x1747   :  { %v5524_v1 = vadd.f32 %v5523_v0, %v12837_v28  ;;  %v7853_v50 = vpop.f32.mrb[237].mxu0 }
0x1748   :  { %v5526_v33 = vpop.f32.mrb[238].mxu0 }
0x1749   :  { %v12877_v5 = vadd.f32 %v5524_v1, %v14364_v37  ;;  %v5527_v23 = vadd.f32 %v5526_v33, %v12837_v28  ;;  %v7854_v8 = vpop.f32.mrb[239].mxu0  ;;  %v14373_v1 = vld [vmem:[#allocation80_spill] sm:$0xff] }
0x174b   :  { %v12881_v45 = vadd.f32 %v5527_v23, %v14365_v11  ;;  %v5608_v32 = vsel %vm1346_vm11, %v12877_v5, 0.0 }
0x174c   :  { %5609 = vadd.xlane.f32.xlu1 %v5608_v32 }
0x174d   :  { %v5611_v7 = vsel %vm1346_vm11, %v12881_v45, 0.0 }
0x174e   :  { %5612 = vadd.xlane.f32.xlu0 %v5611_v7  ;;  %v5531_v21 = vpop.f32.mrb[240].mxu0  ;;  %v14374_v7 = vld [vmem:[#allocation55_spill] sm:$0xff] }
0x174f   :  { %v5532_v39 = vadd.f32 %v5531_v21, %v12837_v28  ;;  %v7857_v29 = vpop.f32.mrb[241].mxu0 }
0x1750   :  { %v5534_v6 = vpop.f32.mrb[242].mxu0 }
0x1751   :  { %v12889_v41 = vadd.f32 %v5532_v39, %v14366_v24  ;;  %v5535_v31 = vadd.f32 %v5534_v6, %v12837_v28  ;;  %v7858_v15 = vpop.f32.mrb[243].mxu0  ;;  %v14375_v6 = vld [vmem:[#allocation54_spill] sm:$0xff] }
0x1753   :  { %v12893_v2 = vadd.f32 %v5535_v31, %v14367_v20  ;;  %v5614_v57 = vsel %vm1346_vm11, %v12889_v41, 0.0  ;;  %v8194_v20 = vld [vmem:[%s13754_s1 + $0x200] ss:$8 sps:$4 sm:$0xff]  }
0x1754   :  { %5615 = vadd.xlane.f32.xlu1 %v5614_v57  ;;  %7876 = vmatpush3.bf16.msra.mxu0 %v8194_v20 }
0x1755   :  { %v5617_v46 = vsel %vm1346_vm11, %v12893_v2, 0.0  ;;  %7965 = vmatprep.subr.bf16.mxu0 %v14337_v4 }
0x1756   :  { %5618 = vadd.xlane.f32.xlu0 %v5617_v46  ;;  %v5539_v56 = vpop.f32.mrb[244].mxu0 }
0x1757   :  { %v5540_v53 = vadd.f32 %v5539_v56, %v12837_v28  ;;  %v7861_v48 = vpop.f32.mrb[245].mxu0 }
0x1758   :  { %v5542_v40 = vpop.f32.mrb[246].mxu0 }
0x1759   :  { %v12901_v44 = vadd.f32 %v5540_v53, %v14368_v16  ;;  %v5543_v55 = vadd.f32 %v5542_v40, %v12837_v28  ;;  %v7862_v22 = vpop.f32.mrb[247].mxu0 }
0x175b   :  { %v12905_v62 = vadd.f32 %v5543_v55, %v14369_v34  ;;  %v5620_v54 = vsel %vm1346_vm11, %v12901_v44, 0.0 }
0x175c   :  { %5621 = vadd.xlane.f32.xlu1 %v5620_v54 }
0x175d   :  { %v5623_v59 = vsel %vm1346_vm11, %v12905_v62, 0.0 }
0x175e   :  { %5624 = vadd.xlane.f32.xlu0 %v5623_v59  ;;  %v5547_v38 = vpop.f32.mrb[248].mxu0 }
0x175f   :  { %v5548_v13 = vadd.f32 %v5547_v38, %v12837_v28  ;;  %v7865_v47 = vpop.f32.mrb[249].mxu0 }
0x1760   :  { %v5550_v9 = vpop.f32.mrb[250].mxu0 }
0x1761   :  { %v12913_v27 = vadd.f32 %v5548_v13, %v14370_v42  ;;  %v5551_v18 = vadd.f32 %v5550_v9, %v12837_v28  ;;  %v7866_v19 = vpop.f32.mrb[251].mxu0 }
0x1763   :  { %v12917_v25 = vadd.f32 %v5551_v18, %v14371_v63  ;;  %v5626_v60 = vsel %vm1346_vm11, %v12913_v27, 0.0 }
0x1764   :  { %5627 = vadd.xlane.f32.xlu1 %v5626_v60 }
0x1765   :  { %v5629_v58 = vsel %vm1346_vm11, %v12917_v25, 0.0 }
0x1766   :  { %5630 = vadd.xlane.f32.xlu0 %v5629_v58  ;;  %v5555_v61 = vpop.f32.mrb[252].mxu0 }
0x1767   :  { %v5556_v10 = vadd.f32 %v5555_v61, %v12837_v28  ;;  %v7869_v26 = vpop.f32.mrb[253].mxu0 }
0x1768   :  { %v5558_v17 = vpop.f32.mrb[254].mxu0 }
0x1769   :  { %v12925_v30 = vadd.f32 %v5556_v10, %v14372_v51  ;;  %v5559_v43 = vadd.f32 %v5558_v17, %v12837_v28  ;;  %v7870_v0 = vpop.f32.mrb[255].mxu0 }
0x176b   :  { %v12929_v50 = vadd.f32 %v5559_v43, %v14373_v1  ;;  %v5632_v33 = vsel %vm1346_vm11, %v12925_v30, 0.0 }
0x176c   :  { %5633 = vadd.xlane.f32.xlu1 %v5632_v33 }
0x176d   :  { %v5635_v37 = vsel %vm1346_vm11, %v12929_v50, 0.0 }
0x176e   :  { %5636 = vadd.xlane.f32.xlu0 %v5635_v37  ;;  %v5563_v23 = vpop.f32.mrb[0].mxu0 }
0x176f   :  { %v5564_v8 = vadd.f32 %v5563_v23, %v12837_v28  ;;  %v7873_v11 = vpop.f32.mrb[1].mxu0 }
0x1770   :  { %v5566_v32 = vpop.f32.mrb[2].mxu0 }
0x1771   :  { %v12937_v21 = vadd.f32 %v5564_v8, %v14374_v7  ;;  %v5567_v39 = vadd.f32 %v5566_v32, %v12837_v28  ;;  %v7874_v29 = vpop.f32.mrb[3].mxu0 }
0x1773   :  { %v12941_v24 = vadd.f32 %v5567_v39, %v14375_v6  ;;  %v5638_v31 = vsel %vm1346_vm11, %v12937_v21, 0.0 }
0x1774   :  { %5639 = vadd.xlane.f32.xlu1 %v5638_v31 }
0x1775   :  { %v5641_v15 = vsel %vm1346_vm11, %v12941_v24, 0.0 }
0x1776   :  { %5642 = vadd.xlane.f32.xlu0 %v5641_v15 }
0x17c1   :  { %v5592_v28 = vpop.xlane.xlu1 %5591 }
0x17c2   :  { %v5645_v57 = vmul.f32 0.0625, %v5592_v28 }
0x17c4   :  { %v12952_v46 = vsub.f32 %v12841_v14, %v5645_v57 }
0x17c5   :  { %v5595_v56 = vpop.xlane.xlu1 %5594 }
0x17c6   :  { %v5646_v53 = vmul.f32 0.0625, %v5595_v56  ;;  %v5681_v48 = vmul.f32 %v12952_v46, %v12952_v46 }
0x17c8   :  { %v12957_v40 = vsub.f32 %v12845_v12, %v5646_v53  ;;  %v5699_v16 = vsel %vm1346_vm11, %v5681_v48, 0.0 }
0x17c9   :  { %5700 = vadd.xlane.f32.xlu1 %v5699_v16  ;;  %v5598_v55 = vpop.xlane.xlu1 %5597 }
0x17ca   :  { %v5647_v22 = vmul.f32 0.0625, %v5598_v55  ;;  %v5682_v34 = vmul.f32 %v12957_v40, %v12957_v40 }
0x17cc   :  { %v12963_v54 = vsub.f32 %v12853_v52, %v5647_v22  ;;  %v5702_v14 = vsel %vm1346_vm11, %v5682_v34, 0.0 }
0x17cd   :  { %5703 = vadd.xlane.f32.xlu0 %v5702_v14  ;;  %v5601_v59 = vpop.xlane.xlu1 %5600 }
0x17ce   :  { %v5648_v38 = vmul.f32 0.0625, %v5601_v59  ;;  %v5683_v12 = vmul.f32 %v12963_v54, %v12963_v54 }
0x17d0   :  { %v12969_v13 = vsub.f32 %v12857_v36, %v5648_v38  ;;  %v5705_v47 = vsel %vm1346_vm11, %v5683_v12, 0.0 }
0x17d1   :  { %5706 = vadd.xlane.f32.xlu1 %v5705_v47  ;;  %v5604_v9 = vpop.xlane.xlu1 %5603 }
0x17d2   :  { %v5649_v42 = vmul.f32 0.0625, %v5604_v9  ;;  %v5684_v52 = vmul.f32 %v12969_v13, %v12969_v13 }
0x17d3   :  { %v5607_v18 = vpop.xlane.xlu0 %5606 }
0x17d4   :  { %v12975_v19 = vsub.f32 %v12865_v35, %v5649_v42  ;;  %v5650_v63 = vmul.f32 0.0625, %v5607_v18  ;;  %v5708_v60 = vsel %vm1346_vm11, %v5684_v52, 0.0 }
0x17d5   :  { %5709 = vadd.xlane.f32.xlu0 %v5708_v60 }
0x17d6   :  { %v12979_v58 = vsub.f32 %v12869_v49, %v5650_v63  ;;  %v5685_v36 = vmul.f32 %v12975_v19, %v12975_v19 }
0x17d8   :  { %v5711_v61 = vsel %vm1346_vm11, %v5685_v36, 0.0  ;;  %v5686_v10 = vmul.f32 %v12979_v58, %v12979_v58 }
0x17d9   :  { %5712 = vadd.xlane.f32.xlu1 %v5711_v61  ;;  %v5610_v26 = vpop.xlane.xlu1 %5609 }
0x17da   :  { %v5651_v17 = vmul.f32 0.0625, %v5610_v26  ;;  %v5714_v35 = vsel %vm1346_vm11, %v5686_v10, 0.0 }
0x17db   :  { %v5613_v51 = vpop.xlane.xlu0 %5612  ;;  %5715 = vadd.xlane.f32.xlu0 %v5714_v35 }
0x17dc   :  { %v12988_v43 = vsub.f32 %v12877_v5, %v5651_v17  ;;  %v5652_v49 = vmul.f32 0.0625, %v5613_v51 }
0x17de   :  { %v12991_v0 = vsub.f32 %v12881_v45, %v5652_v49  ;;  %v5687_v1 = vmul.f32 %v12988_v43, %v12988_v43 }
0x17e0   :  { %v5717_v33 = vsel %vm1346_vm11, %v5687_v1, 0.0  ;;  %v5688_v37 = vmul.f32 %v12991_v0, %v12991_v0 }
0x17e1   :  { %5718 = vadd.xlane.f32.xlu1 %v5717_v33  ;;  %v5616_v23 = vpop.xlane.xlu1 %5615 }
0x17e2   :  { %v5653_v8 = vmul.f32 0.0625, %v5616_v23  ;;  %v5720_v11 = vsel %vm1346_vm11, %v5688_v37, 0.0  ;;  %v8197_v37 = vld [vmem:[%s13754_s1 + $0x230] ss:$8 sps:$4 sm:$0xff]   ;;  %v8198_v23 = vld [vmem:[%s13754_s1 + $0x240] ss:$8 sps:$4 sm:$0xff]  }
0x17e3   :  { %v5619_v32 = vpop.xlane.xlu0 %5618  ;;  %5721 = vadd.xlane.f32.xlu0 %v5720_v11  ;;  %v8200_v11 = vld [vmem:[%s13754_s1 + $0x260] ss:$8 sps:$4 sm:$0xff]  }
0x17e4   :  { %v13000_v5 = vsub.f32 %v12889_v41, %v5653_v8  ;;  %v5654_v45 = vmul.f32 0.0625, %v5619_v32  ;;  %v8199_v8 = vld [vmem:[%s13754_s1 + $0x250] ss:$8 sps:$4 sm:$0xff]  }
0x17e5   :  { %v8201_v32 = vld [vmem:[%s13754_s1 + $0x270] ss:$8 sps:$4 sm:$0xff]  }
0x17e6   :  { %v13003_v7 = vsub.f32 %v12893_v2, %v5654_v45  ;;  %v5689_v39 = vmul.f32 %v13000_v5, %v13000_v5 }
0x17e8   :  { %v5723_v29 = vsel %vm1346_vm11, %v5689_v39, 0.0  ;;  %v5690_v6 = vmul.f32 %v13003_v7, %v13003_v7 }
0x17e9   :  { %5724 = vadd.xlane.f32.xlu1 %v5723_v29  ;;  %v5622_v31 = vpop.xlane.xlu1 %5621 }
0x17ea   :  { %v5655_v15 = vmul.f32 0.0625, %v5622_v31  ;;  %v5726_v20 = vsel %vm1346_vm11, %v5690_v6, 0.0 }
0x17eb   :  { %v5625_v28 = vpop.xlane.xlu0 %5624  ;;  %5727 = vadd.xlane.f32.xlu0 %v5726_v20 }
0x17ec   :  { %v13012_v41 = vsub.f32 %v12901_v44, %v5655_v15  ;;  %v5656_v2 = vmul.f32 0.0625, %v5625_v28 }
0x17ee   :  { %v13015_v57 = vsub.f32 %v12905_v62, %v5656_v2  ;;  %v5691_v56 = vmul.f32 %v13012_v41, %v13012_v41 }
0x17f0   :  { %v5729_v53 = vsel %vm1346_vm11, %v5691_v56, 0.0  ;;  %v5692_v48 = vmul.f32 %v13015_v57, %v13015_v57 }
0x17f1   :  { %5730 = vadd.xlane.f32.xlu1 %v5729_v53  ;;  %v5628_v16 = vpop.xlane.xlu1 %5627 }
0x17f2   :  { %v5657_v55 = vmul.f32 0.0625, %v5628_v16  ;;  %v5732_v22 = vsel %vm1346_vm11, %v5692_v48, 0.0 }
0x17f3   :  { %v5631_v34 = vpop.xlane.xlu0 %5630  ;;  %5733 = vadd.xlane.f32.xlu0 %v5732_v22 }
0x17f4   :  { %v13024_v44 = vsub.f32 %v12913_v27, %v5657_v55  ;;  %v5658_v62 = vmul.f32 0.0625, %v5631_v34  ;;  %v13091_v34 = vld [vmem:[%s13755_s2 + $0x120] ss:$0 sm:$0xff] }
0x17f6   :  { %v13027_v14 = vsub.f32 %v12917_v25, %v5658_v62  ;;  %v5693_v59 = vmul.f32 %v13024_v44, %v13024_v44 }
0x17f8   :  { %v5735_v38 = vsel %vm1346_vm11, %v5693_v59, 0.0  ;;  %v5694_v12 = vmul.f32 %v13027_v14, %v13027_v14 }
0x17f9   :  { %5736 = vadd.xlane.f32.xlu1 %v5735_v38  ;;  %v5634_v47 = vpop.xlane.xlu1 %5633 }
0x17fa   :  { %v5659_v9 = vmul.f32 0.0625, %v5634_v47  ;;  %v5738_v42 = vsel %vm1346_vm11, %v5694_v12, 0.0 }
0x17fb   :  { %v5637_v52 = vpop.xlane.xlu0 %5636  ;;  %5739 = vadd.xlane.f32.xlu0 %v5738_v42 }
0x17fc   :  { %v13036_v27 = vsub.f32 %v12925_v30, %v5659_v9  ;;  %v5660_v25 = vmul.f32 0.0625, %v5637_v52 }
0x17fe   :  { %v13039_v18 = vsub.f32 %v12929_v50, %v5660_v25  ;;  %v5695_v63 = vmul.f32 %v13036_v27, %v13036_v27 }
0x1800   :  { %v5741_v60 = vsel %vm1346_vm11, %v5695_v63, 0.0  ;;  %v5696_v36 = vmul.f32 %v13039_v18, %v13039_v18 }
0x1801   :  { %5742 = vadd.xlane.f32.xlu1 %v5741_v60  ;;  %v5640_v61 = vpop.xlane.xlu1 %5639 }
0x1802   :  { %v5661_v10 = vmul.f32 0.0625, %v5640_v61  ;;  %v5744_v26 = vsel %vm1346_vm11, %v5696_v36, 0.0 }
0x1803   :  { %v5643_v17 = vpop.xlane.xlu0 %5642  ;;  %5745 = vadd.xlane.f32.xlu0 %v5744_v26 }
0x1804   :  { %v13048_v30 = vsub.f32 %v12937_v21, %v5661_v10  ;;  %v5662_v50 = vmul.f32 0.0625, %v5643_v17  ;;  %v8195_v21 = vld [vmem:[%s13754_s1 + $0x210] ss:$8 sps:$4 sm:$0xff]  }
0x1805   :  { %7914 = vmatpush3.bf16.msra.mxu1 %v8195_v21 }
0x1806   :  { %v13051_v35 = vsub.f32 %v12941_v24, %v5662_v50  ;;  %v5697_v51 = vmul.f32 %v13048_v30, %v13048_v30  ;;  %v8196_v24 = vld [vmem:[%s13754_s1 + $0x220] ss:$8 sps:$4 sm:$0xff]   ;;  %7915 = vmatprep.subr.bf16.mxu1 %v14337_v4 }
0x1808   :  { %v5747_v49 = vsel %vm1346_vm11, %v5697_v51, 0.0  ;;  %v5698_v1 = vmul.f32 %v13051_v35, %v13051_v35 }
0x1809   :  { %5748 = vadd.xlane.f32.xlu1 %v5747_v49  ;;  %7916 = vmatpush3.bf16.msra.mxu1 %v8196_v24 }
0x180a   :  { %v5750_v33 = vsel %vm1346_vm11, %v5698_v1, 0.0  ;;  %7917 = vmatprep.subr.bf16.mxu1 %v14337_v4 }
0x180b   :  { %5751 = vadd.xlane.f32.xlu0 %v5750_v33 }
0x180d   :  { %7918 = vmatpush3.bf16.msra.mxu1 %v8197_v37 }
0x180e   :  { %7919 = vmatprep.subr.bf16.mxu1 %v14337_v4 }
0x1811   :  { %7920 = vmatpush3.bf16.msra.mxu1 %v8198_v23 }
0x1812   :  { %7921 = vmatprep.subr.bf16.mxu1 %v14337_v4 }
0x1815   :  { %7922 = vmatpush3.bf16.msra.mxu1 %v8199_v8 }
0x1816   :  { %7923 = vmatprep.subr.bf16.mxu1 %v14337_v4 }
0x1819   :  { %7924 = vmatpush3.bf16.msra.mxu1 %v8200_v11 }
0x181a   :  { %7925 = vmatprep.subr.bf16.mxu1 %v14337_v4 }
0x181d   :  { %7926 = vmatpush3.bf16.msra.mxu1 %v8201_v32 }
0x181e   :  { %7927 = vmatprep.subr.bf16.mxu1 %v14337_v4 }
0x1856   :  { %v5701_v45 = vpop.xlane.xlu1 %5700 }
0x1857   :  { %v5753_v39 = vmul.f32 0.0625, %v5701_v45 }
0x1859   :  { %v5771_v29 = vadd.f32 1e-05, %v5753_v39 }
0x185a   :  { %v5704_v6 = vpop.xlane.xlu0 %5703 }
0x185b   :  { %8716 = vrsqrt.f32 %v5771_v29  ;;  %v5754_v31 = vmul.f32 0.0625, %v5704_v6 }
0x185d   :  { %v5772_v15 = vadd.f32 1e-05, %v5754_v31 }
0x185e   :  { %v5707_v20 = vpop.xlane.xlu1 %5706 }
0x185f   :  { %8718 = vrsqrt.f32 %v5772_v15  ;;  %v5755_v28 = vmul.f32 0.0625, %v5707_v20 }
0x1861   :  { %v5773_v2 = vadd.f32 1e-05, %v5755_v28 }
0x1862   :  { %v5710_v56 = vpop.xlane.xlu0 %5709 }
0x1863   :  { %8720 = vrsqrt.f32 %v5773_v2  ;;  %v5756_v53 = vmul.f32 0.0625, %v5710_v56 }
0x1865   :  { %v8717_v48 = vpop.eup %8716  ;;  %v5774_v16 = vadd.f32 1e-05, %v5756_v53 }
0x1866   :  { %v5807_v55 = vmul.f32 %v8717_v48, %v12952_v46  ;;  %v5713_v22 = vpop.xlane.xlu1 %5712  ;;  %v13098_v46 = vld [vmem:[%s13755_s2 + $0x130] ss:$0 sm:$0xff] }
0x1867   :  { %8722 = vrsqrt.f32 %v5774_v16  ;;  %v5757_v62 = vmul.f32 0.0625, %v5713_v22 }
0x1868   :  { %v5716_v59 = vpop.xlane.xlu0 %5715  ;;  %v5825_v9 = vmul.f32 %v5807_v55, %v13091_v34 }
0x1869   :  { %v8719_v38 = vpop.eup %8718  ;;  %v5775_v12 = vadd.f32 1e-05, %v5757_v62  ;;  %v5758_v47 = vmul.f32 0.0625, %v5716_v59 }
0x186a   :  { %v5808_v42 = vmul.f32 %v8719_v38, %v12957_v40  ;;  %v13102_v60 = vadd.f32 %v5825_v9, %v13098_v46 }
0x186b   :  { %8724 = vrsqrt.f32 %v5775_v12  ;;  %v5776_v52 = vadd.f32 1e-05, %v5758_v47 }
0x186c   :  { %v5826_v25 = vmul.f32 %v5808_v42, %v13091_v34 }
0x186d   :  { %v8721_v63 = vpop.eup %8720  ;;  %8726 = vrsqrt.f32 %v5776_v52 }
0x186e   :  { %v13105_v36 = vadd.f32 %v5826_v25, %v13098_v46  ;;  %v5809_v61 = vmul.f32 %v8721_v63, %v12963_v54  ;;  %v5719_v40 = vpop.xlane.xlu1 %5718 }
0x186f   :  { %v5759_v10 = vmul.f32 0.0625, %v5719_v40 }
0x1870   :  { %v5863_v26 = vpack.c.bf16 %v13105_v36, %v13102_v60  ;;  %v5722_v17 = vpop.xlane.xlu0 %5721  ;;  %v5827_v1 = vmul.f32 %v5809_v61, %v13091_v34 }
0x1871   :  { %v8723_v50 = vpop.eup %8722  ;;  %v5777_v51 = vadd.f32 1e-05, %v5759_v10  ;;  %v5760_v49 = vmul.f32 0.0625, %v5722_v17 }
0x1872   :  { %v5810_v33 = vmul.f32 %v8723_v50, %v12969_v13  ;;  %7878 = vmatmul.mubr.msk.bf16.vlgmr.msra.gmra.mrb[4].mxu0 %vm1346_vm11, %v5863_v26  ;;  %v13117_v37 = vadd.f32 %v5827_v1, %v13098_v46 }
0x1873   :  { %8728 = vrsqrt.f32 %v5777_v51  ;;  %v5778_v21 = vadd.f32 1e-05, %v5760_v49  ;;  %7881 = vmatprep.mubr.msk.bf16.mxu0 %vm8861_vm0, %v14337_v4 }
0x1874   :  { %v5828_v54 = vmul.f32 %v5810_v33, %v13091_v34 }
0x1875   :  { %v8725_v24 = vpop.eup %8724  ;;  %8730 = vrsqrt.f32 %v5778_v21 }
0x1876   :  { %v13120_v23 = vadd.f32 %v5828_v54, %v13098_v46  ;;  %v5811_v8 = vmul.f32 %v8725_v24, %v12975_v19  ;;  %v5725_v13 = vpop.xlane.xlu1 %5724 }
0x1877   :  { %v8727_v11 = vpop.eup %8726  ;;  %v5761_v32 = vmul.f32 0.0625, %v5725_v13 }
0x1878   :  { %v5864_v45 = vpack.c.bf16 %v13120_v23, %v13117_v37  ;;  %v5812_v39 = vmul.f32 %v8727_v11, %v12979_v58  ;;  %v5728_v29 = vpop.xlane.xlu0 %5727  ;;  %v5829_v15 = vmul.f32 %v5811_v8, %v13091_v34 }
0x1879   :  { %v5779_v6 = vadd.f32 1e-05, %v5761_v32  ;;  %v5762_v31 = vmul.f32 0.0625, %v5728_v29 }
0x187a   :  { %v5830_v20 = vmul.f32 %v5812_v39, %v13091_v34  ;;  %7882 = vmatmul.mubr.msk.bf16.gmra.mrb[8].mxu0 %vm1346_vm11, %v5864_v45  ;;  %v13135_v58 = vadd.f32 %v5829_v15, %v13098_v46 }
0x187b   :  { %8732 = vrsqrt.f32 %v5779_v6  ;;  %v5780_v28 = vadd.f32 1e-05, %v5762_v31  ;;  %7885 = vmatprep.mubr.msk.bf16.mxu0 %vm8861_vm0, %v14337_v4 }
0x187c   :  { %v13132_v19 = vadd.f32 %v5830_v20, %v13098_v46 }
0x187d   :  { %v8729_v2 = vpop.eup %8728  ;;  %8734 = vrsqrt.f32 %v5780_v28 }
0x187e   :  { %v5813_v56 = vmul.f32 %v8729_v2, %v12988_v43  ;;  %v5731_v53 = vpop.xlane.xlu1 %5730  ;;  %v5865_v55 = vpack.c.bf16 %v13132_v19, %v13135_v58 }
0x187f   :  { %v8731_v48 = vpop.eup %8730  ;;  %v5763_v16 = vmul.f32 0.0625, %v5731_v53 }
0x1880   :  { %v5814_v22 = vmul.f32 %v8731_v48, %v12991_v0  ;;  %v5734_v62 = vpop.xlane.xlu0 %5733  ;;  %v5831_v12 = vmul.f32 %v5813_v56, %v13091_v34 }
0x1881   :  { %v5781_v59 = vadd.f32 1e-05, %v5763_v16  ;;  %v5764_v38 = vmul.f32 0.0625, %v5734_v62 }
0x1882   :  { %v5832_v47 = vmul.f32 %v5814_v22, %v13091_v34  ;;  %7886 = vmatmul.mubr.msk.bf16.gmra.mrb[12].mxu0 %vm1346_vm11, %v5865_v55  ;;  %v13150_v0 = vadd.f32 %v5831_v12, %v13098_v46 }
0x1883   :  { %8736 = vrsqrt.f32 %v5781_v59  ;;  %v5782_v9 = vadd.f32 1e-05, %v5764_v38  ;;  %7889 = vmatprep.mubr.msk.bf16.mxu0 %vm8861_vm0, %v14337_v4 }
0x1884   :  { %v13147_v43 = vadd.f32 %v5832_v47, %v13098_v46 }
0x1885   :  { %v8733_v42 = vpop.eup %8732  ;;  %8738 = vrsqrt.f32 %v5782_v9 }
0x1886   :  { %v5815_v52 = vmul.f32 %v8733_v42, %v13000_v5  ;;  %v5737_v25 = vpop.xlane.xlu1 %5736  ;;  %v5866_v40 = vpack.c.bf16 %v13147_v43, %v13150_v0 }
0x1887   :  { %v8735_v63 = vpop.eup %8734  ;;  %v5765_v61 = vmul.f32 0.0625, %v5737_v25 }
0x1888   :  { %v5816_v10 = vmul.f32 %v8735_v63, %v13003_v7  ;;  %v5740_v26 = vpop.xlane.xlu0 %5739  ;;  %v5833_v51 = vmul.f32 %v5815_v52, %v13091_v34 }
0x1889   :  { %v5783_v17 = vadd.f32 1e-05, %v5765_v61  ;;  %v5766_v50 = vmul.f32 0.0625, %v5740_v26 }
0x188a   :  { %v5834_v49 = vmul.f32 %v5816_v10, %v13091_v34  ;;  %7890 = vmatmul.mubr.msk.bf16.gmra.mrb[16].mxu0 %vm1346_vm11, %v5866_v40  ;;  %v13165_v7 = vadd.f32 %v5833_v51, %v13098_v46 }
0x188b   :  { %8740 = vrsqrt.f32 %v5783_v17  ;;  %v5784_v1 = vadd.f32 1e-05, %v5766_v50  ;;  %7893 = vmatprep.mubr.msk.bf16.mxu0 %vm8861_vm0, %v14337_v4 }
0x188c   :  { %v13162_v5 = vadd.f32 %v5834_v49, %v13098_v46 }
0x188d   :  { %v8737_v33 = vpop.eup %8736  ;;  %8742 = vrsqrt.f32 %v5784_v1 }
0x188e   :  { %v5817_v21 = vmul.f32 %v8737_v33, %v13012_v41  ;;  %v5743_v54 = vpop.xlane.xlu1 %5742  ;;  %v5867_v13 = vpack.c.bf16 %v13162_v5, %v13165_v7 }
0x188f   :  { %v8739_v24 = vpop.eup %8738  ;;  %v5767_v8 = vmul.f32 0.0625, %v5743_v54 }
0x1890   :  { %v5818_v11 = vmul.f32 %v8739_v24, %v13015_v57  ;;  %v5746_v32 = vpop.xlane.xlu0 %5745  ;;  %v5835_v29 = vmul.f32 %v5817_v21, %v13091_v34 }
0x1891   :  { %v5785_v45 = vadd.f32 1e-05, %v5767_v8  ;;  %v5768_v39 = vmul.f32 0.0625, %v5746_v32 }
0x1892   :  { %v5836_v6 = vmul.f32 %v5818_v11, %v13091_v34  ;;  %7894 = vmatmul.mubr.msk.bf16.gmra.mrb[20].mxu0 %vm1346_vm11, %v5867_v13  ;;  %v13180_v57 = vadd.f32 %v5835_v29, %v13098_v46 }
0x1893   :  { %8744 = vrsqrt.f32 %v5785_v45  ;;  %v5786_v31 = vadd.f32 1e-05, %v5768_v39  ;;  %7897 = vmatprep.mubr.msk.bf16.mxu0 %vm8861_vm0, %v14337_v4 }
0x1894   :  { %v13177_v41 = vadd.f32 %v5836_v6, %v13098_v46 }
0x1895   :  { %v8741_v15 = vpop.eup %8740  ;;  %8746 = vrsqrt.f32 %v5786_v31 }
0x1896   :  { %v5819_v20 = vmul.f32 %v8741_v15, %v13024_v44  ;;  %v5749_v28 = vpop.xlane.xlu1 %5748  ;;  %v5868_v53 = vpack.c.bf16 %v13177_v41, %v13180_v57 }
0x1897   :  { %v8743_v2 = vpop.eup %8742  ;;  %v5769_v56 = vmul.f32 0.0625, %v5749_v28 }
0x1898   :  { %v5820_v48 = vmul.f32 %v8743_v2, %v13027_v14  ;;  %v5752_v16 = vpop.xlane.xlu0 %5751  ;;  %v5837_v62 = vmul.f32 %v5819_v20, %v13091_v34 }
0x1899   :  { %v5787_v55 = vadd.f32 1e-05, %v5769_v56  ;;  %v5770_v22 = vmul.f32 0.0625, %v5752_v16 }
0x189a   :  { %v5838_v59 = vmul.f32 %v5820_v48, %v13091_v34  ;;  %7898 = vmatmul.mubr.msk.bf16.gmra.mrb[24].mxu0 %vm1346_vm11, %v5868_v53  ;;  %v13195_v14 = vadd.f32 %v5837_v62, %v13098_v46 }
0x189b   :  { %8748 = vrsqrt.f32 %v5787_v55  ;;  %v5788_v38 = vadd.f32 1e-05, %v5770_v22  ;;  %7901 = vmatprep.mubr.msk.bf16.mxu0 %vm8861_vm0, %v14337_v4 }
0x189c   :  { %v13192_v44 = vadd.f32 %v5838_v59, %v13098_v46 }
0x189d   :  { %v8745_v12 = vpop.eup %8744  ;;  %8750 = vrsqrt.f32 %v5788_v38 }
0x189e   :  { %v5821_v47 = vmul.f32 %v8745_v12, %v13036_v27  ;;  %v5869_v42 = vpack.c.bf16 %v13192_v44, %v13195_v14 }
0x189f   :  { %v8747_v9 = vpop.eup %8746 }
0x18a0   :  { %v5822_v52 = vmul.f32 %v8747_v9, %v13039_v18  ;;  %v5839_v25 = vmul.f32 %v5821_v47, %v13091_v34 }
0x18a2   :  { %v5840_v63 = vmul.f32 %v5822_v52, %v13091_v34  ;;  %7902 = vmatmul.mubr.msk.bf16.gmra.mrb[28].mxu0 %vm1346_vm11, %v5869_v42  ;;  %v13210_v27 = vadd.f32 %v5839_v25, %v13098_v46 }
0x18a3   :  { %7905 = vmatprep.mubr.msk.bf16.mxu0 %vm8861_vm0, %v14337_v4 }
0x18a4   :  { %v13207_v61 = vadd.f32 %v5840_v63, %v13098_v46 }
0x18a5   :  { %v8749_v40 = vpop.eup %8748 }
0x18a6   :  { %v5823_v10 = vmul.f32 %v8749_v40, %v13048_v30  ;;  %v5870_v18 = vpack.c.bf16 %v13207_v61, %v13210_v27 }
0x18a7   :  { %v8751_v26 = vpop.eup %8750 }
0x18a8   :  { %v5841_v17 = vmul.f32 %v5823_v10, %v13091_v34  ;;  %v5824_v50 = vmul.f32 %v8751_v26, %v13051_v35  ;;  %v8202_v35 = vld [vmem:[%s13754_s1 + $0x280] ss:$8 sps:$4 sm:$0xff]  }
0x18a9   :  { %7928 = vmatpush3.bf16.msra.mxu1 %v8202_v35 }
0x18aa   :  { %v13218_v51 = vadd.f32 %v5841_v17, %v13098_v46  ;;  %v5842_v49 = vmul.f32 %v5824_v50, %v13091_v34  ;;  %7906 = vmatmul.mubr.msk.bf16.gmra.mrb[32].mxu0 %vm1346_vm11, %v5870_v18  ;;  %6788 = vmatprep.subr.bf16.mxu1 %v14332_v3  ;;  %v13239_v34 = vld [vmem:[%s13755_s2 + $0x140] ss:$0 sm:$0xff] }
0x18ab   :  { %7909 = vmatprep.mubr.msk.bf16.mxu0 %vm8861_vm0, %v14337_v4 }
0x18ac   :  { %v13225_v30 = vadd.f32 %v5842_v49, %v13098_v46 }
0x18ae   :  { %v5871_v1 = vpack.c.bf16 %v13225_v30, %v13218_v51 }
0x18b2   :  { %7910 = vmatmul.mubr.msk.bf16.gmra.mrb[36].mxu0 %vm1346_vm11, %v5871_v1 }
0x18b3   :  { %7967 = vmatprep.mubr.msk.bf16.mxu0 %vm8861_vm0, %v14337_v4 }
0x1945   :  { %v5940_v46 = vpop.f32.mrb[4].mxu0 }
0x1946   :  { %v5941_v33 = vadd.f32 %v5940_v46, %v13239_v34  ;;  %v7879_v21 = vpop.f32.mrb[5].mxu0 }
0x1947   :  { %v5943_v54 = vpop.f32.mrb[6].mxu0 }
0x1948   :  { %v5944_v24 = vadd.f32 %v5943_v54, %v13239_v34  ;;  %v7880_v8 = vpop.f32.mrb[7].mxu0  ;;  %v6011_v13 = vmax.f32 %v5941_v33, 0.0 }
0x194a   :  { %v6012_v11 = vmax.f32 %v5944_v24, 0.0 }
0x194c   :  { %v6045_v32 = vpack.c.bf16 %v6012_v11, %v6011_v13 }
0x194d   :  { %v5948_v45 = vpop.f32.mrb[8].mxu0 }
0x194e   :  { %v5949_v39 = vadd.f32 %v5948_v45, %v13239_v34  ;;  %v7883_v29 = vpop.f32.mrb[9].mxu0  ;;  %7930 = vmatmul.mubr.bf16.vlgmr.msra.gmra.mrb[36].mxu1 %v6045_v32 }
0x194f   :  { %v5951_v6 = vpop.f32.mrb[10].mxu0  ;;  %7933 = vmatprep.mubr.msk.bf16.mxu1 %vm8861_vm0, %v14337_v4 }
0x1950   :  { %v5952_v31 = vadd.f32 %v5951_v6, %v13239_v34  ;;  %v7884_v15 = vpop.f32.mrb[11].mxu0  ;;  %v6013_v20 = vmax.f32 %v5949_v39, 0.0 }
0x1952   :  { %v6014_v28 = vmax.f32 %v5952_v31, 0.0 }
0x1954   :  { %v6046_v2 = vpack.c.bf16 %v6014_v28, %v6013_v20 }
0x1955   :  { %v5956_v56 = vpop.f32.mrb[12].mxu0 }
0x1956   :  { %v5957_v53 = vadd.f32 %v5956_v56, %v13239_v34  ;;  %v7887_v48 = vpop.f32.mrb[13].mxu0  ;;  %7934 = vmatmul.mubr.bf16.gmra.mrb[40].mxu1 %v6046_v2 }
0x1957   :  { %v5959_v16 = vpop.f32.mrb[14].mxu0  ;;  %7937 = vmatprep.mubr.msk.bf16.mxu1 %vm8861_vm0, %v14337_v4 }
0x1958   :  { %v5960_v55 = vadd.f32 %v5959_v16, %v13239_v34  ;;  %v7888_v22 = vpop.f32.mrb[15].mxu0  ;;  %v6015_v62 = vmax.f32 %v5957_v53, 0.0 }
0x195a   :  { %v6016_v59 = vmax.f32 %v5960_v55, 0.0 }
0x195c   :  { %v6047_v38 = vpack.c.bf16 %v6016_v59, %v6015_v62 }
0x195d   :  { %v5964_v12 = vpop.f32.mrb[16].mxu0 }
0x195e   :  { %v5965_v47 = vadd.f32 %v5964_v12, %v13239_v34  ;;  %v7891_v9 = vpop.f32.mrb[17].mxu0  ;;  %7938 = vmatmul.mubr.bf16.gmra.mrb[44].mxu1 %v6047_v38 }
0x195f   :  { %v5967_v42 = vpop.f32.mrb[18].mxu0  ;;  %7941 = vmatprep.mubr.msk.bf16.mxu1 %vm8861_vm0, %v14337_v4 }
0x1960   :  { %v5968_v52 = vadd.f32 %v5967_v42, %v13239_v34  ;;  %v7892_v25 = vpop.f32.mrb[19].mxu0  ;;  %v6017_v63 = vmax.f32 %v5965_v47, 0.0 }
0x1962   :  { %v6018_v40 = vmax.f32 %v5968_v52, 0.0 }
0x1964   :  { %v6048_v10 = vpack.c.bf16 %v6018_v40, %v6017_v63 }
0x1965   :  { %v5972_v26 = vpop.f32.mrb[20].mxu0 }
0x1966   :  { %v5973_v18 = vadd.f32 %v5972_v26, %v13239_v34  ;;  %v7895_v17 = vpop.f32.mrb[21].mxu0  ;;  %7942 = vmatmul.mubr.bf16.gmra.mrb[48].mxu1 %v6048_v10 }
0x1967   :  { %v5975_v50 = vpop.f32.mrb[22].mxu0  ;;  %7945 = vmatprep.mubr.msk.bf16.mxu1 %vm8861_vm0, %v14337_v4  ;;  %v13278_v17 = vld [vmem:[%s13755_s2 + $0x150] ss:$0 sm:$0xff] }
0x1968   :  { %v5976_v49 = vadd.f32 %v5975_v50, %v13239_v34  ;;  %v7896_v1 = vpop.f32.mrb[23].mxu0  ;;  %v6019_v35 = vmax.f32 %v5973_v18, 0.0 }
0x196a   :  { %v6020_v46 = vmax.f32 %v5976_v49, 0.0 }
0x196c   :  { %v6049_v33 = vpack.c.bf16 %v6020_v46, %v6019_v35 }
0x196d   :  { %v5980_v21 = vpop.f32.mrb[24].mxu0 }
0x196e   :  { %v5981_v54 = vadd.f32 %v5980_v21, %v13239_v34  ;;  %v7899_v24 = vpop.f32.mrb[25].mxu0  ;;  %7946 = vmatmul.mubr.bf16.gmra.mrb[52].mxu1 %v6049_v33 }
0x196f   :  { %v5983_v8 = vpop.f32.mrb[26].mxu0  ;;  %7949 = vmatprep.mubr.msk.bf16.mxu1 %vm8861_vm0, %v14337_v4 }
0x1970   :  { %v5984_v13 = vadd.f32 %v5983_v8, %v13239_v34  ;;  %v7900_v11 = vpop.f32.mrb[27].mxu0  ;;  %v6021_v32 = vmax.f32 %v5981_v54, 0.0 }
0x1972   :  { %v6022_v45 = vmax.f32 %v5984_v13, 0.0 }
0x1974   :  { %v6050_v39 = vpack.c.bf16 %v6022_v45, %v6021_v32 }
0x1975   :  { %v5988_v29 = vpop.f32.mrb[28].mxu0 }
0x1976   :  { %v5989_v6 = vadd.f32 %v5988_v29, %v13239_v34  ;;  %v7903_v31 = vpop.f32.mrb[29].mxu0  ;;  %7950 = vmatmul.mubr.bf16.gmra.mrb[56].mxu1 %v6050_v39 }
0x1977   :  { %v5991_v15 = vpop.f32.mrb[30].mxu0  ;;  %7953 = vmatprep.mubr.msk.bf16.mxu1 %vm8861_vm0, %v14337_v4 }
0x1978   :  { %v5992_v20 = vadd.f32 %v5991_v15, %v13239_v34  ;;  %v7904_v28 = vpop.f32.mrb[31].mxu0  ;;  %v6023_v2 = vmax.f32 %v5989_v6, 0.0 }
0x197a   :  { %v6024_v56 = vmax.f32 %v5992_v20, 0.0 }
0x197c   :  { %v6051_v53 = vpack.c.bf16 %v6024_v56, %v6023_v2 }
0x197d   :  { %v5996_v48 = vpop.f32.mrb[32].mxu0 }
0x197e   :  { %v5997_v16 = vadd.f32 %v5996_v48, %v13239_v34  ;;  %v7907_v55 = vpop.f32.mrb[33].mxu0  ;;  %7954 = vmatmul.mubr.bf16.gmra.mrb[60].mxu1 %v6051_v53 }
0x197f   :  { %v5999_v22 = vpop.f32.mrb[34].mxu0  ;;  %7957 = vmatprep.mubr.msk.bf16.mxu1 %vm8861_vm0, %v14337_v4 }
0x1980   :  { %v6000_v62 = vadd.f32 %v5999_v22, %v13239_v34  ;;  %v7908_v59 = vpop.f32.mrb[35].mxu0  ;;  %v6025_v38 = vmax.f32 %v5997_v16, 0.0 }
0x1982   :  { %v6026_v12 = vmax.f32 %v6000_v62, 0.0 }
0x1984   :  { %v6052_v47 = vpack.c.bf16 %v6026_v12, %v6025_v38 }
0x1985   :  { %v6004_v9 = vpop.f32.mrb[36].mxu0 }
0x1986   :  { %v6005_v42 = vadd.f32 %v6004_v9, %v13239_v34  ;;  %v7911_v52 = vpop.f32.mrb[37].mxu0  ;;  %7958 = vmatmul.mubr.bf16.gmra.mrb[64].mxu1 %v6052_v47 }
0x1987   :  { %v6007_v25 = vpop.f32.mrb[38].mxu0  ;;  %7961 = vmatprep.mubr.msk.bf16.mxu1 %vm8861_vm0, %v14337_v4 }
0x1988   :  { %v6008_v63 = vadd.f32 %v6007_v25, %v13239_v34  ;;  %v7912_v40 = vpop.f32.mrb[39].mxu0  ;;  %v6027_v10 = vmax.f32 %v6005_v42, 0.0 }
0x198a   :  { %v6028_v26 = vmax.f32 %v6008_v63, 0.0 }
0x198c   :  { %v6053_v18 = vpack.c.bf16 %v6028_v26, %v6027_v10 }
0x198e   :  { %7962 = vmatmul.mubr.bf16.gmra.mrb[68].mxu1 %v6053_v18 }
0x1a21   :  { %v6137_v50 = vpop.f32.mrb[36].mxu1 }
0x1a22   :  { %v6138_v49 = vadd.f32 %v6137_v50, %v13278_v17  ;;  %v7931_v1 = vpop.f32.mrb[37].mxu1 }
0x1a23   :  { %v6140_v35 = vpop.f32.mrb[38].mxu1 }
0x1a24   :  { %v13282_v46 = vadd.f32 %v6138_v49, %v13102_v60  ;;  %v6141_v34 = vadd.f32 %v6140_v35, %v13278_v17  ;;  %v7932_v33 = vpop.f32.mrb[39].mxu1 }
0x1a26   :  { %v13286_v21 = vadd.f32 %v6141_v34, %v13105_v36  ;;  %v6228_v54 = vsel %vm1346_vm11, %v13282_v46, 0.0 }
0x1a27   :  { %6229 = vadd.xlane.f32.xlu1 %v6228_v54 }
0x1a28   :  { %v6231_v24 = vsel %vm1346_vm11, %v13286_v21, 0.0 }
0x1a29   :  { %6232 = vadd.xlane.f32.xlu0 %v6231_v24  ;;  %v6145_v8 = vpop.f32.mrb[40].mxu1 }
0x1a2a   :  { %v6146_v13 = vadd.f32 %v6145_v8, %v13278_v17  ;;  %v7935_v11 = vpop.f32.mrb[41].mxu1 }
0x1a2b   :  { %v6148_v60 = vpop.f32.mrb[42].mxu1 }
0x1a2c   :  { %v13294_v32 = vadd.f32 %v6146_v13, %v13117_v37  ;;  %v6149_v45 = vadd.f32 %v6148_v60, %v13278_v17  ;;  %v7936_v36 = vpop.f32.mrb[43].mxu1 }
0x1a2e   :  { %v13298_v39 = vadd.f32 %v6149_v45, %v13120_v23  ;;  %v6234_v29 = vsel %vm1346_vm11, %v13294_v32, 0.0 }
0x1a2f   :  { %6235 = vadd.xlane.f32.xlu1 %v6234_v29 }
0x1a30   :  { %v6237_v6 = vsel %vm1346_vm11, %v13298_v39, 0.0 }
0x1a31   :  { %6238 = vadd.xlane.f32.xlu0 %v6237_v6  ;;  %v6153_v31 = vpop.f32.mrb[44].mxu1 }
0x1a32   :  { %v6154_v15 = vadd.f32 %v6153_v31, %v13278_v17  ;;  %v7939_v20 = vpop.f32.mrb[45].mxu1 }
0x1a33   :  { %v6156_v37 = vpop.f32.mrb[46].mxu1 }
0x1a34   :  { %v13306_v28 = vadd.f32 %v6154_v15, %v13135_v58  ;;  %v6157_v2 = vadd.f32 %v6156_v37, %v13278_v17  ;;  %v7940_v23 = vpop.f32.mrb[47].mxu1 }
0x1a36   :  { %v13310_v56 = vadd.f32 %v6157_v2, %v13132_v19  ;;  %v6240_v53 = vsel %vm1346_vm11, %v13306_v28, 0.0 }
0x1a37   :  { %6241 = vadd.xlane.f32.xlu1 %v6240_v53 }
0x1a38   :  { %v6243_v48 = vsel %vm1346_vm11, %v13310_v56, 0.0 }
0x1a39   :  { %6244 = vadd.xlane.f32.xlu0 %v6243_v48  ;;  %v6161_v16 = vpop.f32.mrb[48].mxu1 }
0x1a3a   :  { %v6162_v55 = vadd.f32 %v6161_v16, %v13278_v17  ;;  %v7943_v22 = vpop.f32.mrb[49].mxu1 }
0x1a3b   :  { %v6164_v58 = vpop.f32.mrb[50].mxu1 }
0x1a3c   :  { %v13318_v62 = vadd.f32 %v6162_v55, %v13150_v0  ;;  %v6165_v59 = vadd.f32 %v6164_v58, %v13278_v17  ;;  %v7944_v19 = vpop.f32.mrb[51].mxu1 }
0x1a3e   :  { %v13322_v38 = vadd.f32 %v6165_v59, %v13147_v43  ;;  %v6246_v12 = vsel %vm1346_vm11, %v13318_v62, 0.0 }
0x1a3f   :  { %6247 = vadd.xlane.f32.xlu1 %v6246_v12 }
0x1a40   :  { %v6249_v47 = vsel %vm1346_vm11, %v13322_v38, 0.0 }
0x1a41   :  { %6250 = vadd.xlane.f32.xlu0 %v6249_v47  ;;  %v6169_v9 = vpop.f32.mrb[52].mxu1  ;;  %v8203_v47 = vld [vmem:[%s13754_s1 + $0x290] ss:$8 sps:$4 sm:$0xff]  }
0x1a42   :  { %v6170_v42 = vadd.f32 %v6169_v9, %v13278_v17  ;;  %v7947_v52 = vpop.f32.mrb[53].mxu1  ;;  %7966 = vmatpush3.bf16.msra.mxu0 %v8203_v47 }
0x1a43   :  { %v6172_v0 = vpop.f32.mrb[54].mxu1 }
0x1a44   :  { %v13330_v25 = vadd.f32 %v6170_v42, %v13165_v7  ;;  %v6173_v63 = vadd.f32 %v6172_v0, %v13278_v17  ;;  %v7948_v43 = vpop.f32.mrb[55].mxu1 }
0x1a46   :  { %v13334_v40 = vadd.f32 %v6173_v63, %v13162_v5  ;;  %v6252_v10 = vsel %vm1346_vm11, %v13330_v25, 0.0 }
0x1a47   :  { %6253 = vadd.xlane.f32.xlu1 %v6252_v10 }
0x1a48   :  { %v6255_v26 = vsel %vm1346_vm11, %v13334_v40, 0.0 }
0x1a49   :  { %6256 = vadd.xlane.f32.xlu0 %v6255_v26  ;;  %v6177_v18 = vpop.f32.mrb[56].mxu1 }
0x1a4a   :  { %v6178_v50 = vadd.f32 %v6177_v18, %v13278_v17  ;;  %v7951_v49 = vpop.f32.mrb[57].mxu1 }
0x1a4b   :  { %v6180_v7 = vpop.f32.mrb[58].mxu1 }
0x1a4c   :  { %v13342_v1 = vadd.f32 %v6178_v50, %v13180_v57  ;;  %v6181_v35 = vadd.f32 %v6180_v7, %v13278_v17  ;;  %v7952_v5 = vpop.f32.mrb[59].mxu1 }
0x1a4e   :  { %v13346_v34 = vadd.f32 %v6181_v35, %v13177_v41  ;;  %v6258_v33 = vsel %vm1346_vm11, %v13342_v1, 0.0 }
0x1a4f   :  { %6259 = vadd.xlane.f32.xlu1 %v6258_v33 }
0x1a50   :  { %v6261_v54 = vsel %vm1346_vm11, %v13346_v34, 0.0 }
0x1a51   :  { %6262 = vadd.xlane.f32.xlu0 %v6261_v54  ;;  %v6185_v24 = vpop.f32.mrb[60].mxu1 }
0x1a52   :  { %v6186_v8 = vadd.f32 %v6185_v24, %v13278_v17  ;;  %v7955_v13 = vpop.f32.mrb[61].mxu1 }
0x1a53   :  { %v6188_v57 = vpop.f32.mrb[62].mxu1 }
0x1a54   :  { %v13354_v11 = vadd.f32 %v6186_v8, %v13195_v14  ;;  %v6189_v60 = vadd.f32 %v6188_v57, %v13278_v17  ;;  %v7956_v41 = vpop.f32.mrb[63].mxu1 }
0x1a56   :  { %v13358_v45 = vadd.f32 %v6189_v60, %v13192_v44  ;;  %v6264_v36 = vsel %vm1346_vm11, %v13354_v11, 0.0 }
0x1a57   :  { %6265 = vadd.xlane.f32.xlu1 %v6264_v36 }
0x1a58   :  { %v6267_v29 = vsel %vm1346_vm11, %v13358_v45, 0.0 }
0x1a59   :  { %6268 = vadd.xlane.f32.xlu0 %v6267_v29  ;;  %v6193_v6 = vpop.f32.mrb[64].mxu1 }
0x1a5a   :  { %v6194_v31 = vadd.f32 %v6193_v6, %v13278_v17  ;;  %v7959_v15 = vpop.f32.mrb[65].mxu1 }
0x1a5b   :  { %v6196_v14 = vpop.f32.mrb[66].mxu1 }
0x1a5c   :  { %v13366_v20 = vadd.f32 %v6194_v31, %v13210_v27  ;;  %v6197_v37 = vadd.f32 %v6196_v14, %v13278_v17  ;;  %v7960_v44 = vpop.f32.mrb[67].mxu1 }
0x1a5e   :  { %v13370_v2 = vadd.f32 %v6197_v37, %v13207_v61  ;;  %v6270_v23 = vsel %vm1346_vm11, %v13366_v20, 0.0 }
0x1a5f   :  { %6271 = vadd.xlane.f32.xlu1 %v6270_v23 }
0x1a60   :  { %v6273_v53 = vsel %vm1346_vm11, %v13370_v2, 0.0 }
0x1a61   :  { %6274 = vadd.xlane.f32.xlu0 %v6273_v53  ;;  %v6201_v48 = vpop.f32.mrb[68].mxu1 }
0x1a62   :  { %v6202_v16 = vadd.f32 %v6201_v48, %v13278_v17  ;;  %v7963_v55 = vpop.f32.mrb[69].mxu1 }
0x1a63   :  { %v6204_v27 = vpop.f32.mrb[70].mxu1 }
0x1a64   :  { %v13378_v22 = vadd.f32 %v6202_v16, %v13218_v51  ;;  %v6205_v58 = vadd.f32 %v6204_v27, %v13278_v17  ;;  %v7964_v61 = vpop.f32.mrb[71].mxu1 }
0x1a66   :  { %v13382_v59 = vadd.f32 %v6205_v58, %v13225_v30  ;;  %v6276_v19 = vsel %vm1346_vm11, %v13378_v22, 0.0 }
0x1a67   :  { %6277 = vadd.xlane.f32.xlu1 %v6276_v19 }
0x1a68   :  { %v6279_v12 = vsel %vm1346_vm11, %v13382_v59, 0.0 }
0x1a69   :  { %6280 = vadd.xlane.f32.xlu0 %v6279_v12 }
0x1ab4   :  { %v6230_v51 = vpop.xlane.xlu1 %6229 }
0x1ab5   :  { %v6282_v9 = vmul.f32 0.0625, %v6230_v51 }
0x1ab6   :  { %v6233_v17 = vpop.xlane.xlu0 %6232 }
0x1ab7   :  { %v13392_v42 = vsub.f32 %v13282_v46, %v6282_v9  ;;  %v6283_v30 = vmul.f32 0.0625, %v6233_v17 }
0x1ab9   :  { %v13395_v52 = vsub.f32 %v13286_v21, %v6283_v30  ;;  %v6318_v0 = vmul.f32 %v13392_v42, %v13392_v42 }
0x1abb   :  { %v6336_v63 = vsel %vm1346_vm11, %v6318_v0, 0.0  ;;  %v6319_v43 = vmul.f32 %v13395_v52, %v13395_v52 }
0x1abc   :  { %6337 = vadd.xlane.f32.xlu1 %v6336_v63  ;;  %v6236_v10 = vpop.xlane.xlu1 %6235 }
0x1abd   :  { %v6284_v26 = vmul.f32 0.0625, %v6236_v10  ;;  %v6339_v18 = vsel %vm1346_vm11, %v6319_v43, 0.0 }
0x1abe   :  { %v6239_v50 = vpop.xlane.xlu0 %6238  ;;  %6340 = vadd.xlane.f32.xlu0 %v6339_v18 }
0x1abf   :  { %v13404_v46 = vsub.f32 %v13294_v32, %v6284_v26  ;;  %v6285_v21 = vmul.f32 0.0625, %v6239_v50 }
0x1ac1   :  { %v13407_v49 = vsub.f32 %v13298_v39, %v6285_v21  ;;  %v6320_v7 = vmul.f32 %v13404_v46, %v13404_v46 }
0x1ac3   :  { %v6342_v35 = vsel %vm1346_vm11, %v6320_v7, 0.0  ;;  %v6321_v5 = vmul.f32 %v13407_v49, %v13407_v49 }
0x1ac4   :  { %6343 = vadd.xlane.f32.xlu1 %v6342_v35  ;;  %v6242_v33 = vpop.xlane.xlu1 %6241 }
0x1ac5   :  { %v6286_v54 = vmul.f32 0.0625, %v6242_v33  ;;  %v6345_v24 = vsel %vm1346_vm11, %v6321_v5, 0.0 }
0x1ac6   :  { %v6245_v8 = vpop.xlane.xlu0 %6244  ;;  %6346 = vadd.xlane.f32.xlu0 %v6345_v24 }
0x1ac7   :  { %v13416_v32 = vsub.f32 %v13306_v28, %v6286_v54  ;;  %v6287_v39 = vmul.f32 0.0625, %v6245_v8 }
0x1ac9   :  { %v13419_v13 = vsub.f32 %v13310_v56, %v6287_v39  ;;  %v6322_v57 = vmul.f32 %v13416_v32, %v13416_v32 }
0x1acb   :  { %v6348_v60 = vsel %vm1346_vm11, %v6322_v57, 0.0  ;;  %v6323_v41 = vmul.f32 %v13419_v13, %v13419_v13 }
0x1acc   :  { %6349 = vadd.xlane.f32.xlu1 %v6348_v60  ;;  %v6248_v36 = vpop.xlane.xlu1 %6247 }
0x1acd   :  { %v6288_v29 = vmul.f32 0.0625, %v6248_v36  ;;  %v6351_v6 = vsel %vm1346_vm11, %v6323_v41, 0.0 }
0x1ace   :  { %v6251_v31 = vpop.xlane.xlu0 %6250  ;;  %6352 = vadd.xlane.f32.xlu0 %v6351_v6 }
0x1acf   :  { %v13428_v28 = vsub.f32 %v13318_v62, %v6288_v29  ;;  %v6289_v56 = vmul.f32 0.0625, %v6251_v31 }
0x1ad1   :  { %v13431_v15 = vsub.f32 %v13322_v38, %v6289_v56  ;;  %v6324_v14 = vmul.f32 %v13428_v28, %v13428_v28 }
0x1ad3   :  { %v6354_v37 = vsel %vm1346_vm11, %v6324_v14, 0.0  ;;  %v6325_v44 = vmul.f32 %v13431_v15, %v13431_v15 }
0x1ad4   :  { %6355 = vadd.xlane.f32.xlu1 %v6354_v37  ;;  %v6254_v23 = vpop.xlane.xlu1 %6253  ;;  %v14376_v37 = vld [vmem:[#allocation16_spill] sm:$0xff] }
0x1ad5   :  { %v6290_v53 = vmul.f32 0.0625, %v6254_v23  ;;  %v6357_v48 = vsel %vm1346_vm11, %v6325_v44, 0.0  ;;  %v6885_v44 = vmul.f32 %v14376_v37, %v14376_v37 }
0x1ad6   :  { %v6257_v16 = vpop.xlane.xlu0 %6256  ;;  %6358 = vadd.xlane.f32.xlu0 %v6357_v48 }
0x1ad7   :  { %v13440_v62 = vsub.f32 %v13330_v25, %v6290_v53  ;;  %v6291_v38 = vmul.f32 0.0625, %v6257_v16 }
0x1ad9   :  { %v13443_v55 = vsub.f32 %v13334_v40, %v6291_v38  ;;  %v6326_v27 = vmul.f32 %v13440_v62, %v13440_v62 }
0x1adb   :  { %v6360_v58 = vsel %vm1346_vm11, %v6326_v27, 0.0  ;;  %v6327_v61 = vmul.f32 %v13443_v55, %v13443_v55 }
0x1adc   :  { %6361 = vadd.xlane.f32.xlu1 %v6360_v58  ;;  %v6260_v19 = vpop.xlane.xlu1 %6259 }
0x1add   :  { %v6292_v12 = vmul.f32 0.0625, %v6260_v19  ;;  %v6363_v47 = vsel %vm1346_vm11, %v6327_v61, 0.0 }
0x1ade   :  { %v6263_v51 = vpop.xlane.xlu0 %6262  ;;  %6364 = vadd.xlane.f32.xlu0 %v6363_v47 }
0x1adf   :  { %v13452_v25 = vsub.f32 %v13342_v1, %v6292_v12  ;;  %v6293_v40 = vmul.f32 0.0625, %v6263_v51 }
0x1ae1   :  { %v13455_v9 = vsub.f32 %v13346_v34, %v6293_v40  ;;  %v6328_v17 = vmul.f32 %v13452_v25, %v13452_v25 }
0x1ae3   :  { %v6366_v30 = vsel %vm1346_vm11, %v6328_v17, 0.0  ;;  %v6329_v0 = vmul.f32 %v13455_v9, %v13455_v9 }
0x1ae4   :  { %6367 = vadd.xlane.f32.xlu1 %v6366_v30  ;;  %v6266_v63 = vpop.xlane.xlu1 %6265 }
0x1ae5   :  { %v6294_v43 = vmul.f32 0.0625, %v6266_v63  ;;  %v6369_v10 = vsel %vm1346_vm11, %v6329_v0, 0.0  ;;  %v13508_v63 = vld [vmem:[%s13755_s2 + $0x160] ss:$0 sm:$0xff] }
0x1ae6   :  { %v6269_v26 = vpop.xlane.xlu0 %6268  ;;  %6370 = vadd.xlane.f32.xlu0 %v6369_v10 }
0x1ae7   :  { %v13464_v1 = vsub.f32 %v13354_v11, %v6294_v43  ;;  %v6295_v34 = vmul.f32 0.0625, %v6269_v26 }
0x1ae9   :  { %v13467_v18 = vsub.f32 %v13358_v45, %v6295_v34  ;;  %v6330_v50 = vmul.f32 %v13464_v1, %v13464_v1 }
0x1aeb   :  { %v6372_v21 = vsel %vm1346_vm11, %v6330_v50, 0.0  ;;  %v6331_v7 = vmul.f32 %v13467_v18, %v13467_v18 }
0x1aec   :  { %6373 = vadd.xlane.f32.xlu1 %v6372_v21  ;;  %v6272_v35 = vpop.xlane.xlu1 %6271 }
0x1aed   :  { %v6296_v5 = vmul.f32 0.0625, %v6272_v35  ;;  %v6375_v33 = vsel %vm1346_vm11, %v6331_v7, 0.0  ;;  %v13516_v35 = vld [vmem:[%s13755_s2 + $0x170] ss:$0 sm:$0xff] }
0x1aee   :  { %v6275_v54 = vpop.xlane.xlu0 %6274  ;;  %6376 = vadd.xlane.f32.xlu0 %v6375_v33 }
0x1aef   :  { %v13476_v11 = vsub.f32 %v13366_v20, %v6296_v5  ;;  %v6297_v45 = vmul.f32 0.0625, %v6275_v54 }
0x1af1   :  { %v13479_v24 = vsub.f32 %v13370_v2, %v6297_v45  ;;  %v6332_v8 = vmul.f32 %v13476_v11, %v13476_v11 }
0x1af3   :  { %v6378_v39 = vsel %vm1346_vm11, %v6332_v8, 0.0  ;;  %v6333_v57 = vmul.f32 %v13479_v24, %v13479_v24 }
0x1af4   :  { %6379 = vadd.xlane.f32.xlu1 %v6378_v39  ;;  %v6278_v60 = vpop.xlane.xlu1 %6277 }
0x1af5   :  { %v6298_v41 = vmul.f32 0.0625, %v6278_v60  ;;  %v6381_v36 = vsel %vm1346_vm11, %v6333_v57, 0.0 }
0x1af6   :  { %6382 = vadd.xlane.f32.xlu0 %v6381_v36  ;;  %v6281_v20 = vpop.xlane.xlu0 %6280 }
0x1af7   :  { %v13488_v29 = vsub.f32 %v13378_v22, %v6298_v41  ;;  %v6299_v2 = vmul.f32 0.0625, %v6281_v20  ;;  %v14377_v22 = vld [vmem:[#allocation17_spill] sm:$0xff] }
0x1af8   :  { %v6886_v53 = vmul.f32 %v14377_v22, %v14377_v22 }
0x1af9   :  { %v13491_v6 = vsub.f32 %v13382_v59, %v6299_v2  ;;  %v6334_v31 = vmul.f32 %v13488_v29, %v13488_v29  ;;  %v6887_v59 = vsel %vm39_vm1, %v6885_v44, 0.0 }
0x1afa   :  { %v6890_v48 = vsel %vm91_vm2, %v6886_v53, 0.0 }
0x1afb   :  { %v6384_v56 = vsel %vm1346_vm11, %v6334_v31, 0.0  ;;  %v6335_v14 = vmul.f32 %v13491_v6, %v13491_v6 }
0x1afc   :  { %6385 = vadd.xlane.f32.xlu1 %v6384_v56 }
0x1afd   :  { %v6387_v23 = vsel %vm1346_vm11, %v6335_v14, 0.0 }
0x1afe   :  { %6388 = vadd.xlane.f32.xlu0 %v6387_v23 }
0x1b00   :  { %6888 = vadd.xlane.f32.xlu1 %v6887_v59 }
0x1b02   :  { %6891 = vadd.xlane.f32.xlu0 %v6890_v48 }
0x1b49   :  { %v6338_v16 = vpop.xlane.xlu1 %6337 }
0x1b4a   :  { %v6390_v38 = vmul.f32 0.0625, %v6338_v16 }
0x1b4b   :  { %v6341_v27 = vpop.xlane.xlu0 %6340 }
0x1b4c   :  { %v6408_v58 = vadd.f32 1e-05, %v6390_v38  ;;  %v6391_v61 = vmul.f32 0.0625, %v6341_v27 }
0x1b4e   :  { %8752 = vrsqrt.f32 %v6408_v58  ;;  %v6409_v19 = vadd.f32 1e-05, %v6391_v61 }
0x1b50   :  { %8754 = vrsqrt.f32 %v6409_v19 }
0x1b51   :  { %v6344_v12 = vpop.xlane.xlu1 %6343 }
0x1b52   :  { %v6392_v47 = vmul.f32 0.0625, %v6344_v12 }
0x1b53   :  { %v6347_v51 = vpop.xlane.xlu0 %6346 }
0x1b54   :  { %v6410_v40 = vadd.f32 1e-05, %v6392_v47  ;;  %v6393_v17 = vmul.f32 0.0625, %v6347_v51 }
0x1b56   :  { %8756 = vrsqrt.f32 %v6410_v40  ;;  %v6411_v30 = vadd.f32 1e-05, %v6393_v17 }
0x1b58   :  { %v8753_v0 = vpop.eup %8752  ;;  %8758 = vrsqrt.f32 %v6411_v30 }
0x1b59   :  { %v6444_v43 = vmul.f32 %v8753_v0, %v13392_v42  ;;  %v6350_v10 = vpop.xlane.xlu1 %6349 }
0x1b5a   :  { %v8755_v26 = vpop.eup %8754  ;;  %v6394_v34 = vmul.f32 0.0625, %v6350_v10 }
0x1b5b   :  { %v6462_v50 = vmul.f32 %v6444_v43, %v13508_v63  ;;  %v6445_v21 = vmul.f32 %v8755_v26, %v13395_v52  ;;  %v6353_v7 = vpop.xlane.xlu0 %6352 }
0x1b5c   :  { %v6412_v5 = vadd.f32 1e-05, %v6394_v34  ;;  %v6395_v33 = vmul.f32 0.0625, %v6353_v7 }
0x1b5d   :  { %v6463_v54 = vmul.f32 %v6445_v21, %v13508_v63  ;;  %v6480_v42 = vadd.f32 %v6462_v50, %v13516_v35 }
0x1b5e   :  { %8760 = vrsqrt.f32 %v6412_v5  ;;  %v6413_v45 = vadd.f32 1e-05, %v6395_v33 }
0x1b5f   :  { %v6481_v8 = vadd.f32 %v6463_v54, %v13516_v35 }
0x1b60   :  { %v8757_v39 = vpop.eup %8756  ;;  %8762 = vrsqrt.f32 %v6413_v45 }
0x1b61   :  { %v6498_v57 = vpack.c.bf16 %v6481_v8, %v6480_v42  ;;  %v6446_v52 = vmul.f32 %v8757_v39, %v13404_v46  ;;  %v6356_v60 = vpop.xlane.xlu1 %6355 }
0x1b62   :  { %v8759_v41 = vpop.eup %8758  ;;  %v6396_v36 = vmul.f32 0.0625, %v6356_v60 }
0x1b63   :  { %v6464_v20 = vmul.f32 %v6446_v52, %v13508_v63  ;;  %v6447_v2 = vmul.f32 %v8759_v41, %v13407_v49  ;;  %v6359_v31 = vpop.xlane.xlu0 %6358  ;;  %7968 = vmatmul.mubr.msk.bf16.vlgmr.msra.gmra.mrb[40].mxu0 %vm1346_vm11, %v6498_v57 }
0x1b64   :  { %v6414_v56 = vadd.f32 1e-05, %v6396_v36  ;;  %v6397_v14 = vmul.f32 0.0625, %v6359_v31  ;;  %7971 = vmatprep.mubr.msk.bf16.mxu0 %vm8861_vm0, %v14337_v4 }
0x1b65   :  { %v6465_v44 = vmul.f32 %v6447_v2, %v13508_v63  ;;  %v6482_v46 = vadd.f32 %v6464_v20, %v13516_v35 }
0x1b66   :  { %8764 = vrsqrt.f32 %v6414_v56  ;;  %v6415_v23 = vadd.f32 1e-05, %v6397_v14 }
0x1b67   :  { %v6483_v53 = vadd.f32 %v6465_v44, %v13516_v35 }
0x1b68   :  { %v8761_v59 = vpop.eup %8760  ;;  %8766 = vrsqrt.f32 %v6415_v23 }
0x1b69   :  { %v6499_v48 = vpack.c.bf16 %v6483_v53, %v6482_v46  ;;  %v6448_v49 = vmul.f32 %v8761_v59, %v13416_v32  ;;  %v6362_v16 = vpop.xlane.xlu1 %6361 }
0x1b6a   :  { %v8763_v38 = vpop.eup %8762  ;;  %v6398_v27 = vmul.f32 0.0625, %v6362_v16 }
0x1b6b   :  { %v6466_v58 = vmul.f32 %v6448_v49, %v13508_v63  ;;  %v6449_v61 = vmul.f32 %v8763_v38, %v13419_v13  ;;  %v6365_v19 = vpop.xlane.xlu0 %6364  ;;  %7972 = vmatmul.mubr.msk.bf16.gmra.mrb[44].mxu0 %vm1346_vm11, %v6499_v48 }
0x1b6c   :  { %v6416_v12 = vadd.f32 1e-05, %v6398_v27  ;;  %v6399_v47 = vmul.f32 0.0625, %v6365_v19  ;;  %7975 = vmatprep.mubr.msk.bf16.mxu0 %vm8861_vm0, %v14337_v4 }
0x1b6d   :  { %v6467_v51 = vmul.f32 %v6449_v61, %v13508_v63  ;;  %v6484_v32 = vadd.f32 %v6466_v58, %v13516_v35 }
0x1b6e   :  { %8768 = vrsqrt.f32 %v6416_v12  ;;  %v6417_v40 = vadd.f32 1e-05, %v6399_v47 }
0x1b6f   :  { %v6485_v17 = vadd.f32 %v6467_v51, %v13516_v35 }
0x1b70   :  { %v8765_v30 = vpop.eup %8764  ;;  %8770 = vrsqrt.f32 %v6417_v40 }
0x1b71   :  { %v6500_v0 = vpack.c.bf16 %v6485_v17, %v6484_v32  ;;  %v6450_v13 = vmul.f32 %v8765_v30, %v13428_v28  ;;  %v6368_v43 = vpop.xlane.xlu1 %6367 }
0x1b72   :  { %v8767_v10 = vpop.eup %8766  ;;  %v6400_v26 = vmul.f32 0.0625, %v6368_v43 }
0x1b73   :  { %v6468_v34 = vmul.f32 %v6450_v13, %v13508_v63  ;;  %v6451_v50 = vmul.f32 %v8767_v10, %v13431_v15  ;;  %v6371_v21 = vpop.xlane.xlu0 %6370  ;;  %7976 = vmatmul.mubr.msk.bf16.gmra.mrb[48].mxu0 %vm1346_vm11, %v6500_v0 }
0x1b74   :  { %v6418_v7 = vadd.f32 1e-05, %v6400_v26  ;;  %v6401_v5 = vmul.f32 0.0625, %v6371_v21  ;;  %7979 = vmatprep.mubr.msk.bf16.mxu0 %vm8861_vm0, %v14337_v4 }
0x1b75   :  { %v6469_v33 = vmul.f32 %v6451_v50, %v13508_v63  ;;  %v6486_v28 = vadd.f32 %v6468_v34, %v13516_v35 }
0x1b76   :  { %8772 = vrsqrt.f32 %v6418_v7  ;;  %v6419_v54 = vadd.f32 1e-05, %v6401_v5 }
0x1b77   :  { %v6487_v45 = vadd.f32 %v6469_v33, %v13516_v35 }
0x1b78   :  { %v8769_v42 = vpop.eup %8768  ;;  %8774 = vrsqrt.f32 %v6419_v54 }
0x1b79   :  { %v6501_v8 = vpack.c.bf16 %v6487_v45, %v6486_v28  ;;  %v6452_v15 = vmul.f32 %v8769_v42, %v13440_v62  ;;  %v6374_v39 = vpop.xlane.xlu1 %6373 }
0x1b7a   :  { %v8771_v57 = vpop.eup %8770  ;;  %v6402_v52 = vmul.f32 0.0625, %v6374_v39 }
0x1b7b   :  { %v6470_v60 = vmul.f32 %v6452_v15, %v13508_v63  ;;  %v6453_v41 = vmul.f32 %v8771_v57, %v13443_v55  ;;  %v6377_v36 = vpop.xlane.xlu0 %6376  ;;  %7980 = vmatmul.mubr.msk.bf16.gmra.mrb[52].mxu0 %vm1346_vm11, %v6501_v8 }
0x1b7c   :  { %v6420_v20 = vadd.f32 1e-05, %v6402_v52  ;;  %v6403_v2 = vmul.f32 0.0625, %v6377_v36  ;;  %7983 = vmatprep.mubr.msk.bf16.mxu0 %vm8861_vm0, %v14337_v4 }
0x1b7d   :  { %v6471_v31 = vmul.f32 %v6453_v41, %v13508_v63  ;;  %v6488_v62 = vadd.f32 %v6470_v60, %v13516_v35 }
0x1b7e   :  { %8776 = vrsqrt.f32 %v6420_v20  ;;  %v6421_v56 = vadd.f32 1e-05, %v6403_v2 }
0x1b7f   :  { %v6489_v14 = vadd.f32 %v6471_v31, %v13516_v35 }
0x1b80   :  { %v8773_v44 = vpop.eup %8772  ;;  %8778 = vrsqrt.f32 %v6421_v56 }
0x1b81   :  { %v6502_v23 = vpack.c.bf16 %v6489_v14, %v6488_v62  ;;  %v6454_v55 = vmul.f32 %v8773_v44, %v13452_v25  ;;  %v6380_v46 = vpop.xlane.xlu1 %6379 }
0x1b82   :  { %v8775_v53 = vpop.eup %8774  ;;  %v6404_v59 = vmul.f32 0.0625, %v6380_v46 }
0x1b83   :  { %v6472_v48 = vmul.f32 %v6454_v55, %v13508_v63  ;;  %v6455_v49 = vmul.f32 %v8775_v53, %v13455_v9  ;;  %v6383_v16 = vpop.xlane.xlu0 %6382  ;;  %7984 = vmatmul.mubr.msk.bf16.gmra.mrb[56].mxu0 %vm1346_vm11, %v6502_v23 }
0x1b84   :  { %v6422_v38 = vadd.f32 1e-05, %v6404_v59  ;;  %v6405_v27 = vmul.f32 0.0625, %v6383_v16  ;;  %7987 = vmatprep.mubr.msk.bf16.mxu0 %vm8861_vm0, %v14337_v4 }
0x1b85   :  { %v6473_v58 = vmul.f32 %v6455_v49, %v13508_v63  ;;  %v6490_v25 = vadd.f32 %v6472_v48, %v13516_v35 }
0x1b86   :  { %8780 = vrsqrt.f32 %v6422_v38  ;;  %v6423_v61 = vadd.f32 1e-05, %v6405_v27 }
0x1b87   :  { %v6491_v19 = vadd.f32 %v6473_v58, %v13516_v35 }
0x1b88   :  { %v8777_v12 = vpop.eup %8776  ;;  %8782 = vrsqrt.f32 %v6423_v61 }
0x1b89   :  { %v6503_v47 = vpack.c.bf16 %v6491_v19, %v6490_v25  ;;  %v6456_v9 = vmul.f32 %v8777_v12, %v13464_v1  ;;  %v6386_v51 = vpop.xlane.xlu1 %6385 }
0x1b8a   :  { %v8779_v40 = vpop.eup %8778  ;;  %v6406_v32 = vmul.f32 0.0625, %v6386_v51 }
0x1b8b   :  { %v6474_v17 = vmul.f32 %v6456_v9, %v13508_v63  ;;  %v6457_v30 = vmul.f32 %v8779_v40, %v13467_v18  ;;  %v6389_v0 = vpop.xlane.xlu0 %6388  ;;  %7988 = vmatmul.mubr.msk.bf16.gmra.mrb[60].mxu0 %vm1346_vm11, %v6503_v47 }
0x1b8c   :  { %v6424_v13 = vadd.f32 1e-05, %v6406_v32  ;;  %v6407_v43 = vmul.f32 0.0625, %v6389_v0  ;;  %7991 = vmatprep.mubr.msk.bf16.mxu0 %vm8861_vm0, %v14337_v4 }
0x1b8d   :  { %v6475_v10 = vmul.f32 %v6457_v30, %v13508_v63  ;;  %v6889_v26 = vpop.xlane.xlu1 %6888  ;;  %v6492_v34 = vadd.f32 %v6474_v17, %v13516_v35 }
0x1b8e   :  { %8784 = vrsqrt.f32 %v6424_v13  ;;  %v6425_v1 = vadd.f32 1e-05, %v6407_v43  ;;  %vm6895_vm2 = vcmp.eq.f32.partialorder %v6889_v26, inf  ;;  %v6898_v20 = vand.u32 2147483648, %v6889_v26 }
0x1b8f   :  { %v6493_v50 = vadd.f32 %v6475_v10, %v13516_v35  ;;  %8786 = vrsqrt.f32 %v6889_v26  ;;  %v6892_v21 = vpop.xlane.xlu0 %6891  ;;  %vm6897_vm6 = vcmp.eq.f32.partialorder %v6889_v26, 0.0 }
0x1b90   :  { %v8781_v18 = vpop.eup %8780  ;;  %8788 = vrsqrt.f32 %v6425_v1  ;;  %vm6902_vm15 = vcmp.eq.f32.partialorder %v6892_v21, inf  ;;  %v6905_v14 = vand.u32 2147483648, %v6892_v21  ;;  %vm6904_vm5 = vcmp.eq.f32.partialorder %v6892_v21, 0.0 }
0x1b91   :  { %v6504_v7 = vpack.c.bf16 %v6493_v50, %v6492_v34  ;;  %v6458_v5 = vmul.f32 %v8781_v18, %v13476_v11  ;;  %8790 = vrsqrt.f32 %v6892_v21 }
0x1b92   :  { %v8783_v33 = vpop.eup %8782 }
0x1b93   :  { %v6476_v54 = vmul.f32 %v6458_v5, %v13508_v63  ;;  %v6459_v28 = vmul.f32 %v8783_v33, %v13479_v24  ;;  %7992 = vmatmul.mubr.msk.bf16.gmra.mrb[64].mxu0 %vm1346_vm11, %v6504_v7 }
0x1b94   :  { %7995 = vmatprep.mubr.msk.bf16.mxu0 %vm8861_vm0, %v14337_v4 }
0x1b95   :  { %v6477_v45 = vmul.f32 %v6459_v28, %v13508_v63  ;;  %v6494_v42 = vadd.f32 %v6476_v54, %v13516_v35 }
0x1b97   :  { %v6495_v8 = vadd.f32 %v6477_v45, %v13516_v35 }
0x1b98   :  { %v8785_v15 = vpop.eup %8784 }
0x1b99   :  { %v8787_v39 = vpop.eup %8786  ;;  %v6505_v11 = vpack.c.bf16 %v6495_v8, %v6494_v42  ;;  %v6460_v57 = vmul.f32 %v8785_v15, %v13488_v29 }
0x1b9a   :  { %v8789_v52 = vpop.eup %8788  ;;  %v6894_v60 = vmul.f32 %v8787_v39, %v6889_v26 }
0x1b9b   :  { %v8791_v41 = vpop.eup %8790  ;;  %v6478_v24 = vmul.f32 %v6460_v57, %v13508_v63  ;;  %v6461_v36 = vmul.f32 %v8789_v52, %v13491_v6  ;;  %7996 = vmatmul.mubr.msk.bf16.gmra.mrb[68].mxu0 %vm1346_vm11, %v6505_v11 }
0x1b9c   :  { %v6896_v2 = vsel %vm6895_vm2, %v6889_v26, %v6894_v60  ;;  %v6901_v31 = vmul.f32 %v8791_v41, %v6892_v21  ;;  %7999 = vmatprep.mubr.msk.bf16.mxu0 %vm8861_vm0, %v14337_v4  ;;  %vm8011_vm0 = vmpackc.low %vm39_vm1, %vm39_vm1  ;;  %vm13968_vm2 = vcmask 93184  }
0x1b9d   :  { %v6496_v29 = vadd.f32 %v6478_v24, %v13516_v35  ;;  %v6479_v56 = vmul.f32 %v6461_v36, %v13508_v63  ;;  %v6899_v62 = vsel %vm6897_vm6, %v6898_v20, %v6896_v2 }
0x1b9e   :  { %v6907_v44 = vmax.f32 %v6899_v62, 1e-12  ;;  %v6903_v23 = vsel %vm6902_vm15, %v6892_v21, %v6901_v31  ;;  %vm7338_vm15 = vmpackc.low %vm414_vm10, %vm413_vm9 }
0x1b9f   :  { %v6497_v6 = vadd.f32 %v6479_v56, %v13516_v35  ;;  %v6906_v55 = vsel %vm6904_vm5, %v6905_v14, %v6903_v23  ;;  %v13603_v35 = vld [vmem:[%s13755_s2 + $0x180] ss:$0 sm:$0xff]  ;;  %s8868_s2 = smov [#allocation4]  }
0x1ba0   :  { %8792 = vrcp.f32 %v6907_v44  ;;  %v6908_v46 = vmax.f32 %v6906_v55, 1e-12  ;;  %s7067_s29 = sshll.u32 %s8868_s2, 4  ;;  %s7068_s29 = int_to_ptr.vmem [resolvable:$true] %s7067_s29 }
0x1ba1   :  { %v6506_v53 = vpack.c.bf16 %v6497_v6, %v6496_v29  ;;  %s8812_s5 = scalar_lea.vmem %s7068_s29, 16  ;;  %s8816_s6 = scalar_lea.vmem %s7068_s29, 32 }
0x1ba2   :  { %8794 = vrcp.f32 %v6908_v46  ;;  %p8813_p0 = scmp.ne.s32.totalorder %s7068_s29, %s8812_s5  ;;  %p8817_p1 = scmp.lt.s32.totalorder %s7068_s29, %s7068_s29 }
0x1ba3   :  { %8000 = vmatmul.mubr.msk.bf16.gmra.mrb[72].mxu0 %vm1346_vm11, %v6506_v53  ;;  %p8818_p2 = scmp.lt.s32.totalorder %s8816_s6, %s8812_s5 }
0x1ba5   :  { %p8819_p3 = por %p8818_p2, %p8817_p1 }
0x1ba7   :  { %p8820_p4 = pnand %p8819_p3, %p8813_p0 }
0x1baa   :  { %v8793_v59 = vpop.eup %8792 }
0x1bab   :  { %v6910_v48 = vmul.f32 %v8793_v59, %v14376_v37 }
0x1bac   :  { %v8795_v49 = vpop.eup %8794 }
0x1bad   :  { %8007 = vmatprep.mubr.msk.f32.mxu0 %vm39_vm1, %v6910_v48  ;;  %v6912_v63 = vmul.f32 %v8795_v49, %v14377_v22 }
0x1baf   :  { %v8010_v16 = vpack.c.bf16 %v6912_v63, %v6910_v48 }
0x1bb1   :  { %8012 = vmatprep.subr.msk.bf16.mxu0 %vm8011_vm0, %v8010_v16 }
0x1bb2   :  { %8015 = vmatpush3.bf16.xpose.msk.msra.mxu0 %vm8011_vm0, %v8010_v16 }
0x1bb9   :  { %8008 = vmatmul.mubr.msk.f32.vlgmr.msra.gmra.mrb[76].mxu0 %vm39_vm1, %v6912_v63 }
0x1c36   :  { %v6577_v38 = vpop.f32.mrb[40].mxu0 }
0x1c37   :  { %v7969_v37 = vpop.f32.mrb[41].mxu0  ;;  %v6578_v58 = vadd.f32 %v6577_v38, %v13603_v35 }
0x1c38   :  { %v6580_v27 = vpop.f32.mrb[42].mxu0 }
0x1c39   :  { %v6581_v22 = vadd.f32 %v6580_v27, %v13603_v35  ;;  %v7970_v61 = vpop.f32.mrb[43].mxu0  ;;  %v14378_v27 = vld [vmem:[#allocation12_spill] sm:$0xff] }
0x1c3b   :  { %v8108_v25 = vpack.i.bf16 %v6581_v22, %v6578_v58  ;;  %v6648_v58 = vadd.s32 128, %v14378_v27 }
0x1c3d   :  { %8109 = vperm.xlu1 %8107, %v8108_v25   ;;  %v6649_v22 = vcvt.s32.f32 %v6648_v58 }
0x1c3e   :  { %v6585_v19 = vpop.f32.mrb[44].mxu0 }
0x1c3f   :  { %v7973_v12 = vpop.f32.mrb[45].mxu0  ;;  %v6586_v9 = vadd.f32 %v6585_v19, %v13603_v35  ;;  %v6651_v61 = vmul.f32 0.083333336, %v6649_v22  ;;  %v14379_v19 = vld [vmem:[#allocation10_spill] sm:$0xff] }
0x1c40   :  { %v6588_v47 = vpop.f32.mrb[46].mxu0  ;;  %v14380_v12 = vld [vmem:[#allocation11_spill] sm:$0xff] }
0x1c41   :  { %v6589_v51 = vadd.f32 %v6588_v47, %v13603_v35  ;;  %v7974_v40 = vpop.f32.mrb[47].mxu0  ;;  %v6653_v25 = vfloor.f32 %v6651_v61  ;;  %v14405_v61 = vld [vmem:[#allocation30_spill] sm:$0xff] }
0x1c43   :  { %v8114_v32 = vpack.i.bf16 %v6589_v51, %v6586_v9  ;;  %vm6655_vm1 = vcmp.eq.f32.partialorder %v14379_v19, %v6653_v25  ;;  %vm6657_vm12 = vcmp.eq.f32.partialorder %v14380_v12, %v6653_v25  ;;  %v14407_v25 = vld [vmem:[#allocation31_spill] sm:$0xff] }
0x1c44   :  { %v7332_v47 = vsel %vm6655_vm1, 1.0, %v14337_v4  ;;  %v7334_v9 = vsel %vm6657_vm12, 1.0, %v14337_v4 }
0x1c45   :  { %8115 = vperm.xlu0 %8113, %v8114_v32   ;;  %v6667_v51 = vpack.c.bf16 %v7334_v9, %v7332_v47 }
0x1c46   :  { %v6593_v17 = vpop.f32.mrb[48].mxu0 }
0x1c47   :  { %v7977_v30 = vpop.f32.mrb[49].mxu0  ;;  %v6594_v13 = vadd.f32 %v6593_v17, %v13603_v35  ;;  %7362 = vmatprep.mubr.msk.bf16.mxu1 %vm1346_vm11, %v6667_v51  ;;  %vm7335_vm11 = vmpackc.low %vm9008_vm4, %vm9000_vm3 }
0x1c48   :  { %v6596_v0 = vpop.f32.mrb[50].mxu0  ;;  %vm7341_vm3 = vmpackc.low %vm416_vm14, %vm415_vm13 }
0x1c49   :  { %v6597_v43 = vadd.f32 %v6596_v0, %v13603_v35  ;;  %v7978_v10 = vpop.f32.mrb[51].mxu0  ;;  %v14381_v0 = vld [vmem:[#allocation8_spill] sm:$0xff] }
0x1c4a   :  { %vm7020_vm6 = vcmp.eq.s32.totalorder %v14381_v0, %v14378_v27 }
0x1c4b   :  { %v8119_v26 = vpack.i.bf16 %v6597_v43, %v6594_v13 }
0x1c4d   :  { %8120 = vperm.xlu1 %8107, %v8119_v26  }
0x1c4e   :  { %v6601_v1 = vpop.f32.mrb[52].mxu0 }
0x1c4f   :  { %v7981_v34 = vpop.f32.mrb[53].mxu0  ;;  %v6602_v21 = vadd.f32 %v6601_v1, %v13603_v35 }
0x1c50   :  { %v6604_v50 = vpop.f32.mrb[54].mxu0 }
0x1c51   :  { %v6605_v18 = vadd.f32 %v6604_v50, %v13603_v35  ;;  %v7982_v7 = vpop.f32.mrb[55].mxu0 }
0x1c53   :  { %v8124_v5 = vpack.i.bf16 %v6605_v18, %v6602_v21 }
0x1c55   :  { %8125 = vperm.xlu1 %8107, %v8124_v5  }
0x1c56   :  { %v6609_v33 = vpop.f32.mrb[56].mxu0 }
0x1c57   :  { %v7985_v54 = vpop.f32.mrb[57].mxu0  ;;  %v6610_v45 = vadd.f32 %v6609_v33, %v13603_v35 }
0x1c58   :  { %v6612_v28 = vpop.f32.mrb[58].mxu0  ;;  %v14385_v54 = vld [vmem:[#allocation13_spill] sm:$0xff] }
0x1c59   :  { %v6613_v42 = vadd.f32 %v6612_v28, %v13603_v35  ;;  %v7986_v8 = vpop.f32.mrb[59].mxu0  ;;  %v6650_v47 = vmul.f32 0.083333336, %v14385_v54 }
0x1c5b   :  { %v8129_v15 = vpack.i.bf16 %v6613_v42, %v6610_v45  ;;  %v6652_v51 = vfloor.f32 %v6650_v47 }
0x1c5d   :  { %8130 = vperm.xlu1 %8107, %v8129_v15  }
0x1c5e   :  { %v6617_v39 = vpop.f32.mrb[60].mxu0 }
0x1c5f   :  { %v7989_v11 = vpop.f32.mrb[61].mxu0  ;;  %v6618_v52 = vadd.f32 %v6617_v39, %v13603_v35 }
0x1c60   :  { %v6620_v57 = vpop.f32.mrb[62].mxu0 }
0x1c61   :  { %v6621_v60 = vadd.f32 %v6620_v57, %v13603_v35  ;;  %v7990_v41 = vpop.f32.mrb[63].mxu0 }
0x1c63   :  { %v8134_v24 = vpack.i.bf16 %v6621_v60, %v6618_v52 }
0x1c65   :  { %8135 = vperm.xlu1 %8107, %v8134_v24   ;;  %v14389_v24 = vld [vmem:[#allocation22_spill] sm:$0xff] }
0x1c66   :  { %v6625_v36 = vpop.f32.mrb[64].mxu0  ;;  %vm14390_vm4 = vcmp.eq.f32.partialorder %v14389_v24, %v14385_v54 }
0x1c67   :  { %v7993_v20 = vpop.f32.mrb[65].mxu0  ;;  %v6626_v31 = vadd.f32 %v6625_v36, %v13603_v35  ;;  %v14391_v36 = vld [vmem:[#allocation23_spill] sm:$0xff] }
0x1c68   :  { %v6628_v2 = vpop.f32.mrb[66].mxu0  ;;  %vm14392_vm9 = vcmp.eq.f32.partialorder %v14391_v36, %v14385_v54 }
0x1c69   :  { %v6629_v29 = vadd.f32 %v6628_v2, %v13603_v35  ;;  %v7994_v56 = vpop.f32.mrb[67].mxu0  ;;  %vm7344_vm10 = vmpackc.low %vm14392_vm9, %vm14390_vm4  ;;  %vm14408_vm4 = vcmp.eq.f32.partialorder %v14407_v25, %v14385_v54 }
0x1c6a   :  { %v14393_v56 = vld [vmem:[#allocation24_spill] sm:$0xff] }
0x1c6b   :  { %v8139_v62 = vpack.i.bf16 %v6629_v29, %v6626_v31  ;;  %vm14394_vm13 = vcmp.eq.f32.partialorder %v14393_v56, %v14385_v54 }
0x1c6d   :  { %8140 = vperm.xlu1 %8107, %v8139_v62   ;;  %v14395_v62 = vld [vmem:[#allocation25_spill] sm:$0xff] }
0x1c6e   :  { %v6633_v14 = vpop.f32.mrb[68].mxu0  ;;  %vm14396_vm14 = vcmp.eq.f32.partialorder %v14395_v62, %v14385_v54 }
0x1c6f   :  { %v7997_v44 = vpop.f32.mrb[69].mxu0  ;;  %v6634_v6 = vadd.f32 %v6633_v14, %v13603_v35  ;;  %vm7347_vm5 = vmpackc.low %vm14396_vm14, %vm14394_vm13  ;;  %vm6654_vm14 = vcmp.eq.f32.partialorder %v14379_v19, %v6652_v51 }
0x1c70   :  { %v6636_v23 = vpop.f32.mrb[70].mxu0 }
0x1c71   :  { %v6637_v55 = vadd.f32 %v6636_v23, %v13603_v35  ;;  %v7998_v46 = vpop.f32.mrb[71].mxu0 }
0x1c72   :  { %v14399_v46 = vld [vmem:[#allocation27_spill] sm:$0xff] }
0x1c73   :  { %v8144_v53 = vpack.i.bf16 %v6637_v55, %v6634_v6  ;;  %v14397_v55 = vld [vmem:[#allocation26_spill] sm:$0xff]  ;;  %vm14400_vm1 = vcmp.eq.f32.partialorder %v14399_v46, %v14385_v54 }
0x1c74   :  { %vm14398_vm0 = vcmp.eq.f32.partialorder %v14397_v55, %v14385_v54 }
0x1c75   :  { %8145 = vperm.xlu1 %8107, %v8144_v53   ;;  %vm7350_vm12 = vmpackc.low %vm14400_vm1, %vm14398_vm0  ;;  %vm6829_vm1 = vcmp.ge.s32.totalorder %v14381_v0, 2 }
0x1c76   :  { %v6641_v59 = vpop.f32.mrb[72].mxu0 }
0x1c77   :  { %v6642_v48 = vadd.f32 %v6641_v59, %v13603_v35  ;;  %v8001_v49 = vpop.f32.mrb[73].mxu0 }
0x1c78   :  { %v6644_v63 = vpop.f32.mrb[74].mxu0 }
0x1c79   :  { %v6645_v16 = vadd.f32 %v6644_v63, %v13603_v35  ;;  %v8002_v38 = vpop.f32.mrb[75].mxu0  ;;  %v14401_v63 = vld [vmem:[#allocation28_spill] sm:$0xff] }
0x1c7b   :  { %v8149_v37 = vpack.i.bf16 %v6645_v16, %v6642_v48  ;;  %v14403_v16 = vld [vmem:[#allocation29_spill] sm:$0xff] }
0x1c7d   :  { %8150 = vperm.xlu1 %8107, %v8149_v37  }
0x1c8c   :  { %v8009_v40 = vpop.f32.mrb[76].mxu0 }
0x1c8d   :  { %v6985_v32 = vpop.f32.mrb[77].mxu0  ;;  %v13633_v30 = vmul.f32 2.459603, %v8009_v40 }
0x1c8e   :  { %v13629_v35 = vmul.f32 2.459603, %v6985_v32 }
0x1c8f   :  { %v6999_v4 = vsel %vm13968_vm2, %v13633_v30, -inf }
0x1c90   :  { %v6996_v17 = vsel %vm13969_vm8, %v13629_v35, -inf  ;;  %v7022_v13 = vsel %vm7020_vm6, %v13629_v35, 0.0  ;;  %vm14402_vm6 = vcmp.eq.f32.partialorder %v14401_v63, %v14385_v54 }
0x1c91   :  { %6997 = vmax.xlane.f32.xlu0 %v6996_v17  ;;  %v7024_v43 = vsel %vm13969_vm8, %v7022_v13, 0.0  ;;  %v14410_v13 = vld [vmem:[#allocation33_spill] sm:$0xff] }
0x1ca1   :  { %7000 = vmax.xlane.f32.xlu1 %v6999_v4 }
0x1ca5   :  { %7025 = vadd.xlane.f32.xlu1 %v7024_v43 }
0x1cbc   :  { %v8110_v10 = vpop.permute.xlu1 %8109 }
0x1cbd   :  { %v8112_v26 = vunpack.i.h.bf16 %v8110_v10  ;;  %v8111_v1 = vunpack.i.l.bf16 %v8110_v10  ;;  %v8867_v10 = vmov 1.0|1.0  }
0x1cbf   :  { %v7336_v21 = vpack.c.bf16 %v8112_v26, %v8111_v1 }
0x1cc1   :  { %7337 = vmatpush1.bf16.msk.msra.mxu1 %vm7335_vm11, %v7336_v21  ;;  %vm14404_vm11 = vcmp.eq.f32.partialorder %v14403_v16, %v14385_v54 }
0x1cc2   :  { %6790 = vmatprep.subr.bf16.mxu1 %v14332_v3 }
0x1cc4   :  { %v8116_v18 = vpop.permute.xlu0 %8115 }
0x1cc5   :  { %v8118_v7 = vunpack.i.h.bf16 %v8116_v18  ;;  %v8117_v5 = vunpack.i.l.bf16 %v8116_v18 }
0x1cc7   :  { %v7339_v45 = vpack.c.bf16 %v8118_v7, %v8117_v5 }
0x1cc9   :  { %7340 = vmatpush1.bf16.msk.msra.mxu1 %vm7338_vm15, %v7339_v45  ;;  %vm7353_vm15 = vmpackc.low %vm14404_vm11, %vm14402_vm6  ;;  %vm6838_vm6 = vcmp.eq.s32.totalorder %v14381_v0, 1  ;;  %vm6840_vm11 = vcmp.eq.s32.totalorder %v14378_v27, 0 }
0x1cca   :  { %6792 = vmatprep.subr.bf16.mxu1 %v14332_v3 }
0x1ccc   :  { %v8121_v42 = vpop.permute.xlu1 %8120 }
0x1ccd   :  { %v8123_v8 = vunpack.i.h.bf16 %v8121_v42  ;;  %v8122_v15 = vunpack.i.l.bf16 %v8121_v42 }
0x1ccf   :  { %v7342_v57 = vpack.c.bf16 %v8123_v8, %v8122_v15 }
0x1cd1   :  { %7343 = vmatpush1.bf16.msk.msra.mxu1 %vm7341_vm3, %v7342_v57  ;;  %vm14406_vm3 = vcmp.eq.f32.partialorder %v14405_v61, %v14385_v54 }
0x1cd2   :  { %6794 = vmatprep.subr.bf16.mxu1 %v14332_v3  ;;  %vm7356_vm9 = vmpackc.low %vm14408_vm4, %vm14406_vm3 }
0x1cd4   :  { %v8126_v52 = vpop.permute.xlu1 %8125 }
0x1cd5   :  { %v8128_v60 = vunpack.i.h.bf16 %v8126_v52  ;;  %v8127_v41 = vunpack.i.l.bf16 %v8126_v52 }
0x1cd7   :  { %v7345_v20 = vpack.c.bf16 %v8128_v60, %v8127_v41 }
0x1cd9   :  { %7346 = vmatpush1.bf16.msk.msra.mxu1 %vm7344_vm10, %v7345_v20  ;;  %vm14411_vm10 = vcmp.eq.f32.partialorder %v14410_v13, %v14385_v54 }
0x1cda   :  { %6796 = vmatprep.subr.bf16.mxu1 %v14332_v3  ;;  %vm7359_vm13 = vmpackc.low %vm14411_vm10, %vm427_vm7 }
0x1cdb   :  { %vm6841_vm10 = vmand %vm6838_vm6, %vm6840_vm11  ;;  %vm7032_vm6 = vcmask 7168   ;;  %vm7034_vm11 = vcmask 3072  }
0x1cdc   :  { %v8131_v2 = vpop.permute.xlu1 %8130 }
0x1cdd   :  { %v8133_v31 = vunpack.i.h.bf16 %v8131_v2  ;;  %v8132_v29 = vunpack.i.l.bf16 %v8131_v2 }
0x1cdf   :  { %v7348_v14 = vpack.c.bf16 %v8133_v31, %v8132_v29 }
0x1ce1   :  { %7349 = vmatpush1.bf16.msk.msra.mxu1 %vm7347_vm5, %v7348_v14  ;;  %vm6656_vm5 = vcmp.eq.f32.partialorder %v14380_v12, %v6652_v51  ;;  %v14412_v12 = vld [vmem:[#allocation9_spill] sm:$0xff] }
0x1ce2   :  { %6798 = vmatprep.subr.bf16.mxu1 %v14332_v3  ;;  %vm7363_vm0 = vmpackc.low %vm6656_vm5, %vm6654_vm14  ;;  %vm7021_vm7 = vcmp.eq.s32.totalorder %v14412_v12, %v14378_v27  ;;  %vm6846_vm4 = vcmp.eq.s32.totalorder %v14412_v12, 11 }
0x1ce4   :  { %v8136_v44 = vpop.permute.xlu1 %8135 }
0x1ce5   :  { %v8138_v23 = vunpack.i.h.bf16 %v8136_v44  ;;  %v8137_v6 = vunpack.i.l.bf16 %v8136_v44 }
0x1ce7   :  { %v7351_v53 = vpack.c.bf16 %v8138_v23, %v8137_v6 }
0x1ce9   :  { %7352 = vmatpush1.bf16.msk.msra.mxu1 %vm7350_vm12, %v7351_v53  ;;  %vm6835_vm12 = vcmp.le.s32.totalorder %v14378_v27, 9 }
0x1cea   :  { %6800 = vmatprep.subr.bf16.mxu1 %v14332_v3  ;;  %vm6836_vm3 = vmand %vm6829_vm1, %vm6835_vm12 }
0x1ceb   :  { %vm6843_vm5 = vmor %vm6836_vm3, %vm6841_vm10  ;;  %vm7047_vm3 = vcmask 0  }
0x1cec   :  { %v8141_v59 = vpop.permute.xlu1 %8140 }
0x1ced   :  { %v8143_v48 = vunpack.i.h.bf16 %v8141_v59  ;;  %v8142_v49 = vunpack.i.l.bf16 %v8141_v59 }
0x1cef   :  { %v7354_v38 = vpack.c.bf16 %v8143_v48, %v8142_v49 }
0x1cf1   :  { %7355 = vmatpush1.bf16.msk.msra.mxu1 %vm7353_vm15, %v7354_v38  ;;  %vm6832_vm15 = vcmp.le.s32.totalorder %v14412_v12, 10 }
0x1cf2   :  { %6802 = vmatprep.subr.bf16.mxu1 %v14332_v3 }
0x1cf4   :  { %v8146_v37 = vpop.permute.xlu1 %8145 }
0x1cf5   :  { %v8148_v58 = vunpack.i.h.bf16 %v8146_v37  ;;  %v8147_v22 = vunpack.i.l.bf16 %v8146_v37 }
0x1cf7   :  { %v7357_v9 = vpack.c.bf16 %v8148_v58, %v8147_v22 }
0x1cf9   :  { %7358 = vmatpush1.bf16.msk.msra.mxu1 %vm7356_vm9, %v7357_v9  ;;  %vm6847_vm9 = vcmp.eq.s32.totalorder %v14378_v27, 10 }
0x1cfa   :  { %6804 = vmatprep.subr.bf16.mxu1 %v14332_v3  ;;  %vm6849_vm14 = vmand %vm6846_vm4, %vm6847_vm9 }
0x1cfc   :  { %v8151_v40 = vpop.permute.xlu1 %8150 }
0x1cfd   :  { %v8153_v32 = vunpack.i.h.bf16 %v8151_v40  ;;  %v8152_v17 = vunpack.i.l.bf16 %v8151_v40 }
0x1cff   :  { %v7360_v43 = vpack.c.bf16 %v8153_v32, %v8152_v17 }
0x1d01   :  { %7361 = vmatpush1.bf16.msk.msra.mxu1 %vm7359_vm13, %v7360_v43  ;;  %vm6837_vm13 = vmand %vm6832_vm15, %vm6835_vm12  ;;  %vm14413_vm12 = vcmask 97280   ;;  %vm14414_vm15 = vcmask 93184  }
0x1d04   :  { %7364 = vmatmul.mubr.msk.bf16.vlgmr.msra.gmra.mrb[72].mxu1 %vm7363_vm0, %v8867_v10  ;;  %vm6852_vm0 = vcmp.ne.s32.totalorder %v14381_v0, %v14378_v27 }
0x1d1e   :  { %v6998_v3 = vpop.xlane.xlu0 %6997 }
0x1d1f   :  { %v7002_v26 = vsub.f32 %v13629_v35, %v6998_v3  ;;  %v7023_v35 = vsel %vm7021_vm7, %v13633_v30, 0.0  ;;  %vm6851_vm7 = vmor %vm6837_vm13, %vm6849_vm14 }
0x1d20   :  { %v7027_v33 = vsel %vm13968_vm2, %v7023_v35, 0.0 }
0x1d21   :  { %v7004_v1 = vmul.f32 1.442695, %v7002_v26 }
0x1d23   :  { %8796 = vpow2.f32 %v7004_v1 }
0x1d2d   :  { %v8797_v34 = vpop.eup %8796 }
0x1d2e   :  { %v7008_v50 = vsel %vm13969_vm8, %v8797_v34, 0.0  ;;  %v7001_v21 = vpop.xlane.xlu1 %7000  ;;  %vm6854_vm8 = vmand %vm6843_vm5, %vm6852_vm0 }
0x1d2f   :  { %7009 = vadd.xlane.f32.xlu0 %v7008_v50  ;;  %v7003_v18 = vsub.f32 %v13633_v30, %v7001_v21 }
0x1d31   :  { %v7006_v19 = vmul.f32 1.442695, %v7003_v18 }
0x1d32   :  { %v7026_v52 = vpop.xlane.xlu1 %7025 }
0x1d33   :  { %8798 = vpow2.f32 %v7006_v19 }
0x1d3d   :  { %v8799_v7 = vpop.eup %8798 }
0x1d3e   :  { %v7011_v5 = vsel %vm13968_vm2, %v8799_v7, 0.0  ;;  %vm6853_vm2 = vcmp.ne.s32.totalorder %v14412_v12, %v14378_v27 }
0x1d3f   :  { %7012 = vadd.xlane.f32.xlu0 %v7011_v5  ;;  %vm6855_vm1 = vmand %vm6851_vm7, %vm6853_vm2 }
0x1d40   :  { %vm14416_vm2 = vmmov %vm14414_vm15 }
0x1d43   :  { %7028 = vadd.xlane.f32.xlu0 %v7027_v33 }
0x1dbc   :  { %v7010_v54 = vpop.xlane.xlu0 %7009 }
0x1dbd   :  { %8800 = vlog2.f32 %v7010_v54 }
0x1dc7   :  { %v8801_v30 = vpop.eup %8800 }
0x1dc8   :  { %v7015_v45 = vmul.f32 0.6931472, %v8801_v30 }
0x1dca   :  { %v7018_v42 = vadd.f32 %v7015_v45, %v6998_v3 }
0x1dcc   :  { %v7013_v28 = vpop.xlane.xlu0 %7012  ;;  %v7030_v36 = vsub.f32 %v7018_v42, %v7026_v52 }
0x1dcd   :  { %8802 = vlog2.f32 %v7013_v28 }
0x1dce   :  { %v7033_v29 = vsel %vm7032_vm6, %v7030_v36, 0.0 }
0x1dd0   :  { %v7029_v27 = vpop.xlane.xlu0 %7028 }
0x1dd7   :  { %v8803_v8 = vpop.eup %8802  ;;  %v6822_v15 = vpop.f32.mrb[72].mxu1 }
0x1dd8   :  { %v7017_v39 = vmul.f32 0.6931472, %v8803_v8  ;;  %v6856_v11 = vsel %vm6854_vm8, %v6822_v15, -1e+10  ;;  %v6824_v57 = vpop.f32.mrb[73].mxu1  ;;  %vm14415_vm8 = vmmov %vm14413_vm12 }
0x1dd9   :  { %v6858_v60 = vsel %vm14413_vm12, %v6856_v11, -inf  ;;  %v6825_v41 = vpop.f32.mrb[74].mxu1 }
0x1dda   :  { %v7019_v24 = vadd.f32 %v7017_v39, %v7001_v21  ;;  %v6857_v20 = vsel %vm6855_vm1, %v6825_v41, -1e+10  ;;  %6859 = vmax.xlane.f32.xlu1 %v6858_v60  ;;  %v6827_v0 = vpop.f32.mrb[75].mxu1 }
0x1ddb   :  { %v6862_v2 = vsel %vm14414_vm15, %v6857_v20, -inf }
0x1ddc   :  { %v7031_v31 = vsub.f32 %v7019_v24, %v7029_v27  ;;  %6863 = vmax.xlane.f32.xlu0 %v6862_v2 }
0x1dde   :  { %v7035_v56 = vsel %vm7034_vm11, %v7031_v31, 0.0 }
0x1ddf   :  { %v7036_v62 = vadd.f32 %v7035_v56, %v7033_v29 }
0x1de1   :  { %7037 = vadd.xlane.f32.xlu1 %v7036_v62 }
0x1e67   :  { %v6860_v14 = vpop.xlane.xlu1 %6859 }
0x1e68   :  { %v6865_v44 = vsub.f32 %v6856_v11, %v6860_v14 }
0x1e69   :  { %v6864_v23 = vpop.xlane.xlu0 %6863 }
0x1e6a   :  { %v6867_v6 = vmul.f32 1.442695, %v6865_v44  ;;  %v6866_v55 = vsub.f32 %v6857_v20, %v6864_v23 }
0x1e6c   :  { %8804 = vpow2.f32 %v6867_v6  ;;  %v6869_v46 = vmul.f32 1.442695, %v6866_v55 }
0x1e6e   :  { %8806 = vpow2.f32 %v6869_v46  ;;  %v7038_v53 = vpop.xlane.xlu1 %7037 }
0x1e6f   :  { %v7039_v59 = vrot.slane %v7038_v53, 4 }
0x1e71   :  { %v7040_v48 = vadd.f32 %v7039_v59, %v7038_v53 }
0x1e73   :  { %v7041_v49 = vrot.slane %v7040_v48, 2 }
0x1e75   :  { %v7042_v63 = vadd.f32 %v7041_v49, %v7040_v48 }
0x1e76   :  { %v8805_v16 = vpop.eup %8804 }
0x1e77   :  { %v6871_v38 = vsel %vm14415_vm8, %v8805_v16, 0.0  ;;  %v7043_v37 = vrot.slane %v7042_v63, 1 }
0x1e78   :  { %v8807_v58 = vpop.eup %8806  ;;  %6872 = vadd.xlane.f32.xlu0 %v6871_v38 }
0x1e79   :  { %v6874_v22 = vsel %vm14416_vm2, %v8807_v58, 0.0  ;;  %v7044_v61 = vadd.f32 %v7043_v37, %v7042_v63 }
0x1e7a   :  { %6875 = vadd.xlane.f32.xlu1 %v6874_v22 }
0x1e7b   :  { %8088 = vpush %v7044_v61 }
0x1eac   :  { %s8089_s30 = spop %8088 }
0x1ead   :  { %v7046_v25 = vstv %s8089_s30 }
0x1eae   :  { %7048 = vst.msk [vmem:[#allocation4] sm:$0x1] %vm7047_vm3, %v7046_v25 }
0x1eaf   :  { %8823 = shalt.err (!%p8820_p4)
}
0x1eb0   :  { %s8824_s10 = scalar_lea.hbm %s13757_s4, 16 }
0x1eb1   :  { %p8825_p5 = scmp.ne.s32.totalorder %s13757_s4, %s8824_s10  ;;  %p8828_p6 = scmp.lt.u32.totalorder %s8824_s10, %s13757_s4 }
0x1eb3   :  { %p8830_p7 = pnand %p8828_p6, %p8825_p5 }
0x1eb5   :  { %8833 = shalt.err (!%p8830_p7)
}
0x1eb6   :  { %7070 = dma.vmem_to_hbm [thread:$0]  %s7068_s29, 16, %s13757_s4, [#allocation5]   ;;  %vm14417_vm4 = vmmov %vm14415_vm8 }
0x1eb7   :  { %s8869_s17 = smov [#allocation2]   ;;  %vm14418_vm9 = vmmov %vm14416_vm2 }
0x1eb8   :  { %s7054_s18 = sshll.u32 %s8869_s17, 4  ;;  %s7055_s18 = int_to_ptr.vmem [resolvable:$true] %s7054_s18 }
0x1eb9   :  { %s8834_s19 = scalar_lea.vmem %s7055_s18, 256  ;;  %p8839_p9 = scmp.lt.s32.totalorder %s7055_s18, %s7055_s18 }
0x1eba   :  { %p8835_p8 = scmp.ne.s32.totalorder %s7055_s18, %s8834_s19  ;;  %p8840_p10 = scmp.lt.s32.totalorder %s8834_s19, %s8834_s19 }
0x1ebc   :  { %p8841_p11 = por %p8840_p10, %p8839_p9 }
0x1ebe   :  { %p8842_p12 = pnand %p8841_p11, %p8835_p8 }
0x1f05   :  { %v6873_v47 = vpop.xlane.xlu0 %6872 }
0x1f06   :  { %8808 = vrcp.f32 %v6873_v47 }
0x1f07   :  { %v6876_v9 = vpop.xlane.xlu1 %6875 }
0x1f08   :  { %8810 = vrcp.f32 %v6876_v9 }
0x1f10   :  { %v8809_v51 = vpop.eup %8808 }
0x1f11   :  { %v6878_v40 = vmul.f32 %v8809_v51, %v8805_v16 }
0x1f12   :  { %v8811_v32 = vpop.eup %8810 }
0x1f13   :  { %v6880_v17 = vmul.f32 %v8811_v32, %v8807_v58  ;;  %v6881_v4 = vadd.f32 1e-06, %v6878_v40 }
0x1f15   :  { %v6882_v13 = vadd.f32 1e-06, %v6880_v17  ;;  %6883 = vst.msk [vmem:[#allocation2] sm:$0xff] %vm14417_vm4, %v6881_v4 }
0x1f17   :  { %6884 = vst.msk [vmem:[#allocation2 + $0x8] sm:$0xf] %vm14418_vm9, %v6882_v13 }
0x1f18   :  { %8845 = shalt.err (!%p8842_p12)
}
0x1f19   :  { %s8846_s20 = scalar_lea.hbm %s13756_s3, 256 }
0x1f1a   :  { %p8847_p13 = scmp.ne.s32.totalorder %s13756_s3, %s8846_s20  ;;  %p8850_p0 = scmp.lt.u32.totalorder %s8846_s20, %s13756_s3 }
0x1f1c   :  { %p8852_p1 = pnand %p8850_p0, %p8847_p13 }
0x1f1e   :  { %8855 = shalt.err (!%p8852_p1)
}
0x1f1f   :  { %s8870_s1 = smov 128   ;;  %s8871_s0 = smov 8  }
0x1f20   :  { %7060 = dma.vmem_to_hbm [thread:$0]  %s7055_s18, 256, %s13756_s3, [#allocation3], %s8870_s1, %s8870_s1, %s8871_s0  }
0x1f21   :  { %8856 = dma.done.wait [#allocation3], 256  }
0x1f22   :  { %8857 = vsyncadd [#allocation3], 4294967040 }
0x1f23   :  { %8858 = dma.done.wait [#allocation5], 16  }
0x1f24   :  { %8859 = vsyncadd [#allocation5], 4294967280 }
0x1f25   :  { %7077 = vsyncpa [#allocation3], 1 }
0x1f26   :  { %7078 = vsyncpa [#allocation5], 1 }

</bundles_post_ra>
